<compile_context>
chip_gen: v5e
topology: v5e:2x2
jax: 0.10.0
libtpu: 0.0.40
codegen_flags: <defaults>
</compile_context>

<pallas_src>
import jax
import jax.numpy as jnp
import numpy as np
from jax.experimental import pallas as pl
from jax.experimental.pallas import tpu as pltpu

N_FLAT = 384          # 19*19 = 361 spatial positions padded to 3*128 lanes
N_GROUPS = 16         # (row parity a, col parity b, pool1 tap di, dj)


# ------------------------- fused conv/pool/fc kernel ------------------------ #

def _cnn_kernel(pt_ref, w1_ref, b1_ref, w2_ref, b2_ref, wf_ref, bf_ref, o_ref):
    # pt_ref: (n_img, 12, 16*384)  w1: (8,12)  b1: (8,1)
    # w2: (32,32) [conv2 taps stacked on K]  b2: (32,1)
    # wf: (10, 32, 384) zero-padded FC weight,  bf: (1,10),  o: (n_img, 1, 10)
    n_img = pt_ref.shape[0]
    w1 = w1_ref[...]
    w2 = w2_ref[...]
    b1b = jnp.broadcast_to(b1_ref[...], (8, N_FLAT))      # hoisted broadcasts
    b2b = jnp.broadcast_to(b2_ref[...], (32, N_FLAT))
    bf = bf_ref[...]

    def shl(x, k):  # x'[:, f] = x[:, f + k]   (lane shift, wrap lands in junk lanes)
        return jnp.concatenate([x[:, k:], x[:, :k]], axis=1)

    for i in range(n_img):
        # ---- conv1 (+bias+ReLU) + pool1: one wide MXU matmul, aligned maxes
        c1 = jnp.dot(w1, pt_ref[i], preferred_element_type=jnp.float32)  # (8,6144)
        P = {}
        for a in range(2):
            for b in range(2):
                g0 = (2 * a + b) * 4
                t0 = c1[:, (g0 + 0) * N_FLAT:(g0 + 1) * N_FLAT]
                t1 = c1[:, (g0 + 1) * N_FLAT:(g0 + 2) * N_FLAT]
                t2 = c1[:, (g0 + 2) * N_FLAT:(g0 + 3) * N_FLAT]
                t3 = c1[:, (g0 + 3) * N_FLAT:(g0 + 4) * N_FLAT]
                m = jnp.maximum(jnp.maximum(t0, t1), jnp.maximum(t2, t3))
                # P[a,b][c, 19*ph+qh] = pooled1[c, 2ph+a, 2qh+b]
                P[(a, b)] = jnp.maximum(m + b1b, 0.0)                    # (8,384)

        # ---- 3x3 pooled1 neighbourhood maps (flat 19x19 lane layout)
        nb = {
            (0, 0): P[(0, 0)], (0, 1): P[(0, 1)], (0, 2): shl(P[(0, 0)], 1),
            (1, 0): P[(1, 0)], (1, 1): P[(1, 1)], (1, 2): shl(P[(1, 0)], 1),
            (2, 0): shl(P[(0, 0)], 19), (2, 1): shl(P[(0, 1)], 19),
            (2, 2): shl(P[(0, 0)], 20),
        }

        # ---- conv2 (+bias+ReLU) + pool2: one (32,32)@(32,1536) matmul
        cols = []
        for di in range(2):
            for dj in range(2):
                cols.append(jnp.concatenate(
                    [nb[(di, dj)], nb[(di, dj + 1)],
                     nb[(di + 1, dj)], nb[(di + 1, dj + 1)]], axis=0))   # (32,384)
        big = jnp.concatenate(cols, axis=1)                              # (32,1536)
        t = jnp.dot(w2, big, preferred_element_type=jnp.float32)         # (32,1536)
        m = jnp.maximum(
            jnp.maximum(t[:, 0:N_FLAT], t[:, N_FLAT:2 * N_FLAT]),
            jnp.maximum(t[:, 2 * N_FLAT:3 * N_FLAT], t[:, 3 * N_FLAT:4 * N_FLAT]))
        p2 = jnp.maximum(m + b2b, 0.0)                                   # (32,384)

        # ---- fused FC epilogue: Frobenius products with 10 zero-padded planes
        q = jnp.concatenate(
            [jnp.sum(p2 * wf_ref[n], axis=-1, keepdims=True) for n in range(10)],
            axis=1)                                                      # (32,10)
        o_ref[i] = jnp.sum(q, axis=0, keepdims=True) + bf                # (1,10)


# ------------------------------ host-side prep ------------------------------ #

def _make_patches(x):
    """(B,3,148,148) -> (B, 12, 16*384): pad + reshape + ONE transpose, no gather.

    lane = 384*(8a+4b+2di+dj) + 19*ph + qh ,  sublane = 4*ci+2*kh+kw
    value = x[b, ci, 8ph+4a+2di+kh, 8qh+4b+2dj+kw]  (zero in padding)."""
    B = x.shape[0]
    xp = jnp.pad(x, ((0, 0), (0, 0), (0, 4), (0, 4)))        # (B,3,152,152)
    t = xp.reshape(B, 3, 19, 2, 2, 2, 19, 2, 2, 2)           # b ci ph a di kh qh b2 dj kw
    t = jnp.transpose(t, (0, 1, 5, 9, 3, 7, 4, 8, 2, 6))     # b ci kh kw a b2 di dj ph qh
    t = t.reshape(B, 12, 16, 361)
    t = jnp.pad(t, ((0, 0), (0, 0), (0, 0), (0, N_FLAT - 361)))
    return t.reshape(B, 12, 16 * N_FLAT)


def init_params(key):
    k1, k2, k3, k4, k5, k6 = jax.random.split(key, 6)
    w1 = jax.random.normal(k1, (8, 3, 2, 2), jnp.float32) * 0.1    # OIHW
    b1 = jax.random.normal(k2, (8,), jnp.float32) * 0.01
    w2 = jax.random.normal(k3, (32, 8, 2, 2), jnp.float32) * 0.1   # OIHW
    b2 = jax.random.normal(k4, (32,), jnp.float32) * 0.01
    wf = jax.random.normal(k5, (10, 10368), jnp.float32) * 0.01    # (out, in)
    bf = jax.random.normal(k6, (10,), jnp.float32) * 0.01
    return (w1, b1, w2, b2, wf, bf)


@jax.jit
def cnn_forward(x, params):
    """x: (B, 3, 148, 148) NCHW float32 -> (B, 10)."""
    w1, b1, w2, b2, wf, bf = params
    B = x.shape[0]

    # images per grid step: as large as possible while keeping >=2 steps (megacore)
    n_img = 1
    for c in (8, 4, 2):
        if B % c == 0 and B // c >= 2:
            n_img = c
            break
    assert B % n_img == 0

    patches = _make_patches(x)                                    # (B,12,6144)
    w1m = w1.reshape(8, 12)                                       # (out, ci*kh*kw)
    w2m = jnp.transpose(w2, (0, 2, 3, 1)).reshape(32, 32)         # (out, (dh,dw,ci))
    # FC weight permuted to the kernel layout, zero-padded so junk lanes -> 0
    wfr = wf.reshape(10, 32, 18, 18)
    wfr = jnp.pad(wfr, ((0, 0), (0, 0), (0, 1), (0, 1))).reshape(10, 32, 361)
    wfr = jnp.pad(wfr, ((0, 0), (0, 0), (0, N_FLAT - 361)))       # (10,32,384)

    out = pl.pallas_call(
        _cnn_kernel,
        out_shape=jax.ShapeDtypeStruct((B, 1, 10), jnp.float32),
        grid=(B // n_img,),
        in_specs=[
            pl.BlockSpec((n_img, 12, 16 * N_FLAT), lambda i: (i, 0, 0)),
            pl.BlockSpec((8, 12), lambda i: (0, 0)),
            pl.BlockSpec((8, 1), lambda i: (0, 0)),
            pl.BlockSpec((32, 32), lambda i: (0, 0)),
            pl.BlockSpec((32, 1), lambda i: (0, 0)),
            pl.BlockSpec((10, 32, N_FLAT), lambda i: (0, 0, 0)),
            pl.BlockSpec((1, 10), lambda i: (0, 0)),
        ],
        out_specs=pl.BlockSpec((n_img, 1, 10), lambda i: (i, 0, 0)),
        compiler_params=pltpu.CompilerParams(
            dimension_semantics=("parallel",)),
    )(patches, w1m, b1.reshape(8, 1), w2m, b2.reshape(32, 1),
      wfr, bf.reshape(1, 10))
    return out[:, 0, :]


# ---------------------------- pure-JAX reference ---------------------------- #

def reference_forward(x, params):
    w1, b1, w2, b2, wf, bf = params
    dn = ("NCHW", "OIHW", "NCHW")
    y = jax.lax.conv_general_dilated(x, w1, (2, 2), "VALID", dimension_numbers=dn)
    y = jnp.maximum(y + b1[None, :, None, None], 0.0)
    y = jax.lax.reduce_window(y, -jnp.inf, jax.lax.max,
                              (1, 1, 2, 2), (1, 1, 2, 2), "VALID")
    y = jax.lax.conv_general_dilated(y, w2, (1, 1), "VALID", dimension_numbers=dn)
    y = jnp.maximum(y + b2[None, :, None, None], 0.0)
    y = jax.lax.reduce_window(y, -jnp.inf, jax.lax.max,
                              (1, 1, 2, 2), (1, 1, 2, 2), "VALID")
    y = y.reshape(y.shape[0], -1)
    return y @ wf.T + bf


# ----------------------------------- main ------------------------------------ #

if __name__ == "__main__":
    key = jax.random.PRNGKey(0)
    kx, kp = jax.random.split(key)

    # fc expects 10368 = 32*18*18 features => input spatial must be 148x148.
    B = 8
    x = jax.random.normal(kx, (B, 3, 148, 148), jnp.float32)
    params = init_params(kp)

    out = jax.block_until_ready(cnn_forward(x, params))
    ref = jax.block_until_ready(reference_forward(x, params))

    assert out.shape == (B, 10)
    np.testing.assert_allclose(np.asarray(out), np.asarray(ref),
                               rtol=2e-4, atol=2e-4)

    print("KERNEL_OK")
</pallas_src>

<mosaic_0001>
module attributes {stable_mosaic.version = 11 : i64} {
  func.func @_cnn_kernel(%arg0: i32, %arg1: memref<4x12x6144xf32, #tpu.memory_space<vmem>>, %arg2: memref<8x12xf32, #tpu.memory_space<vmem>>, %arg3: memref<8x1xf32, #tpu.memory_space<vmem>>, %arg4: memref<32x32xf32, #tpu.memory_space<vmem>>, %arg5: memref<32x1xf32, #tpu.memory_space<vmem>>, %arg6: memref<10x32x384xf32, #tpu.memory_space<vmem>>, %arg7: memref<1x10xf32, #tpu.memory_space<vmem>>, %arg8: memref<4x1x10xf32, #tpu.memory_space<vmem>>) attributes {dimension_semantics = [#tpu.dimension_semantics<parallel>], iteration_bounds = array<i64: 2>, scalar_prefetch = 0 : i64, scratch_operands = 0 : i64, tpu.core_type = #tpu.core_type<tc>, window_params = [{transform_indices = @transform_0, window_bounds = array<i64: 4, 12, 6144>}, {pipeline_mode = #tpu.pipeline_mode<synchronous>, transform_indices = @transform_1, window_bounds = array<i64: 8, 12>}, {pipeline_mode = #tpu.pipeline_mode<synchronous>, transform_indices = @transform_2, window_bounds = array<i64: 8, 1>}, {pipeline_mode = #tpu.pipeline_mode<synchronous>, transform_indices = @transform_3, window_bounds = array<i64: 32, 32>}, {pipeline_mode = #tpu.pipeline_mode<synchronous>, transform_indices = @transform_4, window_bounds = array<i64: 32, 1>}, {pipeline_mode = #tpu.pipeline_mode<synchronous>, transform_indices = @transform_5, window_bounds = array<i64: 10, 32, 384>}, {pipeline_mode = #tpu.pipeline_mode<synchronous>, transform_indices = @transform_6, window_bounds = array<i64: 1, 10>}, {transform_indices = @transform_7, window_bounds = array<i64: 4, 1, 10>}]} {
    %c0 = arith.constant 0 : index
    %c0_0 = arith.constant 0 : index
    %0 = vector.load %arg2[%c0, %c0_0] : memref<8x12xf32, #tpu.memory_space<vmem>>, vector<8x12xf32>
    %c0_1 = arith.constant 0 : index
    %c0_2 = arith.constant 0 : index
    %1 = vector.load %arg4[%c0_1, %c0_2] : memref<32x32xf32, #tpu.memory_space<vmem>>, vector<32x32xf32>
    %c0_3 = arith.constant 0 : index
    %c0_4 = arith.constant 0 : index
    %2 = vector.load %arg3[%c0_3, %c0_4] : memref<8x1xf32, #tpu.memory_space<vmem>>, vector<8x1xf32>
    %3 = vector.shape_cast %2 : vector<8x1xf32> to vector<8x1xf32>
    %4 = vector.broadcast %3 : vector<8x1xf32> to vector<8x384xf32>
    %c0_5 = arith.constant 0 : index
    %c0_6 = arith.constant 0 : index
    %5 = vector.load %arg5[%c0_5, %c0_6] : memref<32x1xf32, #tpu.memory_space<vmem>>, vector<32x1xf32>
    %6 = vector.shape_cast %5 : vector<32x1xf32> to vector<32x1xf32>
    %7 = vector.broadcast %6 : vector<32x1xf32> to vector<32x384xf32>
    %c0_7 = arith.constant 0 : index
    %c0_8 = arith.constant 0 : index
    %8 = vector.load %arg7[%c0_7, %c0_8] : memref<1x10xf32, #tpu.memory_space<vmem>>, vector<1x10xf32>
    %c0_9 = arith.constant 0 : index
    %c0_10 = arith.constant 0 : index
    %c0_11 = arith.constant 0 : index
    %9 = vector.load %arg1[%c0_9, %c0_10, %c0_11] : memref<4x12x6144xf32, #tpu.memory_space<vmem>>, vector<1x12x6144xf32>
    %10 = vector.shape_cast %9 : vector<1x12x6144xf32> to vector<12x6144xf32>
    %cst = arith.constant dense<0.000000e+00> : vector<8x6144xf32>
    %11 = tpu.matmul %0, %10, %cst {dimension_numbers = #tpu.dot_dimension_numbers<[1], [0], [0], [1], [0, 0, 1, 1], [], []>} : vector<8x12xf32>, vector<12x6144xf32>, vector<8x6144xf32> -> vector<8x6144xf32>
    %12 = vector.extract_strided_slice %11 {offsets = [0, 0], sizes = [8, 384], strides = [1, 1]} : vector<8x6144xf32> to vector<8x384xf32>
    %13 = vector.extract_strided_slice %11 {offsets = [0, 384], sizes = [8, 384], strides = [1, 1]} : vector<8x6144xf32> to vector<8x384xf32>
    %14 = vector.extract_strided_slice %11 {offsets = [0, 768], sizes = [8, 384], strides = [1, 1]} : vector<8x6144xf32> to vector<8x384xf32>
    %15 = vector.extract_strided_slice %11 {offsets = [0, 1152], sizes = [8, 384], strides = [1, 1]} : vector<8x6144xf32> to vector<8x384xf32>
    %16 = arith.maximumf %12, %13 : vector<8x384xf32>
    %17 = arith.maximumf %14, %15 : vector<8x384xf32>
    %18 = arith.maximumf %16, %17 : vector<8x384xf32>
    %19 = arith.addf %18, %4 : vector<8x384xf32>
    %cst_12 = arith.constant 0.000000e+00 : f32
    %20 = vector.broadcast %cst_12 : f32 to vector<8x384xf32>
    %21 = arith.maximumf %19, %20 : vector<8x384xf32>
    %22 = vector.extract_strided_slice %11 {offsets = [0, 1536], sizes = [8, 384], strides = [1, 1]} : vector<8x6144xf32> to vector<8x384xf32>
    %23 = vector.extract_strided_slice %11 {offsets = [0, 1920], sizes = [8, 384], strides = [1, 1]} : vector<8x6144xf32> to vector<8x384xf32>
    %24 = vector.extract_strided_slice %11 {offsets = [0, 2304], sizes = [8, 384], strides = [1, 1]} : vector<8x6144xf32> to vector<8x384xf32>
    %25 = vector.extract_strided_slice %11 {offsets = [0, 2688], sizes = [8, 384], strides = [1, 1]} : vector<8x6144xf32> to vector<8x384xf32>
    %26 = arith.maximumf %22, %23 : vector<8x384xf32>
    %27 = arith.maximumf %24, %25 : vector<8x384xf32>
    %28 = arith.maximumf %26, %27 : vector<8x384xf32>
    %29 = arith.addf %28, %4 : vector<8x384xf32>
    %cst_13 = arith.constant 0.000000e+00 : f32
    %30 = vector.broadcast %cst_13 : f32 to vector<8x384xf32>
    %31 = arith.maximumf %29, %30 : vector<8x384xf32>
    %32 = vector.extract_strided_slice %11 {offsets = [0, 3072], sizes = [8, 384], strides = [1, 1]} : vector<8x6144xf32> to vector<8x384xf32>
    %33 = vector.extract_strided_slice %11 {offsets = [0, 3456], sizes = [8, 384], strides = [1, 1]} : vector<8x6144xf32> to vector<8x384xf32>
    %34 = vector.extract_strided_slice %11 {offsets = [0, 3840], sizes = [8, 384], strides = [1, 1]} : vector<8x6144xf32> to vector<8x384xf32>
    %35 = vector.extract_strided_slice %11 {offsets = [0, 4224], sizes = [8, 384], strides = [1, 1]} : vector<8x6144xf32> to vector<8x384xf32>
    %36 = arith.maximumf %32, %33 : vector<8x384xf32>
    %37 = arith.maximumf %34, %35 : vector<8x384xf32>
    %38 = arith.maximumf %36, %37 : vector<8x384xf32>
    %39 = arith.addf %38, %4 : vector<8x384xf32>
    %cst_14 = arith.constant 0.000000e+00 : f32
    %40 = vector.broadcast %cst_14 : f32 to vector<8x384xf32>
    %41 = arith.maximumf %39, %40 : vector<8x384xf32>
    %42 = vector.extract_strided_slice %11 {offsets = [0, 4608], sizes = [8, 384], strides = [1, 1]} : vector<8x6144xf32> to vector<8x384xf32>
    %43 = vector.extract_strided_slice %11 {offsets = [0, 4992], sizes = [8, 384], strides = [1, 1]} : vector<8x6144xf32> to vector<8x384xf32>
    %44 = vector.extract_strided_slice %11 {offsets = [0, 5376], sizes = [8, 384], strides = [1, 1]} : vector<8x6144xf32> to vector<8x384xf32>
    %45 = vector.extract_strided_slice %11 {offsets = [0, 5760], sizes = [8, 384], strides = [1, 1]} : vector<8x6144xf32> to vector<8x384xf32>
    %46 = arith.maximumf %42, %43 : vector<8x384xf32>
    %47 = arith.maximumf %44, %45 : vector<8x384xf32>
    %48 = arith.maximumf %46, %47 : vector<8x384xf32>
    %49 = arith.addf %48, %4 : vector<8x384xf32>
    %cst_15 = arith.constant 0.000000e+00 : f32
    %50 = vector.broadcast %cst_15 : f32 to vector<8x384xf32>
    %51 = arith.maximumf %49, %50 : vector<8x384xf32>
    %52 = vector.extract_strided_slice %21 {offsets = [0, 1], sizes = [8, 383], strides = [1, 1]} : vector<8x384xf32> to vector<8x383xf32>
    %53 = vector.extract_strided_slice %21 {offsets = [0, 0], sizes = [8, 1], strides = [1, 1]} : vector<8x384xf32> to vector<8x1xf32>
    %54 = tpu.concatenate %52, %53 in 1 : vector<8x383xf32>, vector<8x1xf32> -> vector<8x384xf32>
    %55 = vector.extract_strided_slice %41 {offsets = [0, 1], sizes = [8, 383], strides = [1, 1]} : vector<8x384xf32> to vector<8x383xf32>
    %56 = vector.extract_strided_slice %41 {offsets = [0, 0], sizes = [8, 1], strides = [1, 1]} : vector<8x384xf32> to vector<8x1xf32>
    %57 = tpu.concatenate %55, %56 in 1 : vector<8x383xf32>, vector<8x1xf32> -> vector<8x384xf32>
    %58 = vector.extract_strided_slice %21 {offsets = [0, 19], sizes = [8, 365], strides = [1, 1]} : vector<8x384xf32> to vector<8x365xf32>
    %59 = vector.extract_strided_slice %21 {offsets = [0, 0], sizes = [8, 19], strides = [1, 1]} : vector<8x384xf32> to vector<8x19xf32>
    %60 = tpu.concatenate %58, %59 in 1 : vector<8x365xf32>, vector<8x19xf32> -> vector<8x384xf32>
    %61 = vector.extract_strided_slice %31 {offsets = [0, 19], sizes = [8, 365], strides = [1, 1]} : vector<8x384xf32> to vector<8x365xf32>
    %62 = vector.extract_strided_slice %31 {offsets = [0, 0], sizes = [8, 19], strides = [1, 1]} : vector<8x384xf32> to vector<8x19xf32>
    %63 = tpu.concatenate %61, %62 in 1 : vector<8x365xf32>, vector<8x19xf32> -> vector<8x384xf32>
    %64 = vector.extract_strided_slice %21 {offsets = [0, 20], sizes = [8, 364], strides = [1, 1]} : vector<8x384xf32> to vector<8x364xf32>
    %65 = vector.extract_strided_slice %21 {offsets = [0, 0], sizes = [8, 20], strides = [1, 1]} : vector<8x384xf32> to vector<8x20xf32>
    %66 = tpu.concatenate %64, %65 in 1 : vector<8x364xf32>, vector<8x20xf32> -> vector<8x384xf32>
    %67 = tpu.concatenate %21, %31, %41, %51 in 0 : vector<8x384xf32>, vector<8x384xf32>, vector<8x384xf32>, vector<8x384xf32> -> vector<32x384xf32>
    %68 = tpu.concatenate %31, %54, %51, %57 in 0 : vector<8x384xf32>, vector<8x384xf32>, vector<8x384xf32>, vector<8x384xf32> -> vector<32x384xf32>
    %69 = tpu.concatenate %41, %51, %60, %63 in 0 : vector<8x384xf32>, vector<8x384xf32>, vector<8x384xf32>, vector<8x384xf32> -> vector<32x384xf32>
    %70 = tpu.concatenate %51, %57, %63, %66 in 0 : vector<8x384xf32>, vector<8x384xf32>, vector<8x384xf32>, vector<8x384xf32> -> vector<32x384xf32>
    %71 = tpu.concatenate %67, %68, %69, %70 in 1 : vector<32x384xf32>, vector<32x384xf32>, vector<32x384xf32>, vector<32x384xf32> -> vector<32x1536xf32>
    %cst_16 = arith.constant dense<0.000000e+00> : vector<32x1536xf32>
    %72 = tpu.matmul %1, %71, %cst_16 {dimension_numbers = #tpu.dot_dimension_numbers<[1], [0], [0], [1], [0, 0, 1, 1], [], []>} : vector<32x32xf32>, vector<32x1536xf32>, vector<32x1536xf32> -> vector<32x1536xf32>
    %73 = vector.extract_strided_slice %72 {offsets = [0, 0], sizes = [32, 384], strides = [1, 1]} : vector<32x1536xf32> to vector<32x384xf32>
    %74 = vector.extract_strided_slice %72 {offsets = [0, 384], sizes = [32, 384], strides = [1, 1]} : vector<32x1536xf32> to vector<32x384xf32>
    %75 = arith.maximumf %73, %74 : vector<32x384xf32>
    %76 = vector.extract_strided_slice %72 {offsets = [0, 768], sizes = [32, 384], strides = [1, 1]} : vector<32x1536xf32> to vector<32x384xf32>
    %77 = vector.extract_strided_slice %72 {offsets = [0, 1152], sizes = [32, 384], strides = [1, 1]} : vector<32x1536xf32> to vector<32x384xf32>
    %78 = arith.maximumf %76, %77 : vector<32x384xf32>
    %79 = arith.maximumf %75, %78 : vector<32x384xf32>
    %80 = arith.addf %79, %7 : vector<32x384xf32>
    %cst_17 = arith.constant 0.000000e+00 : f32
    %81 = vector.broadcast %cst_17 : f32 to vector<32x384xf32>
    %82 = arith.maximumf %80, %81 : vector<32x384xf32>
    %c0_18 = arith.constant 0 : index
    %c0_19 = arith.constant 0 : index
    %c0_20 = arith.constant 0 : index
    %83 = vector.load %arg6[%c0_18, %c0_19, %c0_20] : memref<10x32x384xf32, #tpu.memory_space<vmem>>, vector<1x32x384xf32>
    %84 = vector.shape_cast %83 : vector<1x32x384xf32> to vector<32x384xf32>
    %85 = arith.mulf %82, %84 : vector<32x384xf32>
    %cst_21 = arith.constant dense<0.000000e+00> : vector<32xf32>
    %86 = vector.multi_reduction <add>, %85, %cst_21 [1] : vector<32x384xf32> to vector<32xf32>
    %87 = vector.shape_cast %86 : vector<32xf32> to vector<32x1xf32>
    %c1 = arith.constant 1 : index
    %c0_22 = arith.constant 0 : index
    %c0_23 = arith.constant 0 : index
    %88 = vector.load %arg6[%c1, %c0_22, %c0_23] : memref<10x32x384xf32, #tpu.memory_space<vmem>>, vector<1x32x384xf32>
    %89 = vector.shape_cast %88 : vector<1x32x384xf32> to vector<32x384xf32>
    %90 = arith.mulf %82, %89 : vector<32x384xf32>
    %cst_24 = arith.constant dense<0.000000e+00> : vector<32xf32>
    %91 = vector.multi_reduction <add>, %90, %cst_24 [1] : vector<32x384xf32> to vector<32xf32>
    %92 = vector.shape_cast %91 : vector<32xf32> to vector<32x1xf32>
    %c2 = arith.constant 2 : index
    %c0_25 = arith.constant 0 : index
    %c0_26 = arith.constant 0 : index
    %93 = vector.load %arg6[%c2, %c0_25, %c0_26] : memref<10x32x384xf32, #tpu.memory_space<vmem>>, vector<1x32x384xf32>
    %94 = vector.shape_cast %93 : vector<1x32x384xf32> to vector<32x384xf32>
    %95 = arith.mulf %82, %94 : vector<32x384xf32>
    %cst_27 = arith.constant dense<0.000000e+00> : vector<32xf32>
    %96 = vector.multi_reduction <add>, %95, %cst_27 [1] : vector<32x384xf32> to vector<32xf32>
    %97 = vector.shape_cast %96 : vector<32xf32> to vector<32x1xf32>
    %c3 = arith.constant 3 : index
    %c0_28 = arith.constant 0 : index
    %c0_29 = arith.constant 0 : index
    %98 = vector.load %arg6[%c3, %c0_28, %c0_29] : memref<10x32x384xf32, #tpu.memory_space<vmem>>, vector<1x32x384xf32>
    %99 = vector.shape_cast %98 : vector<1x32x384xf32> to vector<32x384xf32>
    %100 = arith.mulf %82, %99 : vector<32x384xf32>
    %cst_30 = arith.constant dense<0.000000e+00> : vector<32xf32>
    %101 = vector.multi_reduction <add>, %100, %cst_30 [1] : vector<32x384xf32> to vector<32xf32>
    %102 = vector.shape_cast %101 : vector<32xf32> to vector<32x1xf32>
    %c4 = arith.constant 4 : index
    %c0_31 = arith.constant 0 : index
    %c0_32 = arith.constant 0 : index
    %103 = vector.load %arg6[%c4, %c0_31, %c0_32] : memref<10x32x384xf32, #tpu.memory_space<vmem>>, vector<1x32x384xf32>
    %104 = vector.shape_cast %103 : vector<1x32x384xf32> to vector<32x384xf32>
    %105 = arith.mulf %82, %104 : vector<32x384xf32>
    %cst_33 = arith.constant dense<0.000000e+00> : vector<32xf32>
    %106 = vector.multi_reduction <add>, %105, %cst_33 [1] : vector<32x384xf32> to vector<32xf32>
    %107 = vector.shape_cast %106 : vector<32xf32> to vector<32x1xf32>
    %c5 = arith.constant 5 : index
    %c0_34 = arith.constant 0 : index
    %c0_35 = arith.constant 0 : index
    %108 = vector.load %arg6[%c5, %c0_34, %c0_35] : memref<10x32x384xf32, #tpu.memory_space<vmem>>, vector<1x32x384xf32>
    %109 = vector.shape_cast %108 : vector<1x32x384xf32> to vector<32x384xf32>
    %110 = arith.mulf %82, %109 : vector<32x384xf32>
    %cst_36 = arith.constant dense<0.000000e+00> : vector<32xf32>
    %111 = vector.multi_reduction <add>, %110, %cst_36 [1] : vector<32x384xf32> to vector<32xf32>
    %112 = vector.shape_cast %111 : vector<32xf32> to vector<32x1xf32>
    %c6 = arith.constant 6 : index
    %c0_37 = arith.constant 0 : index
    %c0_38 = arith.constant 0 : index
    %113 = vector.load %arg6[%c6, %c0_37, %c0_38] : memref<10x32x384xf32, #tpu.memory_space<vmem>>, vector<1x32x384xf32>
    %114 = vector.shape_cast %113 : vector<1x32x384xf32> to vector<32x384xf32>
    %115 = arith.mulf %82, %114 : vector<32x384xf32>
    %cst_39 = arith.constant dense<0.000000e+00> : vector<32xf32>
    %116 = vector.multi_reduction <add>, %115, %cst_39 [1] : vector<32x384xf32> to vector<32xf32>
    %117 = vector.shape_cast %116 : vector<32xf32> to vector<32x1xf32>
    %c7 = arith.constant 7 : index
    %c0_40 = arith.constant 0 : index
    %c0_41 = arith.constant 0 : index
    %118 = vector.load %arg6[%c7, %c0_40, %c0_41] : memref<10x32x384xf32, #tpu.memory_space<vmem>>, vector<1x32x384xf32>
    %119 = vector.shape_cast %118 : vector<1x32x384xf32> to vector<32x384xf32>
    %120 = arith.mulf %82, %119 : vector<32x384xf32>
    %cst_42 = arith.constant dense<0.000000e+00> : vector<32xf32>
    %121 = vector.multi_reduction <add>, %120, %cst_42 [1] : vector<32x384xf32> to vector<32xf32>
    %122 = vector.shape_cast %121 : vector<32xf32> to vector<32x1xf32>
    %c8 = arith.constant 8 : index
    %c0_43 = arith.constant 0 : index
    %c0_44 = arith.constant 0 : index
    %123 = vector.load %arg6[%c8, %c0_43, %c0_44] : memref<10x32x384xf32, #tpu.memory_space<vmem>>, vector<1x32x384xf32>
    %124 = vector.shape_cast %123 : vector<1x32x384xf32> to vector<32x384xf32>
    %125 = arith.mulf %82, %124 : vector<32x384xf32>
    %cst_45 = arith.constant dense<0.000000e+00> : vector<32xf32>
    %126 = vector.multi_reduction <add>, %125, %cst_45 [1] : vector<32x384xf32> to vector<32xf32>
    %127 = vector.shape_cast %126 : vector<32xf32> to vector<32x1xf32>
    %c9 = arith.constant 9 : index
    %c0_46 = arith.constant 0 : index
    %c0_47 = arith.constant 0 : index
    %128 = vector.load %arg6[%c9, %c0_46, %c0_47] : memref<10x32x384xf32, #tpu.memory_space<vmem>>, vector<1x32x384xf32>
    %129 = vector.shape_cast %128 : vector<1x32x384xf32> to vector<32x384xf32>
    %130 = arith.mulf %82, %129 : vector<32x384xf32>
    %cst_48 = arith.constant dense<0.000000e+00> : vector<32xf32>
    %131 = vector.multi_reduction <add>, %130, %cst_48 [1] : vector<32x384xf32> to vector<32xf32>
    %132 = vector.shape_cast %131 : vector<32xf32> to vector<32x1xf32>
    %133 = tpu.concatenate %87, %92, %97, %102, %107, %112, %117, %122, %127, %132 in 1 : vector<32x1xf32>, vector<32x1xf32>, vector<32x1xf32>, vector<32x1xf32>, vector<32x1xf32>, vector<32x1xf32>, vector<32x1xf32>, vector<32x1xf32>, vector<32x1xf32>, vector<32x1xf32> -> vector<32x10xf32>
    %cst_49 = arith.constant dense<0.000000e+00> : vector<10xf32>
    %134 = vector.multi_reduction <add>, %133, %cst_49 [0] : vector<32x10xf32> to vector<10xf32>
    %135 = vector.shape_cast %134 : vector<10xf32> to vector<1x10xf32>
    %136 = arith.addf %135, %8 : vector<1x10xf32>
    %c0_50 = arith.constant 0 : index
    %c0_51 = arith.constant 0 : index
    %c0_52 = arith.constant 0 : index
    %137 = vector.load %arg8[%c0_50, %c0_51, %c0_52] : memref<4x1x10xf32, #tpu.memory_space<vmem>>, vector<1x1x10xf32>
    %138 = vector.shape_cast %137 : vector<1x1x10xf32> to vector<1x10xf32>
    %139 = vector.shape_cast %136 : vector<1x10xf32> to vector<1x1x10xf32>
    tpu.vector_store %arg8[%c0_50, %c0_51, %c0_52], %139 {strides = array<i32>} : memref<4x1x10xf32, #tpu.memory_space<vmem>>, vector<1x1x10xf32>,
    %c1_53 = arith.constant 1 : index
    %c0_54 = arith.constant 0 : index
    %c0_55 = arith.constant 0 : index
    %140 = vector.load %arg1[%c1_53, %c0_54, %c0_55] : memref<4x12x6144xf32, #tpu.memory_space<vmem>>, vector<1x12x6144xf32>
    %141 = vector.shape_cast %140 : vector<1x12x6144xf32> to vector<12x6144xf32>
    %cst_56 = arith.constant dense<0.000000e+00> : vector<8x6144xf32>
    %142 = tpu.matmul %0, %141, %cst_56 {dimension_numbers = #tpu.dot_dimension_numbers<[1], [0], [0], [1], [0, 0, 1, 1], [], []>} : vector<8x12xf32>, vector<12x6144xf32>, vector<8x6144xf32> -> vector<8x6144xf32>
    %143 = vector.extract_strided_slice %142 {offsets = [0, 0], sizes = [8, 384], strides = [1, 1]} : vector<8x6144xf32> to vector<8x384xf32>
    %144 = vector.extract_strided_slice %142 {offsets = [0, 384], sizes = [8, 384], strides = [1, 1]} : vector<8x6144xf32> to vector<8x384xf32>
    %145 = vector.extract_strided_slice %142 {offsets = [0, 768], sizes = [8, 384], strides = [1, 1]} : vector<8x6144xf32> to vector<8x384xf32>
    %146 = vector.extract_strided_slice %142 {offsets = [0, 1152], sizes = [8, 384], strides = [1, 1]} : vector<8x6144xf32> to vector<8x384xf32>
    %147 = arith.maximumf %143, %144 : vector<8x384xf32>
    %148 = arith.maximumf %145, %146 : vector<8x384xf32>
    %149 = arith.maximumf %147, %148 : vector<8x384xf32>
    %150 = arith.addf %149, %4 : vector<8x384xf32>
    %cst_57 = arith.constant 0.000000e+00 : f32
    %151 = vector.broadcast %cst_57 : f32 to vector<8x384xf32>
    %152 = arith.maximumf %150, %151 : vector<8x384xf32>
    %153 = vector.extract_strided_slice %142 {offsets = [0, 1536], sizes = [8, 384], strides = [1, 1]} : vector<8x6144xf32> to vector<8x384xf32>
    %154 = vector.extract_strided_slice %142 {offsets = [0, 1920], sizes = [8, 384], strides = [1, 1]} : vector<8x6144xf32> to vector<8x384xf32>
    %155 = vector.extract_strided_slice %142 {offsets = [0, 2304], sizes = [8, 384], strides = [1, 1]} : vector<8x6144xf32> to vector<8x384xf32>
    %156 = vector.extract_strided_slice %142 {offsets = [0, 2688], sizes = [8, 384], strides = [1, 1]} : vector<8x6144xf32> to vector<8x384xf32>
    %157 = arith.maximumf %153, %154 : vector<8x384xf32>
    %158 = arith.maximumf %155, %156 : vector<8x384xf32>
    %159 = arith.maximumf %157, %158 : vector<8x384xf32>
    %160 = arith.addf %159, %4 : vector<8x384xf32>
    %cst_58 = arith.constant 0.000000e+00 : f32
    %161 = vector.broadcast %cst_58 : f32 to vector<8x384xf32>
    %162 = arith.maximumf %160, %161 : vector<8x384xf32>
    %163 = vector.extract_strided_slice %142 {offsets = [0, 3072], sizes = [8, 384], strides = [1, 1]} : vector<8x6144xf32> to vector<8x384xf32>
    %164 = vector.extract_strided_slice %142 {offsets = [0, 3456], sizes = [8, 384], strides = [1, 1]} : vector<8x6144xf32> to vector<8x384xf32>
    %165 = vector.extract_strided_slice %142 {offsets = [0, 3840], sizes = [8, 384], strides = [1, 1]} : vector<8x6144xf32> to vector<8x384xf32>
    %166 = vector.extract_strided_slice %142 {offsets = [0, 4224], sizes = [8, 384], strides = [1, 1]} : vector<8x6144xf32> to vector<8x384xf32>
    %167 = arith.maximumf %163, %164 : vector<8x384xf32>
    %168 = arith.maximumf %165, %166 : vector<8x384xf32>
    %169 = arith.maximumf %167, %168 : vector<8x384xf32>
    %170 = arith.addf %169, %4 : vector<8x384xf32>
    %cst_59 = arith.constant 0.000000e+00 : f32
    %171 = vector.broadcast %cst_59 : f32 to vector<8x384xf32>
    %172 = arith.maximumf %170, %171 : vector<8x384xf32>
    %173 = vector.extract_strided_slice %142 {offsets = [0, 4608], sizes = [8, 384], strides = [1, 1]} : vector<8x6144xf32> to vector<8x384xf32>
    %174 = vector.extract_strided_slice %142 {offsets = [0, 4992], sizes = [8, 384], strides = [1, 1]} : vector<8x6144xf32> to vector<8x384xf32>
    %175 = vector.extract_strided_slice %142 {offsets = [0, 5376], sizes = [8, 384], strides = [1, 1]} : vector<8x6144xf32> to vector<8x384xf32>
    %176 = vector.extract_strided_slice %142 {offsets = [0, 5760], sizes = [8, 384], strides = [1, 1]} : vector<8x6144xf32> to vector<8x384xf32>
    %177 = arith.maximumf %173, %174 : vector<8x384xf32>
    %178 = arith.maximumf %175, %176 : vector<8x384xf32>
    %179 = arith.maximumf %177, %178 : vector<8x384xf32>
    %180 = arith.addf %179, %4 : vector<8x384xf32>
    %cst_60 = arith.constant 0.000000e+00 : f32
    %181 = vector.broadcast %cst_60 : f32 to vector<8x384xf32>
    %182 = arith.maximumf %180, %181 : vector<8x384xf32>
    %183 = vector.extract_strided_slice %152 {offsets = [0, 1], sizes = [8, 383], strides = [1, 1]} : vector<8x384xf32> to vector<8x383xf32>
    %184 = vector.extract_strided_slice %152 {offsets = [0, 0], sizes = [8, 1], strides = [1, 1]} : vector<8x384xf32> to vector<8x1xf32>
    %185 = tpu.concatenate %183, %184 in 1 : vector<8x383xf32>, vector<8x1xf32> -> vector<8x384xf32>
    %186 = vector.extract_strided_slice %172 {offsets = [0, 1], sizes = [8, 383], strides = [1, 1]} : vector<8x384xf32> to vector<8x383xf32>
    %187 = vector.extract_strided_slice %172 {offsets = [0, 0], sizes = [8, 1], strides = [1, 1]} : vector<8x384xf32> to vector<8x1xf32>
    %188 = tpu.concatenate %186, %187 in 1 : vector<8x383xf32>, vector<8x1xf32> -> vector<8x384xf32>
    %189 = vector.extract_strided_slice %152 {offsets = [0, 19], sizes = [8, 365], strides = [1, 1]} : vector<8x384xf32> to vector<8x365xf32>
    %190 = vector.extract_strided_slice %152 {offsets = [0, 0], sizes = [8, 19], strides = [1, 1]} : vector<8x384xf32> to vector<8x19xf32>
    %191 = tpu.concatenate %189, %190 in 1 : vector<8x365xf32>, vector<8x19xf32> -> vector<8x384xf32>
    %192 = vector.extract_strided_slice %162 {offsets = [0, 19], sizes = [8, 365], strides = [1, 1]} : vector<8x384xf32> to vector<8x365xf32>
    %193 = vector.extract_strided_slice %162 {offsets = [0, 0], sizes = [8, 19], strides = [1, 1]} : vector<8x384xf32> to vector<8x19xf32>
    %194 = tpu.concatenate %192, %193 in 1 : vector<8x365xf32>, vector<8x19xf32> -> vector<8x384xf32>
    %195 = vector.extract_strided_slice %152 {offsets = [0, 20], sizes = [8, 364], strides = [1, 1]} : vector<8x384xf32> to vector<8x364xf32>
    %196 = vector.extract_strided_slice %152 {offsets = [0, 0], sizes = [8, 20], strides = [1, 1]} : vector<8x384xf32> to vector<8x20xf32>
    %197 = tpu.concatenate %195, %196 in 1 : vector<8x364xf32>, vector<8x20xf32> -> vector<8x384xf32>
    %198 = tpu.concatenate %152, %162, %172, %182 in 0 : vector<8x384xf32>, vector<8x384xf32>, vector<8x384xf32>, vector<8x384xf32> -> vector<32x384xf32>
    %199 = tpu.concatenate %162, %185, %182, %188 in 0 : vector<8x384xf32>, vector<8x384xf32>, vector<8x384xf32>, vector<8x384xf32> -> vector<32x384xf32>
    %200 = tpu.concatenate %172, %182, %191, %194 in 0 : vector<8x384xf32>, vector<8x384xf32>, vector<8x384xf32>, vector<8x384xf32> -> vector<32x384xf32>
    %201 = tpu.concatenate %182, %188, %194, %197 in 0 : vector<8x384xf32>, vector<8x384xf32>, vector<8x384xf32>, vector<8x384xf32> -> vector<32x384xf32>
    %202 = tpu.concatenate %198, %199, %200, %201 in 1 : vector<32x384xf32>, vector<32x384xf32>, vector<32x384xf32>, vector<32x384xf32> -> vector<32x1536xf32>
    %cst_61 = arith.constant dense<0.000000e+00> : vector<32x1536xf32>
    %203 = tpu.matmul %1, %202, %cst_61 {dimension_numbers = #tpu.dot_dimension_numbers<[1], [0], [0], [1], [0, 0, 1, 1], [], []>} : vector<32x32xf32>, vector<32x1536xf32>, vector<32x1536xf32> -> vector<32x1536xf32>
    %204 = vector.extract_strided_slice %203 {offsets = [0, 0], sizes = [32, 384], strides = [1, 1]} : vector<32x1536xf32> to vector<32x384xf32>
    %205 = vector.extract_strided_slice %203 {offsets = [0, 384], sizes = [32, 384], strides = [1, 1]} : vector<32x1536xf32> to vector<32x384xf32>
    %206 = arith.maximumf %204, %205 : vector<32x384xf32>
    %207 = vector.extract_strided_slice %203 {offsets = [0, 768], sizes = [32, 384], strides = [1, 1]} : vector<32x1536xf32> to vector<32x384xf32>
    %208 = vector.extract_strided_slice %203 {offsets = [0, 1152], sizes = [32, 384], strides = [1, 1]} : vector<32x1536xf32> to vector<32x384xf32>
    %209 = arith.maximumf %207, %208 : vector<32x384xf32>
    %210 = arith.maximumf %206, %209 : vector<32x384xf32>
    %211 = arith.addf %210, %7 : vector<32x384xf32>
    %cst_62 = arith.constant 0.000000e+00 : f32
    %212 = vector.broadcast %cst_62 : f32 to vector<32x384xf32>
    %213 = arith.maximumf %211, %212 : vector<32x384xf32>
    %c0_63 = arith.constant 0 : index
    %c0_64 = arith.constant 0 : index
    %c0_65 = arith.constant 0 : index
    %214 = vector.load %arg6[%c0_63, %c0_64, %c0_65] : memref<10x32x384xf32, #tpu.memory_space<vmem>>, vector<1x32x384xf32>
    %215 = vector.shape_cast %214 : vector<1x32x384xf32> to vector<32x384xf32>
    %216 = arith.mulf %213, %215 : vector<32x384xf32>
    %cst_66 = arith.constant dense<0.000000e+00> : vector<32xf32>
    %217 = vector.multi_reduction <add>, %216, %cst_66 [1] : vector<32x384xf32> to vector<32xf32>
    %218 = vector.shape_cast %217 : vector<32xf32> to vector<32x1xf32>
    %c1_67 = arith.constant 1 : index
    %c0_68 = arith.constant 0 : index
    %c0_69 = arith.constant 0 : index
    %219 = vector.load %arg6[%c1_67, %c0_68, %c0_69] : memref<10x32x384xf32, #tpu.memory_space<vmem>>, vector<1x32x384xf32>
    %220 = vector.shape_cast %219 : vector<1x32x384xf32> to vector<32x384xf32>
    %221 = arith.mulf %213, %220 : vector<32x384xf32>
    %cst_70 = arith.constant dense<0.000000e+00> : vector<32xf32>
    %222 = vector.multi_reduction <add>, %221, %cst_70 [1] : vector<32x384xf32> to vector<32xf32>
    %223 = vector.shape_cast %222 : vector<32xf32> to vector<32x1xf32>
    %c2_71 = arith.constant 2 : index
    %c0_72 = arith.constant 0 : index
    %c0_73 = arith.constant 0 : index
    %224 = vector.load %arg6[%c2_71, %c0_72, %c0_73] : memref<10x32x384xf32, #tpu.memory_space<vmem>>, vector<1x32x384xf32>
    %225 = vector.shape_cast %224 : vector<1x32x384xf32> to vector<32x384xf32>
    %226 = arith.mulf %213, %225 : vector<32x384xf32>
    %cst_74 = arith.constant dense<0.000000e+00> : vector<32xf32>
    %227 = vector.multi_reduction <add>, %226, %cst_74 [1] : vector<32x384xf32> to vector<32xf32>
    %228 = vector.shape_cast %227 : vector<32xf32> to vector<32x1xf32>
    %c3_75 = arith.constant 3 : index
    %c0_76 = arith.constant 0 : index
    %c0_77 = arith.constant 0 : index
    %229 = vector.load %arg6[%c3_75, %c0_76, %c0_77] : memref<10x32x384xf32, #tpu.memory_space<vmem>>, vector<1x32x384xf32>
    %230 = vector.shape_cast %229 : vector<1x32x384xf32> to vector<32x384xf32>
    %231 = arith.mulf %213, %230 : vector<32x384xf32>
    %cst_78 = arith.constant dense<0.000000e+00> : vector<32xf32>
    %232 = vector.multi_reduction <add>, %231, %cst_78 [1] : vector<32x384xf32> to vector<32xf32>
    %233 = vector.shape_cast %232 : vector<32xf32> to vector<32x1xf32>
    %c4_79 = arith.constant 4 : index
    %c0_80 = arith.constant 0 : index
    %c0_81 = arith.constant 0 : index
    %234 = vector.load %arg6[%c4_79, %c0_80, %c0_81] : memref<10x32x384xf32, #tpu.memory_space<vmem>>, vector<1x32x384xf32>
    %235 = vector.shape_cast %234 : vector<1x32x384xf32> to vector<32x384xf32>
    %236 = arith.mulf %213, %235 : vector<32x384xf32>
    %cst_82 = arith.constant dense<0.000000e+00> : vector<32xf32>
    %237 = vector.multi_reduction <add>, %236, %cst_82 [1] : vector<32x384xf32> to vector<32xf32>
    %238 = vector.shape_cast %237 : vector<32xf32> to vector<32x1xf32>
    %c5_83 = arith.constant 5 : index
    %c0_84 = arith.constant 0 : index
    %c0_85 = arith.constant 0 : index
    %239 = vector.load %arg6[%c5_83, %c0_84, %c0_85] : memref<10x32x384xf32, #tpu.memory_space<vmem>>, vector<1x32x384xf32>
    %240 = vector.shape_cast %239 : vector<1x32x384xf32> to vector<32x384xf32>
    %241 = arith.mulf %213, %240 : vector<32x384xf32>
    %cst_86 = arith.constant dense<0.000000e+00> : vector<32xf32>
    %242 = vector.multi_reduction <add>, %241, %cst_86 [1] : vector<32x384xf32> to vector<32xf32>
    %243 = vector.shape_cast %242 : vector<32xf32> to vector<32x1xf32>
    %c6_87 = arith.constant 6 : index
    %c0_88 = arith.constant 0 : index
    %c0_89 = arith.constant 0 : index
    %244 = vector.load %arg6[%c6_87, %c0_88, %c0_89] : memref<10x32x384xf32, #tpu.memory_space<vmem>>, vector<1x32x384xf32>
    %245 = vector.shape_cast %244 : vector<1x32x384xf32> to vector<32x384xf32>
    %246 = arith.mulf %213, %245 : vector<32x384xf32>
    %cst_90 = arith.constant dense<0.000000e+00> : vector<32xf32>
    %247 = vector.multi_reduction <add>, %246, %cst_90 [1] : vector<32x384xf32> to vector<32xf32>
    %248 = vector.shape_cast %247 : vector<32xf32> to vector<32x1xf32>
    %c7_91 = arith.constant 7 : index
    %c0_92 = arith.constant 0 : index
    %c0_93 = arith.constant 0 : index
    %249 = vector.load %arg6[%c7_91, %c0_92, %c0_93] : memref<10x32x384xf32, #tpu.memory_space<vmem>>, vector<1x32x384xf32>
    %250 = vector.shape_cast %249 : vector<1x32x384xf32> to vector<32x384xf32>
    %251 = arith.mulf %213, %250 : vector<32x384xf32>
    %cst_94 = arith.constant dense<0.000000e+00> : vector<32xf32>
    %252 = vector.multi_reduction <add>, %251, %cst_94 [1] : vector<32x384xf32> to vector<32xf32>
    %253 = vector.shape_cast %252 : vector<32xf32> to vector<32x1xf32>
    %c8_95 = arith.constant 8 : index
    %c0_96 = arith.constant 0 : index
    %c0_97 = arith.constant 0 : index
    %254 = vector.load %arg6[%c8_95, %c0_96, %c0_97] : memref<10x32x384xf32, #tpu.memory_space<vmem>>, vector<1x32x384xf32>
    %255 = vector.shape_cast %254 : vector<1x32x384xf32> to vector<32x384xf32>
    %256 = arith.mulf %213, %255 : vector<32x384xf32>
    %cst_98 = arith.constant dense<0.000000e+00> : vector<32xf32>
    %257 = vector.multi_reduction <add>, %256, %cst_98 [1] : vector<32x384xf32> to vector<32xf32>
    %258 = vector.shape_cast %257 : vector<32xf32> to vector<32x1xf32>
    %c9_99 = arith.constant 9 : index
    %c0_100 = arith.constant 0 : index
    %c0_101 = arith.constant 0 : index
    %259 = vector.load %arg6[%c9_99, %c0_100, %c0_101] : memref<10x32x384xf32, #tpu.memory_space<vmem>>, vector<1x32x384xf32>
    %260 = vector.shape_cast %259 : vector<1x32x384xf32> to vector<32x384xf32>
    %261 = arith.mulf %213, %260 : vector<32x384xf32>
    %cst_102 = arith.constant dense<0.000000e+00> : vector<32xf32>
    %262 = vector.multi_reduction <add>, %261, %cst_102 [1] : vector<32x384xf32> to vector<32xf32>
    %263 = vector.shape_cast %262 : vector<32xf32> to vector<32x1xf32>
    %264 = tpu.concatenate %218, %223, %228, %233, %238, %243, %248, %253, %258, %263 in 1 : vector<32x1xf32>, vector<32x1xf32>, vector<32x1xf32>, vector<32x1xf32>, vector<32x1xf32>, vector<32x1xf32>, vector<32x1xf32>, vector<32x1xf32>, vector<32x1xf32>, vector<32x1xf32> -> vector<32x10xf32>
    %cst_103 = arith.constant dense<0.000000e+00> : vector<10xf32>
    %265 = vector.multi_reduction <add>, %264, %cst_103 [0] : vector<32x10xf32> to vector<10xf32>
    %266 = vector.shape_cast %265 : vector<10xf32> to vector<1x10xf32>
    %267 = arith.addf %266, %8 : vector<1x10xf32>
    %c1_104 = arith.constant 1 : index
    %c0_105 = arith.constant 0 : index
    %c0_106 = arith.constant 0 : index
    %268 = vector.load %arg8[%c1_104, %c0_105, %c0_106] : memref<4x1x10xf32, #tpu.memory_space<vmem>>, vector<1x1x10xf32>
    %269 = vector.shape_cast %268 : vector<1x1x10xf32> to vector<1x10xf32>
    %270 = vector.shape_cast %267 : vector<1x10xf32> to vector<1x1x10xf32>
    tpu.vector_store %arg8[%c1_104, %c0_105, %c0_106], %270 {strides = array<i32>} : memref<4x1x10xf32, #tpu.memory_space<vmem>>, vector<1x1x10xf32>,
    %c2_107 = arith.constant 2 : index
    %c0_108 = arith.constant 0 : index
    %c0_109 = arith.constant 0 : index
    %271 = vector.load %arg1[%c2_107, %c0_108, %c0_109] : memref<4x12x6144xf32, #tpu.memory_space<vmem>>, vector<1x12x6144xf32>
    %272 = vector.shape_cast %271 : vector<1x12x6144xf32> to vector<12x6144xf32>
    %cst_110 = arith.constant dense<0.000000e+00> : vector<8x6144xf32>
    %273 = tpu.matmul %0, %272, %cst_110 {dimension_numbers = #tpu.dot_dimension_numbers<[1], [0], [0], [1], [0, 0, 1, 1], [], []>} : vector<8x12xf32>, vector<12x6144xf32>, vector<8x6144xf32> -> vector<8x6144xf32>
    %274 = vector.extract_strided_slice %273 {offsets = [0, 0], sizes = [8, 384], strides = [1, 1]} : vector<8x6144xf32> to vector<8x384xf32>
    %275 = vector.extract_strided_slice %273 {offsets = [0, 384], sizes = [8, 384], strides = [1, 1]} : vector<8x6144xf32> to vector<8x384xf32>
    %276 = vector.extract_strided_slice %273 {offsets = [0, 768], sizes = [8, 384], strides = [1, 1]} : vector<8x6144xf32> to vector<8x384xf32>
    %277 = vector.extract_strided_slice %273 {offsets = [0, 1152], sizes = [8, 384], strides = [1, 1]} : vector<8x6144xf32> to vector<8x384xf32>
    %278 = arith.maximumf %274, %275 : vector<8x384xf32>
    %279 = arith.maximumf %276, %277 : vector<8x384xf32>
    %280 = arith.maximumf %278, %279 : vector<8x384xf32>
    %281 = arith.addf %280, %4 : vector<8x384xf32>
    %cst_111 = arith.constant 0.000000e+00 : f32
    %282 = vector.broadcast %cst_111 : f32 to vector<8x384xf32>
    %283 = arith.maximumf %281, %282 : vector<8x384xf32>
    %284 = vector.extract_strided_slice %273 {offsets = [0, 1536], sizes = [8, 384], strides = [1, 1]} : vector<8x6144xf32> to vector<8x384xf32>
    %285 = vector.extract_strided_slice %273 {offsets = [0, 1920], sizes = [8, 384], strides = [1, 1]} : vector<8x6144xf32> to vector<8x384xf32>
    %286 = vector.extract_strided_slice %273 {offsets = [0, 2304], sizes = [8, 384], strides = [1, 1]} : vector<8x6144xf32> to vector<8x384xf32>
    %287 = vector.extract_strided_slice %273 {offsets = [0, 2688], sizes = [8, 384], strides = [1, 1]} : vector<8x6144xf32> to vector<8x384xf32>
    %288 = arith.maximumf %284, %285 : vector<8x384xf32>
    %289 = arith.maximumf %286, %287 : vector<8x384xf32>
    %290 = arith.maximumf %288, %289 : vector<8x384xf32>
    %291 = arith.addf %290, %4 : vector<8x384xf32>
    %cst_112 = arith.constant 0.000000e+00 : f32
    %292 = vector.broadcast %cst_112 : f32 to vector<8x384xf32>
    %293 = arith.maximumf %291, %292 : vector<8x384xf32>
    %294 = vector.extract_strided_slice %273 {offsets = [0, 3072], sizes = [8, 384], strides = [1, 1]} : vector<8x6144xf32> to vector<8x384xf32>
    %295 = vector.extract_strided_slice %273 {offsets = [0, 3456], sizes = [8, 384], strides = [1, 1]} : vector<8x6144xf32> to vector<8x384xf32>
    %296 = vector.extract_strided_slice %273 {offsets = [0, 3840], sizes = [8, 384], strides = [1, 1]} : vector<8x6144xf32> to vector<8x384xf32>
    %297 = vector.extract_strided_slice %273 {offsets = [0, 4224], sizes = [8, 384], strides = [1, 1]} : vector<8x6144xf32> to vector<8x384xf32>
    %298 = arith.maximumf %294, %295 : vector<8x384xf32>
    %299 = arith.maximumf %296, %297 : vector<8x384xf32>
    %300 = arith.maximumf %298, %299 : vector<8x384xf32>
    %301 = arith.addf %300, %4 : vector<8x384xf32>
    %cst_113 = arith.constant 0.000000e+00 : f32
    %302 = vector.broadcast %cst_113 : f32 to vector<8x384xf32>
    %303 = arith.maximumf %301, %302 : vector<8x384xf32>
    %304 = vector.extract_strided_slice %273 {offsets = [0, 4608], sizes = [8, 384], strides = [1, 1]} : vector<8x6144xf32> to vector<8x384xf32>
    %305 = vector.extract_strided_slice %273 {offsets = [0, 4992], sizes = [8, 384], strides = [1, 1]} : vector<8x6144xf32> to vector<8x384xf32>
    %306 = vector.extract_strided_slice %273 {offsets = [0, 5376], sizes = [8, 384], strides = [1, 1]} : vector<8x6144xf32> to vector<8x384xf32>
    %307 = vector.extract_strided_slice %273 {offsets = [0, 5760], sizes = [8, 384], strides = [1, 1]} : vector<8x6144xf32> to vector<8x384xf32>
    %308 = arith.maximumf %304, %305 : vector<8x384xf32>
    %309 = arith.maximumf %306, %307 : vector<8x384xf32>
    %310 = arith.maximumf %308, %309 : vector<8x384xf32>
    %311 = arith.addf %310, %4 : vector<8x384xf32>
    %cst_114 = arith.constant 0.000000e+00 : f32
    %312 = vector.broadcast %cst_114 : f32 to vector<8x384xf32>
    %313 = arith.maximumf %311, %312 : vector<8x384xf32>
    %314 = vector.extract_strided_slice %283 {offsets = [0, 1], sizes = [8, 383], strides = [1, 1]} : vector<8x384xf32> to vector<8x383xf32>
    %315 = vector.extract_strided_slice %283 {offsets = [0, 0], sizes = [8, 1], strides = [1, 1]} : vector<8x384xf32> to vector<8x1xf32>
    %316 = tpu.concatenate %314, %315 in 1 : vector<8x383xf32>, vector<8x1xf32> -> vector<8x384xf32>
    %317 = vector.extract_strided_slice %303 {offsets = [0, 1], sizes = [8, 383], strides = [1, 1]} : vector<8x384xf32> to vector<8x383xf32>
    %318 = vector.extract_strided_slice %303 {offsets = [0, 0], sizes = [8, 1], strides = [1, 1]} : vector<8x384xf32> to vector<8x1xf32>
    %319 = tpu.concatenate %317, %318 in 1 : vector<8x383xf32>, vector<8x1xf32> -> vector<8x384xf32>
    %320 = vector.extract_strided_slice %283 {offsets = [0, 19], sizes = [8, 365], strides = [1, 1]} : vector<8x384xf32> to vector<8x365xf32>
    %321 = vector.extract_strided_slice %283 {offsets = [0, 0], sizes = [8, 19], strides = [1, 1]} : vector<8x384xf32> to vector<8x19xf32>
    %322 = tpu.concatenate %320, %321 in 1 : vector<8x365xf32>, vector<8x19xf32> -> vector<8x384xf32>
    %323 = vector.extract_strided_slice %293 {offsets = [0, 19], sizes = [8, 365], strides = [1, 1]} : vector<8x384xf32> to vector<8x365xf32>
    %324 = vector.extract_strided_slice %293 {offsets = [0, 0], sizes = [8, 19], strides = [1, 1]} : vector<8x384xf32> to vector<8x19xf32>
    %325 = tpu.concatenate %323, %324 in 1 : vector<8x365xf32>, vector<8x19xf32> -> vector<8x384xf32>
    %326 = vector.extract_strided_slice %283 {offsets = [0, 20], sizes = [8, 364], strides = [1, 1]} : vector<8x384xf32> to vector<8x364xf32>
    %327 = vector.extract_strided_slice %283 {offsets = [0, 0], sizes = [8, 20], strides = [1, 1]} : vector<8x384xf32> to vector<8x20xf32>
    %328 = tpu.concatenate %326, %327 in 1 : vector<8x364xf32>, vector<8x20xf32> -> vector<8x384xf32>
    %329 = tpu.concatenate %283, %293, %303, %313 in 0 : vector<8x384xf32>, vector<8x384xf32>, vector<8x384xf32>, vector<8x384xf32> -> vector<32x384xf32>
    %330 = tpu.concatenate %293, %316, %313, %319 in 0 : vector<8x384xf32>, vector<8x384xf32>, vector<8x384xf32>, vector<8x384xf32> -> vector<32x384xf32>
    %331 = tpu.concatenate %303, %313, %322, %325 in 0 : vector<8x384xf32>, vector<8x384xf32>, vector<8x384xf32>, vector<8x384xf32> -> vector<32x384xf32>
    %332 = tpu.concatenate %313, %319, %325, %328 in 0 : vector<8x384xf32>, vector<8x384xf32>, vector<8x384xf32>, vector<8x384xf32> -> vector<32x384xf32>
    %333 = tpu.concatenate %329, %330, %331, %332 in 1 : vector<32x384xf32>, vector<32x384xf32>, vector<32x384xf32>, vector<32x384xf32> -> vector<32x1536xf32>
    %cst_115 = arith.constant dense<0.000000e+00> : vector<32x1536xf32>
    %334 = tpu.matmul %1, %333, %cst_115 {dimension_numbers = #tpu.dot_dimension_numbers<[1], [0], [0], [1], [0, 0, 1, 1], [], []>} : vector<32x32xf32>, vector<32x1536xf32>, vector<32x1536xf32> -> vector<32x1536xf32>
    %335 = vector.extract_strided_slice %334 {offsets = [0, 0], sizes = [32, 384], strides = [1, 1]} : vector<32x1536xf32> to vector<32x384xf32>
    %336 = vector.extract_strided_slice %334 {offsets = [0, 384], sizes = [32, 384], strides = [1, 1]} : vector<32x1536xf32> to vector<32x384xf32>
    %337 = arith.maximumf %335, %336 : vector<32x384xf32>
    %338 = vector.extract_strided_slice %334 {offsets = [0, 768], sizes = [32, 384], strides = [1, 1]} : vector<32x1536xf32> to vector<32x384xf32>
    %339 = vector.extract_strided_slice %334 {offsets = [0, 1152], sizes = [32, 384], strides = [1, 1]} : vector<32x1536xf32> to vector<32x384xf32>
    %340 = arith.maximumf %338, %339 : vector<32x384xf32>
    %341 = arith.maximumf %337, %340 : vector<32x384xf32>
    %342 = arith.addf %341, %7 : vector<32x384xf32>
    %cst_116 = arith.constant 0.000000e+00 : f32
    %343 = vector.broadcast %cst_116 : f32 to vector<32x384xf32>
    %344 = arith.maximumf %342, %343 : vector<32x384xf32>
    %c0_117 = arith.constant 0 : index
    %c0_118 = arith.constant 0 : index
    %c0_119 = arith.constant 0 : index
    %345 = vector.load %arg6[%c0_117, %c0_118, %c0_119] : memref<10x32x384xf32, #tpu.memory_space<vmem>>, vector<1x32x384xf32>
    %346 = vector.shape_cast %345 : vector<1x32x384xf32> to vector<32x384xf32>
    %347 = arith.mulf %344, %346 : vector<32x384xf32>
    %cst_120 = arith.constant dense<0.000000e+00> : vector<32xf32>
    %348 = vector.multi_reduction <add>, %347, %cst_120 [1] : vector<32x384xf32> to vector<32xf32>
    %349 = vector.shape_cast %348 : vector<32xf32> to vector<32x1xf32>
    %c1_121 = arith.constant 1 : index
    %c0_122 = arith.constant 0 : index
    %c0_123 = arith.constant 0 : index
    %350 = vector.load %arg6[%c1_121, %c0_122, %c0_123] : memref<10x32x384xf32, #tpu.memory_space<vmem>>, vector<1x32x384xf32>
    %351 = vector.shape_cast %350 : vector<1x32x384xf32> to vector<32x384xf32>
    %352 = arith.mulf %344, %351 : vector<32x384xf32>
    %cst_124 = arith.constant dense<0.000000e+00> : vector<32xf32>
    %353 = vector.multi_reduction <add>, %352, %cst_124 [1] : vector<32x384xf32> to vector<32xf32>
    %354 = vector.shape_cast %353 : vector<32xf32> to vector<32x1xf32>
    %c2_125 = arith.constant 2 : index
    %c0_126 = arith.constant 0 : index
    %c0_127 = arith.constant 0 : index
    %355 = vector.load %arg6[%c2_125, %c0_126, %c0_127] : memref<10x32x384xf32, #tpu.memory_space<vmem>>, vector<1x32x384xf32>
    %356 = vector.shape_cast %355 : vector<1x32x384xf32> to vector<32x384xf32>
    %357 = arith.mulf %344, %356 : vector<32x384xf32>
    %cst_128 = arith.constant dense<0.000000e+00> : vector<32xf32>
    %358 = vector.multi_reduction <add>, %357, %cst_128 [1] : vector<32x384xf32> to vector<32xf32>
    %359 = vector.shape_cast %358 : vector<32xf32> to vector<32x1xf32>
    %c3_129 = arith.constant 3 : index
    %c0_130 = arith.constant 0 : index
    %c0_131 = arith.constant 0 : index
    %360 = vector.load %arg6[%c3_129, %c0_130, %c0_131] : memref<10x32x384xf32, #tpu.memory_space<vmem>>, vector<1x32x384xf32>
    %361 = vector.shape_cast %360 : vector<1x32x384xf32> to vector<32x384xf32>
    %362 = arith.mulf %344, %361 : vector<32x384xf32>
    %cst_132 = arith.constant dense<0.000000e+00> : vector<32xf32>
    %363 = vector.multi_reduction <add>, %362, %cst_132 [1] : vector<32x384xf32> to vector<32xf32>
    %364 = vector.shape_cast %363 : vector<32xf32> to vector<32x1xf32>
    %c4_133 = arith.constant 4 : index
    %c0_134 = arith.constant 0 : index
    %c0_135 = arith.constant 0 : index
    %365 = vector.load %arg6[%c4_133, %c0_134, %c0_135] : memref<10x32x384xf32, #tpu.memory_space<vmem>>, vector<1x32x384xf32>
    %366 = vector.shape_cast %365 : vector<1x32x384xf32> to vector<32x384xf32>
    %367 = arith.mulf %344, %366 : vector<32x384xf32>
    %cst_136 = arith.constant dense<0.000000e+00> : vector<32xf32>
    %368 = vector.multi_reduction <add>, %367, %cst_136 [1] : vector<32x384xf32> to vector<32xf32>
    %369 = vector.shape_cast %368 : vector<32xf32> to vector<32x1xf32>
    %c5_137 = arith.constant 5 : index
    %c0_138 = arith.constant 0 : index
    %c0_139 = arith.constant 0 : index
    %370 = vector.load %arg6[%c5_137, %c0_138, %c0_139] : memref<10x32x384xf32, #tpu.memory_space<vmem>>, vector<1x32x384xf32>
    %371 = vector.shape_cast %370 : vector<1x32x384xf32> to vector<32x384xf32>
    %372 = arith.mulf %344, %371 : vector<32x384xf32>
    %cst_140 = arith.constant dense<0.000000e+00> : vector<32xf32>
    %373 = vector.multi_reduction <add>, %372, %cst_140 [1] : vector<32x384xf32> to vector<32xf32>
    %374 = vector.shape_cast %373 : vector<32xf32> to vector<32x1xf32>
    %c6_141 = arith.constant 6 : index
    %c0_142 = arith.constant 0 : index
    %c0_143 = arith.constant 0 : index
    %375 = vector.load %arg6[%c6_141, %c0_142, %c0_143] : memref<10x32x384xf32, #tpu.memory_space<vmem>>, vector<1x32x384xf32>
    %376 = vector.shape_cast %375 : vector<1x32x384xf32> to vector<32x384xf32>
    %377 = arith.mulf %344, %376 : vector<32x384xf32>
    %cst_144 = arith.constant dense<0.000000e+00> : vector<32xf32>
    %378 = vector.multi_reduction <add>, %377, %cst_144 [1] : vector<32x384xf32> to vector<32xf32>
    %379 = vector.shape_cast %378 : vector<32xf32> to vector<32x1xf32>
    %c7_145 = arith.constant 7 : index
    %c0_146 = arith.constant 0 : index
    %c0_147 = arith.constant 0 : index
    %380 = vector.load %arg6[%c7_145, %c0_146, %c0_147] : memref<10x32x384xf32, #tpu.memory_space<vmem>>, vector<1x32x384xf32>
    %381 = vector.shape_cast %380 : vector<1x32x384xf32> to vector<32x384xf32>
    %382 = arith.mulf %344, %381 : vector<32x384xf32>
    %cst_148 = arith.constant dense<0.000000e+00> : vector<32xf32>
    %383 = vector.multi_reduction <add>, %382, %cst_148 [1] : vector<32x384xf32> to vector<32xf32>
    %384 = vector.shape_cast %383 : vector<32xf32> to vector<32x1xf32>
    %c8_149 = arith.constant 8 : index
    %c0_150 = arith.constant 0 : index
    %c0_151 = arith.constant 0 : index
    %385 = vector.load %arg6[%c8_149, %c0_150, %c0_151] : memref<10x32x384xf32, #tpu.memory_space<vmem>>, vector<1x32x384xf32>
    %386 = vector.shape_cast %385 : vector<1x32x384xf32> to vector<32x384xf32>
    %387 = arith.mulf %344, %386 : vector<32x384xf32>
    %cst_152 = arith.constant dense<0.000000e+00> : vector<32xf32>
    %388 = vector.multi_reduction <add>, %387, %cst_152 [1] : vector<32x384xf32> to vector<32xf32>
    %389 = vector.shape_cast %388 : vector<32xf32> to vector<32x1xf32>
    %c9_153 = arith.constant 9 : index
    %c0_154 = arith.constant 0 : index
    %c0_155 = arith.constant 0 : index
    %390 = vector.load %arg6[%c9_153, %c0_154, %c0_155] : memref<10x32x384xf32, #tpu.memory_space<vmem>>, vector<1x32x384xf32>
    %391 = vector.shape_cast %390 : vector<1x32x384xf32> to vector<32x384xf32>
    %392 = arith.mulf %344, %391 : vector<32x384xf32>
    %cst_156 = arith.constant dense<0.000000e+00> : vector<32xf32>
    %393 = vector.multi_reduction <add>, %392, %cst_156 [1] : vector<32x384xf32> to vector<32xf32>
    %394 = vector.shape_cast %393 : vector<32xf32> to vector<32x1xf32>
    %395 = tpu.concatenate %349, %354, %359, %364, %369, %374, %379, %384, %389, %394 in 1 : vector<32x1xf32>, vector<32x1xf32>, vector<32x1xf32>, vector<32x1xf32>, vector<32x1xf32>, vector<32x1xf32>, vector<32x1xf32>, vector<32x1xf32>, vector<32x1xf32>, vector<32x1xf32> -> vector<32x10xf32>
    %cst_157 = arith.constant dense<0.000000e+00> : vector<10xf32>
    %396 = vector.multi_reduction <add>, %395, %cst_157 [0] : vector<32x10xf32> to vector<10xf32>
    %397 = vector.shape_cast %396 : vector<10xf32> to vector<1x10xf32>
    %398 = arith.addf %397, %8 : vector<1x10xf32>
    %c2_158 = arith.constant 2 : index
    %c0_159 = arith.constant 0 : index
    %c0_160 = arith.constant 0 : index
    %399 = vector.load %arg8[%c2_158, %c0_159, %c0_160] : memref<4x1x10xf32, #tpu.memory_space<vmem>>, vector<1x1x10xf32>
    %400 = vector.shape_cast %399 : vector<1x1x10xf32> to vector<1x10xf32>
    %401 = vector.shape_cast %398 : vector<1x10xf32> to vector<1x1x10xf32>
    tpu.vector_store %arg8[%c2_158, %c0_159, %c0_160], %401 {strides = array<i32>} : memref<4x1x10xf32, #tpu.memory_space<vmem>>, vector<1x1x10xf32>,
    %c3_161 = arith.constant 3 : index
    %c0_162 = arith.constant 0 : index
    %c0_163 = arith.constant 0 : index
    %402 = vector.load %arg1[%c3_161, %c0_162, %c0_163] : memref<4x12x6144xf32, #tpu.memory_space<vmem>>, vector<1x12x6144xf32>
    %403 = vector.shape_cast %402 : vector<1x12x6144xf32> to vector<12x6144xf32>
    %cst_164 = arith.constant dense<0.000000e+00> : vector<8x6144xf32>
    %404 = tpu.matmul %0, %403, %cst_164 {dimension_numbers = #tpu.dot_dimension_numbers<[1], [0], [0], [1], [0, 0, 1, 1], [], []>} : vector<8x12xf32>, vector<12x6144xf32>, vector<8x6144xf32> -> vector<8x6144xf32>
    %405 = vector.extract_strided_slice %404 {offsets = [0, 0], sizes = [8, 384], strides = [1, 1]} : vector<8x6144xf32> to vector<8x384xf32>
    %406 = vector.extract_strided_slice %404 {offsets = [0, 384], sizes = [8, 384], strides = [1, 1]} : vector<8x6144xf32> to vector<8x384xf32>
    %407 = vector.extract_strided_slice %404 {offsets = [0, 768], sizes = [8, 384], strides = [1, 1]} : vector<8x6144xf32> to vector<8x384xf32>
    %408 = vector.extract_strided_slice %404 {offsets = [0, 1152], sizes = [8, 384], strides = [1, 1]} : vector<8x6144xf32> to vector<8x384xf32>
    %409 = arith.maximumf %405, %406 : vector<8x384xf32>
    %410 = arith.maximumf %407, %408 : vector<8x384xf32>
    %411 = arith.maximumf %409, %410 : vector<8x384xf32>
    %412 = arith.addf %411, %4 : vector<8x384xf32>
    %cst_165 = arith.constant 0.000000e+00 : f32
    %413 = vector.broadcast %cst_165 : f32 to vector<8x384xf32>
    %414 = arith.maximumf %412, %413 : vector<8x384xf32>
    %415 = vector.extract_strided_slice %404 {offsets = [0, 1536], sizes = [8, 384], strides = [1, 1]} : vector<8x6144xf32> to vector<8x384xf32>
    %416 = vector.extract_strided_slice %404 {offsets = [0, 1920], sizes = [8, 384], strides = [1, 1]} : vector<8x6144xf32> to vector<8x384xf32>
    %417 = vector.extract_strided_slice %404 {offsets = [0, 2304], sizes = [8, 384], strides = [1, 1]} : vector<8x6144xf32> to vector<8x384xf32>
    %418 = vector.extract_strided_slice %404 {offsets = [0, 2688], sizes = [8, 384], strides = [1, 1]} : vector<8x6144xf32> to vector<8x384xf32>
    %419 = arith.maximumf %415, %416 : vector<8x384xf32>
    %420 = arith.maximumf %417, %418 : vector<8x384xf32>
    %421 = arith.maximumf %419, %420 : vector<8x384xf32>
    %422 = arith.addf %421, %4 : vector<8x384xf32>
    %cst_166 = arith.constant 0.000000e+00 : f32
    %423 = vector.broadcast %cst_166 : f32 to vector<8x384xf32>
    %424 = arith.maximumf %422, %423 : vector<8x384xf32>
    %425 = vector.extract_strided_slice %404 {offsets = [0, 3072], sizes = [8, 384], strides = [1, 1]} : vector<8x6144xf32> to vector<8x384xf32>
    %426 = vector.extract_strided_slice %404 {offsets = [0, 3456], sizes = [8, 384], strides = [1, 1]} : vector<8x6144xf32> to vector<8x384xf32>
    %427 = vector.extract_strided_slice %404 {offsets = [0, 3840], sizes = [8, 384], strides = [1, 1]} : vector<8x6144xf32> to vector<8x384xf32>
    %428 = vector.extract_strided_slice %404 {offsets = [0, 4224], sizes = [8, 384], strides = [1, 1]} : vector<8x6144xf32> to vector<8x384xf32>
    %429 = arith.maximumf %425, %426 : vector<8x384xf32>
    %430 = arith.maximumf %427, %428 : vector<8x384xf32>
    %431 = arith.maximumf %429, %430 : vector<8x384xf32>
    %432 = arith.addf %431, %4 : vector<8x384xf32>
    %cst_167 = arith.constant 0.000000e+00 : f32
    %433 = vector.broadcast %cst_167 : f32 to vector<8x384xf32>
    %434 = arith.maximumf %432, %433 : vector<8x384xf32>
    %435 = vector.extract_strided_slice %404 {offsets = [0, 4608], sizes = [8, 384], strides = [1, 1]} : vector<8x6144xf32> to vector<8x384xf32>
    %436 = vector.extract_strided_slice %404 {offsets = [0, 4992], sizes = [8, 384], strides = [1, 1]} : vector<8x6144xf32> to vector<8x384xf32>
    %437 = vector.extract_strided_slice %404 {offsets = [0, 5376], sizes = [8, 384], strides = [1, 1]} : vector<8x6144xf32> to vector<8x384xf32>
    %438 = vector.extract_strided_slice %404 {offsets = [0, 5760], sizes = [8, 384], strides = [1, 1]} : vector<8x6144xf32> to vector<8x384xf32>
    %439 = arith.maximumf %435, %436 : vector<8x384xf32>
    %440 = arith.maximumf %437, %438 : vector<8x384xf32>
    %441 = arith.maximumf %439, %440 : vector<8x384xf32>
    %442 = arith.addf %441, %4 : vector<8x384xf32>
    %cst_168 = arith.constant 0.000000e+00 : f32
    %443 = vector.broadcast %cst_168 : f32 to vector<8x384xf32>
    %444 = arith.maximumf %442, %443 : vector<8x384xf32>
    %445 = vector.extract_strided_slice %414 {offsets = [0, 1], sizes = [8, 383], strides = [1, 1]} : vector<8x384xf32> to vector<8x383xf32>
    %446 = vector.extract_strided_slice %414 {offsets = [0, 0], sizes = [8, 1], strides = [1, 1]} : vector<8x384xf32> to vector<8x1xf32>
    %447 = tpu.concatenate %445, %446 in 1 : vector<8x383xf32>, vector<8x1xf32> -> vector<8x384xf32>
    %448 = vector.extract_strided_slice %434 {offsets = [0, 1], sizes = [8, 383], strides = [1, 1]} : vector<8x384xf32> to vector<8x383xf32>
    %449 = vector.extract_strided_slice %434 {offsets = [0, 0], sizes = [8, 1], strides = [1, 1]} : vector<8x384xf32> to vector<8x1xf32>
    %450 = tpu.concatenate %448, %449 in 1 : vector<8x383xf32>, vector<8x1xf32> -> vector<8x384xf32>
    %451 = vector.extract_strided_slice %414 {offsets = [0, 19], sizes = [8, 365], strides = [1, 1]} : vector<8x384xf32> to vector<8x365xf32>
    %452 = vector.extract_strided_slice %414 {offsets = [0, 0], sizes = [8, 19], strides = [1, 1]} : vector<8x384xf32> to vector<8x19xf32>
    %453 = tpu.concatenate %451, %452 in 1 : vector<8x365xf32>, vector<8x19xf32> -> vector<8x384xf32>
    %454 = vector.extract_strided_slice %424 {offsets = [0, 19], sizes = [8, 365], strides = [1, 1]} : vector<8x384xf32> to vector<8x365xf32>
    %455 = vector.extract_strided_slice %424 {offsets = [0, 0], sizes = [8, 19], strides = [1, 1]} : vector<8x384xf32> to vector<8x19xf32>
    %456 = tpu.concatenate %454, %455 in 1 : vector<8x365xf32>, vector<8x19xf32> -> vector<8x384xf32>
    %457 = vector.extract_strided_slice %414 {offsets = [0, 20], sizes = [8, 364], strides = [1, 1]} : vector<8x384xf32> to vector<8x364xf32>
    %458 = vector.extract_strided_slice %414 {offsets = [0, 0], sizes = [8, 20], strides = [1, 1]} : vector<8x384xf32> to vector<8x20xf32>
    %459 = tpu.concatenate %457, %458 in 1 : vector<8x364xf32>, vector<8x20xf32> -> vector<8x384xf32>
    %460 = tpu.concatenate %414, %424, %434, %444 in 0 : vector<8x384xf32>, vector<8x384xf32>, vector<8x384xf32>, vector<8x384xf32> -> vector<32x384xf32>
    %461 = tpu.concatenate %424, %447, %444, %450 in 0 : vector<8x384xf32>, vector<8x384xf32>, vector<8x384xf32>, vector<8x384xf32> -> vector<32x384xf32>
    %462 = tpu.concatenate %434, %444, %453, %456 in 0 : vector<8x384xf32>, vector<8x384xf32>, vector<8x384xf32>, vector<8x384xf32> -> vector<32x384xf32>
    %463 = tpu.concatenate %444, %450, %456, %459 in 0 : vector<8x384xf32>, vector<8x384xf32>, vector<8x384xf32>, vector<8x384xf32> -> vector<32x384xf32>
    %464 = tpu.concatenate %460, %461, %462, %463 in 1 : vector<32x384xf32>, vector<32x384xf32>, vector<32x384xf32>, vector<32x384xf32> -> vector<32x1536xf32>
    %cst_169 = arith.constant dense<0.000000e+00> : vector<32x1536xf32>
    %465 = tpu.matmul %1, %464, %cst_169 {dimension_numbers = #tpu.dot_dimension_numbers<[1], [0], [0], [1], [0, 0, 1, 1], [], []>} : vector<32x32xf32>, vector<32x1536xf32>, vector<32x1536xf32> -> vector<32x1536xf32>
    %466 = vector.extract_strided_slice %465 {offsets = [0, 0], sizes = [32, 384], strides = [1, 1]} : vector<32x1536xf32> to vector<32x384xf32>
    %467 = vector.extract_strided_slice %465 {offsets = [0, 384], sizes = [32, 384], strides = [1, 1]} : vector<32x1536xf32> to vector<32x384xf32>
    %468 = arith.maximumf %466, %467 : vector<32x384xf32>
    %469 = vector.extract_strided_slice %465 {offsets = [0, 768], sizes = [32, 384], strides = [1, 1]} : vector<32x1536xf32> to vector<32x384xf32>
    %470 = vector.extract_strided_slice %465 {offsets = [0, 1152], sizes = [32, 384], strides = [1, 1]} : vector<32x1536xf32> to vector<32x384xf32>
    %471 = arith.maximumf %469, %470 : vector<32x384xf32>
    %472 = arith.maximumf %468, %471 : vector<32x384xf32>
    %473 = arith.addf %472, %7 : vector<32x384xf32>
    %cst_170 = arith.constant 0.000000e+00 : f32
    %474 = vector.broadcast %cst_170 : f32 to vector<32x384xf32>
    %475 = arith.maximumf %473, %474 : vector<32x384xf32>
    %c0_171 = arith.constant 0 : index
    %c0_172 = arith.constant 0 : index
    %c0_173 = arith.constant 0 : index
    %476 = vector.load %arg6[%c0_171, %c0_172, %c0_173] : memref<10x32x384xf32, #tpu.memory_space<vmem>>, vector<1x32x384xf32>
    %477 = vector.shape_cast %476 : vector<1x32x384xf32> to vector<32x384xf32>
    %478 = arith.mulf %475, %477 : vector<32x384xf32>
    %cst_174 = arith.constant dense<0.000000e+00> : vector<32xf32>
    %479 = vector.multi_reduction <add>, %478, %cst_174 [1] : vector<32x384xf32> to vector<32xf32>
    %480 = vector.shape_cast %479 : vector<32xf32> to vector<32x1xf32>
    %c1_175 = arith.constant 1 : index
    %c0_176 = arith.constant 0 : index
    %c0_177 = arith.constant 0 : index
    %481 = vector.load %arg6[%c1_175, %c0_176, %c0_177] : memref<10x32x384xf32, #tpu.memory_space<vmem>>, vector<1x32x384xf32>
    %482 = vector.shape_cast %481 : vector<1x32x384xf32> to vector<32x384xf32>
    %483 = arith.mulf %475, %482 : vector<32x384xf32>
    %cst_178 = arith.constant dense<0.000000e+00> : vector<32xf32>
    %484 = vector.multi_reduction <add>, %483, %cst_178 [1] : vector<32x384xf32> to vector<32xf32>
    %485 = vector.shape_cast %484 : vector<32xf32> to vector<32x1xf32>
    %c2_179 = arith.constant 2 : index
    %c0_180 = arith.constant 0 : index
    %c0_181 = arith.constant 0 : index
    %486 = vector.load %arg6[%c2_179, %c0_180, %c0_181] : memref<10x32x384xf32, #tpu.memory_space<vmem>>, vector<1x32x384xf32>
    %487 = vector.shape_cast %486 : vector<1x32x384xf32> to vector<32x384xf32>
    %488 = arith.mulf %475, %487 : vector<32x384xf32>
    %cst_182 = arith.constant dense<0.000000e+00> : vector<32xf32>
    %489 = vector.multi_reduction <add>, %488, %cst_182 [1] : vector<32x384xf32> to vector<32xf32>
    %490 = vector.shape_cast %489 : vector<32xf32> to vector<32x1xf32>
    %c3_183 = arith.constant 3 : index
    %c0_184 = arith.constant 0 : index
    %c0_185 = arith.constant 0 : index
    %491 = vector.load %arg6[%c3_183, %c0_184, %c0_185] : memref<10x32x384xf32, #tpu.memory_space<vmem>>, vector<1x32x384xf32>
    %492 = vector.shape_cast %491 : vector<1x32x384xf32> to vector<32x384xf32>
    %493 = arith.mulf %475, %492 : vector<32x384xf32>
    %cst_186 = arith.constant dense<0.000000e+00> : vector<32xf32>
    %494 = vector.multi_reduction <add>, %493, %cst_186 [1] : vector<32x384xf32> to vector<32xf32>
    %495 = vector.shape_cast %494 : vector<32xf32> to vector<32x1xf32>
    %c4_187 = arith.constant 4 : index
    %c0_188 = arith.constant 0 : index
    %c0_189 = arith.constant 0 : index
    %496 = vector.load %arg6[%c4_187, %c0_188, %c0_189] : memref<10x32x384xf32, #tpu.memory_space<vmem>>, vector<1x32x384xf32>
    %497 = vector.shape_cast %496 : vector<1x32x384xf32> to vector<32x384xf32>
    %498 = arith.mulf %475, %497 : vector<32x384xf32>
    %cst_190 = arith.constant dense<0.000000e+00> : vector<32xf32>
    %499 = vector.multi_reduction <add>, %498, %cst_190 [1] : vector<32x384xf32> to vector<32xf32>
    %500 = vector.shape_cast %499 : vector<32xf32> to vector<32x1xf32>
    %c5_191 = arith.constant 5 : index
    %c0_192 = arith.constant 0 : index
    %c0_193 = arith.constant 0 : index
    %501 = vector.load %arg6[%c5_191, %c0_192, %c0_193] : memref<10x32x384xf32, #tpu.memory_space<vmem>>, vector<1x32x384xf32>
    %502 = vector.shape_cast %501 : vector<1x32x384xf32> to vector<32x384xf32>
    %503 = arith.mulf %475, %502 : vector<32x384xf32>
    %cst_194 = arith.constant dense<0.000000e+00> : vector<32xf32>
    %504 = vector.multi_reduction <add>, %503, %cst_194 [1] : vector<32x384xf32> to vector<32xf32>
    %505 = vector.shape_cast %504 : vector<32xf32> to vector<32x1xf32>
    %c6_195 = arith.constant 6 : index
    %c0_196 = arith.constant 0 : index
    %c0_197 = arith.constant 0 : index
    %506 = vector.load %arg6[%c6_195, %c0_196, %c0_197] : memref<10x32x384xf32, #tpu.memory_space<vmem>>, vector<1x32x384xf32>
    %507 = vector.shape_cast %506 : vector<1x32x384xf32> to vector<32x384xf32>
    %508 = arith.mulf %475, %507 : vector<32x384xf32>
    %cst_198 = arith.constant dense<0.000000e+00> : vector<32xf32>
    %509 = vector.multi_reduction <add>, %508, %cst_198 [1] : vector<32x384xf32> to vector<32xf32>
    %510 = vector.shape_cast %509 : vector<32xf32> to vector<32x1xf32>
    %c7_199 = arith.constant 7 : index
    %c0_200 = arith.constant 0 : index
    %c0_201 = arith.constant 0 : index
    %511 = vector.load %arg6[%c7_199, %c0_200, %c0_201] : memref<10x32x384xf32, #tpu.memory_space<vmem>>, vector<1x32x384xf32>
    %512 = vector.shape_cast %511 : vector<1x32x384xf32> to vector<32x384xf32>
    %513 = arith.mulf %475, %512 : vector<32x384xf32>
    %cst_202 = arith.constant dense<0.000000e+00> : vector<32xf32>
    %514 = vector.multi_reduction <add>, %513, %cst_202 [1] : vector<32x384xf32> to vector<32xf32>
    %515 = vector.shape_cast %514 : vector<32xf32> to vector<32x1xf32>
    %c8_203 = arith.constant 8 : index
    %c0_204 = arith.constant 0 : index
    %c0_205 = arith.constant 0 : index
    %516 = vector.load %arg6[%c8_203, %c0_204, %c0_205] : memref<10x32x384xf32, #tpu.memory_space<vmem>>, vector<1x32x384xf32>
    %517 = vector.shape_cast %516 : vector<1x32x384xf32> to vector<32x384xf32>
    %518 = arith.mulf %475, %517 : vector<32x384xf32>
    %cst_206 = arith.constant dense<0.000000e+00> : vector<32xf32>
    %519 = vector.multi_reduction <add>, %518, %cst_206 [1] : vector<32x384xf32> to vector<32xf32>
    %520 = vector.shape_cast %519 : vector<32xf32> to vector<32x1xf32>
    %c9_207 = arith.constant 9 : index
    %c0_208 = arith.constant 0 : index
    %c0_209 = arith.constant 0 : index
    %521 = vector.load %arg6[%c9_207, %c0_208, %c0_209] : memref<10x32x384xf32, #tpu.memory_space<vmem>>, vector<1x32x384xf32>
    %522 = vector.shape_cast %521 : vector<1x32x384xf32> to vector<32x384xf32>
    %523 = arith.mulf %475, %522 : vector<32x384xf32>
    %cst_210 = arith.constant dense<0.000000e+00> : vector<32xf32>
    %524 = vector.multi_reduction <add>, %523, %cst_210 [1] : vector<32x384xf32> to vector<32xf32>
    %525 = vector.shape_cast %524 : vector<32xf32> to vector<32x1xf32>
    %526 = tpu.concatenate %480, %485, %490, %495, %500, %505, %510, %515, %520, %525 in 1 : vector<32x1xf32>, vector<32x1xf32>, vector<32x1xf32>, vector<32x1xf32>, vector<32x1xf32>, vector<32x1xf32>, vector<32x1xf32>, vector<32x1xf32>, vector<32x1xf32>, vector<32x1xf32> -> vector<32x10xf32>
    %cst_211 = arith.constant dense<0.000000e+00> : vector<10xf32>
    %527 = vector.multi_reduction <add>, %526, %cst_211 [0] : vector<32x10xf32> to vector<10xf32>
    %528 = vector.shape_cast %527 : vector<10xf32> to vector<1x10xf32>
    %529 = arith.addf %528, %8 : vector<1x10xf32>
    %c3_212 = arith.constant 3 : index
    %c0_213 = arith.constant 0 : index
    %c0_214 = arith.constant 0 : index
    %530 = vector.load %arg8[%c3_212, %c0_213, %c0_214] : memref<4x1x10xf32, #tpu.memory_space<vmem>>, vector<1x1x10xf32>
    %531 = vector.shape_cast %530 : vector<1x1x10xf32> to vector<1x10xf32>
    %532 = vector.shape_cast %529 : vector<1x10xf32> to vector<1x1x10xf32>
    tpu.vector_store %arg8[%c3_212, %c0_213, %c0_214], %532 {strides = array<i32>} : memref<4x1x10xf32, #tpu.memory_space<vmem>>, vector<1x1x10xf32>,
    return
  }
  func.func @transform_0(%arg0: i32) -> (i32, i32, i32) {
    %c0_i32 = arith.constant 0 : i32
    %c0_i32_0 = arith.constant 0 : i32
    %c0_i32_1 = arith.constant 0 : i32
    return %arg0, %c0_i32, %c0_i32_0 : i32, i32, i32
  }
  func.func @transform_1(%arg0: i32) -> (i32, i32) {
    %c0_i32 = arith.constant 0 : i32
    %c0_i32_0 = arith.constant 0 : i32
    %c0_i32_1 = arith.constant 0 : i32
    return %c0_i32, %c0_i32_0 : i32, i32
  }
  func.func @transform_2(%arg0: i32) -> (i32, i32) {
    %c0_i32 = arith.constant 0 : i32
    %c0_i32_0 = arith.constant 0 : i32
    %c0_i32_1 = arith.constant 0 : i32
    return %c0_i32, %c0_i32_0 : i32, i32
  }
  func.func @transform_3(%arg0: i32) -> (i32, i32) {
    %c0_i32 = arith.constant 0 : i32
    %c0_i32_0 = arith.constant 0 : i32
    %c0_i32_1 = arith.constant 0 : i32
    return %c0_i32, %c0_i32_0 : i32, i32
  }
  func.func @transform_4(%arg0: i32) -> (i32, i32) {
    %c0_i32 = arith.constant 0 : i32
    %c0_i32_0 = arith.constant 0 : i32
    %c0_i32_1 = arith.constant 0 : i32
    return %c0_i32, %c0_i32_0 : i32, i32
  }
  func.func @transform_5(%arg0: i32) -> (i32, i32, i32) {
    %c0_i32 = arith.constant 0 : i32
    %c0_i32_0 = arith.constant 0 : i32
    %c0_i32_1 = arith.constant 0 : i32
    %c0_i32_2 = arith.constant 0 : i32
    return %c0_i32, %c0_i32_0, %c0_i32_1 : i32, i32, i32
  }
  func.func @transform_6(%arg0: i32) -> (i32, i32) {
    %c0_i32 = arith.constant 0 : i32
    %c0_i32_0 = arith.constant 0 : i32
    %c0_i32_1 = arith.constant 0 : i32
    return %c0_i32, %c0_i32_0 : i32, i32
  }
  func.func @transform_7(%arg0: i32) -> (i32, i32, i32) {
    %c0_i32 = arith.constant 0 : i32
    %c0_i32_0 = arith.constant 0 : i32
    %c0_i32_1 = arith.constant 0 : i32
    return %arg0, %c0_i32, %c0_i32_0 : i32, i32, i32
  }
}

</mosaic_0001>

<bundles_post_ra>
// kernel: cnn_forward.1
= control target key start
LH: loop header
LB: loop body
LE: loop exit
PB: predicated region body
PF: predicated region fallthrough
CT: control target
= control target key end

     0   :  { %12 = vsyncpa [#allocation3], 0  ;;  %s16301_s0 = inlined_call_operand.vmem [shape: f32[8,12,6144], index: 0, kind: input, shape index: {}]   ;;  %s16302_s1 = inlined_call_operand.vmem [shape: f32[8,12], index: 1, kind: input, shape index: {}]   ;;  %s16303_s2 = inlined_call_operand.vmem [shape: f32[8,1], index: 2, kind: input, shape index: {}]   ;;  %s16304_s3 = inlined_call_operand.vmem [shape: f32[32,32], index: 3, kind: input, shape index: {}]   ;;  %s16305_s4 = inlined_call_operand.vmem [shape: f32[32,1], index: 4, kind: input, shape index: {}]   ;;  %s16306_s5 = inlined_call_operand.vmem [shape: f32[10,32,384], index: 5, kind: input, shape index: {}]   ;;  %s16307_s6 = inlined_call_operand.vmem [shape: f32[1,10], index: 6, kind: input, shape index: {}]   ;;  %s16308_s7 = inlined_call_operand.hbm [shape: f32[8,1,10], index: 7, kind: output, shape index: {}]  }
   0x1   :  { %14 = vsyncpa [#allocation3 + $0x1], 0  ;;  %s10868_s24 = smov 0   ;;  %s10870_s25 = smov 0  }
   0x2   :  { %s10872_s26 = smov 0   ;;  %s10874_s27 = smov 0  }
   0x3 LB: > { %s9214_s28 = sadd.s32 4294967295, %s10820_s27   ;;  %s9215_s29 = sadd.s32 4294967294, %s10820_s27   ;;  %s10820_s27 = sphi %s10874_s27, %s16583_s27   ;;  %s10816_s26 = sphi %s10872_s26, %s16582_s26   ;;  %s10812_s25 = sphi %s10870_s25, %s16581_s25   ;;  %s10808_s24 = sphi %s10868_s24, %s16580_s24  }
   0x4   : > { %s10891_s30 = sadd.s32 1, %s10820_s27   ;;  %s179_s8 = sadd.s32 1, %s10816_s26 }
   0x5   : > { %s176_s9 = ssub.s32 %s10820_s27, %s10891_s30  ;;  %p189_p0 = scmp.ne.s32.totalorder %s10816_s26, %s10812_s25 }
   0x6   : > { %p177_p1 = scmp.eq.s32.totalorder %s176_s9, 0  ;;  %p190_p2 = scmp.eq.s32.totalorder %s9214_s28, 1 }
   0x7   : > { %p195_p3 = scmp.ne.s32.totalorder %s10812_s25, %s10808_s24  ;;  %p196_p4 = scmp.eq.s32.totalorder %s9215_s29, 1 }
   0x8   : > { %s10901_s10 = scalar_select %p177_p1, %s10816_s26, %s179_s8  }
   0x9   : > { %p10903_p5 = por %p190_p2, %p189_p0  ;;  %p10907_p6 = por %p196_p4, %p195_p3 }
   0xa   : > { %p9218_p7 = scmp.ge.s32.totalorder %s10820_s27, 1  ;;  %p242_p8 = scmp.lt.s32.totalorder %s10820_s27, 3 }
   0xc   : > { %p243_p9 = pnand %p9218_p7, %p242_p8 }
   0xe   : > { %246 = sbr.rel (%p243_p9) target bundleno = 2058 (0x80a), region = 48 }
  0x13   : > { %s10913_s13 = sshll.u32 %s9214_s28, 2  ;;  %vm419_vm0 = vcmask 1043456   ;;  %v288_v0 = vld [vmem:[%s16303_s2] sm:$0xff]  ;;  %v10822_v1 = vmov 0   ;;  %vm415_vm1 = vcmask 97280   ;;  %s10823_s23 = smov 109  }
  0x14   : > { %p276_p10 = scmp.lt.s32.totalorder %s10913_s13, 7  ;;  %10571 = vset.pattern.permute.xlu0 %v10822_v1  ;;  %10677 = vset.pattern.permute.xlu1 %v10822_v1  ;;  %v10940_v10 = vld [vmem:[%s16302_s1] sm:$0xff]  ;;  %s10824_s28 = smov 127   ;;  %vm1661_vm2 = vcmask 261120   ;;  %vm1623_vm3 = vcmask 891904   ;;  %vm1653_vm4 = vcmask 883712  }
  0x15   : > { %291 = vperm.xlu0 %10571, %v288_v0   ;;  %10678 = vset.pattern.permute.xlu2 %v10822_v1  ;;  %s10825_s29 = smov 108   ;;  %vm1593_vm5 = vcmask 1039360   ;;  %vm2491_vm6 = vcmask 7168   ;;  %vm2496_vm7 = vcmask 15360   ;;  %vm2501_vm8 = vcmask 23552   ;;  %s272_s18 = sand.u32 1, %s10812_s25  }
  0x16   : > { %s277_s14 = scalar_select %p276_p10, %s10913_s13, 7  ;;  %vm2506_vm9 = vcmask 31744   ;;  %vm2511_vm10 = vcmask 39936   ;;  %vm2516_vm11 = vcmask 48128   ;;  %vm2521_vm12 = vcmask 56320  }
  0x17   : > { %vm2526_vm13 = vcmask 64512   ;;  %vm2531_vm14 = vcmask 72704   ;;  %vm2536_vm15 = vcmask 80896   ;;  %s9219_s19 = sshll.u32 %s272_s18, 2  ;;  %s9149_s22 = scalar_lea.hbm %s16308_s7, %s10913_s13 }
  0x18   : > { %s10525_s15 = smul.u32 768, %s277_s14  ;;  %s9139_s9 = scalar_lea.sflag [#allocation3], %s272_s18 }
  0x19   : > { %s10778_s17 = scalar_lea.hbm %s16308_s7, 8 }
  0x1a   : > { %s10923_s20 = scalar_lea.vmem %s16301_s0, %s10525_s15 }
  0x1b   : > { %v367_v2 = vld [vmem:[%s10923_s20 + $0x180] sm:$0xf]  ;;  %v368_v3 = vld [vmem:[%s10923_s20 + $0x188] sm:$0xf]  ;;  %v369_v4 = vld [vmem:[%s10923_s20 + $0x190] sm:$0xf] }
  0x1c   : > { %9222 = vmatpush.msk.msra.mxu0 %vm419_vm0, %v367_v2  ;;  %9224 = vmatpush.msk.msra.mxu1 %vm419_vm0, %v368_v3  ;;  %v370_v5 = vld [vmem:[%s10923_s20 + $0x198] sm:$0xf]  ;;  %v319_v6 = vld [vmem:[%s10923_s20] sm:$0xff]  ;;  %v320_v7 = vld [vmem:[%s10923_s20 + $0x8] sm:$0xff] }
  0x1d   : > { %9226 = vmatpush.msk.msra.mxu2 %vm419_vm0, %v369_v4  ;;  %9228 = vmatpush.msk.msra.mxu3 %vm419_vm0, %v370_v5  ;;  %v321_v8 = vld [vmem:[%s10923_s20 + $0x10] sm:$0xff]  ;;  %v322_v9 = vld [vmem:[%s10923_s20 + $0x18] sm:$0xff]  ;;  %v371_v11 = vld [vmem:[%s10923_s20 + $0x1a0] sm:$0xf] }
  0x1e   : > { %579 = vmatpush.msra.mxu0 %v319_v6  ;;  %599 = vmatpush.msra.mxu1 %v320_v7  ;;  %v372_v12 = vld [vmem:[%s10923_s20 + $0x1a8] sm:$0xf]  ;;  %v373_v13 = vld [vmem:[%s10923_s20 + $0x1b0] sm:$0xf]  ;;  %v374_v14 = vld [vmem:[%s10923_s20 + $0x1b8] sm:$0xf] }
  0x1f   : > { %619 = vmatpush.msra.mxu2 %v321_v8  ;;  %639 = vmatpush.msra.mxu3 %v322_v9  ;;  %v323_v15 = vld [vmem:[%s10923_s20 + $0x20] sm:$0xff]  ;;  %v324_v16 = vld [vmem:[%s10923_s20 + $0x28] sm:$0xff]  ;;  %v325_v17 = vld [vmem:[%s10923_s20 + $0x30] sm:$0xff] }
  0x20   : > { %9223 = vmatmul.msk.f32.vlgmr.msra.gmra.mxu0 %vm415_vm1, %v10940_v10  ;;  %9225 = vmatmul.msk.f32.vlgmr.msra.gmra.mxu1 %vm415_vm1, %v10940_v10  ;;  %v326_v18 = vld [vmem:[%s10923_s20 + $0x38] sm:$0xff]  ;;  %v375_v19 = vld [vmem:[%s10923_s20 + $0x1c0] sm:$0xf]  ;;  %v376_v20 = vld [vmem:[%s10923_s20 + $0x1c8] sm:$0xf] }
  0x21   : > { %9227 = vmatmul.msk.f32.vlgmr.msra.gmra.mxu2 %vm415_vm1, %v10940_v10  ;;  %9229 = vmatmul.msk.f32.vlgmr.msra.gmra.mxu3 %vm415_vm1, %v10940_v10  ;;  %v377_v21 = vld [vmem:[%s10923_s20 + $0x1d0] sm:$0xf]  ;;  %v378_v22 = vld [vmem:[%s10923_s20 + $0x1d8] sm:$0xf]  ;;  %v327_v23 = vld [vmem:[%s10923_s20 + $0x40] sm:$0xff] }
  0x22   : > { %9230 = vmatpush.msk.msrb.mxu0 %vm419_vm0, %v371_v11  ;;  %9232 = vmatpush.msk.msrb.mxu1 %vm419_vm0, %v372_v12  ;;  %v328_v24 = vld [vmem:[%s10923_s20 + $0x48] sm:$0xff]  ;;  %v329_v25 = vld [vmem:[%s10923_s20 + $0x50] sm:$0xff]  ;;  %v330_v26 = vld [vmem:[%s10923_s20 + $0x58] sm:$0xff] }
  0x23   : > { %9234 = vmatpush.msk.msrb.mxu2 %vm419_vm0, %v373_v13  ;;  %9236 = vmatpush.msk.msrb.mxu3 %vm419_vm0, %v374_v14  ;;  %v379_v27 = vld [vmem:[%s10923_s20 + $0x1e0] sm:$0xf]  ;;  %v380_v28 = vld [vmem:[%s10923_s20 + $0x1e8] sm:$0xf]  ;;  %v381_v29 = vld [vmem:[%s10923_s20 + $0x1f0] sm:$0xf] }
  0x24   : > { %659 = vmatpush.msrb.mxu0 %v323_v15  ;;  %679 = vmatpush.msrb.mxu1 %v324_v16  ;;  %v382_v30 = vld [vmem:[%s10923_s20 + $0x1f8] sm:$0xf]  ;;  %v331_v31 = vld [vmem:[%s10923_s20 + $0x60] sm:$0xff]  ;;  %v332_v32 = vld [vmem:[%s10923_s20 + $0x68] sm:$0xff] }
  0x25   : > { %699 = vmatpush.msrb.mxu2 %v325_v17  ;;  %719 = vmatpush.msrb.mxu3 %v326_v18  ;;  %v333_v33 = vld [vmem:[%s10923_s20 + $0x70] sm:$0xff]  ;;  %v334_v34 = vld [vmem:[%s10923_s20 + $0x78] sm:$0xff]  ;;  %v383_v35 = vld [vmem:[%s10923_s20 + $0x200] sm:$0xf] }
  0x26   : > { %9238 = vmatpush.msk.msra.mxu0 %vm419_vm0, %v375_v19  ;;  %9240 = vmatpush.msk.msra.mxu1 %vm419_vm0, %v376_v20  ;;  %v384_v36 = vld [vmem:[%s10923_s20 + $0x208] sm:$0xf]  ;;  %v385_v37 = vld [vmem:[%s10923_s20 + $0x210] sm:$0xf]  ;;  %v386_v38 = vld [vmem:[%s10923_s20 + $0x218] sm:$0xf] }
  0x27   : > { %9242 = vmatpush.msk.msra.mxu2 %vm419_vm0, %v377_v21  ;;  %9244 = vmatpush.msk.msra.mxu3 %vm419_vm0, %v378_v22  ;;  %v335_v39 = vld [vmem:[%s10923_s20 + $0x80] sm:$0xff]  ;;  %v336_v40 = vld [vmem:[%s10923_s20 + $0x88] sm:$0xff]  ;;  %v337_v41 = vld [vmem:[%s10923_s20 + $0x90] sm:$0xff] }
  0x28   : > { %9231 = vmatmul.msk.f32.vlgmr.msrb.gmra.mxu0 %vm415_vm1, %v10940_v10  ;;  %9233 = vmatmul.msk.f32.vlgmr.msrb.gmra.mxu1 %vm415_vm1, %v10940_v10  ;;  %v338_v42 = vld [vmem:[%s10923_s20 + $0x98] sm:$0xff]  ;;  %v387_v43 = vld [vmem:[%s10923_s20 + $0x220] sm:$0xf]  ;;  %v388_v44 = vld [vmem:[%s10923_s20 + $0x228] sm:$0xf] }
  0x29   : > { %9235 = vmatmul.msk.f32.vlgmr.msrb.gmra.mxu2 %vm415_vm1, %v10940_v10  ;;  %9237 = vmatmul.msk.f32.vlgmr.msrb.gmra.mxu3 %vm415_vm1, %v10940_v10  ;;  %v389_v45 = vld [vmem:[%s10923_s20 + $0x230] sm:$0xf]  ;;  %v390_v46 = vld [vmem:[%s10923_s20 + $0x238] sm:$0xf]  ;;  %v339_v47 = vld [vmem:[%s10923_s20 + $0xa0] sm:$0xff] }
  0x2a   : > { %739 = vmatpush.msra.mxu0 %v327_v23  ;;  %759 = vmatpush.msra.mxu1 %v328_v24  ;;  %v340_v48 = vld [vmem:[%s10923_s20 + $0xa8] sm:$0xff]  ;;  %v341_v49 = vld [vmem:[%s10923_s20 + $0xb0] sm:$0xff]  ;;  %v342_v50 = vld [vmem:[%s10923_s20 + $0xb8] sm:$0xff] }
  0x2b   : > { %779 = vmatpush.msra.mxu2 %v329_v25  ;;  %799 = vmatpush.msra.mxu3 %v330_v26  ;;  %v391_v51 = vld [vmem:[%s10923_s20 + $0x240] sm:$0xf]  ;;  %v392_v52 = vld [vmem:[%s10923_s20 + $0x248] sm:$0xf]  ;;  %v393_v53 = vld [vmem:[%s10923_s20 + $0x250] sm:$0xf] }
  0x2c   : > { %9246 = vmatpush.msk.msrb.mxu0 %vm419_vm0, %v379_v27  ;;  %9248 = vmatpush.msk.msrb.mxu1 %vm419_vm0, %v380_v28  ;;  %v394_v54 = vld [vmem:[%s10923_s20 + $0x258] sm:$0xf]  ;;  %v343_v55 = vld [vmem:[%s10923_s20 + $0xc0] sm:$0xff]  ;;  %v344_v56 = vld [vmem:[%s10923_s20 + $0xc8] sm:$0xff] }
  0x2d   : > { %9250 = vmatpush.msk.msrb.mxu2 %vm419_vm0, %v381_v29  ;;  %9252 = vmatpush.msk.msrb.mxu3 %vm419_vm0, %v382_v30  ;;  %v345_v57 = vld [vmem:[%s10923_s20 + $0xd0] sm:$0xff]  ;;  %v346_v58 = vld [vmem:[%s10923_s20 + $0xd8] sm:$0xff]  ;;  %v395_v59 = vld [vmem:[%s10923_s20 + $0x260] sm:$0xf] }
  0x2e   : > { %819 = vmatpush.msrb.mxu0 %v331_v31  ;;  %839 = vmatpush.msrb.mxu1 %v332_v32  ;;  %v396_v60 = vld [vmem:[%s10923_s20 + $0x268] sm:$0xf]  ;;  %v397_v61 = vld [vmem:[%s10923_s20 + $0x270] sm:$0xf]  ;;  %v398_v62 = vld [vmem:[%s10923_s20 + $0x278] sm:$0xf] }
  0x2f   : > { %859 = vmatpush.msrb.mxu2 %v333_v33  ;;  %879 = vmatpush.msrb.mxu3 %v334_v34  ;;  %v347_v63 = vld [vmem:[%s10923_s20 + $0xe0] sm:$0xff]  ;;  %v348_v0 = vld [vmem:[%s10923_s20 + $0xe8] sm:$0xff]  ;;  %v349_v1 = vld [vmem:[%s10923_s20 + $0xf0] sm:$0xff] }
  0x30   : > { %9239 = vmatmul.msk.f32.vlgmr.msra.gmra.mxu0 %vm415_vm1, %v10940_v10  ;;  %9241 = vmatmul.msk.f32.vlgmr.msra.gmra.mxu1 %vm415_vm1, %v10940_v10  ;;  %v350_v2 = vld [vmem:[%s10923_s20 + $0xf8] sm:$0xff]  ;;  %v400_v3 = vld [vmem:[%s10923_s20 + $0x288] sm:$0xf]  ;;  %v401_v4 = vld [vmem:[%s10923_s20 + $0x290] sm:$0xf] }
  0x31   : > { %9243 = vmatmul.msk.f32.vlgmr.msra.gmra.mxu2 %vm415_vm1, %v10940_v10  ;;  %9245 = vmatmul.msk.f32.vlgmr.msra.gmra.mxu3 %vm415_vm1, %v10940_v10  ;;  %v402_v5 = vld [vmem:[%s10923_s20 + $0x298] sm:$0xf]  ;;  %v399_v6 = vld [vmem:[%s10923_s20 + $0x280] sm:$0xf]  ;;  %v352_v7 = vld [vmem:[%s10923_s20 + $0x108] sm:$0xff] }
  0x32   : > { %9254 = vmatpush.msk.msra.mxu0 %vm419_vm0, %v383_v35  ;;  %9256 = vmatpush.msk.msra.mxu1 %vm419_vm0, %v384_v36  ;;  %v353_v8 = vld [vmem:[%s10923_s20 + $0x110] sm:$0xff]  ;;  %v354_v9 = vld [vmem:[%s10923_s20 + $0x118] sm:$0xff]  ;;  %v351_v11 = vld [vmem:[%s10923_s20 + $0x100] sm:$0xff] }
  0x33   : > { %9258 = vmatpush.msk.msra.mxu2 %vm419_vm0, %v385_v37  ;;  %9260 = vmatpush.msk.msra.mxu3 %vm419_vm0, %v386_v38  ;;  %v404_v12 = vld [vmem:[%s10923_s20 + $0x2a8] sm:$0xf]  ;;  %v405_v13 = vld [vmem:[%s10923_s20 + $0x2b0] sm:$0xf]  ;;  %v406_v14 = vld [vmem:[%s10923_s20 + $0x2b8] sm:$0xf] }
  0x34   : > { %899 = vmatpush.msra.mxu0 %v335_v39  ;;  %919 = vmatpush.msra.mxu1 %v336_v40  ;;  %v403_v15 = vld [vmem:[%s10923_s20 + $0x2a0] sm:$0xf]  ;;  %v356_v16 = vld [vmem:[%s10923_s20 + $0x128] sm:$0xff]  ;;  %v357_v17 = vld [vmem:[%s10923_s20 + $0x130] sm:$0xff] }
  0x35   : > { %939 = vmatpush.msra.mxu2 %v337_v41  ;;  %959 = vmatpush.msra.mxu3 %v338_v42  ;;  %v358_v18 = vld [vmem:[%s10923_s20 + $0x138] sm:$0xff]  ;;  %v355_v19 = vld [vmem:[%s10923_s20 + $0x120] sm:$0xff]  ;;  %v408_v20 = vld [vmem:[%s10923_s20 + $0x2c8] sm:$0xf] }
  0x36   : > { %v409_v21 = vld [vmem:[%s10923_s20 + $0x2d0] sm:$0xf]  ;;  %v410_v22 = vld [vmem:[%s10923_s20 + $0x2d8] sm:$0xf]  ;;  %v407_v23 = vld [vmem:[%s10923_s20 + $0x2c0] sm:$0xf] }
  0x37   : > { %v360_v24 = vld [vmem:[%s10923_s20 + $0x148] sm:$0xff]  ;;  %v361_v25 = vld [vmem:[%s10923_s20 + $0x150] sm:$0xff]  ;;  %v362_v26 = vld [vmem:[%s10923_s20 + $0x158] sm:$0xff] }
  0x38   : > { %9247 = vmatmul.msk.f32.vlgmr.msrb.gmra.mxu0 %vm415_vm1, %v10940_v10  ;;  %9249 = vmatmul.msk.f32.vlgmr.msrb.gmra.mxu1 %vm415_vm1, %v10940_v10  ;;  %v359_v27 = vld [vmem:[%s10923_s20 + $0x140] sm:$0xff]  ;;  %v412_v28 = vld [vmem:[%s10923_s20 + $0x2e8] sm:$0xf]  ;;  %v413_v29 = vld [vmem:[%s10923_s20 + $0x2f0] sm:$0xf] }
  0x39   : > { %9251 = vmatmul.msk.f32.vlgmr.msrb.gmra.mxu2 %vm415_vm1, %v10940_v10  ;;  %9253 = vmatmul.msk.f32.vlgmr.msrb.gmra.mxu3 %vm415_vm1, %v10940_v10  ;;  %v414_v30 = vld [vmem:[%s10923_s20 + $0x2f8] sm:$0xf]  ;;  %v411_v31 = vld [vmem:[%s10923_s20 + $0x2e0] sm:$0xf]  ;;  %v364_v32 = vld [vmem:[%s10923_s20 + $0x168] sm:$0xff] }
  0x3a   : > { %9262 = vmatpush.msk.msrb.mxu0 %vm419_vm0, %v387_v43  ;;  %9264 = vmatpush.msk.msrb.mxu1 %vm419_vm0, %v388_v44  ;;  %v365_v33 = vld [vmem:[%s10923_s20 + $0x170] sm:$0xff]  ;;  %v366_v34 = vld [vmem:[%s10923_s20 + $0x178] sm:$0xff]  ;;  %v363_v35 = vld [vmem:[%s10923_s20 + $0x160] sm:$0xff] }
  0x3b   : > { %9266 = vmatpush.msk.msrb.mxu2 %vm419_vm0, %v389_v45  ;;  %9268 = vmatpush.msk.msrb.mxu3 %vm419_vm0, %v390_v46 }
  0x3c   : > { %979 = vmatpush.msrb.mxu0 %v339_v47  ;;  %999 = vmatpush.msrb.mxu1 %v340_v48 }
  0x3d   : > { %1019 = vmatpush.msrb.mxu2 %v341_v49  ;;  %1039 = vmatpush.msrb.mxu3 %v342_v50 }
  0x40   : > { %9255 = vmatmul.msk.f32.vlgmr.msra.gmra.mxu0 %vm415_vm1, %v10940_v10  ;;  %9257 = vmatmul.msk.f32.vlgmr.msra.gmra.mxu1 %vm415_vm1, %v10940_v10 }
  0x41   : > { %9259 = vmatmul.msk.f32.vlgmr.msra.gmra.mxu2 %vm415_vm1, %v10940_v10  ;;  %9261 = vmatmul.msk.f32.vlgmr.msra.gmra.mxu3 %vm415_vm1, %v10940_v10 }
  0x42   : > { %9270 = vmatpush.msk.msra.mxu0 %vm419_vm0, %v391_v51  ;;  %9272 = vmatpush.msk.msra.mxu1 %vm419_vm0, %v392_v52 }
  0x43   : > { %9274 = vmatpush.msk.msra.mxu2 %vm419_vm0, %v393_v53  ;;  %9276 = vmatpush.msk.msra.mxu3 %vm419_vm0, %v394_v54 }
  0x44   : > { %1059 = vmatpush.msra.mxu0 %v343_v55  ;;  %1079 = vmatpush.msra.mxu1 %v344_v56 }
  0x45   : > { %1099 = vmatpush.msra.mxu2 %v345_v57  ;;  %1119 = vmatpush.msra.mxu3 %v346_v58 }
  0x48   : > { %9263 = vmatmul.msk.f32.vlgmr.msrb.gmra.mxu0 %vm415_vm1, %v10940_v10  ;;  %9265 = vmatmul.msk.f32.vlgmr.msrb.gmra.mxu1 %vm415_vm1, %v10940_v10 }
  0x49   : > { %9267 = vmatmul.msk.f32.vlgmr.msrb.gmra.mxu2 %vm415_vm1, %v10940_v10  ;;  %9269 = vmatmul.msk.f32.vlgmr.msrb.gmra.mxu3 %vm415_vm1, %v10940_v10 }
  0x4a   : > { %9278 = vmatpush.msk.msrb.mxu0 %vm419_vm0, %v395_v59  ;;  %9280 = vmatpush.msk.msrb.mxu1 %vm419_vm0, %v396_v60 }
  0x4b   : > { %9282 = vmatpush.msk.msrb.mxu2 %vm419_vm0, %v397_v61  ;;  %9284 = vmatpush.msk.msrb.mxu3 %vm419_vm0, %v398_v62 }
  0x4c   : > { %1139 = vmatpush.msrb.mxu0 %v347_v63  ;;  %1159 = vmatpush.msrb.mxu1 %v348_v0 }
  0x4d   : > { %1179 = vmatpush.msrb.mxu2 %v349_v1  ;;  %1199 = vmatpush.msrb.mxu3 %v350_v2 }
  0x50   : > { %9271 = vmatmul.msk.f32.vlgmr.msra.gmra.mxu0 %vm415_vm1, %v10940_v10  ;;  %9273 = vmatmul.msk.f32.vlgmr.msra.gmra.mxu1 %vm415_vm1, %v10940_v10 }
  0x51   : > { %9275 = vmatmul.msk.f32.vlgmr.msra.gmra.mxu2 %vm415_vm1, %v10940_v10  ;;  %9277 = vmatmul.msk.f32.vlgmr.msra.gmra.mxu3 %vm415_vm1, %v10940_v10 }
  0x52   : > { %9288 = vmatpush.msk.msra.mxu1 %vm419_vm0, %v400_v3  ;;  %9290 = vmatpush.msk.msra.mxu2 %vm419_vm0, %v401_v4 }
  0x53   : > { %9292 = vmatpush.msk.msra.mxu3 %vm419_vm0, %v402_v5  ;;  %9286 = vmatpush.msk.msra.mxu0 %vm419_vm0, %v399_v6 }
  0x54   : > { %1239 = vmatpush.msra.mxu1 %v352_v7  ;;  %1259 = vmatpush.msra.mxu2 %v353_v8 }
  0x55   : > { %1279 = vmatpush.msra.mxu3 %v354_v9  ;;  %1219 = vmatpush.msra.mxu0 %v351_v11 }
  0x58   : > { %9279 = vmatmul.msk.f32.vlgmr.msrb.gmra.mxu0 %vm415_vm1, %v10940_v10  ;;  %9281 = vmatmul.msk.f32.vlgmr.msrb.gmra.mxu1 %vm415_vm1, %v10940_v10 }
  0x59   : > { %9283 = vmatmul.msk.f32.vlgmr.msrb.gmra.mxu2 %vm415_vm1, %v10940_v10  ;;  %9285 = vmatmul.msk.f32.vlgmr.msrb.gmra.mxu3 %vm415_vm1, %v10940_v10 }
  0x5a   : > { %9296 = vmatpush.msk.msrb.mxu1 %vm419_vm0, %v404_v12  ;;  %9298 = vmatpush.msk.msrb.mxu2 %vm419_vm0, %v405_v13 }
  0x5b   : > { %9300 = vmatpush.msk.msrb.mxu3 %vm419_vm0, %v406_v14  ;;  %9294 = vmatpush.msk.msrb.mxu0 %vm419_vm0, %v403_v15 }
  0x5c   : > { %1319 = vmatpush.msrb.mxu1 %v356_v16  ;;  %1339 = vmatpush.msrb.mxu2 %v357_v17 }
  0x5d   : > { %1359 = vmatpush.msrb.mxu3 %v358_v18  ;;  %1299 = vmatpush.msrb.mxu0 %v355_v19 }
  0x60   : > { %9289 = vmatmul.msk.f32.vlgmr.msra.gmra.mxu1 %vm415_vm1, %v10940_v10  ;;  %9287 = vmatmul.msk.f32.vlgmr.msra.gmra.mxu0 %vm415_vm1, %v10940_v10 }
  0x61   : > { %9291 = vmatmul.msk.f32.vlgmr.msra.gmra.mxu2 %vm415_vm1, %v10940_v10  ;;  %9293 = vmatmul.msk.f32.vlgmr.msra.gmra.mxu3 %vm415_vm1, %v10940_v10 }
  0x62   : > { %9304 = vmatpush.msk.msra.mxu1 %vm419_vm0, %v408_v20  ;;  %9306 = vmatpush.msk.msra.mxu2 %vm419_vm0, %v409_v21 }
  0x63   : > { %9308 = vmatpush.msk.msra.mxu3 %vm419_vm0, %v410_v22  ;;  %9302 = vmatpush.msk.msra.mxu0 %vm419_vm0, %v407_v23 }
  0x64   : > { %1399 = vmatpush.msra.mxu1 %v360_v24  ;;  %1419 = vmatpush.msra.mxu2 %v361_v25 }
  0x65   : > { %1439 = vmatpush.msra.mxu3 %v362_v26  ;;  %1379 = vmatpush.msra.mxu0 %v359_v27 }
  0x68   : > { %9297 = vmatmul.msk.f32.vlgmr.msrb.gmra.mxu1 %vm415_vm1, %v10940_v10  ;;  %9295 = vmatmul.msk.f32.vlgmr.msrb.gmra.mxu0 %vm415_vm1, %v10940_v10 }
  0x69   : > { %9299 = vmatmul.msk.f32.vlgmr.msrb.gmra.mxu2 %vm415_vm1, %v10940_v10  ;;  %9301 = vmatmul.msk.f32.vlgmr.msrb.gmra.mxu3 %vm415_vm1, %v10940_v10 }
  0x6a   : > { %9312 = vmatpush.msk.msrb.mxu1 %vm419_vm0, %v412_v28  ;;  %9314 = vmatpush.msk.msrb.mxu2 %vm419_vm0, %v413_v29 }
  0x6b   : > { %9316 = vmatpush.msk.msrb.mxu3 %vm419_vm0, %v414_v30  ;;  %9310 = vmatpush.msk.msrb.mxu0 %vm419_vm0, %v411_v31 }
  0x6c   : > { %1479 = vmatpush.msrb.mxu1 %v364_v32  ;;  %1499 = vmatpush.msrb.mxu2 %v365_v33 }
  0x6d   : > { %1519 = vmatpush.msrb.mxu3 %v366_v34  ;;  %1459 = vmatpush.msrb.mxu0 %v363_v35 }
  0x70   : > { %9305 = vmatmul.msk.f32.vlgmr.msra.gmra.mxu1 %vm415_vm1, %v10940_v10  ;;  %9303 = vmatmul.msk.f32.vlgmr.msra.gmra.mxu0 %vm415_vm1, %v10940_v10 }
  0x71   : > { %9307 = vmatmul.msk.f32.vlgmr.msra.gmra.mxu2 %vm415_vm1, %v10940_v10  ;;  %9309 = vmatmul.msk.f32.vlgmr.msra.gmra.mxu3 %vm415_vm1, %v10940_v10 }
  0x78   : > { %9313 = vmatmul.msk.f32.vlgmr.msrb.gmra.mxu1 %vm415_vm1, %v10940_v10  ;;  %9311 = vmatmul.msk.f32.vlgmr.msrb.gmra.mxu0 %vm415_vm1, %v10940_v10 }
  0x79   : > { %9315 = vmatmul.msk.f32.vlgmr.msrb.gmra.mxu2 %vm415_vm1, %v10940_v10  ;;  %9317 = vmatmul.msk.f32.vlgmr.msrb.gmra.mxu3 %vm415_vm1, %v10940_v10 }
  0x87   : > { %v11170_v49 = vpop.permute.xlu0 %291 }
  0x88   : > { %16336 = vst [vmem:[#allocation5_spill] sm:$0xff] %v11170_v49 }
  0x9d   : > { %v581_v36 = vpop.f32.mrf.mxu0  ;;  %v601_v37 = vpop.f32.mrf.mxu1 }
  0xa4   : > { %v621_v38 = vpop.f32.mrf.mxu2  ;;  %v641_v39 = vpop.f32.mrf.mxu3 }
  0xa5   : > { %v661_v40 = vpop.f32.mrf.mxu0  ;;  %v681_v41 = vpop.f32.mrf.mxu1  ;;  %v1524_v47 = vmax.f32 %v581_v36, %v641_v39 }
  0xa6   : > { %v1525_v52 = vmax.f32 %v601_v37, %v661_v40  ;;  %v1526_v17 = vmax.f32 %v621_v38, %v681_v41 }
  0xac   : > { %v701_v42 = vpop.f32.mrf.mxu2  ;;  %v721_v43 = vpop.f32.mrf.mxu3 }
  0xad   : > { %v741_v44 = vpop.f32.mrf.mxu0  ;;  %v761_v45 = vpop.f32.mrf.mxu1 }
  0xae   : > { %v1527_v46 = vmax.f32 %v701_v42, %v761_v45 }
  0xb0   : > { %v1530_v48 = vmax.f32 %v1524_v47, %v1527_v46 }
  0xb2   : > { %v1533_v57 = vadd.f32 %v1530_v48, %v11170_v49 }
  0xb4   : > { %v781_v50 = vpop.f32.mrf.mxu2  ;;  %v801_v51 = vpop.f32.mrf.mxu3  ;;  %v11176_v60 = vmax.f32 %v1533_v57, 0.0 }
  0xb5   : > { %v1528_v53 = vmax.f32 %v721_v43, %v781_v50  ;;  %v821_v54 = vpop.f32.mrf.mxu0  ;;  %v841_v55 = vpop.f32.mrf.mxu1  ;;  %v1529_v12 = vmax.f32 %v741_v44, %v801_v51 }
  0xb7   : > { %v1531_v56 = vmax.f32 %v1525_v52, %v1528_v53  ;;  %v1532_v20 = vmax.f32 %v1526_v17, %v1529_v12 }
  0xb9   : > { %v1534_v58 = vadd.f32 %v1531_v56, %v11170_v49  ;;  %v1535_v26 = vadd.f32 %v1532_v20, %v11170_v49 }
  0xbb   : > { %v11174_v59 = vmax.f32 %v1534_v58, 0.0  ;;  %v11192_v30 = vmax.f32 %v1535_v26, 0.0 }
  0xbc   : > { %v861_v61 = vpop.f32.mrf.mxu2  ;;  %v881_v62 = vpop.f32.mrf.mxu3 }
  0xbd   : > { %v901_v63 = vpop.f32.mrf.mxu0  ;;  %v921_v0 = vpop.f32.mrf.mxu1  ;;  %v10587_v1 = vpack.i.bf16 %v11174_v59, %v11176_v60  ;;  %v1539_v7 = vmax.f32 %v821_v54, %v881_v62  ;;  %v10602_v34 = vpack.i.bf16 %v11192_v30, %v11174_v59 }
  0xbe   : > { %v1540_v13 = vmax.f32 %v841_v55, %v901_v63  ;;  %v1541_v48 = vmax.f32 %v861_v61, %v921_v0 }
  0xbf   : > { %10588 = vrot.lane.b32.xlu2 %v10587_v1, %s10823_s23  ;;  %10578 = vrot.lane.b32.xlu1 %v10587_v1, %s10824_s28 }
  0xc4   : > { %v941_v2 = vpop.f32.mrf.mxu2  ;;  %v961_v3 = vpop.f32.mrf.mxu3 }
  0xc5   : > { %v981_v4 = vpop.f32.mrf.mxu0  ;;  %v1001_v5 = vpop.f32.mrf.mxu1 }
  0xc6   : > { %v1542_v6 = vmax.f32 %v941_v2, %v1001_v5 }
  0xc8   : > { %v1545_v8 = vmax.f32 %v1539_v7, %v1542_v6 }
  0xca   : > { %v1548_v18 = vadd.f32 %v1545_v8, %v11170_v49 }
  0xcc   : > { %v1021_v9 = vpop.f32.mrf.mxu2  ;;  %v1041_v11 = vpop.f32.mrf.mxu3  ;;  %v11184_v22 = vmax.f32 %v1548_v18, 0.0 }
  0xcd   : > { %v1543_v14 = vmax.f32 %v961_v3, %v1021_v9  ;;  %v1061_v15 = vpop.f32.mrf.mxu0  ;;  %v1081_v16 = vpop.f32.mrf.mxu1  ;;  %v1544_v39 = vmax.f32 %v981_v4, %v1041_v11 }
  0xcf   : > { %v1546_v19 = vmax.f32 %v1540_v13, %v1543_v14  ;;  %v1547_v53 = vmax.f32 %v1541_v48, %v1544_v39 }
  0xd1   : > { %v1549_v21 = vadd.f32 %v1546_v19, %v11170_v49  ;;  %v1550_v1 = vadd.f32 %v1547_v53, %v11170_v49 }
  0xd3   : > { %v11186_v23 = vmax.f32 %v1549_v21, 0.0  ;;  %v11213_v4 = vmax.f32 %v1550_v1, 0.0 }
  0xd4   : > { %v1101_v24 = vpop.f32.mrf.mxu2  ;;  %v1121_v25 = vpop.f32.mrf.mxu3 }
  0xd5   : > { %v1141_v27 = vpop.f32.mrf.mxu0  ;;  %v1161_v28 = vpop.f32.mrf.mxu1  ;;  %v10582_v29 = vpack.i.bf16 %v11186_v23, %v11184_v22  ;;  %v1554_v37 = vmax.f32 %v1061_v15, %v1121_v25  ;;  %v10597_v9 = vpack.i.bf16 %v11192_v30, %v11213_v4 }
  0xd6   : > { %v1555_v42 = vmax.f32 %v1081_v16, %v1141_v27  ;;  %v1556_v43 = vmax.f32 %v1101_v24, %v1161_v28 }
  0xd7   : > { %10583 = vrot.lane.b32.xlu1 %v10582_v29, %s10823_s23 }
  0xdc   : > { %v1181_v31 = vpop.f32.mrf.mxu2  ;;  %v1201_v32 = vpop.f32.mrf.mxu3 }
  0xdd   : > { %v1241_v33 = vpop.f32.mrf.mxu1  ;;  %v1221_v35 = vpop.f32.mrf.mxu0 }
  0xde   : > { %v1557_v36 = vmax.f32 %v1181_v31, %v1241_v33 }
  0xdf   : > { %10603 = vrot.lane.b32.xlu1 %v10602_v34, %s10825_s29 }
  0xe0   : > { %v1560_v38 = vmax.f32 %v1554_v37, %v1557_v36 }
  0xe2   : > { %v1563_v50 = vadd.f32 %v1560_v38, %v11170_v49 }
  0xe4   : > { %v1261_v40 = vpop.f32.mrf.mxu2  ;;  %v1281_v41 = vpop.f32.mrf.mxu3  ;;  %v11200_v56 = vmax.f32 %v1563_v50, 0.0 }
  0xe5   : > { %v1558_v44 = vmax.f32 %v1201_v32, %v1261_v40  ;;  %v1559_v45 = vmax.f32 %v1221_v35, %v1281_v41  ;;  %v1321_v46 = vpop.f32.mrf.mxu1  ;;  %v1301_v47 = vpop.f32.mrf.mxu0  ;;  %v11277_v32 = vld [vmem:[%s16304_s3 + $0x18] sm:$0xff] }
  0xe7   : > { %v1561_v51 = vmax.f32 %v1555_v42, %v1558_v44  ;;  %v1562_v52 = vmax.f32 %v1556_v43, %v1559_v45 }
  0xe9   : > { %v1564_v54 = vadd.f32 %v1561_v51, %v11170_v49  ;;  %v1565_v55 = vadd.f32 %v1562_v52, %v11170_v49 }
  0xeb   : > { %v11202_v57 = vmax.f32 %v1564_v54, 0.0  ;;  %v11204_v58 = vmax.f32 %v1565_v55, 0.0 }
  0xec   : > { %v1341_v62 = vpop.f32.mrf.mxu2  ;;  %v1361_v63 = vpop.f32.mrf.mxu3 }
  0xed   : > { %v1401_v61 = vpop.f32.mrf.mxu1  ;;  %v10572_v0 = vpack.i.bf16 %v11202_v57, %v11200_v56  ;;  %v10592_v2 = vpack.i.bf16 %v11192_v30, %v11204_v58  ;;  %v1381_v3 = vpop.f32.mrf.mxu0  ;;  %v1569_v5 = vmax.f32 %v1301_v47, %v1361_v63 }
  0xee   : > { %v1571_v15 = vmax.f32 %v1341_v62, %v1401_v61  ;;  %v1570_v16 = vmax.f32 %v1321_v46, %v1381_v3 }
  0xef   : > { %10573 = vrot.lane.b32.xlu0 %v10572_v0, %s10824_s28  ;;  %10593 = vrot.lane.b32.xlu2 %v10592_v2, %s10824_s28 }
  0xf4   : > { %v1421_v6 = vpop.f32.mrf.mxu2  ;;  %v1441_v7 = vpop.f32.mrf.mxu3 }
  0xf5   : > { %v1481_v8 = vpop.f32.mrf.mxu1  ;;  %v1461_v14 = vpop.f32.mrf.mxu0 }
  0xf6   : > { %v1572_v11 = vmax.f32 %v1421_v6, %v1481_v8  ;;  %v9523_v8 = vld [vmem:[%s10923_s20 + $0x488] sm:$0xf] }
  0xf7   : > { %10598 = vrot.lane.b32.xlu0 %v10597_v9, %s10823_s23  ;;  %1647 = vrot.lane.b32.xlu2 %v11176_v60, %s10825_s29  ;;  %v9474_v9 = vld [vmem:[%s10923_s20 + $0x300] sm:$0xff] }
  0xf8   : > { %v1575_v12 = vmax.f32 %v1569_v5, %v1572_v11  ;;  %v9475_v11 = vld [vmem:[%s10923_s20 + $0x308] sm:$0xff] }
  0xfa   : > { %v1578_v13 = vadd.f32 %v1575_v12, %v11170_v49  ;;  %v9476_v12 = vld [vmem:[%s10923_s20 + $0x310] sm:$0xff] }
  0xfc   : > { %v11221_v17 = vmax.f32 %v1578_v13, 0.0  ;;  %v1501_v18 = vpop.f32.mrf.mxu2  ;;  %v1521_v19 = vpop.f32.mrf.mxu3  ;;  %v9525_v13 = vld [vmem:[%s10923_s20 + $0x498] sm:$0xf] }
  0xfd   : > { %v1573_v20 = vmax.f32 %v1441_v7, %v1501_v18  ;;  %v1574_v21 = vmax.f32 %v1461_v14, %v1521_v19  ;;  %v9526_v14 = vld [vmem:[%s10923_s20 + $0x4a0] sm:$0xf]  ;;  %v9528_v18 = vld [vmem:[%s10923_s20 + $0x4b0] sm:$0xf] }
  0xfe   : > { %1686 = vmatpush.msra.mxu0 %v11221_v17  ;;  %v9480_v19 = vld [vmem:[%s10923_s20 + $0x330] sm:$0xff] }
  0xff   : > { %v1576_v24 = vmax.f32 %v1570_v16, %v1573_v20  ;;  %v1577_v25 = vmax.f32 %v1571_v15, %v1574_v21  ;;  %v9527_v15 = vld [vmem:[%s10923_s20 + $0x4a8] sm:$0xf]  ;;  %v9478_v16 = vld [vmem:[%s10923_s20 + $0x320] sm:$0xff] }
 0x100   : > { %1687 = vmatpush.msra.mxu0 %v11200_v56  ;;  %v11421_v20 = vld [vmem:[%s16302_s1] sm:$0xff] }
 0x101   : > { %v1579_v26 = vadd.f32 %v1576_v24, %v11170_v49  ;;  %v1580_v27 = vadd.f32 %v1577_v25, %v11170_v49  ;;  %v9530_v21 = vld [vmem:[%s10923_s20 + $0x4c0] sm:$0xf]  ;;  %v9531_v24 = vld [vmem:[%s10923_s20 + $0x4c8] sm:$0xf]  ;;  %v9529_v25 = vld [vmem:[%s10923_s20 + $0x4b8] sm:$0xf] }
 0x102   : > { %1688 = vmatpush.msra.mxu0 %v11184_v22 }
 0x103   : > { %v11228_v28 = vmax.f32 %v1579_v26, 0.0  ;;  %v11230_v29 = vmax.f32 %v1580_v27, 0.0  ;;  %v9482_v26 = vld [vmem:[%s10923_s20 + $0x340] sm:$0xff]  ;;  %v9483_v27 = vld [vmem:[%s10923_s20 + $0x348] sm:$0xff] }
 0x104   : > { %1689 = vmatpush.msra.mxu0 %v11176_v60  ;;  %v11244_v60 = vld [vmem:[%s16304_s3] sm:$0xff] }
 0x105   : > { %1715 = vmatpush.msra.mxu1 %v11228_v28  ;;  %1744 = vmatpush.msra.mxu2 %v11230_v29 }
 0x106   : > { %9318 = vmatmul.msk.f32.vlgmr.msra.gmra.mxu0 %vm1661_vm2, %v11244_v60 }
 0x107   : > { %1716 = vmatpush.msra.mxu1 %v11202_v57  ;;  %1745 = vmatpush.msra.mxu2 %v11204_v58 }
 0x109   : > { %1717 = vmatpush.msra.mxu1 %v11186_v23  ;;  %1746 = vmatpush.msra.mxu2 %v11213_v4 }
 0x10b   : > { %1718 = vmatpush.msra.mxu1 %v11174_v59  ;;  %1747 = vmatpush.msra.mxu2 %v11192_v30  ;;  %v11255_v59 = vld [vmem:[%s16304_s3 + $0x8] sm:$0xff]  ;;  %v11266_v30 = vld [vmem:[%s16304_s3 + $0x10] sm:$0xff] }
 0x10c   : > { %9322 = vmatmul.msk.f32.vlgmr.msra.gmra.mxu1 %vm1661_vm2, %v11244_v60  ;;  %9326 = vmatmul.msk.f32.vlgmr.msra.gmra.mxu2 %vm1661_vm2, %v11244_v60 }
 0x10e   : > { %9319 = vmatmul.msk.f32.gmra.mxu0 %vm1661_vm2, %v11255_v59 }
 0x114   : > { %9323 = vmatmul.msk.f32.gmra.mxu1 %vm1661_vm2, %v11255_v59  ;;  %9327 = vmatmul.msk.f32.gmra.mxu2 %vm1661_vm2, %v11255_v59 }
 0x116   : > { %9320 = vmatmul.msk.f32.gmra.mxu0 %vm1661_vm2, %v11266_v30 }
 0x119   : > { %v11285_v33 = vpop.permute.xlu2 %10588 }
 0x11a   : > { %v10591_v35 = vunpack.i.h.bf16 %v11285_v33  ;;  %v10590_v36 = vunpack.i.l.bf16 %v11285_v33  ;;  %v9535_v33 = vld [vmem:[%s10923_s20 + $0x4e8] sm:$0xf] }
 0x11c   : > { %9324 = vmatmul.msk.f32.gmra.mxu1 %vm1661_vm2, %v11266_v30  ;;  %9328 = vmatmul.msk.f32.gmra.mxu2 %vm1661_vm2, %v11266_v30  ;;  %v1624_v40 = vsel %vm1623_vm3, %v10590_v36, %v10591_v35 }
 0x11e   : > { %9321 = vmatmul.msk.f32.gmra.mxu0 %vm1661_vm2, %v11277_v32 }
 0x124   : > { %9325 = vmatmul.msk.f32.gmra.mxu1 %vm1661_vm2, %v11277_v32  ;;  %9329 = vmatmul.msk.f32.gmra.mxu2 %vm1661_vm2, %v11277_v32 }
 0x131   : > { %v10579_v31 = vpop.permute.xlu1 %10578 }
 0x132   : > { %v10581_v51 = vunpack.i.h.bf16 %v10579_v31  ;;  %v10580_v52 = vunpack.i.l.bf16 %v10579_v31  ;;  %v9534_v31 = vld [vmem:[%s10923_s20 + $0x4e0] sm:$0xf] }
 0x134   : > { %v1594_v62 = vsel %vm1593_vm5, %v10580_v52, %v10581_v51 }
 0x149   : > { %v10584_v34 = vpop.permute.xlu1 %10583  ;;  %v10594_v45 = vpop.permute.xlu2 %10593 }
 0x14a   : > { %v10586_v37 = vunpack.i.h.bf16 %v10584_v34  ;;  %v10585_v38 = vunpack.i.l.bf16 %v10584_v34  ;;  %v10595_v47 = vunpack.i.l.bf16 %v10594_v45  ;;  %v10596_v53 = vunpack.i.h.bf16 %v10594_v45  ;;  %v9486_v34 = vld [vmem:[%s10923_s20 + $0x360] sm:$0xff] }
 0x14c   : > { %v1640_v39 = vsel %vm1623_vm3, %v10585_v38, %v10586_v37  ;;  %v1595_v63 = vsel %vm1593_vm5, %v10581_v51, %v10596_v53  ;;  %v1600_v61 = vsel %vm1593_vm5, %v10596_v53, %v10580_v52  ;;  %v9544_v52 = vld [vmem:[%s10923_s20 + $0x530] sm:$0xf] }
 0x14d   : > { %1860 = vmatpush.msrb.mxu2 %v1640_v39  ;;  %v9496_v53 = vld [vmem:[%s10923_s20 + $0x3b0] sm:$0xff] }
 0x14f   : > { %1861 = vmatpush.msrb.mxu2 %v1624_v40  ;;  %v9490_v40 = vld [vmem:[%s10923_s20 + $0x380] sm:$0xff] }
 0x151   : > { %v11293_v41 = vpop.permute.xlu1 %10603  ;;  %1862 = vmatpush.msrb.mxu2 %v11221_v17  ;;  %v1648_v3 = vpop.permute.xlu2 %1647 }
 0x152   : > { %v10606_v42 = vunpack.i.h.bf16 %v11293_v41  ;;  %v10605_v43 = vunpack.i.l.bf16 %v11293_v41  ;;  %v9491_v41 = vld [vmem:[%s10923_s20 + $0x388] sm:$0xff] }
 0x153   : > { %1863 = vmatpush.msrb.mxu2 %v11200_v56 }
 0x154   : > { %v1655_v44 = vsel %vm1653_vm4, %v10605_v43, %v10606_v42  ;;  %9342 = vmatmul.msk.f32.vlgmr.msrb.gmra.mxu2 %vm1661_vm2, %v11244_v60  ;;  %v1660_v7 = vsel %vm1653_vm4, %v10606_v42, %v1648_v3  ;;  %v9540_v42 = vld [vmem:[%s10923_s20 + $0x510] sm:$0xf] }
 0x155   : > { %1976 = vmatpush.msra.mxu2 %v1655_v44 }
 0x15c   : > { %9343 = vmatmul.msk.f32.gmra.mxu2 %vm1661_vm2, %v11255_v59 }
 0x161   : > { %v10574_v46 = vpop.permute.xlu0 %10573 }
 0x162   : > { %v10576_v48 = vunpack.i.h.bf16 %v10574_v46  ;;  %v10575_v50 = vunpack.i.l.bf16 %v10574_v46  ;;  %v9542_v46 = vld [vmem:[%s10923_s20 + $0x520] sm:$0xf] }
 0x164   : > { %v1610_v54 = vsel %vm1593_vm5, %v10575_v50, %v10576_v48  ;;  %v1611_v55 = vsel %vm1593_vm5, %v10576_v48, %v10595_v47  ;;  %v1616_v56 = vsel %vm1593_vm5, %v10595_v47, %v10575_v50  ;;  %9344 = vmatmul.msk.f32.gmra.mxu2 %vm1661_vm2, %v11266_v30  ;;  %v9543_v47 = vld [vmem:[%s10923_s20 + $0x528] sm:$0xf]  ;;  %v9494_v48 = vld [vmem:[%s10923_s20 + $0x3a0] sm:$0xff] }
 0x165   : > { %1773 = vmatpush.msra.mxu3 %v1610_v54  ;;  %1802 = vmatpush.msrb.mxu0 %v1611_v55  ;;  %v9495_v50 = vld [vmem:[%s10923_s20 + $0x3a8] sm:$0xff] }
 0x166   : > { %1831 = vmatpush.msrb.mxu1 %v1616_v56 }
 0x167   : > { %1774 = vmatpush.msra.mxu3 %v11221_v17  ;;  %1803 = vmatpush.msrb.mxu0 %v11228_v28 }
 0x168   : > { %1832 = vmatpush.msrb.mxu1 %v11230_v29 }
 0x169   : > { %v10599_v1 = vpop.permute.xlu0 %10598  ;;  %1775 = vmatpush.msra.mxu3 %v1594_v62  ;;  %1804 = vmatpush.msrb.mxu0 %v1595_v63  ;;  %v9546_v62 = vld [vmem:[%s10923_s20 + $0x540] sm:$0xf]  ;;  %v9547_v63 = vld [vmem:[%s10923_s20 + $0x548] sm:$0xf] }
 0x16a   : > { %v10600_v0 = vunpack.i.l.bf16 %v10599_v1  ;;  %1833 = vmatpush.msrb.mxu1 %v1600_v61  ;;  %v10601_v2 = vunpack.i.h.bf16 %v10599_v1  ;;  %v9498_v1 = vld [vmem:[%s10923_s20 + $0x3c0] sm:$0xff]  ;;  %v9499_v61 = vld [vmem:[%s10923_s20 + $0x3c8] sm:$0xff] }
 0x16b   : > { %1776 = vmatpush.msra.mxu3 %v11184_v22  ;;  %1805 = vmatpush.msrb.mxu0 %v11186_v23  ;;  %v1654_v22 = vsel %vm1653_vm4, %v1648_v3, %v10605_v43  ;;  %v9500_v3 = vld [vmem:[%s10923_s20 + $0x3d0] sm:$0xff] }
 0x16c   : > { %1834 = vmatpush.msrb.mxu1 %v11213_v4  ;;  %9330 = vmatmul.msk.f32.vlgmr.msra.gmra.mxu3 %vm1661_vm2, %v11244_v60  ;;  %v1641_v5 = vsel %vm1623_vm3, %v10586_v37, %v10600_v0  ;;  %v1646_v6 = vsel %vm1623_vm3, %v10600_v0, %v10585_v38  ;;  %v1625_v23 = vsel %vm1623_vm3, %v10591_v35, %v10601_v2  ;;  %v9487_v35 = vld [vmem:[%s10923_s20 + $0x368] sm:$0xff]  ;;  %v9538_v38 = vld [vmem:[%s10923_s20 + $0x500] sm:$0xf]  ;;  %v9537_v0 = vld [vmem:[%s10923_s20 + $0x4f8] sm:$0xf] }
 0x16d   : > { %9334 = vmatmul.msk.f32.vlgmr.msrb.gmra.mxu0 %vm1661_vm2, %v11244_v60  ;;  %9338 = vmatmul.msk.f32.vlgmr.msrb.gmra.mxu1 %vm1661_vm2, %v11244_v60  ;;  %v1630_v4 = vsel %vm1623_vm3, %v10601_v2, %v10590_v36  ;;  %v9536_v36 = vld [vmem:[%s10923_s20 + $0x4f0] sm:$0xf] }
 0x16e   : > { %1947 = vmatpush.msra.mxu1 %v1654_v22  ;;  %1889 = vmatpush.msrb.mxu3 %v1641_v5  ;;  %v9548_v2 = vld [vmem:[%s10923_s20 + $0x550] sm:$0xf] }
 0x16f   : > { %1918 = vmatpush.msra.mxu0 %v1646_v6  ;;  %1977 = vmatpush.msra.mxu2 %v1641_v5 }
 0x170   : > { %1948 = vmatpush.msra.mxu1 %v1640_v39  ;;  %1890 = vmatpush.msrb.mxu3 %v1625_v23  ;;  %v9539_v39 = vld [vmem:[%s10923_s20 + $0x508] sm:$0xf] }
 0x171   : > { %1919 = vmatpush.msra.mxu0 %v1630_v4  ;;  %1978 = vmatpush.msra.mxu2 %v1611_v55  ;;  %v9485_v55 = vld [vmem:[%s10923_s20 + $0x358] sm:$0xff]  ;;  %v9550_v4 = vld [vmem:[%s10923_s20 + $0x560] sm:$0xf] }
 0x172   : > { %1949 = vmatpush.msra.mxu1 %v1610_v54  ;;  %1891 = vmatpush.msrb.mxu3 %v11228_v28 }
 0x173   : > { %1920 = vmatpush.msra.mxu0 %v11230_v29  ;;  %1979 = vmatpush.msra.mxu2 %v11228_v28  ;;  %v9532_v28 = vld [vmem:[%s10923_s20 + $0x4d0] sm:$0xf] }
 0x174   : > { %1950 = vmatpush.msra.mxu1 %v11221_v17  ;;  %1892 = vmatpush.msrb.mxu3 %v11202_v57  ;;  %v9524_v57 = vld [vmem:[%s10923_s20 + $0x490] sm:$0xf]  ;;  %v9479_v17 = vld [vmem:[%s10923_s20 + $0x328] sm:$0xff] }
 0x175   : > { %1921 = vmatpush.msra.mxu0 %v11204_v58  ;;  %9331 = vmatmul.msk.f32.gmra.mxu3 %vm1661_vm2, %v11255_v59  ;;  %v9522_v58 = vld [vmem:[%s10923_s20 + $0x480] sm:$0xf] }
 0x176   : > { %9335 = vmatmul.msk.f32.gmra.mxu0 %vm1661_vm2, %v11255_v59  ;;  %9339 = vmatmul.msk.f32.gmra.mxu1 %vm1661_vm2, %v11255_v59 }
 0x177   : > { %2005 = vmatpush.msra.mxu3 %v1660_v7  ;;  %9345 = vmatmul.msk.f32.gmra.mxu2 %vm1661_vm2, %v11277_v32  ;;  %v9551_v7 = vld [vmem:[%s10923_s20 + $0x568] sm:$0xf] }
 0x178   : > { %9574 = vmatpush.msk.msrb.mxu2 %vm419_vm0, %v9524_v57  ;;  %9570 = vmatpush.msk.msrb.mxu0 %vm419_vm0, %v9522_v58  ;;  %v9502_v57 = vld [vmem:[%s10923_s20 + $0x3e0] sm:$0xff]  ;;  %v9503_v58 = vld [vmem:[%s10923_s20 + $0x3e8] sm:$0xff] }
 0x179   : > { %2006 = vmatpush.msra.mxu3 %v1646_v6  ;;  %9572 = vmatpush.msk.msrb.mxu1 %vm419_vm0, %v9523_v8  ;;  %v9489_v6 = vld [vmem:[%s10923_s20 + $0x378] sm:$0xff] }
 0x17a   : > { %2849 = vmatpush.msrb.mxu2 %v9476_v12  ;;  %2809 = vmatpush.msrb.mxu0 %v9474_v9  ;;  %v9541_v8 = vld [vmem:[%s10923_s20 + $0x518] sm:$0xf]  ;;  %v9552_v9 = vld [vmem:[%s10923_s20 + $0x570] sm:$0xf] }
 0x17b   : > { %2007 = vmatpush.msra.mxu3 %v1616_v56  ;;  %2829 = vmatpush.msrb.mxu1 %v9475_v11  ;;  %v9504_v11 = vld [vmem:[%s10923_s20 + $0x3f0] sm:$0xff]  ;;  %v9493_v12 = vld [vmem:[%s10923_s20 + $0x398] sm:$0xff] }
 0x17d   : > { %2008 = vmatpush.msra.mxu3 %v11230_v29  ;;  %v9481_v29 = vld [vmem:[%s10923_s20 + $0x338] sm:$0xff] }
 0x17e   : > { %9332 = vmatmul.msk.f32.gmra.mxu3 %vm1661_vm2, %v11266_v30  ;;  %9336 = vmatmul.msk.f32.gmra.mxu0 %vm1661_vm2, %v11266_v30 }
 0x17f   : > { %9340 = vmatmul.msk.f32.gmra.mxu1 %vm1661_vm2, %v11266_v30  ;;  %9358 = vmatmul.msk.f32.vlgmr.msra.gmra.mxu2 %vm1661_vm2, %v11244_v60 }
 0x180   : > { %9582 = vmatpush.msk.msra.mxu2 %vm419_vm0, %v9528_v18  ;;  %v9556_v18 = vld [vmem:[%s10923_s20 + $0x590] sm:$0xf] }
 0x182   : > { %2929 = vmatpush.msra.mxu2 %v9480_v19  ;;  %v9508_v19 = vld [vmem:[%s10923_s20 + $0x410] sm:$0xff] }
 0x183   : > { %v11481_v44 = vpop.f32.mrf.mxu0 }
 0x186   : > { %9333 = vmatmul.msk.f32.gmra.mxu3 %vm1661_vm2, %v11277_v32  ;;  %9337 = vmatmul.msk.f32.gmra.mxu0 %vm1661_vm2, %v11277_v32 }
 0x187   : > { %9341 = vmatmul.msk.f32.gmra.mxu1 %vm1661_vm2, %v11277_v32  ;;  %9359 = vmatmul.msk.f32.gmra.mxu2 %vm1661_vm2, %v11255_v59 }
 0x189   : > { %v11479_v43 = vpop.f32.mrf.mxu1 }
 0x18b   : > { %v11507_v54 = vpop.f32.mrf.mxu0 }
 0x18c   : > { %16338 = vst [vmem:[#allocation7_spill] sm:$0xff] %v11507_v54 }
 0x18e   : > { %9346 = vmatmul.msk.f32.vlgmr.msrb.gmra.mxu3 %vm1661_vm2, %v11244_v60  ;;  %9350 = vmatmul.msk.f32.vlgmr.msra.gmra.mxu0 %vm1661_vm2, %v11244_v60 }
 0x18f   : > { %9354 = vmatmul.msk.f32.vlgmr.msra.gmra.mxu1 %vm1661_vm2, %v11244_v60  ;;  %9360 = vmatmul.msk.f32.gmra.mxu2 %vm1661_vm2, %v11266_v30  ;;  %v11460_v37 = vpop.f32.mrf.mxu2 }
 0x190   : > { %9576 = vmatpush.msk.msrb.mxu3 %vm419_vm0, %v9525_v13  ;;  %9578 = vmatpush.msk.msra.mxu0 %vm419_vm0, %v9526_v14  ;;  %v9555_v14 = vld [vmem:[%s10923_s20 + $0x588] sm:$0xf] }
 0x191   : > { %9580 = vmatpush.msk.msra.mxu1 %vm419_vm0, %v9527_v15  ;;  %v11499_v51 = vpop.f32.mrf.mxu1 }
 0x192   : > { %2889 = vmatpush.msra.mxu0 %v9478_v16 }
 0x193   : > { %2909 = vmatpush.msra.mxu1 %v9479_v17  ;;  %v11539_v22 = vpop.f32.mrf.mxu0  ;;  %v9507_v17 = vld [vmem:[%s10923_s20 + $0x408] sm:$0xff] }
 0x194   : > { %16341 = vst [vmem:[#allocation10_spill] sm:$0xff] %v11539_v22 }
 0x196   : > { %9347 = vmatmul.msk.f32.gmra.mxu3 %vm1661_vm2, %v11255_v59  ;;  %9351 = vmatmul.msk.f32.gmra.mxu0 %vm1661_vm2, %v11255_v59 }
 0x197   : > { %9355 = vmatmul.msk.f32.gmra.mxu1 %vm1661_vm2, %v11255_v59  ;;  %9361 = vmatmul.msk.f32.gmra.mxu2 %vm1661_vm2, %v11277_v32  ;;  %v11483_v45 = vpop.f32.mrf.mxu2 }
 0x198   : > { %16337 = vst [vmem:[#allocation6_spill] sm:$0xff] %v11483_v45 }
 0x199   : > { %v11531_v5 = vpop.f32.mrf.mxu1 }
 0x19a   : > { %16340 = vst [vmem:[#allocation9_spill] sm:$0xff] %v11531_v5 }
 0x19b   : > { %v11568_v15 = vpop.f32.mrf.mxu0 }
 0x19c   : > { %16342 = vst [vmem:[#allocation11_spill] sm:$0xff] %v11568_v15 }
 0x19e   : > { %9348 = vmatmul.msk.f32.gmra.mxu3 %vm1661_vm2, %v11266_v30  ;;  %9352 = vmatmul.msk.f32.gmra.mxu0 %vm1661_vm2, %v11266_v30 }
 0x19f   : > { %9356 = vmatmul.msk.f32.gmra.mxu1 %vm1661_vm2, %v11266_v30  ;;  %9575 = vmatmul.msk.f32.vlgmr.msrb.gmra.mxu2 %vm415_vm1, %v10940_v10  ;;  %v9477_v10 = vld [vmem:[%s10923_s20 + $0x318] sm:$0xff]  ;;  %v11510_v56 = vpop.f32.mrf.mxu2 }
 0x1a0   : > { %2869 = vmatpush.msrb.mxu3 %v9477_v10  ;;  %9590 = vmatpush.msk.msrb.mxu2 %vm419_vm0, %v9532_v28  ;;  %16339 = vst [vmem:[#allocation8_spill] sm:$0xff] %v11510_v56  ;;  %v9545_v10 = vld [vmem:[%s10923_s20 + $0x538] sm:$0xf] }
 0x1a1   : > { %v11563_v13 = vpop.f32.mrf.mxu1 }
 0x1a6   : > { %9349 = vmatmul.msk.f32.gmra.mxu3 %vm1661_vm2, %v11277_v32  ;;  %9353 = vmatmul.msk.f32.gmra.mxu0 %vm1661_vm2, %v11277_v32 }
 0x1a7   : > { %9357 = vmatmul.msk.f32.gmra.mxu1 %vm1661_vm2, %v11277_v32  ;;  %9583 = vmatmul.msk.f32.vlgmr.msra.gmra.mxu2 %vm415_vm1, %v11421_v20  ;;  %v11541_v23 = vpop.f32.mrf.mxu2 }
 0x1ae   : > { %9362 = vmatmul.msk.f32.vlgmr.msra.gmra.mxu3 %vm1661_vm2, %v11244_v60  ;;  %9571 = vmatmul.msk.f32.vlgmr.msrb.gmra.mxu0 %vm415_vm1, %v11421_v20  ;;  %v9484_v60 = vld [vmem:[%s10923_s20 + $0x350] sm:$0xff] }
 0x1af   : > { %9573 = vmatmul.msk.f32.vlgmr.msrb.gmra.mxu1 %vm415_vm1, %v11421_v20  ;;  %9586 = vmatpush.msk.msrb.mxu0 %vm419_vm0, %v9530_v21  ;;  %v9497_v21 = vld [vmem:[%s10923_s20 + $0x3b8] sm:$0xff] }
 0x1b0   : > { %9588 = vmatpush.msk.msrb.mxu1 %vm419_vm0, %v9531_v24  ;;  %9584 = vmatpush.msk.msra.mxu3 %vm419_vm0, %v9529_v25  ;;  %v9559_v24 = vld [vmem:[%s10923_s20 + $0x5a8] sm:$0xf] }
 0x1b1   : > { %2969 = vmatpush.msrb.mxu0 %v9482_v26  ;;  %3009 = vmatpush.msrb.mxu2 %v9484_v60  ;;  %v9511_v26 = vld [vmem:[%s10923_s20 + $0x428] sm:$0xff]  ;;  %v9549_v60 = vld [vmem:[%s10923_s20 + $0x558] sm:$0xf] }
 0x1b2   : > { %2989 = vmatpush.msrb.mxu1 %v9483_v27  ;;  %2949 = vmatpush.msra.mxu3 %v9481_v29  ;;  %v9560_v27 = vld [vmem:[%s10923_s20 + $0x5b0] sm:$0xf] }
 0x1b3   : > { %9591 = vmatmul.msk.f32.vlgmr.msrb.gmra.mxu2 %vm415_vm1, %v11421_v20 }
 0x1b4   : > { %9598 = vmatpush.msk.msra.mxu2 %vm419_vm0, %v9536_v36  ;;  %v9563_v36 = vld [vmem:[%s10923_s20 + $0x5c8] sm:$0xf] }
 0x1b6   : > { %9363 = vmatmul.msk.f32.gmra.mxu3 %vm1661_vm2, %v11255_v59  ;;  %9579 = vmatmul.msk.f32.vlgmr.msra.gmra.mxu0 %vm415_vm1, %v11421_v20  ;;  %v9488_v59 = vld [vmem:[%s10923_s20 + $0x370] sm:$0xff] }
 0x1b7   : > { %9581 = vmatmul.msk.f32.vlgmr.msra.gmra.mxu1 %vm415_vm1, %v11421_v20  ;;  %9594 = vmatpush.msk.msra.mxu0 %vm419_vm0, %v9534_v31  ;;  %v9512_v31 = vld [vmem:[%s10923_s20 + $0x430] sm:$0xff] }
 0x1b8   : > { %9596 = vmatpush.msk.msra.mxu1 %vm419_vm0, %v9535_v33  ;;  %3089 = vmatpush.msra.mxu2 %v9488_v59  ;;  %v9501_v33 = vld [vmem:[%s10923_s20 + $0x3d8] sm:$0xff] }
 0x1b9   : > { %3049 = vmatpush.msra.mxu0 %v9486_v34 }
 0x1ba   : > { %3069 = vmatpush.msra.mxu1 %v9487_v35  ;;  %9606 = vmatpush.msk.msrb.mxu2 %vm419_vm0, %v9540_v42  ;;  %v9554_v35 = vld [vmem:[%s10923_s20 + $0x580] sm:$0xf]  ;;  %v9516_v42 = vld [vmem:[%s10923_s20 + $0x450] sm:$0xff] }
 0x1bb   : > { %9599 = vmatmul.msk.f32.vlgmr.msra.gmra.mxu2 %vm415_vm1, %v11421_v20 }
 0x1be   : > { %9364 = vmatmul.msk.f32.gmra.mxu3 %vm1661_vm2, %v11266_v30  ;;  %9587 = vmatmul.msk.f32.vlgmr.msrb.gmra.mxu0 %vm415_vm1, %v11421_v20  ;;  %v9492_v30 = vld [vmem:[%s10923_s20 + $0x390] sm:$0xff] }
 0x1bf   : > { %9589 = vmatmul.msk.f32.vlgmr.msrb.gmra.mxu1 %vm415_vm1, %v11421_v20  ;;  %9602 = vmatpush.msk.msrb.mxu0 %vm419_vm0, %v9538_v38  ;;  %v9506_v38 = vld [vmem:[%s10923_s20 + $0x400] sm:$0xff] }
 0x1c0   : > { %9604 = vmatpush.msk.msrb.mxu1 %vm419_vm0, %v9539_v39  ;;  %3169 = vmatpush.msrb.mxu2 %v9492_v30  ;;  %v9515_v39 = vld [vmem:[%s10923_s20 + $0x448] sm:$0xff] }
 0x1c1   : > { %3129 = vmatpush.msrb.mxu0 %v9490_v40  ;;  %v9553_v40 = vld [vmem:[%s10923_s20 + $0x578] sm:$0xf] }
 0x1c2   : > { %3149 = vmatpush.msrb.mxu1 %v9491_v41  ;;  %9614 = vmatpush.msk.msra.mxu2 %vm419_vm0, %v9544_v52  ;;  %v9564_v41 = vld [vmem:[%s10923_s20 + $0x5d0] sm:$0xf]  ;;  %v9510_v52 = vld [vmem:[%s10923_s20 + $0x420] sm:$0xff] }
 0x1c3   : > { %9607 = vmatmul.msk.f32.vlgmr.msrb.gmra.mxu2 %vm415_vm1, %v11421_v20 }
 0x1c4   : > { %3249 = vmatpush.msra.mxu2 %v9496_v53  ;;  %v9519_v53 = vld [vmem:[%s10923_s20 + $0x468] sm:$0xff] }
 0x1c6   : > { %9365 = vmatmul.msk.f32.gmra.mxu3 %vm1661_vm2, %v11277_v32  ;;  %9595 = vmatmul.msk.f32.vlgmr.msra.gmra.mxu0 %vm415_vm1, %v11421_v20  ;;  %v9533_v32 = vld [vmem:[%s10923_s20 + $0x4d8] sm:$0xf] }
 0x1c7   : > { %9597 = vmatmul.msk.f32.vlgmr.msra.gmra.mxu1 %vm415_vm1, %v11421_v20  ;;  %9610 = vmatpush.msk.msra.mxu0 %vm419_vm0, %v9542_v46 }
 0x1c8   : > { %9612 = vmatpush.msk.msra.mxu1 %vm419_vm0, %v9543_v47  ;;  %9622 = vmatpush.msk.msrb.mxu2 %vm419_vm0, %v9548_v2  ;;  %v9505_v47 = vld [vmem:[%s10923_s20 + $0x3f8] sm:$0xff] }
 0x1c9   : > { %3209 = vmatpush.msra.mxu0 %v9494_v48 }
 0x1ca   : > { %3229 = vmatpush.msra.mxu1 %v9495_v50  ;;  %3329 = vmatpush.msrb.mxu2 %v9500_v3  ;;  %v9558_v50 = vld [vmem:[%s10923_s20 + $0x5a0] sm:$0xf] }
 0x1cb   : > { %9615 = vmatmul.msk.f32.vlgmr.msra.gmra.mxu2 %vm415_vm1, %v11421_v20 }
 0x1cc   : > { %9630 = vmatpush.msk.msra.mxu2 %vm419_vm0, %v9552_v9  ;;  %v9566_v9 = vld [vmem:[%s10923_s20 + $0x5e0] sm:$0xf] }
 0x1ce   : > { %9577 = vmatmul.msk.f32.vlgmr.msrb.gmra.mxu3 %vm415_vm1, %v11421_v20  ;;  %9603 = vmatmul.msk.f32.vlgmr.msrb.gmra.mxu0 %vm415_vm1, %v11421_v20 }
 0x1cf   : > { %9592 = vmatpush.msk.msrb.mxu3 %vm419_vm0, %v9533_v32  ;;  %9605 = vmatmul.msk.f32.vlgmr.msrb.gmra.mxu1 %vm415_vm1, %v11421_v20  ;;  %v9567_v32 = vld [vmem:[%s10923_s20 + $0x5e8] sm:$0xf] }
 0x1d0   : > { %9618 = vmatpush.msk.msrb.mxu0 %vm419_vm0, %v9546_v62  ;;  %9620 = vmatpush.msk.msrb.mxu1 %vm419_vm0, %v9547_v63  ;;  %v9557_v62 = vld [vmem:[%s10923_s20 + $0x598] sm:$0xf]  ;;  %v9568_v63 = vld [vmem:[%s10923_s20 + $0x5f0] sm:$0xf] }
 0x1d1   : > { %3029 = vmatpush.msrb.mxu3 %v9485_v55  ;;  %3409 = vmatpush.msra.mxu2 %v9504_v11 }
 0x1d2   : > { %3289 = vmatpush.msrb.mxu0 %v9498_v1  ;;  %3309 = vmatpush.msrb.mxu1 %v9499_v61  ;;  %v9520_v1 = vld [vmem:[%s10923_s20 + $0x470] sm:$0xff]  ;;  %v9509_v61 = vld [vmem:[%s10923_s20 + $0x418] sm:$0xff] }
 0x1d3   : > { %9623 = vmatmul.msk.f32.vlgmr.msrb.gmra.mxu2 %vm415_vm1, %v11421_v20 }
 0x1d4   : > { %9638 = vmatpush.msk.msrb.mxu2 %vm419_vm0, %v9556_v18  ;;  %v9565_v18 = vld [vmem:[%s10923_s20 + $0x5d8] sm:$0xf] }
 0x1d6   : > { %9585 = vmatmul.msk.f32.vlgmr.msra.gmra.mxu3 %vm415_vm1, %v11421_v20  ;;  %9611 = vmatmul.msk.f32.vlgmr.msra.gmra.mxu0 %vm415_vm1, %v11421_v20 }
 0x1d7   : > { %9600 = vmatpush.msk.msra.mxu3 %vm419_vm0, %v9537_v0  ;;  %9613 = vmatmul.msk.f32.vlgmr.msra.gmra.mxu1 %vm415_vm1, %v11421_v20  ;;  %v11570_v16 = vpop.f32.mrf.mxu2 }
 0x1d8   : > { %9626 = vmatpush.msk.msra.mxu0 %vm419_vm0, %v9550_v4  ;;  %9628 = vmatpush.msk.msra.mxu1 %vm419_vm0, %v9551_v7  ;;  %v9514_v4 = vld [vmem:[%s10923_s20 + $0x440] sm:$0xff] }
 0x1d9   : > { %3109 = vmatpush.msra.mxu3 %v9489_v6  ;;  %3489 = vmatpush.msrb.mxu2 %v9508_v19  ;;  %v9562_v6 = vld [vmem:[%s10923_s20 + $0x5c0] sm:$0xf] }
 0x1da   : > { %3369 = vmatpush.msra.mxu0 %v9502_v57  ;;  %3389 = vmatpush.msra.mxu1 %v9503_v58  ;;  %v9561_v57 = vld [vmem:[%s10923_s20 + $0x5b8] sm:$0xf] }
 0x1db   : > { %9631 = vmatmul.msk.f32.vlgmr.msra.gmra.mxu2 %vm415_vm1, %v11421_v20  ;;  %v9513_v58 = vld [vmem:[%s10923_s20 + $0x438] sm:$0xff] }
 0x1dc   : > { %9646 = vmatpush.msk.msra.mxu2 %vm419_vm0, %v9560_v27  ;;  %v9569_v27 = vld [vmem:[%s10923_s20 + $0x5f8] sm:$0xf] }
 0x1de   : > { %9593 = vmatmul.msk.f32.vlgmr.msrb.gmra.mxu3 %vm415_vm1, %v11421_v20  ;;  %9619 = vmatmul.msk.f32.vlgmr.msrb.gmra.mxu0 %vm415_vm1, %v11421_v20 }
 0x1df   : > { %9608 = vmatpush.msk.msrb.mxu3 %vm419_vm0, %v9541_v8  ;;  %9621 = vmatmul.msk.f32.vlgmr.msrb.gmra.mxu1 %vm415_vm1, %v11421_v20  ;;  %v11596_v29 = vpop.f32.mrf.mxu2 }
 0x1e0   : > { %9636 = vmatpush.msk.msrb.mxu1 %vm419_vm0, %v9555_v14  ;;  %3569 = vmatpush.msra.mxu2 %v9512_v31  ;;  %v9518_v14 = vld [vmem:[%s10923_s20 + $0x460] sm:$0xff] }
 0x1e1   : > { %3189 = vmatpush.msrb.mxu3 %v9493_v12  ;;  %9634 = vmatpush.msk.msrb.mxu0 %vm419_vm0, %v9554_v35 }
 0x1e2   : > { %3469 = vmatpush.msrb.mxu1 %v9507_v17 }
 0x1e3   : > { %9639 = vmatmul.msk.f32.vlgmr.msrb.gmra.mxu2 %vm415_vm1, %v11421_v20  ;;  %3449 = vmatpush.msrb.mxu0 %v9506_v38 }
 0x1e4   : > { %9654 = vmatpush.msk.msrb.mxu2 %vm419_vm0, %v9564_v41 }
 0x1e6   : > { %9601 = vmatmul.msk.f32.vlgmr.msra.gmra.mxu3 %vm415_vm1, %v11421_v20  ;;  %9627 = vmatmul.msk.f32.vlgmr.msra.gmra.mxu0 %vm415_vm1, %v11421_v20 }
 0x1e7   : > { %9616 = vmatpush.msk.msra.mxu3 %vm419_vm0, %v9545_v10  ;;  %9629 = vmatmul.msk.f32.vlgmr.msra.gmra.mxu1 %vm415_vm1, %v11421_v20  ;;  %v11629_v46 = vpop.f32.mrf.mxu2  ;;  %v9517_v10 = vld [vmem:[%s10923_s20 + $0x458] sm:$0xff] }
 0x1e8   : > { %9644 = vmatpush.msk.msra.mxu1 %vm419_vm0, %v9559_v24  ;;  %16344 = vst [vmem:[#allocation13_spill] sm:$0xff] %v11629_v46  ;;  %3649 = vmatpush.msrb.mxu2 %v9516_v42 }
 0x1e9   : > { %3269 = vmatpush.msra.mxu3 %v9497_v21  ;;  %9642 = vmatpush.msk.msra.mxu0 %vm419_vm0, %v9558_v50 }
 0x1ea   : > { %v11589_v25 = vpop.f32.mrf.mxu1  ;;  %v11594_v28 = vpop.f32.mrf.mxu0  ;;  %3549 = vmatpush.msra.mxu1 %v9511_v26 }
 0x1eb   : > { %9647 = vmatmul.msk.f32.vlgmr.msra.gmra.mxu2 %vm415_vm1, %v11421_v20  ;;  %3529 = vmatpush.msra.mxu0 %v9510_v52 }
 0x1ec   : > { %9662 = vmatpush.msk.msra.mxu2 %vm419_vm0, %v9568_v63 }
 0x1ee   : > { %9609 = vmatmul.msk.f32.vlgmr.msrb.gmra.mxu3 %vm415_vm1, %v11421_v20  ;;  %9635 = vmatmul.msk.f32.vlgmr.msrb.gmra.mxu0 %vm415_vm1, %v11421_v20 }
 0x1ef   : > { %v11604_v34 = vpop.f32.mrf.mxu3  ;;  %9624 = vmatpush.msk.msrb.mxu3 %vm419_vm0, %v9549_v60  ;;  %9637 = vmatmul.msk.f32.vlgmr.msrb.gmra.mxu1 %vm415_vm1, %v11421_v20  ;;  %v9521_v60 = vld [vmem:[%s10923_s20 + $0x478] sm:$0xff] }
 0x1f0   : > { %9652 = vmatpush.msk.msrb.mxu1 %vm419_vm0, %v9563_v36  ;;  %3729 = vmatpush.msra.mxu2 %v9520_v1 }
 0x1f1   : > { %3349 = vmatpush.msrb.mxu3 %v9501_v33  ;;  %9650 = vmatpush.msk.msrb.mxu0 %vm419_vm0, %v9562_v6 }
 0x1f2   : > { %3629 = vmatpush.msrb.mxu1 %v9515_v39 }
 0x1f3   : > { %v11615_v59 = vpop.f32.mrf.mxu1  ;;  %v11625_v30 = vpop.f32.mrf.mxu0  ;;  %9655 = vmatmul.msk.f32.vlgmr.msrb.gmra.mxu2 %vm415_vm1, %v11421_v20  ;;  %3609 = vmatpush.msrb.mxu0 %v9514_v4 }
 0x1f4   : > { %16343 = vst [vmem:[#allocation12_spill] sm:$0xff] %v11615_v59 }
 0x1f6   : > { %9617 = vmatmul.msk.f32.vlgmr.msra.gmra.mxu3 %vm415_vm1, %v11421_v20  ;;  %9643 = vmatmul.msk.f32.vlgmr.msra.gmra.mxu0 %vm415_vm1, %v11421_v20 }
 0x1f7   : > { %9632 = vmatpush.msk.msra.mxu3 %vm419_vm0, %v9553_v40  ;;  %9645 = vmatmul.msk.f32.vlgmr.msra.gmra.mxu1 %vm415_vm1, %v11421_v20 }
 0x1f8   : > { %v11635_v48 = vpop.f32.mrf.mxu3  ;;  %9660 = vmatpush.msk.msra.mxu1 %vm419_vm0, %v9567_v32  ;;  %9658 = vmatpush.msk.msra.mxu0 %vm419_vm0, %v9566_v9 }
 0x1f9   : > { %16345 = vst [vmem:[#allocation14_spill] sm:$0xff] %v11635_v48  ;;  %3429 = vmatpush.msra.mxu3 %v9505_v47 }
 0x1fa   : > { %3709 = vmatpush.msra.mxu1 %v9519_v53  ;;  %v11661_v2 = vpop.f32.mrf.mxu2  ;;  %3689 = vmatpush.msra.mxu0 %v9518_v14 }
 0x1fb   : > { %v11659_v0 = vpop.f32.mrf.mxu0  ;;  %9663 = vmatmul.msk.f32.vlgmr.msra.gmra.mxu2 %vm415_vm1, %v11421_v20 }
 0x1fc   : > { %v11645_v55 = vpop.f32.mrf.mxu1  ;;  %16347 = vst [vmem:[#allocation16_spill] sm:$0xff] %v11659_v0 }
 0x1fd   : > { %16346 = vst [vmem:[#allocation15_spill] sm:$0xff] %v11645_v55 }
 0x1fe   : > { %9625 = vmatmul.msk.f32.vlgmr.msrb.gmra.mxu3 %vm415_vm1, %v11421_v20  ;;  %9651 = vmatmul.msk.f32.vlgmr.msrb.gmra.mxu0 %vm415_vm1, %v11421_v20 }
 0x1ff   : > { %9640 = vmatpush.msk.msrb.mxu3 %vm419_vm0, %v9557_v62  ;;  %9653 = vmatmul.msk.f32.vlgmr.msrb.gmra.mxu1 %vm415_vm1, %v11421_v20 }
 0x201   : > { %v11663_v3 = vpop.f32.mrf.mxu3  ;;  %3509 = vmatpush.msrb.mxu3 %v9509_v61 }
 0x202   : > { %16348 = vst [vmem:[#allocation17_spill] sm:$0xff] %v11663_v3  ;;  %v11686_v12 = vpop.f32.mrf.mxu2 }
 0x203   : > { %v11684_v11 = vpop.f32.mrf.mxu0 }
 0x204   : > { %v11670_v7 = vpop.f32.mrf.mxu1 }
 0x206   : > { %9633 = vmatmul.msk.f32.vlgmr.msra.gmra.mxu3 %vm415_vm1, %v11421_v20  ;;  %9659 = vmatmul.msk.f32.vlgmr.msra.gmra.mxu0 %vm415_vm1, %v11421_v20 }
 0x207   : > { %9648 = vmatpush.msk.msra.mxu3 %vm419_vm0, %v9561_v57  ;;  %9661 = vmatmul.msk.f32.vlgmr.msra.gmra.mxu1 %vm415_vm1, %v11421_v20 }
 0x209   : > { %v11681_v8 = vpop.f32.mrf.mxu3  ;;  %3589 = vmatpush.msra.mxu3 %v9513_v58 }
 0x20a   : > { %16349 = vst [vmem:[#allocation18_spill] sm:$0xff] %v11681_v8  ;;  %v11705_v26 = vpop.f32.mrf.mxu2 }
 0x20b   : > { %v11701_v21 = vpop.f32.mrf.mxu0 }
 0x20c   : > { %v11690_v17 = vpop.f32.mrf.mxu1 }
 0x20e   : > { %9641 = vmatmul.msk.f32.vlgmr.msrb.gmra.mxu3 %vm415_vm1, %v11421_v20 }
 0x20f   : > { %9656 = vmatpush.msk.msrb.mxu3 %vm419_vm0, %v9565_v18 }
 0x211   : > { %v11699_v19 = vpop.f32.mrf.mxu3  ;;  %3669 = vmatpush.msrb.mxu3 %v9517_v10 }
 0x212   : > { %v11720_v36 = vpop.f32.mrf.mxu2 }
 0x213   : > { %v11716_v35 = vpop.f32.mrf.mxu0  ;;  %16352 = vst [vmem:[#allocation21_spill] sm:$0xff] %v11720_v36 }
 0x214   : > { %v11703_v24 = vpop.f32.mrf.mxu1  ;;  %16351 = vst [vmem:[#allocation20_spill] sm:$0xff] %v11716_v35 }
 0x216   : > { %9649 = vmatmul.msk.f32.vlgmr.msra.gmra.mxu3 %vm415_vm1, %v11421_v20 }
 0x217   : > { %9664 = vmatpush.msk.msra.mxu3 %vm419_vm0, %v9569_v27 }
 0x219   : > { %v11712_v31 = vpop.f32.mrf.mxu3  ;;  %3749 = vmatpush.msra.mxu3 %v9521_v60 }
 0x21a   : > { %v11730_v41 = vpop.f32.mrf.mxu2 }
 0x21b   : > { %v11728_v40 = vpop.f32.mrf.mxu0 }
 0x21c   : > { %v11714_v33 = vpop.f32.mrf.mxu1  ;;  %16354 = vst [vmem:[#allocation23_spill] sm:$0xff] %v11728_v40 }
 0x21d   : > { %16350 = vst [vmem:[#allocation19_spill] sm:$0xff] %v11714_v33 }
 0x21e   : > { %9657 = vmatmul.msk.f32.vlgmr.msrb.gmra.mxu3 %vm415_vm1, %v11421_v20 }
 0x221   : > { %v11722_v38 = vpop.f32.mrf.mxu3 }
 0x222   : > { %16353 = vst [vmem:[#allocation22_spill] sm:$0xff] %v11722_v38  ;;  %v2851_v32 = vpop.f32.mrf.mxu2 }
 0x223   : > { %v11734_v50 = vpop.f32.mrf.mxu0 }
 0x224   : > { %v11724_v39 = vpop.f32.mrf.mxu1 }
 0x226   : > { %9665 = vmatmul.msk.f32.vlgmr.msra.gmra.mxu3 %vm415_vm1, %v11421_v20 }
 0x229   : > { %v11732_v42 = vpop.f32.mrf.mxu3 }
 0x22a   : > { %v2931_v1 = vpop.f32.mrf.mxu2 }
 0x22b   : > { %v2811_v63 = vpop.f32.mrf.mxu0 }
 0x22c   : > { %v2831_v47 = vpop.f32.mrf.mxu1 }
 0x231   : > { %v11736_v52 = vpop.f32.mrf.mxu3 }
 0x233   : > { %v2891_v20 = vpop.f32.mrf.mxu0 }
 0x234   : > { %v2911_v53 = vpop.f32.mrf.mxu1  ;;  %v3755_v22 = vmax.f32 %v2831_v47, %v2891_v20 }
 0x235   : > { %v3756_v35 = vmax.f32 %v2851_v32, %v2911_v53 }
 0x236   : > { %v3011_v4 = vpop.f32.mrf.mxu2 }
 0x239   : > { %v11738_v62 = vpop.f32.mrf.mxu3 }
 0x23a   : > { %16355 = vst [vmem:[#allocation24_spill] sm:$0xff] %v11738_v62 }
 0x23b   : > { %v2971_v9 = vpop.f32.mrf.mxu0 }
 0x23c   : > { %v2991_v61 = vpop.f32.mrf.mxu1 }
 0x23d   : > { %v3757_v60 = vmax.f32 %v2931_v1, %v2991_v61 }
 0x23e   : > { %v3091_v14 = vpop.f32.mrf.mxu2 }
 0x241   : > { %v11740_v6 = vpop.f32.mrf.mxu3 }
 0x242   : > { %16356 = vst [vmem:[#allocation25_spill] sm:$0xff] %v11740_v6 }
 0x243   : > { %v3051_v38 = vpop.f32.mrf.mxu0 }
 0x244   : > { %v3071_v57 = vpop.f32.mrf.mxu1 }
 0x246   : > { %v3171_v36 = vpop.f32.mrf.mxu2 }
 0x249   : > { %v11742_v58 = vpop.f32.mrf.mxu3 }
 0x24b   : > { %v3131_v59 = vpop.f32.mrf.mxu0 }
 0x24c   : > { %v3151_v18 = vpop.f32.mrf.mxu1  ;;  %v3770_v20 = vmax.f32 %v3071_v57, %v3131_v59 }
 0x24e   : > { %v3251_v1 = vpop.f32.mrf.mxu2 }
 0x251   : > { %v2871_v10 = vpop.f32.mrf.mxu3 }
 0x252   : > { %v3754_v27 = vmax.f32 %v2811_v63, %v2871_v10 }
 0x254   : > { %v3760_v40 = vmax.f32 %v3754_v27, %v3757_v60  ;;  %v3231_v33 = vpop.f32.mrf.mxu1 }
 0x256   : > { %v3763_v6 = vadd.f32 %v3760_v40, %v11170_v49 }
 0x258   : > { %v11746_v5 = vmax.f32 %v3763_v6, 0.0 }
 0x259   : > { %v2951_v46 = vpop.f32.mrf.mxu3 }
 0x25a   : > { %v3758_v3 = vmax.f32 %v2951_v46, %v3011_v4 }
 0x25c   : > { %v3761_v56 = vmax.f32 %v3755_v22, %v3758_v3  ;;  %v3311_v61 = vpop.f32.mrf.mxu1  ;;  %v3211_v22 = vpop.f32.mrf.mxu0  ;;  %v3772_v3 = vmax.f32 %v3171_v36, %v3231_v33 }
 0x25e   : > { %v3764_v55 = vadd.f32 %v3761_v56, %v11170_v49  ;;  %v3331_v56 = vpop.f32.mrf.mxu2 }
 0x260   : > { %v11748_v0 = vmax.f32 %v3764_v55, 0.0 }
 0x261   : > { %v3031_v45 = vpop.f32.mrf.mxu3 }
 0x262   : > { %v11752_v63 = vpack.i.bf16 %v11748_v0, %v11746_v5  ;;  %v3759_v10 = vmax.f32 %v2971_v9, %v3031_v45 }
 0x264   : > { %10613 = vrot.lane.b32.xlu1 %v11752_v63, %s10824_s28  ;;  %v3391_v47 = vpop.f32.mrf.mxu1  ;;  %v3291_v54 = vpop.f32.mrf.mxu0  ;;  %v3762_v8 = vmax.f32 %v3756_v35, %v3759_v10 }
 0x266   : > { %v3411_v48 = vpop.f32.mrf.mxu2  ;;  %v3765_v59 = vadd.f32 %v3762_v8, %v11170_v49 }
 0x268   : > { %v11767_v53 = vmax.f32 %v3765_v59, 0.0 }
 0x269   : > { %v3111_v46 = vpop.f32.mrf.mxu3 }
 0x26a   : > { %v3769_v40 = vmax.f32 %v3051_v38, %v3111_v46  ;;  %v3771_v46 = vmax.f32 %v3091_v14, %v3151_v18 }
 0x26c   : > { %v3775_v6 = vmax.f32 %v3769_v40, %v3772_v3  ;;  %v3471_v15 = vpop.f32.mrf.mxu1  ;;  %v3371_v9 = vpop.f32.mrf.mxu0 }
 0x26e   : > { %v3778_v27 = vadd.f32 %v3775_v6, %v11170_v49 }
 0x270   : > { %v11758_v38 = vmax.f32 %v3778_v27, 0.0 }
 0x271   : > { %v3191_v55 = vpop.f32.mrf.mxu3 }
 0x272   : > { %v3773_v4 = vmax.f32 %v3191_v55, %v3251_v1 }
 0x274   : > { %v3776_v60 = vmax.f32 %v3770_v20, %v3773_v4  ;;  %v3551_v3 = vpop.f32.mrf.mxu1  ;;  %v3451_v55 = vpop.f32.mrf.mxu0  ;;  %v3785_v20 = vmax.f32 %v3311_v61, %v3371_v9 }
 0x276   : > { %v3779_v62 = vadd.f32 %v3776_v60, %v11170_v49 }
 0x278   : > { %v11760_v33 = vmax.f32 %v3779_v62, 0.0  ;;  %v3491_v62 = vpop.f32.mrf.mxu2 }
 0x279   : > { %v3271_v36 = vpop.f32.mrf.mxu3 }
 0x27a   : > { %v3774_v40 = vmax.f32 %v3211_v22, %v3271_v36  ;;  %v10617_v45 = vpack.i.bf16 %v11760_v33, %v11758_v38  ;;  %v3787_v22 = vmax.f32 %v3411_v48, %v3471_v15  ;;  %v3786_v15 = vmax.f32 %v3331_v56, %v3391_v47 }
 0x27c   : > { %v3777_v57 = vmax.f32 %v3771_v46, %v3774_v40  ;;  %10618 = vrot.lane.b32.xlu2 %v10617_v45, %s10823_s23  ;;  %v3631_v27 = vpop.f32.mrf.mxu1 }
 0x27e   : > { %v3780_v32 = vadd.f32 %v3777_v57, %v11170_v49  ;;  %v3531_v57 = vpop.f32.mrf.mxu0 }
 0x280   : > { %v11769_v35 = vmax.f32 %v3780_v32, 0.0  ;;  %v3571_v10 = vpop.f32.mrf.mxu2 }
 0x281   : > { %v3351_v1 = vpop.f32.mrf.mxu3 }
 0x282   : > { %v10632_v14 = vpack.i.bf16 %v11767_v53, %v11769_v35  ;;  %v3784_v18 = vmax.f32 %v3291_v54, %v3351_v1 }
 0x284   : > { %10633 = vrot.lane.b32.xlu2 %v10632_v14, %s10823_s23  ;;  %v3790_v8 = vmax.f32 %v3784_v18, %v3787_v22  ;;  %v3711_v9 = vpop.f32.mrf.mxu1 }
 0x286   : > { %v3793_v60 = vadd.f32 %v3790_v8, %v11170_v49  ;;  %v3611_v8 = vpop.f32.mrf.mxu0 }
 0x288   : > { %v11776_v40 = vmax.f32 %v3793_v60, 0.0  ;;  %v3651_v32 = vpop.f32.mrf.mxu2 }
 0x289   : > { %v3431_v6 = vpop.f32.mrf.mxu3  ;;  %v3802_v14 = vmax.f32 %v3651_v32, %v3711_v9 }
 0x28a   : > { %v3788_v4 = vmax.f32 %v3431_v6, %v3491_v62 }
 0x28c   : > { %v3791_v36 = vmax.f32 %v3785_v20, %v3788_v4  ;;  %v3800_v4 = vmax.f32 %v3551_v3, %v3611_v8 }
 0x28e   : > { %v3794_v46 = vadd.f32 %v3791_v36, %v11170_v49  ;;  %v3691_v3 = vpop.f32.mrf.mxu0 }
 0x290   : > { %v11778_v45 = vmax.f32 %v3794_v46, 0.0  ;;  %v10637_v46 = vpack.i.bf16 %v11767_v53, %v11748_v0 }
 0x291   : > { %v3511_v54 = vpop.f32.mrf.mxu3 }
 0x292   : > { %v3789_v48 = vmax.f32 %v3451_v55, %v3511_v54  ;;  %v10607_v59 = vpack.i.bf16 %v11778_v45, %v11776_v40  ;;  %v3731_v55 = vpop.f32.mrf.mxu2 }
 0x294   : > { %v3792_v61 = vmax.f32 %v3786_v15, %v3789_v48  ;;  %10608 = vrot.lane.b32.xlu0 %v10607_v59, %s10824_s28  ;;  %v3801_v15 = vmax.f32 %v3571_v10, %v3631_v27  ;;  %v11826_v27 = vld [vmem:[%s16304_s3 + $0x8] sm:$0xff] }
 0x296   : > { %v3795_v62 = vadd.f32 %v3792_v61, %v11170_v49  ;;  %v11810_v61 = vld [vmem:[%s16304_s3] sm:$0xff] }
 0x298   : > { %v11784_v1 = vmax.f32 %v3795_v62, 0.0 }
 0x299   : > { %v3591_v18 = vpop.f32.mrf.mxu3 }
 0x29a   : > { %v3799_v22 = vmax.f32 %v3531_v57, %v3591_v18  ;;  %v10627_v56 = vpack.i.bf16 %v11767_v53, %v11784_v1 }
 0x29c   : > { %v3805_v47 = vmax.f32 %v3799_v22, %v3802_v14  ;;  %10628 = vrot.lane.b32.xlu1 %v10627_v56, %s10824_s28  ;;  %10623 = vrot.lane.b32.xlu0 %v11752_v63, %s10823_s23 }
 0x29e   : > { %v3808_v6 = vadd.f32 %v3805_v47, %v11170_v49 }
 0x2a0   : > { %v11792_v20 = vmax.f32 %v3808_v6, 0.0 }
 0x2a1   : > { %v3671_v60 = vpop.f32.mrf.mxu3 }
 0x2a2   : > { %v3803_v36 = vmax.f32 %v3671_v60, %v3731_v55  ;;  %3900 = vmatpush.msrb.mxu0 %v11792_v20 }
 0x2a4   : > { %v3806_v54 = vmax.f32 %v3800_v4, %v3803_v36  ;;  %3875 = vrot.lane.b32.xlu1 %v11746_v5, %s10825_s29  ;;  %10638 = vrot.lane.b32.xlu0 %v10637_v46, %s10825_s29 }
 0x2a5   : > { %3901 = vmatpush.msrb.mxu0 %v11776_v40 }
 0x2a6   : > { %v3809_v63 = vadd.f32 %v3806_v54, %v11170_v49 }
 0x2a7   : > { %3902 = vmatpush.msrb.mxu0 %v11758_v38 }
 0x2a8   : > { %v11803_v48 = vmax.f32 %v3809_v63, 0.0 }
 0x2a9   : > { %3903 = vmatpush.msrb.mxu0 %v11746_v5  ;;  %v3751_v59 = vpop.f32.mrf.mxu3 }
 0x2aa   : > { %v3804_v57 = vmax.f32 %v3691_v3, %v3751_v59  ;;  %3929 = vmatpush.msrb.mxu1 %v11803_v48  ;;  %9666 = vmatmul.msk.f32.vlgmr.msrb.gmra.mxu0 %vm1661_vm2, %v11810_v61 }
 0x2ac   : > { %v3807_v32 = vmax.f32 %v3801_v15, %v3804_v57  ;;  %3930 = vmatpush.msrb.mxu1 %v11778_v45 }
 0x2ae   : > { %v3810_v10 = vadd.f32 %v3807_v32, %v11170_v49  ;;  %3931 = vmatpush.msrb.mxu1 %v11760_v33 }
 0x2b0   : > { %v11817_v5 = vmax.f32 %v3810_v10, 0.0  ;;  %3932 = vmatpush.msrb.mxu1 %v11748_v0  ;;  %v11840_v0 = vld [vmem:[%s16304_s3 + $0x10] sm:$0xff] }
 0x2b1   : > { %9670 = vmatmul.msk.f32.vlgmr.msrb.gmra.mxu1 %vm1661_vm2, %v11810_v61 }
 0x2b2   : > { %3958 = vmatpush.msrb.mxu2 %v11817_v5  ;;  %9667 = vmatmul.msk.f32.gmra.mxu0 %vm1661_vm2, %v11826_v27 }
 0x2b4   : > { %3959 = vmatpush.msrb.mxu2 %v11784_v1 }
 0x2b6   : > { %3960 = vmatpush.msrb.mxu2 %v11769_v35 }
 0x2b8   : > { %3961 = vmatpush.msrb.mxu2 %v11767_v53  ;;  %v11851_v53 = vld [vmem:[%s16304_s3 + $0x18] sm:$0xff] }
 0x2b9   : > { %9674 = vmatmul.msk.f32.vlgmr.msrb.gmra.mxu2 %vm1661_vm2, %v11810_v61  ;;  %9671 = vmatmul.msk.f32.gmra.mxu1 %vm1661_vm2, %v11826_v27 }
 0x2ba   : > { %9668 = vmatmul.msk.f32.gmra.mxu0 %vm1661_vm2, %v11840_v0 }
 0x2c1   : > { %9675 = vmatmul.msk.f32.gmra.mxu2 %vm1661_vm2, %v11826_v27  ;;  %9672 = vmatmul.msk.f32.gmra.mxu1 %vm1661_vm2, %v11840_v0 }
 0x2c2   : > { %9669 = vmatmul.msk.f32.gmra.mxu0 %vm1661_vm2, %v11851_v53 }
 0x2c9   : > { %9676 = vmatmul.msk.f32.gmra.mxu2 %vm1661_vm2, %v11840_v0  ;;  %9673 = vmatmul.msk.f32.gmra.mxu1 %vm1661_vm2, %v11851_v53 }
 0x2d1   : > { %9677 = vmatmul.msk.f32.gmra.mxu2 %vm1661_vm2, %v11851_v53 }
 0x2d6   : > { %v10619_v9 = vpop.permute.xlu2 %10618  ;;  %v10614_v22 = vpop.permute.xlu1 %10613 }
 0x2d7   : > { %v10621_v62 = vunpack.i.h.bf16 %v10619_v9  ;;  %v10620_v14 = vunpack.i.l.bf16 %v10619_v9  ;;  %v10616_v6 = vunpack.i.h.bf16 %v10614_v22  ;;  %v10615_v55 = vunpack.i.l.bf16 %v10614_v22 }
 0x2d9   : > { %v11862_v18 = vsel %vm1623_vm3, %v10620_v14, %v10621_v62  ;;  %v3823_v46 = vsel %vm1593_vm5, %v10615_v55, %v10616_v6 }
 0x2da   : > { %4074 = vmatpush.msra.mxu2 %v11862_v18 }
 0x2de   : > { %v10634_v4 = vpop.permute.xlu2 %10633 }
 0x2df   : > { %v10635_v36 = vunpack.i.l.bf16 %v10634_v4  ;;  %v10636_v3 = vunpack.i.h.bf16 %v10634_v4 }
 0x2e1   : > { %v3869_v10 = vsel %vm1623_vm3, %v10621_v62, %v10635_v36 }
 0x306   : > { %v10609_v56 = vpop.permute.xlu0 %10608 }
 0x307   : > { %v10611_v47 = vunpack.i.h.bf16 %v10609_v56  ;;  %v10610_v8 = vunpack.i.l.bf16 %v10609_v56 }
 0x309   : > { %v3839_v60 = vsel %vm1593_vm5, %v10610_v8, %v10611_v47 }
 0x30a   : > { %3987 = vmatpush.msrb.mxu3 %v3839_v60 }
 0x30c   : > { %3988 = vmatpush.msrb.mxu3 %v11792_v20 }
 0x30e   : > { %v10629_v54 = vpop.permute.xlu1 %10628  ;;  %v10624_v63 = vpop.permute.xlu0 %10623  ;;  %3989 = vmatpush.msrb.mxu3 %v3823_v46 }
 0x30f   : > { %v10630_v15 = vunpack.i.l.bf16 %v10629_v54  ;;  %v10626_v59 = vunpack.i.h.bf16 %v10624_v63  ;;  %v10625_v57 = vunpack.i.l.bf16 %v10624_v63  ;;  %v10631_v32 = vunpack.i.h.bf16 %v10629_v54 }
 0x310   : > { %3990 = vmatpush.msrb.mxu3 %v11758_v38 }
 0x311   : > { %9678 = vmatmul.msk.f32.vlgmr.msrb.gmra.mxu3 %vm1661_vm2, %v11810_v61  ;;  %v3840_v9 = vsel %vm1593_vm5, %v10611_v47, %v10630_v15  ;;  %v3845_v22 = vsel %vm1593_vm5, %v10630_v15, %v10610_v8  ;;  %v3852_v56 = vsel %vm1623_vm3, %v10625_v57, %v10626_v59  ;;  %v3853_v46 = vsel %vm1623_vm3, %v10626_v59, %v10636_v3  ;;  %v9823_v15 = vld [vmem:[%s10923_s20 + $0x600] sm:$0xff]  ;;  %v9878_v59 = vld [vmem:[%s10923_s20 + $0x7b8] sm:$0xf] }
 0x312   : > { %4103 = vmatpush.msra.mxu3 %v3869_v10  ;;  %4016 = vmatpush.msra.mxu0 %v3840_v9  ;;  %v3824_v38 = vsel %vm1593_vm5, %v10616_v6, %v10631_v32  ;;  %v3829_v47 = vsel %vm1593_vm5, %v10631_v32, %v10615_v55  ;;  %v9875_v32 = vld [vmem:[%s10923_s20 + $0x7a0] sm:$0xf] }
 0x313   : > { %4045 = vmatpush.msra.mxu1 %v3845_v22  ;;  %4075 = vmatpush.msra.mxu2 %v3852_v56  ;;  %v9833_v56 = vld [vmem:[%s10923_s20 + $0x650] sm:$0xff] }
 0x314   : > { %4104 = vmatpush.msra.mxu3 %v3853_v46  ;;  %4017 = vmatpush.msra.mxu0 %v11803_v48  ;;  %v9832_v46 = vld [vmem:[%s10923_s20 + $0x648] sm:$0xff] }
 0x315   : > { %4046 = vmatpush.msra.mxu1 %v11817_v5  ;;  %4076 = vmatpush.msra.mxu2 %v11792_v20 }
 0x316   : > { %4105 = vmatpush.msra.mxu3 %v11803_v48  ;;  %v10639_v62 = vpop.permute.xlu0 %10638  ;;  %4018 = vmatpush.msra.mxu0 %v3824_v38  ;;  %v3876_v54 = vpop.permute.xlu1 %3875  ;;  %v9885_v38 = vld [vmem:[%s10923_s20 + $0x7f0] sm:$0xf] }
 0x317   : > { %v10641_v8 = vunpack.i.h.bf16 %v10639_v62  ;;  %v10640_v4 = vunpack.i.l.bf16 %v10639_v62  ;;  %4047 = vmatpush.msra.mxu1 %v3829_v47  ;;  %4077 = vmatpush.msra.mxu2 %v11776_v40  ;;  %v3874_v40 = vsel %vm1623_vm3, %v10635_v36, %v10620_v14  ;;  %v9828_v14 = vld [vmem:[%s10923_s20 + $0x628] sm:$0xff]  ;;  %v9826_v36 = vld [vmem:[%s10923_s20 + $0x618] sm:$0xff]  ;;  %v9879_v62 = vld [vmem:[%s10923_s20 + $0x7c0] sm:$0xf] }
 0x318   : > { %9690 = vmatmul.msk.f32.vlgmr.msra.gmra.mxu2 %vm1661_vm2, %v11810_v61  ;;  %4106 = vmatpush.msra.mxu3 %v11778_v45  ;;  %v9873_v45 = vld [vmem:[%s10923_s20 + $0x790] sm:$0xf] }
 0x319   : > { %4019 = vmatpush.msra.mxu0 %v11760_v33  ;;  %4048 = vmatpush.msra.mxu1 %v11769_v35  ;;  %v3881_v6 = vsel %vm1653_vm4, %v3876_v54, %v10640_v4  ;;  %v3882_v63 = vsel %vm1653_vm4, %v10640_v4, %v10641_v8  ;;  %v3887_v55 = vsel %vm1653_vm4, %v10641_v8, %v3876_v54  ;;  %v9872_v35 = vld [vmem:[%s10923_s20 + $0x788] sm:$0xf]  ;;  %v9837_v47 = vld [vmem:[%s10923_s20 + $0x670] sm:$0xff]  ;;  %v9831_v8 = vld [vmem:[%s10923_s20 + $0x640] sm:$0xff] }
 0x31a   : > { %9679 = vmatmul.msk.f32.gmra.mxu3 %vm1661_vm2, %v11826_v27  ;;  %9686 = vmatmul.msk.f32.vlgmr.msra.gmra.mxu1 %vm1661_vm2, %v11810_v61  ;;  %v3858_v33 = vsel %vm1623_vm3, %v10636_v3, %v10625_v57  ;;  %v9829_v3 = vld [vmem:[%s10923_s20 + $0x630] sm:$0xff]  ;;  %v9830_v57 = vld [vmem:[%s10923_s20 + $0x638] sm:$0xff]  ;;  %v9836_v4 = vld [vmem:[%s10923_s20 + $0x668] sm:$0xff] }
 0x31b   : > { %4132 = vmatpush.msrb.mxu0 %v3874_v40  ;;  %4161 = vmatpush.msrb.mxu1 %v3881_v6  ;;  %v9889_v54 = vld [vmem:[%s10923_s20 + $0x810] sm:$0xf]  ;;  %v9883_v6 = vld [vmem:[%s10923_s20 + $0x7e0] sm:$0xf] }
 0x31c   : > { %4190 = vmatpush.msrb.mxu2 %v3882_v63  ;;  %4219 = vmatpush.msrb.mxu3 %v3887_v55  ;;  %v9841_v63 = vld [vmem:[%s10923_s20 + $0x690] sm:$0xff]  ;;  %v9835_v55 = vld [vmem:[%s10923_s20 + $0x660] sm:$0xff] }
 0x31d   : > { %4133 = vmatpush.msrb.mxu0 %v3858_v33  ;;  %4162 = vmatpush.msrb.mxu1 %v11862_v18  ;;  %v9877_v18 = vld [vmem:[%s10923_s20 + $0x7b0] sm:$0xf] }
 0x31e   : > { %4191 = vmatpush.msrb.mxu2 %v3869_v10  ;;  %4220 = vmatpush.msrb.mxu3 %v3874_v40  ;;  %v9881_v10 = vld [vmem:[%s10923_s20 + $0x7d0] sm:$0xf]  ;;  %v9840_v40 = vld [vmem:[%s10923_s20 + $0x688] sm:$0xff] }
 0x31f   : > { %4134 = vmatpush.msrb.mxu0 %v11817_v5  ;;  %4163 = vmatpush.msrb.mxu1 %v3839_v60  ;;  %v9871_v60 = vld [vmem:[%s10923_s20 + $0x780] sm:$0xf] }
 0x320   : > { %4192 = vmatpush.msrb.mxu2 %v3840_v9  ;;  %4221 = vmatpush.msrb.mxu3 %v3845_v22  ;;  %v9827_v9 = vld [vmem:[%s10923_s20 + $0x620] sm:$0xff] }
 0x321   : > { %9682 = vmatmul.msk.f32.vlgmr.msra.gmra.mxu0 %vm1661_vm2, %v11810_v61  ;;  %9691 = vmatmul.msk.f32.gmra.mxu2 %vm1661_vm2, %v11826_v27  ;;  %v11987_v22 = vld [vmem:[%s16302_s1] sm:$0xff] }
 0x322   : > { %4135 = vmatpush.msrb.mxu0 %v11784_v1  ;;  %4164 = vmatpush.msrb.mxu1 %v11792_v20  ;;  %v9824_v1 = vld [vmem:[%s10923_s20 + $0x608] sm:$0xff]  ;;  %v9825_v20 = vld [vmem:[%s10923_s20 + $0x610] sm:$0xff] }
 0x323   : > { %4193 = vmatpush.msrb.mxu2 %v11803_v48  ;;  %4222 = vmatpush.msrb.mxu3 %v11817_v5  ;;  %v9874_v48 = vld [vmem:[%s10923_s20 + $0x798] sm:$0xf]  ;;  %v9876_v5 = vld [vmem:[%s10923_s20 + $0x7a8] sm:$0xf] }
 0x324   : > { %9680 = vmatmul.msk.f32.gmra.mxu3 %vm1661_vm2, %v11840_v0  ;;  %9687 = vmatmul.msk.f32.gmra.mxu1 %vm1661_vm2, %v11826_v27 }
 0x325   : > { %9921 = vmatpush.msk.msra.mxu1 %vm419_vm0, %v9872_v35  ;;  %9923 = vmatpush.msk.msra.mxu2 %vm419_vm0, %v9873_v45  ;;  %v9893_v35 = vld [vmem:[%s10923_s20 + $0x830] sm:$0xf]  ;;  %v9887_v45 = vld [vmem:[%s10923_s20 + $0x800] sm:$0xf] }
 0x326   : > { %9919 = vmatpush.msk.msra.mxu0 %vm419_vm0, %v9871_v60 }
 0x327   : > { %5024 = vmatpush.msra.mxu1 %v9824_v1  ;;  %5044 = vmatpush.msra.mxu2 %v9825_v20  ;;  %v9892_v1 = vld [vmem:[%s10923_s20 + $0x828] sm:$0xf]  ;;  %v12060_v60 = vpop.f32.mrf.mxu0 }
 0x328   : > { %5004 = vmatpush.msra.mxu0 %v9823_v15  ;;  %16359 = vst [vmem:[#allocation28_spill] sm:$0xff] %v12060_v60 }
 0x329   : > { %9683 = vmatmul.msk.f32.gmra.mxu0 %vm1661_vm2, %v11826_v27  ;;  %9692 = vmatmul.msk.f32.gmra.mxu2 %vm1661_vm2, %v11840_v0 }
 0x32c   : > { %9681 = vmatmul.msk.f32.gmra.mxu3 %vm1661_vm2, %v11851_v53  ;;  %9688 = vmatmul.msk.f32.gmra.mxu1 %vm1661_vm2, %v11840_v0 }
 0x32e   : > { %v12036_v33 = vpop.f32.mrf.mxu1 }
 0x32f   : > { %16357 = vst [vmem:[#allocation26_spill] sm:$0xff] %v12036_v33 }
 0x331   : > { %9684 = vmatmul.msk.f32.gmra.mxu0 %vm1661_vm2, %v11840_v0  ;;  %9693 = vmatmul.msk.f32.gmra.mxu2 %vm1661_vm2, %v11851_v53 }
 0x334   : > { %9689 = vmatmul.msk.f32.gmra.mxu1 %vm1661_vm2, %v11851_v53  ;;  %9694 = vmatmul.msk.f32.vlgmr.msra.gmra.mxu3 %vm1661_vm2, %v11810_v61 }
 0x335   : > { %9925 = vmatpush.msk.msra.mxu3 %vm419_vm0, %v9874_v48  ;;  %v9845_v48 = vld [vmem:[%s10923_s20 + $0x6b0] sm:$0xff] }
 0x336   : > { %v12064_v15 = vpop.f32.mrf.mxu1 }
 0x337   : > { %5064 = vmatpush.msra.mxu3 %v9826_v36  ;;  %v9891_v36 = vld [vmem:[%s10923_s20 + $0x820] sm:$0xf]  ;;  %16360 = vst [vmem:[#allocation29_spill] sm:$0xff] %v12064_v15 }
 0x339   : > { %9685 = vmatmul.msk.f32.gmra.mxu0 %vm1661_vm2, %v11851_v53  ;;  %9706 = vmatmul.msk.f32.vlgmr.msrb.gmra.mxu2 %vm1661_vm2, %v11810_v61 }
 0x33a   : > { %9931 = vmatpush.msk.msrb.mxu2 %vm419_vm0, %v9877_v18  ;;  %v9844_v18 = vld [vmem:[%s10923_s20 + $0x6a8] sm:$0xff] }
 0x33c   : > { %9695 = vmatmul.msk.f32.gmra.mxu3 %vm1661_vm2, %v11826_v27  ;;  %9702 = vmatmul.msk.f32.vlgmr.msrb.gmra.mxu1 %vm1661_vm2, %v11810_v61  ;;  %v12048_v20 = vpop.f32.mrf.mxu2 }
 0x33d   : > { %9929 = vmatpush.msk.msrb.mxu1 %vm419_vm0, %v9876_v5  ;;  %5124 = vmatpush.msrb.mxu2 %v9829_v3  ;;  %16358 = vst [vmem:[#allocation27_spill] sm:$0xff] %v12048_v20  ;;  %v9839_v5 = vld [vmem:[%s10923_s20 + $0x680] sm:$0xff]  ;;  %v9897_v3 = vld [vmem:[%s10923_s20 + $0x850] sm:$0xf] }
 0x33f   : > { %5104 = vmatpush.msrb.mxu1 %v9828_v14  ;;  %v9834_v14 = vld [vmem:[%s10923_s20 + $0x658] sm:$0xff] }
 0x341   : > { %9707 = vmatmul.msk.f32.gmra.mxu2 %vm1661_vm2, %v11826_v27  ;;  %9698 = vmatmul.msk.f32.vlgmr.msrb.gmra.mxu0 %vm1661_vm2, %v11810_v61 }
 0x342   : > { %9927 = vmatpush.msk.msrb.mxu0 %vm419_vm0, %v9875_v32  ;;  %v9849_v32 = vld [vmem:[%s10923_s20 + $0x6d0] sm:$0xff] }
 0x344   : > { %9696 = vmatmul.msk.f32.gmra.mxu3 %vm1661_vm2, %v11840_v0  ;;  %9703 = vmatmul.msk.f32.gmra.mxu1 %vm1661_vm2, %v11826_v27 }
 0x345   : > { %5084 = vmatpush.msrb.mxu0 %v9827_v9  ;;  %v9838_v9 = vld [vmem:[%s10923_s20 + $0x678] sm:$0xff] }
 0x349   : > { %9708 = vmatmul.msk.f32.gmra.mxu2 %vm1661_vm2, %v11840_v0  ;;  %9699 = vmatmul.msk.f32.gmra.mxu0 %vm1661_vm2, %v11826_v27 }
 0x34c   : > { %9697 = vmatmul.msk.f32.gmra.mxu3 %vm1661_vm2, %v11851_v53  ;;  %9704 = vmatmul.msk.f32.gmra.mxu1 %vm1661_vm2, %v11840_v0 }
 0x351   : > { %9709 = vmatmul.msk.f32.gmra.mxu2 %vm1661_vm2, %v11851_v53  ;;  %9700 = vmatmul.msk.f32.gmra.mxu0 %vm1661_vm2, %v11840_v0 }
 0x354   : > { %9705 = vmatmul.msk.f32.gmra.mxu1 %vm1661_vm2, %v11851_v53  ;;  %9710 = vmatmul.msk.f32.vlgmr.msrb.gmra.mxu3 %vm1661_vm2, %v11810_v61  ;;  %v9880_v61 = vld [vmem:[%s10923_s20 + $0x7c8] sm:$0xf] }
 0x355   : > { %9933 = vmatpush.msk.msrb.mxu3 %vm419_vm0, %v9878_v59  ;;  %v9886_v59 = vld [vmem:[%s10923_s20 + $0x7f8] sm:$0xf] }
 0x357   : > { %5144 = vmatpush.msrb.mxu3 %v9830_v57  ;;  %v9896_v57 = vld [vmem:[%s10923_s20 + $0x848] sm:$0xf] }
 0x359   : > { %9924 = vmatmul.msk.f32.vlgmr.msra.gmra.mxu2 %vm415_vm1, %v11987_v22  ;;  %9701 = vmatmul.msk.f32.gmra.mxu0 %vm1661_vm2, %v11851_v53 }
 0x35a   : > { %9939 = vmatpush.msk.msra.mxu2 %vm419_vm0, %v9881_v10  ;;  %v9843_v10 = vld [vmem:[%s10923_s20 + $0x6a0] sm:$0xff] }
 0x35c   : > { %9711 = vmatmul.msk.f32.gmra.mxu3 %vm1661_vm2, %v11826_v27  ;;  %9922 = vmatmul.msk.f32.vlgmr.msra.gmra.mxu1 %vm415_vm1, %v11987_v22  ;;  %v9884_v27 = vld [vmem:[%s10923_s20 + $0x7e8] sm:$0xf] }
 0x35d   : > { %9937 = vmatpush.msk.msra.mxu1 %vm419_vm0, %v9880_v61  ;;  %5204 = vmatpush.msra.mxu2 %v9833_v56  ;;  %v9848_v61 = vld [vmem:[%s10923_s20 + $0x6c8] sm:$0xff]  ;;  %v12082_v56 = vpop.f32.mrf.mxu2 }
 0x35e   : > { %16361 = vst [vmem:[#allocation30_spill] sm:$0xff] %v12082_v56 }
 0x35f   : > { %5184 = vmatpush.msra.mxu1 %v9832_v46  ;;  %v9895_v46 = vld [vmem:[%s10923_s20 + $0x840] sm:$0xf] }
 0x361   : > { %9932 = vmatmul.msk.f32.vlgmr.msrb.gmra.mxu2 %vm415_vm1, %v11987_v22  ;;  %9920 = vmatmul.msk.f32.vlgmr.msra.gmra.mxu0 %vm415_vm1, %v11987_v22 }
 0x362   : > { %9947 = vmatpush.msk.msrb.mxu2 %vm419_vm0, %v9885_v38  ;;  %9935 = vmatpush.msk.msra.mxu0 %vm419_vm0, %v9879_v62  ;;  %v12087_v38 = vpop.f32.mrf.mxu0  ;;  %v9890_v62 = vld [vmem:[%s10923_s20 + $0x818] sm:$0xf] }
 0x363   : > { %16362 = vst [vmem:[#allocation31_spill] sm:$0xff] %v12087_v38 }
 0x364   : > { %9712 = vmatmul.msk.f32.gmra.mxu3 %vm1661_vm2, %v11840_v0  ;;  %9930 = vmatmul.msk.f32.vlgmr.msrb.gmra.mxu1 %vm415_vm1, %v11987_v22  ;;  %v9888_v0 = vld [vmem:[%s10923_s20 + $0x808] sm:$0xf] }
 0x365   : > { %9945 = vmatpush.msk.msrb.mxu1 %vm419_vm0, %v9884_v27  ;;  %5284 = vmatpush.msrb.mxu2 %v9837_v47  ;;  %v9900_v27 = vld [vmem:[%s10923_s20 + $0x868] sm:$0xf]  ;;  %v9901_v47 = vld [vmem:[%s10923_s20 + $0x870] sm:$0xf] }
 0x366   : > { %5164 = vmatpush.msra.mxu0 %v9831_v8  ;;  %v12097_v8 = vpop.f32.mrf.mxu1 }
 0x367   : > { %5264 = vmatpush.msrb.mxu1 %v9836_v4  ;;  %16363 = vst [vmem:[#allocation32_spill] sm:$0xff] %v12097_v8  ;;  %v9853_v4 = vld [vmem:[%s10923_s20 + $0x6f0] sm:$0xff] }
 0x369   : > { %9940 = vmatmul.msk.f32.vlgmr.msra.gmra.mxu2 %vm415_vm1, %v11987_v22  ;;  %9928 = vmatmul.msk.f32.vlgmr.msrb.gmra.mxu0 %vm415_vm1, %v11987_v22 }
 0x36a   : > { %9955 = vmatpush.msk.msra.mxu2 %vm419_vm0, %v9889_v54  ;;  %9943 = vmatpush.msk.msrb.mxu0 %vm419_vm0, %v9883_v6  ;;  %v9847_v54 = vld [vmem:[%s10923_s20 + $0x6c0] sm:$0xff]  ;;  %v9842_v6 = vld [vmem:[%s10923_s20 + $0x698] sm:$0xff] }
 0x36c   : > { %9713 = vmatmul.msk.f32.gmra.mxu3 %vm1661_vm2, %v11851_v53  ;;  %9938 = vmatmul.msk.f32.vlgmr.msra.gmra.mxu1 %vm415_vm1, %v11987_v22  ;;  %v9882_v53 = vld [vmem:[%s10923_s20 + $0x7d8] sm:$0xf] }
 0x36d   : > { %9953 = vmatpush.msk.msra.mxu1 %vm419_vm0, %v9888_v0  ;;  %5364 = vmatpush.msra.mxu2 %v9841_v63  ;;  %v9852_v0 = vld [vmem:[%s10923_s20 + $0x6e8] sm:$0xff]  ;;  %v12110_v63 = vpop.f32.mrf.mxu2 }
 0x36e   : > { %5244 = vmatpush.msrb.mxu0 %v9835_v55  ;;  %16364 = vst [vmem:[#allocation33_spill] sm:$0xff] %v12110_v63  ;;  %v9899_v55 = vld [vmem:[%s10923_s20 + $0x860] sm:$0xf] }
 0x36f   : > { %5344 = vmatpush.msra.mxu1 %v9840_v40  ;;  %v12117_v40 = vpop.f32.mrf.mxu0 }
 0x370   : > { %16365 = vst [vmem:[#allocation34_spill] sm:$0xff] %v12117_v40 }
 0x371   : > { %9948 = vmatmul.msk.f32.vlgmr.msrb.gmra.mxu2 %vm415_vm1, %v11987_v22  ;;  %9936 = vmatmul.msk.f32.vlgmr.msra.gmra.mxu0 %vm415_vm1, %v11987_v22 }
 0x372   : > { %9963 = vmatpush.msk.msrb.mxu2 %vm419_vm0, %v9893_v35  ;;  %9951 = vmatpush.msk.msra.mxu0 %vm419_vm0, %v9887_v45  ;;  %v9894_v35 = vld [vmem:[%s10923_s20 + $0x838] sm:$0xf]  ;;  %v9904_v45 = vld [vmem:[%s10923_s20 + $0x888] sm:$0xf] }
 0x374   : > { %9926 = vmatmul.msk.f32.vlgmr.msra.gmra.mxu3 %vm415_vm1, %v11987_v22  ;;  %9946 = vmatmul.msk.f32.vlgmr.msrb.gmra.mxu1 %vm415_vm1, %v11987_v22 }
 0x375   : > { %9941 = vmatpush.msk.msra.mxu3 %vm419_vm0, %v9882_v53  ;;  %9961 = vmatpush.msk.msrb.mxu1 %vm419_vm0, %v9892_v1  ;;  %v9905_v53 = vld [vmem:[%s10923_s20 + $0x890] sm:$0xf] }
 0x376   : > { %5444 = vmatpush.msrb.mxu2 %v9845_v48  ;;  %5324 = vmatpush.msra.mxu0 %v9839_v5  ;;  %v9857_v1 = vld [vmem:[%s10923_s20 + $0x710] sm:$0xff]  ;;  %v9851_v48 = vld [vmem:[%s10923_s20 + $0x6e0] sm:$0xff]  ;;  %v9846_v5 = vld [vmem:[%s10923_s20 + $0x6b8] sm:$0xff] }
 0x377   : > { %5224 = vmatpush.msra.mxu3 %v9834_v14  ;;  %5424 = vmatpush.msrb.mxu1 %v9844_v18  ;;  %v9856_v14 = vld [vmem:[%s10923_s20 + $0x708] sm:$0xff]  ;;  %v12132_v18 = vpop.f32.mrf.mxu1 }
 0x378   : > { %16366 = vst [vmem:[#allocation35_spill] sm:$0xff] %v12132_v18 }
 0x379   : > { %9956 = vmatmul.msk.f32.vlgmr.msra.gmra.mxu2 %vm415_vm1, %v11987_v22  ;;  %9944 = vmatmul.msk.f32.vlgmr.msrb.gmra.mxu0 %vm415_vm1, %v11987_v22 }
 0x37a   : > { %9971 = vmatpush.msk.msra.mxu2 %vm419_vm0, %v9897_v3  ;;  %9959 = vmatpush.msk.msrb.mxu0 %vm419_vm0, %v9891_v36  ;;  %v12136_v36 = vpop.f32.mrf.mxu2  ;;  %v9898_v3 = vld [vmem:[%s10923_s20 + $0x858] sm:$0xf] }
 0x37b   : > { %16367 = vst [vmem:[#allocation36_spill] sm:$0xff] %v12136_v36 }
 0x37c   : > { %9934 = vmatmul.msk.f32.vlgmr.msrb.gmra.mxu3 %vm415_vm1, %v11987_v22  ;;  %9954 = vmatmul.msk.f32.vlgmr.msra.gmra.mxu1 %vm415_vm1, %v11987_v22 }
 0x37d   : > { %9949 = vmatpush.msk.msrb.mxu3 %vm419_vm0, %v9886_v59  ;;  %9969 = vmatpush.msk.msra.mxu1 %vm419_vm0, %v9896_v57  ;;  %v9908_v59 = vld [vmem:[%s10923_s20 + $0x8a8] sm:$0xf]  ;;  %v9909_v57 = vld [vmem:[%s10923_s20 + $0x8b0] sm:$0xf] }
 0x37e   : > { %5524 = vmatpush.msra.mxu2 %v9849_v32  ;;  %5404 = vmatpush.msrb.mxu0 %v9843_v10  ;;  %v9861_v32 = vld [vmem:[%s10923_s20 + $0x730] sm:$0xff]  ;;  %v12149_v10 = vpop.f32.mrf.mxu0 }
 0x37f   : > { %5304 = vmatpush.msrb.mxu3 %v9838_v9  ;;  %5504 = vmatpush.msra.mxu1 %v9848_v61  ;;  %16368 = vst [vmem:[#allocation37_spill] sm:$0xff] %v12149_v10  ;;  %v9850_v61 = vld [vmem:[%s10923_s20 + $0x6d8] sm:$0xff] }
 0x381   : > { %9964 = vmatmul.msk.f32.vlgmr.msrb.gmra.mxu2 %vm415_vm1, %v11987_v22  ;;  %9952 = vmatmul.msk.f32.vlgmr.msra.gmra.mxu0 %vm415_vm1, %v11987_v22 }
 0x382   : > { %9967 = vmatpush.msk.msra.mxu0 %vm419_vm0, %v9895_v46  ;;  %9979 = vmatpush.msk.msrb.mxu2 %vm419_vm0, %v9901_v47  ;;  %v9860_v46 = vld [vmem:[%s10923_s20 + $0x728] sm:$0xff]  ;;  %v9902_v47 = vld [vmem:[%s10923_s20 + $0x878] sm:$0xf] }
 0x384   : > { %9942 = vmatmul.msk.f32.vlgmr.msra.gmra.mxu3 %vm415_vm1, %v11987_v22  ;;  %9962 = vmatmul.msk.f32.vlgmr.msrb.gmra.mxu1 %vm415_vm1, %v11987_v22 }
 0x385   : > { %9957 = vmatpush.msk.msra.mxu3 %vm419_vm0, %v9890_v62  ;;  %9977 = vmatpush.msk.msrb.mxu1 %vm419_vm0, %v9900_v27  ;;  %v9903_v27 = vld [vmem:[%s10923_s20 + $0x880] sm:$0xf] }
 0x386   : > { %5604 = vmatpush.msrb.mxu2 %v9853_v4  ;;  %5484 = vmatpush.msra.mxu0 %v9847_v54  ;;  %v9912_v4 = vld [vmem:[%s10923_s20 + $0x8c8] sm:$0xf] }
 0x387   : > { %5384 = vmatpush.msra.mxu3 %v9842_v6  ;;  %5584 = vmatpush.msrb.mxu1 %v9852_v0  ;;  %v9854_v6 = vld [vmem:[%s10923_s20 + $0x6f8] sm:$0xff]  ;;  %v9855_v0 = vld [vmem:[%s10923_s20 + $0x700] sm:$0xff] }
 0x389   : > { %9972 = vmatmul.msk.f32.vlgmr.msra.gmra.mxu2 %vm415_vm1, %v11987_v22  ;;  %9960 = vmatmul.msk.f32.vlgmr.msrb.gmra.mxu0 %vm415_vm1, %v11987_v22 }
 0x38a   : > { %9975 = vmatpush.msk.msrb.mxu0 %vm419_vm0, %v9899_v55  ;;  %9987 = vmatpush.msk.msra.mxu2 %vm419_vm0, %v9905_v53  ;;  %v9864_v55 = vld [vmem:[%s10923_s20 + $0x748] sm:$0xff]  ;;  %v9865_v53 = vld [vmem:[%s10923_s20 + $0x750] sm:$0xff] }
 0x38c   : > { %9950 = vmatmul.msk.f32.vlgmr.msrb.gmra.mxu3 %vm415_vm1, %v11987_v22  ;;  %9970 = vmatmul.msk.f32.vlgmr.msra.gmra.mxu1 %vm415_vm1, %v11987_v22 }
 0x38d   : > { %9965 = vmatpush.msk.msrb.mxu3 %vm419_vm0, %v9894_v35  ;;  %9985 = vmatpush.msk.msra.mxu1 %vm419_vm0, %v9904_v45  ;;  %v9913_v45 = vld [vmem:[%s10923_s20 + $0x8d0] sm:$0xf] }
 0x38e   : > { %5684 = vmatpush.msra.mxu2 %v9857_v1  ;;  %5564 = vmatpush.msrb.mxu0 %v9851_v48  ;;  %v9907_v48 = vld [vmem:[%s10923_s20 + $0x8a0] sm:$0xf] }
 0x38f   : > { %5464 = vmatpush.msrb.mxu3 %v9846_v5  ;;  %5664 = vmatpush.msra.mxu1 %v9856_v14  ;;  %v9906_v14 = vld [vmem:[%s10923_s20 + $0x898] sm:$0xf] }
 0x391   : > { %9980 = vmatmul.msk.f32.vlgmr.msrb.gmra.mxu2 %vm415_vm1, %v11987_v22  ;;  %9968 = vmatmul.msk.f32.vlgmr.msra.gmra.mxu0 %vm415_vm1, %v11987_v22 }
 0x392   : > { %9995 = vmatpush.msk.msrb.mxu2 %vm419_vm0, %v9909_v57  ;;  %9983 = vmatpush.msk.msra.mxu0 %vm419_vm0, %v9903_v27  ;;  %v9858_v57 = vld [vmem:[%s10923_s20 + $0x718] sm:$0xff]  ;;  %v9869_v27 = vld [vmem:[%s10923_s20 + $0x770] sm:$0xff] }
 0x394   : > { %9958 = vmatmul.msk.f32.vlgmr.msra.gmra.mxu3 %vm415_vm1, %v11987_v22  ;;  %v12151_v9 = vpop.f32.mrf.mxu3  ;;  %9978 = vmatmul.msk.f32.vlgmr.msrb.gmra.mxu1 %vm415_vm1, %v11987_v22 }
 0x395   : > { %16369 = vst [vmem:[#allocation38_spill] sm:$0xff] %v12151_v9  ;;  %9973 = vmatpush.msk.msra.mxu3 %vm419_vm0, %v9898_v3  ;;  %9993 = vmatpush.msk.msrb.mxu1 %vm419_vm0, %v9908_v59  ;;  %v9916_v3 = vld [vmem:[%s10923_s20 + $0x8e8] sm:$0xf] }
 0x396   : > { %5764 = vmatpush.msrb.mxu2 %v9861_v32  ;;  %5644 = vmatpush.msra.mxu0 %v9855_v0  ;;  %v9859_v32 = vld [vmem:[%s10923_s20 + $0x720] sm:$0xff] }
 0x397   : > { %v12159_v62 = vpop.f32.mrf.mxu1  ;;  %5544 = vmatpush.msra.mxu3 %v9850_v61  ;;  %5744 = vmatpush.msrb.mxu1 %v9860_v46  ;;  %v9868_v61 = vld [vmem:[%s10923_s20 + $0x768] sm:$0xff]  ;;  %v9917_v46 = vld [vmem:[%s10923_s20 + $0x8f0] sm:$0xf] }
 0x398   : > { %16370 = vst [vmem:[#allocation39_spill] sm:$0xff] %v12159_v62 }
 0x399   : > { %9988 = vmatmul.msk.f32.vlgmr.msra.gmra.mxu2 %vm415_vm1, %v11987_v22  ;;  %9976 = vmatmul.msk.f32.vlgmr.msrb.gmra.mxu0 %vm415_vm1, %v11987_v22 }
 0x39a   : > { %10003 = vmatpush.msk.msra.mxu2 %vm419_vm0, %v9913_v45  ;;  %9991 = vmatpush.msk.msrb.mxu0 %vm419_vm0, %v9907_v48  ;;  %v9863_v48 = vld [vmem:[%s10923_s20 + $0x740] sm:$0xff] }
 0x39b   : > { %v12169_v54 = vpop.f32.mrf.mxu2 }
 0x39c   : > { %16371 = vst [vmem:[#allocation40_spill] sm:$0xff] %v12169_v54  ;;  %9966 = vmatmul.msk.f32.vlgmr.msrb.gmra.mxu3 %vm415_vm1, %v11987_v22  ;;  %9986 = vmatmul.msk.f32.vlgmr.msra.gmra.mxu1 %vm415_vm1, %v11987_v22 }
 0x39d   : > { %v12178_v35 = vpop.f32.mrf.mxu3  ;;  %9981 = vmatpush.msk.msrb.mxu3 %vm419_vm0, %v9902_v47  ;;  %10001 = vmatpush.msk.msra.mxu1 %vm419_vm0, %v9912_v4 }
 0x39e   : > { %16372 = vst [vmem:[#allocation41_spill] sm:$0xff] %v12178_v35  ;;  %v12184_v1 = vpop.f32.mrf.mxu0  ;;  %5844 = vmatpush.msra.mxu2 %v9865_v53  ;;  %5724 = vmatpush.msrb.mxu0 %v9859_v32  ;;  %v9862_v53 = vld [vmem:[%s10923_s20 + $0x738] sm:$0xff] }
 0x39f   : > { %16373 = vst [vmem:[#allocation42_spill] sm:$0xff] %v12184_v1  ;;  %5624 = vmatpush.msrb.mxu3 %v9854_v6  ;;  %5824 = vmatpush.msra.mxu1 %v9864_v55  ;;  %v9911_v6 = vld [vmem:[%s10923_s20 + $0x8c0] sm:$0xf]  ;;  %v9910_v55 = vld [vmem:[%s10923_s20 + $0x8b8] sm:$0xf] }
 0x3a1   : > { %v12189_v5 = vpop.f32.mrf.mxu1  ;;  %9996 = vmatmul.msk.f32.vlgmr.msrb.gmra.mxu2 %vm415_vm1, %v11987_v22  ;;  %9984 = vmatmul.msk.f32.vlgmr.msra.gmra.mxu0 %vm415_vm1, %v11987_v22 }
 0x3a2   : > { %16374 = vst [vmem:[#allocation43_spill] sm:$0xff] %v12189_v5  ;;  %10011 = vmatpush.msk.msrb.mxu2 %vm419_vm0, %v9917_v46  ;;  %9999 = vmatpush.msk.msra.mxu0 %vm419_vm0, %v9911_v6  ;;  %v9867_v6 = vld [vmem:[%s10923_s20 + $0x760] sm:$0xff] }
 0x3a4   : > { %9974 = vmatmul.msk.f32.vlgmr.msra.gmra.mxu3 %vm415_vm1, %v11987_v22  ;;  %v12199_v59 = vpop.f32.mrf.mxu2  ;;  %9994 = vmatmul.msk.f32.vlgmr.msrb.gmra.mxu1 %vm415_vm1, %v11987_v22 }
 0x3a5   : > { %16375 = vst [vmem:[#allocation44_spill] sm:$0xff] %v12199_v59  ;;  %9989 = vmatpush.msk.msra.mxu3 %vm419_vm0, %v9906_v14  ;;  %10009 = vmatpush.msk.msrb.mxu1 %vm419_vm0, %v9916_v3 }
 0x3a6   : > { %v12210_v47 = vpop.f32.mrf.mxu0  ;;  %5924 = vmatpush.msrb.mxu2 %v9869_v27  ;;  %5804 = vmatpush.msra.mxu0 %v9863_v48  ;;  %v9866_v27 = vld [vmem:[%s10923_s20 + $0x758] sm:$0xff] }
 0x3a7   : > { %16376 = vst [vmem:[#allocation45_spill] sm:$0xff] %v12210_v47  ;;  %v12213_v4 = vpop.f32.mrf.mxu3  ;;  %5704 = vmatpush.msra.mxu3 %v9858_v57  ;;  %5904 = vmatpush.msrb.mxu1 %v9868_v61  ;;  %v9915_v57 = vld [vmem:[%s10923_s20 + $0x8e0] sm:$0xf]  ;;  %v9914_v61 = vld [vmem:[%s10923_s20 + $0x8d8] sm:$0xf] }
 0x3a8   : > { %16377 = vst [vmem:[#allocation46_spill] sm:$0xff] %v12213_v4 }
 0x3a9   : > { %v12217_v0 = vpop.f32.mrf.mxu1  ;;  %10004 = vmatmul.msk.f32.vlgmr.msra.gmra.mxu2 %vm415_vm1, %v11987_v22  ;;  %9992 = vmatmul.msk.f32.vlgmr.msrb.gmra.mxu0 %vm415_vm1, %v11987_v22 }
 0x3aa   : > { %16378 = vst [vmem:[#allocation47_spill] sm:$0xff] %v12217_v0  ;;  %10007 = vmatpush.msk.msrb.mxu0 %vm419_vm0, %v9915_v57  ;;  %v9918_v57 = vld [vmem:[%s10923_s20 + $0x8f8] sm:$0xf] }
 0x3ac   : > { %9982 = vmatmul.msk.f32.vlgmr.msrb.gmra.mxu3 %vm415_vm1, %v11987_v22  ;;  %v12226_v45 = vpop.f32.mrf.mxu2  ;;  %10002 = vmatmul.msk.f32.vlgmr.msra.gmra.mxu1 %vm415_vm1, %v11987_v22 }
 0x3ad   : > { %16379 = vst [vmem:[#allocation48_spill] sm:$0xff] %v12226_v45  ;;  %9997 = vmatpush.msk.msrb.mxu3 %vm419_vm0, %v9910_v55  ;;  %5884 = vmatpush.msrb.mxu0 %v9867_v6 }
 0x3ae   : > { %v12233_v14 = vpop.f32.mrf.mxu0 }
 0x3af   : > { %16380 = vst [vmem:[#allocation49_spill] sm:$0xff] %v12233_v14  ;;  %v12235_v3 = vpop.f32.mrf.mxu3  ;;  %5784 = vmatpush.msrb.mxu3 %v9862_v53 }
 0x3b0   : > { %16381 = vst [vmem:[#allocation50_spill] sm:$0xff] %v12235_v3 }
 0x3b1   : > { %v12239_v32 = vpop.f32.mrf.mxu1  ;;  %10012 = vmatmul.msk.f32.vlgmr.msrb.gmra.mxu2 %vm415_vm1, %v11987_v22  ;;  %10000 = vmatmul.msk.f32.vlgmr.msra.gmra.mxu0 %vm415_vm1, %v11987_v22 }
 0x3b2   : > { %16382 = vst [vmem:[#allocation51_spill] sm:$0xff] %v12239_v32  ;;  %v9870_v32 = vld [vmem:[%s10923_s20 + $0x778] sm:$0xff] }
 0x3b4   : > { %9990 = vmatmul.msk.f32.vlgmr.msra.gmra.mxu3 %vm415_vm1, %v11987_v22  ;;  %v12248_v46 = vpop.f32.mrf.mxu2  ;;  %10010 = vmatmul.msk.f32.vlgmr.msrb.gmra.mxu1 %vm415_vm1, %v11987_v22 }
 0x3b5   : > { %16383 = vst [vmem:[#allocation52_spill] sm:$0xff] %v12248_v46  ;;  %10005 = vmatpush.msk.msra.mxu3 %vm419_vm0, %v9914_v61 }
 0x3b6   : > { %v12255_v55 = vpop.f32.mrf.mxu0 }
 0x3b7   : > { %16384 = vst [vmem:[#allocation53_spill] sm:$0xff] %v12255_v55  ;;  %v12257_v53 = vpop.f32.mrf.mxu3  ;;  %5864 = vmatpush.msra.mxu3 %v9866_v27 }
 0x3b8   : > { %16385 = vst [vmem:[#allocation54_spill] sm:$0xff] %v12257_v53 }
 0x3b9   : > { %v12259_v48 = vpop.f32.mrf.mxu1  ;;  %10008 = vmatmul.msk.f32.vlgmr.msrb.gmra.mxu0 %vm415_vm1, %v11987_v22 }
 0x3ba   : > { %16386 = vst [vmem:[#allocation55_spill] sm:$0xff] %v12259_v48 }
 0x3bc   : > { %9998 = vmatmul.msk.f32.vlgmr.msrb.gmra.mxu3 %vm415_vm1, %v11987_v22  ;;  %v12266_v36 = vpop.f32.mrf.mxu2 }
 0x3bd   : > { %16387 = vst [vmem:[#allocation56_spill] sm:$0xff] %v12266_v36  ;;  %10013 = vmatpush.msk.msrb.mxu3 %vm419_vm0, %v9918_v57 }
 0x3be   : > { %v12270_v61 = vpop.f32.mrf.mxu0 }
 0x3bf   : > { %16388 = vst [vmem:[#allocation57_spill] sm:$0xff] %v12270_v61  ;;  %v12272_v6 = vpop.f32.mrf.mxu3  ;;  %5944 = vmatpush.msrb.mxu3 %v9870_v32 }
 0x3c0   : > { %16389 = vst [vmem:[#allocation58_spill] sm:$0xff] %v12272_v6 }
 0x3c1   : > { %v12274_v27 = vpop.f32.mrf.mxu1 }
 0x3c2   : > { %16390 = vst [vmem:[#allocation59_spill] sm:$0xff] %v12274_v27 }
 0x3c4   : > { %10006 = vmatmul.msk.f32.vlgmr.msra.gmra.mxu3 %vm415_vm1, %v11987_v22  ;;  %v12278_v56 = vpop.f32.mrf.mxu2 }
 0x3c5   : > { %16391 = vst [vmem:[#allocation60_spill] sm:$0xff] %v12278_v56 }
 0x3c6   : > { %v12280_v5 = vpop.f32.mrf.mxu0 }
 0x3c7   : > { %16392 = vst [vmem:[#allocation61_spill] sm:$0xff] %v12280_v5  ;;  %v12282_v20 = vpop.f32.mrf.mxu3 }
 0x3c8   : > { %16393 = vst [vmem:[#allocation62_spill] sm:$0xff] %v12282_v20 }
 0x3c9   : > { %v12284_v62 = vpop.f32.mrf.mxu1 }
 0x3ca   : > { %16394 = vst [vmem:[#allocation63_spill] sm:$0xff] %v12284_v62 }
 0x3cc   : > { %10014 = vmatmul.msk.f32.vlgmr.msrb.gmra.mxu3 %vm415_vm1, %v11987_v22  ;;  %v12288_v57 = vpop.f32.mrf.mxu2 }
 0x3cd   : > { %16395 = vst [vmem:[#allocation64_spill] sm:$0xff] %v12288_v57 }
 0x3ce   : > { %v12290_v61 = vpop.f32.mrf.mxu0 }
 0x3cf   : > { %16396 = vst [vmem:[#allocation65_spill] sm:$0xff] %v12290_v61  ;;  %v12292_v32 = vpop.f32.mrf.mxu3 }
 0x3d0   : > { %16397 = vst [vmem:[#allocation66_spill] sm:$0xff] %v12292_v32 }
 0x3d1   : > { %v12294_v46 = vpop.f32.mrf.mxu1 }
 0x3d2   : > { %16398 = vst [vmem:[#allocation67_spill] sm:$0xff] %v12294_v46 }
 0x3d4   : > { %v12296_v18 = vpop.f32.mrf.mxu2 }
 0x3d5   : > { %16399 = vst [vmem:[#allocation68_spill] sm:$0xff] %v12296_v18 }
 0x3d6   : > { %v12298_v55 = vpop.f32.mrf.mxu0 }
 0x3d7   : > { %16400 = vst [vmem:[#allocation69_spill] sm:$0xff] %v12298_v55  ;;  %v12300_v5 = vpop.f32.mrf.mxu3 }
 0x3d8   : > { %16401 = vst [vmem:[#allocation70_spill] sm:$0xff] %v12300_v5 }
 0x3d9   : > { %v5026_v10 = vpop.f32.mrf.mxu1 }
 0x3dc   : > { %v5046_v3 = vpop.f32.mrf.mxu2 }
 0x3de   : > { %v5006_v56 = vpop.f32.mrf.mxu0 }
 0x3df   : > { %v12302_v6 = vpop.f32.mrf.mxu3 }
 0x3e0   : > { %16402 = vst [vmem:[#allocation71_spill] sm:$0xff] %v12302_v6 }
 0x3e1   : > { %v5106_v22 = vpop.f32.mrf.mxu1 }
 0x3e2   : > { %v5951_v63 = vmax.f32 %v5046_v3, %v5106_v22 }
 0x3e4   : > { %v5126_v59 = vpop.f32.mrf.mxu2 }
 0x3e6   : > { %v5086_v47 = vpop.f32.mrf.mxu0 }
 0x3e7   : > { %v12304_v27 = vpop.f32.mrf.mxu3  ;;  %v5950_v35 = vmax.f32 %v5026_v10, %v5086_v47 }
 0x3e8   : > { %16403 = vst [vmem:[#allocation72_spill] sm:$0xff] %v12304_v27 }
 0x3e9   : > { %v5186_v15 = vpop.f32.mrf.mxu1 }
 0x3ea   : > { %v5952_v36 = vmax.f32 %v5126_v59, %v5186_v15 }
 0x3ec   : > { %v5206_v32 = vpop.f32.mrf.mxu2 }
 0x3ee   : > { %v5166_v18 = vpop.f32.mrf.mxu0 }
 0x3ef   : > { %v12306_v33 = vpop.f32.mrf.mxu3 }
 0x3f0   : > { %16404 = vst [vmem:[#allocation73_spill] sm:$0xff] %v12306_v33 }
 0x3f1   : > { %v5266_v46 = vpop.f32.mrf.mxu1 }
 0x3f4   : > { %v5286_v1 = vpop.f32.mrf.mxu2 }
 0x3f6   : > { %v5246_v48 = vpop.f32.mrf.mxu0 }
 0x3f7   : > { %v5066_v55 = vpop.f32.mrf.mxu3 }
 0x3f8   : > { %v5949_v5 = vmax.f32 %v5006_v56, %v5066_v55 }
 0x3f9   : > { %v5346_v53 = vpop.f32.mrf.mxu1 }
 0x3fa   : > { %v5955_v54 = vmax.f32 %v5949_v5, %v5952_v36 }
 0x3fc   : > { %v5366_v6 = vpop.f32.mrf.mxu2  ;;  %v5958_v61 = vadd.f32 %v5955_v54, %v11170_v49 }
 0x3fe   : > { %v12310_v33 = vmax.f32 %v5958_v61, 0.0  ;;  %v5326_v56 = vpop.f32.mrf.mxu0 }
 0x3ff   : > { %v5146_v38 = vpop.f32.mrf.mxu3  ;;  %v5965_v55 = vmax.f32 %v5266_v46, %v5326_v56 }
 0x400   : > { %v5953_v60 = vmax.f32 %v5146_v38, %v5206_v32 }
 0x401   : > { %v5426_v9 = vpop.f32.mrf.mxu1 }
 0x402   : > { %v5956_v27 = vmax.f32 %v5950_v35, %v5953_v60  ;;  %v5967_v60 = vmax.f32 %v5366_v6, %v5426_v9 }
 0x404   : > { %v5959_v20 = vadd.f32 %v5956_v27, %v11170_v49  ;;  %v5446_v36 = vpop.f32.mrf.mxu2 }
 0x406   : > { %v12312_v57 = vmax.f32 %v5959_v20, 0.0  ;;  %v5406_v54 = vpop.f32.mrf.mxu0 }
 0x407   : > { %v5226_v8 = vpop.f32.mrf.mxu3 }
 0x408   : > { %v12316_v15 = vpack.i.bf16 %v12312_v57, %v12310_v33  ;;  %v5954_v27 = vmax.f32 %v5166_v18, %v5226_v8 }
 0x409   : > { %v5506_v5 = vpop.f32.mrf.mxu1 }
 0x40a   : > { %10648 = vrot.lane.b32.xlu0 %v12316_v15, %s10824_s28  ;;  %v5957_v62 = vmax.f32 %v5951_v63, %v5954_v27 }
 0x40c   : > { %v5526_v35 = vpop.f32.mrf.mxu2  ;;  %v5960_v18 = vadd.f32 %v5957_v62, %v11170_v49 }
 0x40e   : > { %v5486_v40 = vpop.f32.mrf.mxu0  ;;  %v12331_v3 = vmax.f32 %v5960_v18, 0.0 }
 0x40f   : > { %v5306_v38 = vpop.f32.mrf.mxu3 }
 0x410   : > { %v5964_v10 = vmax.f32 %v5246_v48, %v5306_v38  ;;  %v5966_v38 = vmax.f32 %v5286_v1, %v5346_v53 }
 0x411   : > { %v5586_v59 = vpop.f32.mrf.mxu1 }
 0x412   : > { %v5970_v47 = vmax.f32 %v5964_v10, %v5967_v60  ;;  %v5981_v18 = vmax.f32 %v5526_v35, %v5586_v59 }
 0x414   : > { %v5973_v32 = vadd.f32 %v5970_v47, %v11170_v49  ;;  %v5606_v4 = vpop.f32.mrf.mxu2  ;;  %v294_v47 = vld [vmem:[%s16305_s4] sm:$0xff] }
 0x416   : > { %v12322_v48 = vmax.f32 %v5973_v32, 0.0  ;;  %v5566_v22 = vpop.f32.mrf.mxu0 }
 0x417   : > { %v5386_v20 = vpop.f32.mrf.mxu3 }
 0x418   : > { %v5968_v61 = vmax.f32 %v5386_v20, %v5446_v36 }
 0x419   : > { %v5666_v45 = vpop.f32.mrf.mxu1 }
 0x41a   : > { %v5971_v14 = vmax.f32 %v5965_v55, %v5968_v61  ;;  %v5982_v60 = vmax.f32 %v5606_v4, %v5666_v45  ;;  %v5980_v55 = vmax.f32 %v5506_v5, %v5566_v22 }
 0x41c   : > { %v5974_v0 = vadd.f32 %v5971_v14, %v11170_v49 }
 0x41e   : > { %v12324_v9 = vmax.f32 %v5974_v0, 0.0  ;;  %v5686_v0 = vpop.f32.mrf.mxu2  ;;  %v5646_v20 = vpop.f32.mrf.mxu0 }
 0x41f   : > { %v5466_v6 = vpop.f32.mrf.mxu3 }
 0x420   : > { %v5969_v10 = vmax.f32 %v5406_v54, %v5466_v6  ;;  %v10652_v8 = vpack.i.bf16 %v12324_v9, %v12322_v48 }
 0x421   : > { %v5746_v36 = vpop.f32.mrf.mxu1 }
 0x422   : > { %v5972_v46 = vmax.f32 %v5966_v38, %v5969_v10  ;;  %10653 = vrot.lane.b32.xlu1 %v10652_v8, %s10823_s23  ;;  %v297_v8 = vld [vmem:[%s16305_s4 + $0x18] sm:$0xff] }
 0x424   : > { %v5975_v14 = vadd.f32 %v5972_v46, %v11170_v49 }
 0x426   : > { %v12333_v63 = vmax.f32 %v5975_v14, 0.0  ;;  %v5766_v27 = vpop.f32.mrf.mxu2  ;;  %v5726_v14 = vpop.f32.mrf.mxu0 }
 0x427   : > { %v5546_v56 = vpop.f32.mrf.mxu3 }
 0x428   : > { %v10667_v1 = vpack.i.bf16 %v12331_v3, %v12333_v63  ;;  %v5979_v53 = vmax.f32 %v5486_v40, %v5546_v56 }
 0x429   : > { %v5826_v32 = vpop.f32.mrf.mxu1 }
 0x42a   : > { %10668 = vrot.lane.b32.xlu1 %v10667_v1, %s10823_s23  ;;  %v5985_v62 = vmax.f32 %v5979_v53, %v5982_v60 }
 0x42c   : > { %v5988_v6 = vadd.f32 %v5985_v62, %v11170_v49 }
 0x42e   : > { %v12343_v4 = vmax.f32 %v5988_v6, 0.0 }
 0x42f   : > { %v5626_v54 = vpop.f32.mrf.mxu3 }
 0x430   : > { %v5983_v61 = vmax.f32 %v5626_v54, %v5686_v0  ;;  %v5846_v0 = vpop.f32.mrf.mxu2 }
 0x431   : > { %v5906_v56 = vpop.f32.mrf.mxu1 }
 0x432   : > { %v5986_v38 = vmax.f32 %v5980_v55, %v5983_v61  ;;  %300 = vperm.xlu1 %10677, %v294_v47   ;;  %v5997_v60 = vmax.f32 %v5846_v0, %v5906_v56  ;;  %v5806_v47 = vpop.f32.mrf.mxu0 }
 0x433   : > { %v5995_v6 = vmax.f32 %v5746_v36, %v5806_v47 }
 0x434   : > { %v5989_v40 = vadd.f32 %v5986_v38, %v11170_v49 }
 0x436   : > { %v12345_v45 = vmax.f32 %v5989_v40, 0.0 }
 0x437   : > { %v5706_v10 = vpop.f32.mrf.mxu3 }
 0x438   : > { %v5984_v5 = vmax.f32 %v5646_v20, %v5706_v10  ;;  %v10642_v46 = vpack.i.bf16 %v12345_v45, %v12343_v4  ;;  %v5926_v55 = vpop.f32.mrf.mxu2  ;;  %v10672_v10 = vpack.i.bf16 %v12331_v3, %v12312_v57 }
 0x43a   : > { %v5987_v22 = vmax.f32 %v5981_v18, %v5984_v5  ;;  %315 = vperm.xlu1 %10677, %v297_v8   ;;  %10643 = vrot.lane.b32.xlu2 %v10642_v46, %s10824_s28  ;;  %v5886_v36 = vpop.f32.mrf.mxu0  ;;  %v5996_v18 = vmax.f32 %v5766_v27, %v5826_v32  ;;  %v12386_v27 = vld [vmem:[%s16304_s3] sm:$0xff] }
 0x43c   : > { %v5990_v1 = vadd.f32 %v5987_v22, %v11170_v49  ;;  %v295_v22 = vld [vmem:[%s16305_s4 + $0x8] sm:$0xff] }
 0x43e   : > { %v12354_v53 = vmax.f32 %v5990_v1, 0.0  ;;  %v12402_v1 = vld [vmem:[%s16304_s3 + $0x8] sm:$0xff] }
 0x43f   : > { %v5786_v62 = vpop.f32.mrf.mxu3 }
 0x440   : > { %v5994_v54 = vmax.f32 %v5726_v14, %v5786_v62  ;;  %v10662_v35 = vpack.i.bf16 %v12331_v3, %v12354_v53  ;;  %v296_v14 = vld [vmem:[%s16305_s4 + $0x10] sm:$0xff] }
 0x442   : > { %v6000_v59 = vmax.f32 %v5994_v54, %v5997_v60  ;;  %10663 = vrot.lane.b32.xlu0 %v10662_v35, %s10824_s28  ;;  %10658 = vrot.lane.b32.xlu2 %v12316_v15, %s10823_s23 }
 0x444   : > { %v6003_v20 = vadd.f32 %v6000_v59, %v11170_v49 }
 0x446   : > { %v12362_v61 = vmax.f32 %v6003_v20, 0.0 }
 0x447   : > { %v5866_v38 = vpop.f32.mrf.mxu3 }
 0x448   : > { %v5998_v40 = vmax.f32 %v5866_v38, %v5926_v55  ;;  %6095 = vmatpush.msra.mxu0 %v12362_v61 }
 0x44a   : > { %v6001_v8 = vmax.f32 %v5995_v6, %v5998_v40  ;;  %6070 = vrot.lane.b32.xlu0 %v12310_v33, %s10825_s29  ;;  %10673 = vrot.lane.b32.xlu2 %v10672_v10, %s10825_s29 }
 0x44b   : > { %6096 = vmatpush.msra.mxu0 %v12343_v4 }
 0x44c   : > { %v6004_v15 = vadd.f32 %v6001_v8, %v11170_v49 }
 0x44d   : > { %6097 = vmatpush.msra.mxu0 %v12322_v48 }
 0x44e   : > { %v12373_v5 = vmax.f32 %v6004_v15, 0.0 }
 0x44f   : > { %6098 = vmatpush.msra.mxu0 %v12310_v33  ;;  %v5946_v46 = vpop.f32.mrf.mxu3 }
 0x450   : > { %v5999_v0 = vmax.f32 %v5886_v36, %v5946_v46  ;;  %6124 = vmatpush.msra.mxu1 %v12373_v5  ;;  %10015 = vmatmul.msk.f32.vlgmr.msra.gmra.mxu0 %vm1661_vm2, %v12386_v27 }
 0x452   : > { %v6002_v33 = vmax.f32 %v5996_v18, %v5999_v0  ;;  %310 = vperm.xlu0 %10571, %v296_v14   ;;  %305 = vperm.xlu2 %10678, %v295_v22   ;;  %v2034_v22 = vmax.f32 %v11570_v16, %v11690_v17  ;;  %v2035_v0 = vmax.f32 %v11699_v19, %v11686_v12 }
 0x453   : > { %6125 = vmatpush.msra.mxu1 %v12345_v45  ;;  %v2022_v16 = vmax.f32 %v11481_v44, %v11604_v34  ;;  %v2036_v17 = vmax.f32 %v11701_v21, %v11736_v52  ;;  %v2043_v34 = vmax.f32 %v11661_v2, %v11724_v39  ;;  %v2044_v52 = vmax.f32 %v11732_v42, %v11730_v41  ;;  %v2082_v2 = vld [vmem:[%s16306_s5] sm:$0xff]  ;;  %v2083_v39 = vld [vmem:[%s16306_s5 + $0x8] sm:$0xff] }
 0x454   : > { %v6005_v32 = vadd.f32 %v6002_v33, %v11170_v49  ;;  %v2037_v41 = vmax.f32 %v11596_v29, %v11703_v24  ;;  %v2038_v42 = vmax.f32 %v11712_v31, %v11705_v26  ;;  %v2033_v29 = vmax.f32 %v11541_v23, %v11670_v7  ;;  %v16406_v24 = vld [vmem:[#allocation18_spill] sm:$0xff] }
 0x455   : > { %6126 = vmatpush.msra.mxu1 %v12324_v9  ;;  %v2046_v19 = vmax.f32 %v2022_v16, %v2034_v22  ;;  %v16408_v31 = vld [vmem:[#allocation14_spill] sm:$0xff]  ;;  %v16409_v16 = vld [vmem:[#allocation7_spill] sm:$0xff] }
 0x456   : > { %v12393_v56 = vmax.f32 %v6005_v32, 0.0  ;;  %v16413_v23 = vld [vmem:[#allocation6_spill] sm:$0xff] }
 0x457   : > { %6127 = vmatpush.msra.mxu1 %v12312_v57  ;;  %v12416_v57 = vld [vmem:[%s16304_s3 + $0x10] sm:$0xff] }
 0x458   : > { %6153 = vmatpush.msra.mxu2 %v12393_v56  ;;  %10019 = vmatmul.msk.f32.vlgmr.msra.gmra.mxu1 %vm1661_vm2, %v12386_v27 }
 0x459   : > { %10016 = vmatmul.msk.f32.gmra.mxu0 %vm1661_vm2, %v12402_v1 }
 0x45a   : > { %6154 = vmatpush.msra.mxu2 %v12354_v53 }
 0x45c   : > { %6155 = vmatpush.msra.mxu2 %v12333_v63 }
 0x45e   : > { %6156 = vmatpush.msra.mxu2 %v12331_v3  ;;  %v12427_v3 = vld [vmem:[%s16304_s3 + $0x18] sm:$0xff] }
 0x45f   : > { %10023 = vmatmul.msk.f32.vlgmr.msra.gmra.mxu2 %vm1661_vm2, %v12386_v27 }
 0x460   : > { %10020 = vmatmul.msk.f32.gmra.mxu1 %vm1661_vm2, %v12402_v1 }
 0x461   : > { %10017 = vmatmul.msk.f32.gmra.mxu0 %vm1661_vm2, %v12416_v57 }
 0x467   : > { %10024 = vmatmul.msk.f32.gmra.mxu2 %vm1661_vm2, %v12402_v1 }
 0x468   : > { %10021 = vmatmul.msk.f32.gmra.mxu1 %vm1661_vm2, %v12416_v57 }
 0x469   : > { %10018 = vmatmul.msk.f32.gmra.mxu0 %vm1661_vm2, %v12427_v3 }
 0x46f   : > { %10025 = vmatmul.msk.f32.gmra.mxu2 %vm1661_vm2, %v12416_v57 }
 0x470   : > { %10022 = vmatmul.msk.f32.gmra.mxu1 %vm1661_vm2, %v12427_v3 }
 0x477   : > { %10026 = vmatmul.msk.f32.gmra.mxu2 %vm1661_vm2, %v12427_v3 }
 0x47c   : > { %v12437_v60 = vpop.permute.xlu0 %10648 }
 0x47d   : > { %v10651_v55 = vunpack.i.h.bf16 %v12437_v60  ;;  %v10650_v6 = vunpack.i.l.bf16 %v12437_v60  ;;  %v9368_v60 = vld [vmem:[%s16306_s5 + $0x70] sm:$0xff] }
 0x47f   : > { %v6018_v10 = vsel %vm1593_vm5, %v10650_v6, %v10651_v55 }
 0x494   : > { %v12439_v62 = vpop.permute.xlu1 %10653  ;;  %v12441_v54 = vpop.permute.xlu2 %10643 }
 0x495   : > { %v10656_v35 = vunpack.i.h.bf16 %v12439_v62  ;;  %v10655_v59 = vunpack.i.l.bf16 %v12439_v62  ;;  %v10646_v47 = vunpack.i.h.bf16 %v12441_v54  ;;  %v10645_v20 = vunpack.i.l.bf16 %v12441_v54  ;;  %v9371_v54 = vld [vmem:[%s16306_s5 + $0x88] sm:$0xff]  ;;  %v9380_v62 = vld [vmem:[%s16306_s5 + $0xd0] sm:$0xff] }
 0x497   : > { %v12454_v38 = vsel %vm1593_vm5, %v10645_v20, %v10646_v47  ;;  %v12459_v40 = vsel %vm1623_vm3, %v10655_v59, %v10656_v35 }
 0x498   : > { %6182 = vmatpush.msra.mxu3 %v12454_v38  ;;  %6269 = vmatpush.msrb.mxu2 %v12459_v40 }
 0x49a   : > { %6183 = vmatpush.msra.mxu3 %v12362_v61 }
 0x49c   : > { %v12469_v8 = vpop.permute.xlu1 %10668  ;;  %v12471_v15 = vpop.permute.xlu2 %10658  ;;  %6184 = vmatpush.msra.mxu3 %v6018_v10  ;;  %v2024_v10 = vmax.f32 %v11460_v37, %v11589_v25 }
 0x49d   : > { %v10671_v36 = vunpack.i.h.bf16 %v12469_v8  ;;  %v10670_v18 = vunpack.i.l.bf16 %v12469_v8  ;;  %v10661_v46 = vunpack.i.h.bf16 %v12471_v15  ;;  %v10660_v14 = vunpack.i.l.bf16 %v12471_v15  ;;  %v10227_v15 = vld [vmem:[%s10923_s20 + $0xab8] sm:$0xf] }
 0x49e   : > { %6185 = vmatpush.msra.mxu3 %v12322_v48  ;;  %v2023_v48 = vmax.f32 %v11479_v43, %v11594_v28  ;;  %v2048_v21 = vmax.f32 %v2024_v10, %v2036_v17  ;;  %v16410_v17 = vld [vmem:[#allocation24_spill] sm:$0xff] }
 0x49f   : > { %10027 = vmatmul.msk.f32.vlgmr.msra.gmra.mxu3 %vm1661_vm2, %v12386_v27  ;;  %v6047_v33 = vsel %vm1623_vm3, %v10660_v14, %v10661_v46  ;;  %v6064_v32 = vsel %vm1623_vm3, %v10656_v35, %v10670_v18  ;;  %v6048_v12 = vsel %vm1623_vm3, %v10661_v46, %v10671_v36 }
 0x4a0   : > { %6270 = vmatpush.msrb.mxu2 %v6047_v33  ;;  %6298 = vmatpush.msrb.mxu3 %v6064_v32  ;;  %v2047_v35 = vmax.f32 %v2023_v48, %v2035_v0  ;;  %v2032_v0 = vmax.f32 %v11563_v13, %v11684_v11  ;;  %v16407_v48 = vld [vmem:[#allocation11_spill] sm:$0xff]  ;;  %v16412_v11 = vld [vmem:[#allocation12_spill] sm:$0xff] }
 0x4a1   : > { %v2031_v26 = vmax.f32 %v16407_v48, %v16406_v24  ;;  %v2027_v7 = vmax.f32 %v16413_v23, %v16412_v11  ;;  %v2093_v23 = vld [vmem:[%s16306_s5 + $0x58] sm:$0xff] }
 0x4a2   : > { %6271 = vmatpush.msrb.mxu2 %v12362_v61  ;;  %6299 = vmatpush.msrb.mxu3 %v6048_v12  ;;  %v2025_v12 = vmax.f32 %v16409_v16, %v16408_v31 }
 0x4a4   : > { %v12502_v33 = vpop.permute.xlu1 %300  ;;  %v12504_v43 = vpop.permute.xlu2 %10673  ;;  %6272 = vmatpush.msrb.mxu2 %v12343_v4  ;;  %6300 = vmatpush.msrb.mxu3 %v12373_v5  ;;  %v2045_v4 = vmax.f32 %v11734_v50, %v11742_v58 }
 0x4a5   : > { %16405 = vst [vmem:[#allocation74_spill] sm:$0xff] %v12502_v33  ;;  %v2058_v44 = vadd.f32 %v2046_v19, %v12502_v33  ;;  %v2059_v28 = vadd.f32 %v2047_v35, %v12502_v33  ;;  %10039 = vmatmul.msk.f32.vlgmr.msrb.gmra.mxu2 %vm1661_vm2, %v12386_v27  ;;  %v10676_v37 = vunpack.i.h.bf16 %v12504_v43  ;;  %v10675_v25 = vunpack.i.l.bf16 %v12504_v43  ;;  %v16411_v19 = vld [vmem:[#allocation20_spill] sm:$0xff] }
 0x4a6   : > { %6301 = vmatpush.msrb.mxu3 %v12345_v45  ;;  %v2060_v50 = vadd.f32 %v2048_v21, %v12502_v33  ;;  %v2026_v45 = vmax.f32 %v11499_v51, %v11625_v30  ;;  %v2039_v35 = vmax.f32 %v16411_v19, %v16410_v17  ;;  %v2055_v30 = vmax.f32 %v2031_v26, %v2043_v34 }
 0x4a7   : > { %v12521_v46 = vmax.f32 %v2058_v44, 0.0  ;;  %v12523_v22 = vmax.f32 %v2059_v28, 0.0  ;;  %10028 = vmatmul.msk.f32.gmra.mxu3 %vm1661_vm2, %v12402_v1  ;;  %v6077_v58 = vsel %vm1653_vm4, %v10675_v25, %v10676_v37  ;;  %v2056_v44 = vmax.f32 %v2032_v0, %v2044_v52 }
 0x4a8   : > { %6385 = vmatpush.msra.mxu2 %v6077_v58  ;;  %v2057_v13 = vmax.f32 %v2033_v29, %v2045_v4  ;;  %v2049_v28 = vmax.f32 %v2025_v12, %v2037_v41  ;;  %v2050_v21 = vmax.f32 %v2026_v45, %v2038_v42  ;;  %v12559_v58 = vmax.f32 %v2060_v50, 0.0  ;;  %v2085_v50 = vld [vmem:[%s16306_s5 + $0x18] sm:$0xff]  ;;  %v2091_v45 = vld [vmem:[%s16306_s5 + $0x48] sm:$0xff]  ;;  %v2086_v12 = vld [vmem:[%s16306_s5 + $0x20] sm:$0xff] }
 0x4a9   : > { %v2094_v10 = vmul.f32 %v2082_v2, %v12521_v46  ;;  %v2095_v51 = vmul.f32 %v2083_v39, %v12523_v22  ;;  %v2051_v52 = vmax.f32 %v2027_v7, %v2039_v35  ;;  %v2092_v35 = vld [vmem:[%s16306_s5 + $0x50] sm:$0xff]  ;;  %v9369_v7 = vld [vmem:[%s16306_s5 + $0x78] sm:$0xff]  ;;  %v6069_v43 = vsel %vm1623_vm3, %v10670_v18, %v10655_v59 }
 0x4aa   : > { %6386 = vmatpush.msra.mxu2 %v6064_v32  ;;  %v2084_v32 = vld [vmem:[%s16306_s5 + $0x10] sm:$0xff] }
 0x4ab   : > { %v2106_v41 = vadd.f32 %v2095_v51, %v2094_v10  ;;  %v2096_v16 = vmul.f32 %v2084_v32, %v12559_v58 }
 0x4ac   : > { %v12561_v24 = vpop.permute.xlu1 %315  ;;  %v12563_v48 = vpop.permute.xlu2 %305 }
 0x4ad   : > { %16414 = vst [vmem:[#allocation18_spill] sm:$0xff] %v12561_v24  ;;  %v2067_v31 = vadd.f32 %v2055_v30, %v12561_v24  ;;  %v2068_v2 = vadd.f32 %v2056_v44, %v12561_v24  ;;  %v2069_v34 = vadd.f32 %v2057_v13, %v12561_v24  ;;  %10040 = vmatmul.msk.f32.gmra.mxu2 %vm1661_vm2, %v12402_v1  ;;  %v2087_v30 = vld [vmem:[%s16306_s5 + $0x28] sm:$0xff] }
 0x4ae   : > { %16415 = vst [vmem:[#allocation11_spill] sm:$0xff] %v12563_v48  ;;  %v2061_v4 = vadd.f32 %v2049_v28, %v12563_v48  ;;  %v2062_v39 = vadd.f32 %v2050_v21, %v12563_v48  ;;  %v2063_v29 = vadd.f32 %v2051_v52, %v12563_v48  ;;  %v2107_v51 = vadd.f32 %v2106_v41, %v2096_v16 }
 0x4af   : > { %v12575_v42 = vmax.f32 %v2067_v31, 0.0  ;;  %10029 = vmatmul.msk.f32.gmra.mxu3 %vm1661_vm2, %v12416_v57  ;;  %v12585_v0 = vmax.f32 %v2068_v2, 0.0  ;;  %v12594_v17 = vmax.f32 %v2069_v34, 0.0  ;;  %v9370_v31 = vld [vmem:[%s16306_s5 + $0x80] sm:$0xff] }
 0x4b0   : > { %v12588_v26 = vmax.f32 %v2061_v4, 0.0  ;;  %v12596_v19 = vmax.f32 %v2062_v39, 0.0  ;;  %v12601_v10 = vmax.f32 %v2063_v29, 0.0  ;;  %2108 = vadd.xlane.f32.xlu2 %v2107_v51 }
 0x4b1   : > { %v2103_v13 = vmul.f32 %v2091_v45, %v12575_v42  ;;  %v2104_v21 = vmul.f32 %v2092_v35, %v12585_v0  ;;  %v2105_v4 = vmul.f32 %v2093_v23, %v12594_v17  ;;  %v9367_v35 = vld [vmem:[%s16306_s5 + $0x68] sm:$0xff]  ;;  %v16419_v23 = vld [vmem:[#allocation8_spill] sm:$0xff] }
 0x4b2   : > { %v2097_v44 = vmul.f32 %v2085_v50, %v12588_v26  ;;  %v2098_v11 = vmul.f32 %v2086_v12, %v12596_v19  ;;  %v2099_v34 = vmul.f32 %v2087_v30, %v12601_v10  ;;  %v2138_v41 = vmul.f32 %v9369_v7, %v12588_v26  ;;  %v9366_v12 = vld [vmem:[%s16306_s5 + $0x60] sm:$0xff] }
 0x4b3   : > { %v2118_v39 = vadd.f32 %v2104_v21, %v2103_v13  ;;  %v2139_v16 = vmul.f32 %v9370_v31, %v12596_v19  ;;  %v16416_v30 = vld [vmem:[#allocation16_spill] sm:$0xff] }
 0x4b4   : > { %v10664_v28 = vpop.permute.xlu0 %10663  ;;  %v2110_v32 = vadd.f32 %v2098_v11, %v2097_v44  ;;  %v16417_v44 = vld [vmem:[#allocation9_spill] sm:$0xff]  ;;  %v16418_v11 = vld [vmem:[#allocation15_spill] sm:$0xff]  ;;  %v9378_v31 = vld [vmem:[%s16306_s5 + $0xc0] sm:$0xff] }
 0x4b5   : > { %v10665_v2 = vunpack.i.l.bf16 %v10664_v28  ;;  %10041 = vmatmul.msk.f32.gmra.mxu2 %vm1661_vm2, %v12416_v57  ;;  %v10666_v52 = vunpack.i.h.bf16 %v10664_v28  ;;  %v2119_v51 = vadd.f32 %v2118_v39, %v2105_v4  ;;  %v2029_v13 = vmax.f32 %v16417_v44, %v16416_v30  ;;  %v16422_v4 = vld [vmem:[#allocation19_spill] sm:$0xff]  ;;  %v16423_v39 = vld [vmem:[#allocation13_spill] sm:$0xff] }
 0x4b6   : > { %v2111_v50 = vadd.f32 %v2110_v32, %v2099_v34  ;;  %v2030_v7 = vmax.f32 %v16419_v23, %v16418_v11  ;;  %v2151_v21 = vadd.f32 %v2139_v16, %v2138_v41  ;;  %v16421_v34 = vld [vmem:[#allocation10_spill] sm:$0xff]  ;;  %v16424_v41 = vld [vmem:[#allocation21_spill] sm:$0xff]  ;;  %v2176_v11 = vmul.f32 %v9378_v31, %v12521_v46 }
 0x4b7   : > { %10030 = vmatmul.msk.f32.gmra.mxu3 %vm1661_vm2, %v12427_v3  ;;  %v6035_v45 = vsel %vm1593_vm5, %v10646_v47, %v10665_v2  ;;  %v12632_v29 = vsel %vm1593_vm5, %v10665_v2, %v10645_v20  ;;  %v2135_v47 = vmul.f32 %v9366_v12, %v12521_v46  ;;  %v2136_v20 = vmul.f32 %v9367_v35, %v12523_v22  ;;  %v16420_v2 = vld [vmem:[#allocation17_spill] sm:$0xff]  ;;  %v16425_v16 = vld [vmem:[#allocation22_spill] sm:$0xff] }
 0x4b8   : > { %6211 = vmatpush.msrb.mxu0 %v6035_v45  ;;  %6240 = vmatpush.msrb.mxu1 %v12632_v29  ;;  %v6019_v28 = vsel %vm1593_vm5, %v10651_v55, %v10666_v52  ;;  %v2028_v32 = vmax.f32 %v16421_v34, %v16420_v2  ;;  %v9379_v55 = vld [vmem:[%s16306_s5 + $0xc8] sm:$0xff]  ;;  %v2041_v12 = vmax.f32 %v16425_v16, %v16424_v41  ;;  %v16430_v31 = vld [vmem:[#allocation46_spill] sm:$0xff]  ;;  %v16435_v41 = vld [vmem:[#allocation32_spill] sm:$0xff] }
 0x4b9   : > { %2112 = vadd.xlane.f32.xlu0 %v2111_v50  ;;  %6387 = vmatpush.msra.mxu2 %v6035_v45  ;;  %v2040_v50 = vmax.f32 %v16423_v39, %v16422_v4  ;;  %v2147_v44 = vadd.f32 %v2136_v20, %v2135_v47  ;;  %v9376_v47 = vld [vmem:[%s16306_s5 + $0xb0] sm:$0xff]  ;;  %v16428_v20 = vld [vmem:[#allocation63_spill] sm:$0xff]  ;;  %v6053_v4 = vsel %vm1623_vm3, %v10671_v36, %v10660_v14  ;;  %v9387_v36 = vld [vmem:[%s16306_s5 + $0x108] sm:$0xff] }
 0x4ba   : > { %6212 = vmatpush.msrb.mxu0 %v12373_v5  ;;  %6241 = vmatpush.msrb.mxu1 %v12393_v56  ;;  %v16431_v2 = vld [vmem:[#allocation34_spill] sm:$0xff]  ;;  %v2053_v39 = vmax.f32 %v2029_v13, %v2041_v12 }
 0x4bb   : > { %6388 = vmatpush.msra.mxu2 %v12373_v5  ;;  %2120 = vadd.xlane.f32.xlu2 %v2119_v51  ;;  %v6024_v5 = vsel %vm1593_vm5, %v10666_v52, %v10650_v6  ;;  %v2140_v51 = vmul.f32 %v9371_v54, %v12601_v10  ;;  %v16426_v6 = vld [vmem:[#allocation25_spill] sm:$0xff]  ;;  %v16427_v52 = vld [vmem:[#allocation23_spill] sm:$0xff]  ;;  %v2177_v54 = vmul.f32 %v9379_v55, %v12523_v22  ;;  %v9388_v14 = vld [vmem:[%s16306_s5 + $0x110] sm:$0xff] }
 0x4bc   : > { %v6071_v45 = vpop.permute.xlu0 %6070  ;;  %6213 = vmatpush.msrb.mxu0 %v6019_v28  ;;  %6242 = vmatpush.msrb.mxu1 %v6024_v5  ;;  %v2042_v30 = vmax.f32 %v16427_v52, %v16426_v6  ;;  %v4242_v34 = vmax.f32 %v16431_v2, %v16430_v31  ;;  %v16433_v5 = vld [vmem:[#allocation33_spill] sm:$0xff]  ;;  %v9377_v6 = vld [vmem:[%s16306_s5 + $0xb8] sm:$0xff]  ;;  %v2088_v52 = vld [vmem:[%s16306_s5 + $0x30] sm:$0xff] }
 0x4bd   : > { %10042 = vmatmul.msk.f32.gmra.mxu2 %vm1661_vm2, %v12427_v3  ;;  %v6082_v35 = vsel %vm1653_vm4, %v10676_v37, %v6071_v45  ;;  %v2152_v23 = vadd.f32 %v2151_v21, %v2140_v51  ;;  %v6076_v37 = vsel %vm1653_vm4, %v6071_v45, %v10675_v25  ;;  %v2137_v25 = vmul.f32 %v9368_v60, %v12559_v58  ;;  %v16432_v45 = vld [vmem:[#allocation47_spill] sm:$0xff]  ;;  %v16434_v55 = vld [vmem:[#allocation49_spill] sm:$0xff]  ;;  %v9382_v31 = vld [vmem:[%s16306_s5 + $0xe0] sm:$0xff] }
 0x4be   : > { %6214 = vmatpush.msrb.mxu0 %v12324_v9  ;;  %6414 = vmatpush.msra.mxu3 %v6082_v35  ;;  %v9375_v9 = vld [vmem:[%s16306_s5 + $0xa8] sm:$0xff]  ;;  %v2052_v21 = vmax.f32 %v2028_v32, %v2040_v50  ;;  %v2145_v32 = vmul.f32 %v9376_v47, %v12585_v0  ;;  %v2054_v50 = vmax.f32 %v2030_v7, %v2042_v30  ;;  %v2089_v30 = vld [vmem:[%s16306_s5 + $0x38] sm:$0xff]  ;;  %v9384_v47 = vld [vmem:[%s16306_s5 + $0xf0] sm:$0xff] }
 0x4bf   : > { %6243 = vmatpush.msrb.mxu1 %v12333_v63  ;;  %10031 = vmatmul.msk.f32.vlgmr.msrb.gmra.mxu0 %vm1661_vm2, %v12386_v27  ;;  %v16429_v63 = vld [vmem:[#allocation48_spill] sm:$0xff]  ;;  %v2148_v59 = vadd.f32 %v2147_v44, %v2137_v25  ;;  %v2144_v18 = vmul.f32 %v9375_v9, %v12575_v42  ;;  %v2188_v8 = vadd.f32 %v2177_v54, %v2176_v11 }
 0x4c0   : > { %v4254_v28 = vmax.f32 %v16429_v63, %v16428_v20  ;;  %10035 = vmatmul.msk.f32.vlgmr.msrb.gmra.mxu1 %vm1661_vm2, %v12386_v27  ;;  %10043 = vmatmul.msk.f32.vlgmr.msrb.gmra.mxu3 %vm1661_vm2, %v12386_v27  ;;  %v4243_v16 = vmax.f32 %v16435_v41, %v16434_v55  ;;  %v2178_v7 = vmul.f32 %v9380_v62, %v12559_v58  ;;  %v9385_v20 = vld [vmem:[%s16306_s5 + $0xf8] sm:$0xff]  ;;  %v16437_v63 = vld [vmem:[#allocation64_spill] sm:$0xff]  ;;  %v9403_v62 = vld [vmem:[%s16306_s5 + $0x188] sm:$0xff] }
 0x4c1   : > { %2153 = vadd.xlane.f32.xlu0 %v2152_v23  ;;  %6327 = vmatpush.msra.mxu0 %v6069_v43  ;;  %v2185_v44 = vmul.f32 %v9387_v36, %v12575_v42  ;;  %v2186_v11 = vmul.f32 %v9388_v14, %v12585_v0  ;;  %v12819_v36 = vld [vmem:[%s16306_s5 + $0x98] sm:$0xff]  ;;  %v9386_v41 = vld [vmem:[%s16306_s5 + $0x100] sm:$0xff] }
 0x4c2   : > { %6356 = vmatpush.msra.mxu1 %v6076_v37  ;;  %6415 = vmatpush.msra.mxu3 %v6069_v43  ;;  %v12732_v35 = vmax.f32 %v4242_v34, %v4254_v28  ;;  %v2189_v9 = vadd.f32 %v2188_v8, %v2178_v7  ;;  %v16438_v28 = vld [vmem:[#allocation62_spill] sm:$0xff] }
 0x4c3   : > { %6328 = vmatpush.msra.mxu0 %v6053_v4  ;;  %2149 = vadd.xlane.f32.xlu2 %v2148_v59  ;;  %v4255_v43 = vmax.f32 %v16438_v28, %v16437_v63  ;;  %v9402_v4 = vld [vmem:[%s16306_s5 + $0x180] sm:$0xff]  ;;  %v12814_v8 = vld [vmem:[%s16306_s5 + $0x90] sm:$0xff] }
 0x4c4   : > { %6357 = vmatpush.msra.mxu1 %v12459_v40  ;;  %v12735_v13 = vpop.permute.xlu0 %310  ;;  %6416 = vmatpush.msra.mxu3 %v12632_v29  ;;  %v9393_v40 = vld [vmem:[%s16306_s5 + $0x138] sm:$0xff]  ;;  %v2159_v29 = vadd.f32 %v2145_v32, %v2144_v18  ;;  %v2200_v32 = vadd.f32 %v2186_v11, %v2185_v44  ;;  %v9396_v7 = vld [vmem:[%s16306_s5 + $0x150] sm:$0xff]  ;;  %v2259_v44 = vmul.f32 %v9403_v62, %v12523_v22 }
 0x4c5   : > { %16436 = vst [vmem:[#allocation14_spill] sm:$0xff] %v12735_v13  ;;  %6329 = vmatpush.msra.mxu0 %v12393_v56  ;;  %v2064_v12 = vadd.f32 %v2052_v21, %v12735_v13  ;;  %v2065_v51 = vadd.f32 %v2053_v39, %v12735_v13  ;;  %v2066_v60 = vadd.f32 %v2054_v50, %v12735_v13  ;;  %v9381_v21 = vld [vmem:[%s16306_s5 + $0xd8] sm:$0xff] }
 0x4c6   : > { %6358 = vmatpush.msra.mxu1 %v12454_v38  ;;  %10055 = vmatmul.msk.f32.vlgmr.msra.gmra.mxu2 %vm1661_vm2, %v12386_v27  ;;  %v9394_v38 = vld [vmem:[%s16306_s5 + $0x140] sm:$0xff]  ;;  %v2220_v25 = vmul.f32 %v9393_v40, %v12588_v26  ;;  %v9389_v18 = vld [vmem:[%s16306_s5 + $0x118] sm:$0xff] }
 0x4c7   : > { %v12763_v23 = vmax.f32 %v2064_v12, 0.0  ;;  %v12765_v37 = vmax.f32 %v2065_v51, 0.0  ;;  %v12767_v54 = vmax.f32 %v2066_v60, 0.0  ;;  %6417 = vmatpush.msra.mxu3 %v12393_v56  ;;  %6330 = vmatpush.msra.mxu0 %v12354_v53  ;;  %v2146_v56 = vmul.f32 %v9377_v6, %v12594_v17  ;;  %v2090_v53 = vld [vmem:[%s16306_s5 + $0x40] sm:$0xff]  ;;  %v9397_v12 = vld [vmem:[%s16306_s5 + $0x158] sm:$0xff] }
 0x4c8   : > { %6359 = vmatpush.msra.mxu1 %v12362_v61  ;;  %10032 = vmatmul.msk.f32.gmra.mxu0 %vm1661_vm2, %v12402_v1  ;;  %v2221_v34 = vmul.f32 %v9394_v38, %v12596_v19  ;;  %v2179_v51 = vmul.f32 %v9381_v21, %v12588_v26  ;;  %v2180_v60 = vmul.f32 %v9382_v31, %v12596_v19  ;;  %v9390_v21 = vld [vmem:[%s16306_s5 + $0x120] sm:$0xff] }
 0x4c9   : > { %2190 = vadd.xlane.f32.xlu0 %v2189_v9  ;;  %10036 = vmatmul.msk.f32.gmra.mxu1 %vm1661_vm2, %v12402_v1  ;;  %v2100_v61 = vmul.f32 %v2088_v52, %v12763_v23  ;;  %v2101_v2 = vmul.f32 %v2089_v30, %v12765_v37  ;;  %v2160_v59 = vadd.f32 %v2159_v29, %v2146_v56  ;;  %v9405_v29 = vld [vmem:[%s16306_s5 + $0x198] sm:$0xff]  ;;  %v9406_v52 = vld [vmem:[%s16306_s5 + $0x1a0] sm:$0xff] }
 0x4ca   : > { %10044 = vmatmul.msk.f32.gmra.mxu3 %vm1661_vm2, %v12402_v1  ;;  %v2182_v39 = vmul.f32 %v9384_v47, %v12763_v23  ;;  %v2183_v50 = vmul.f32 %v9385_v20, %v12765_v37  ;;  %v2102_v14 = vmul.f32 %v2090_v53, %v12767_v54  ;;  %v12833_v6 = vmax.f32 %v4243_v16, %v4255_v43  ;;  %v9395_v47 = vld [vmem:[%s16306_s5 + $0x148] sm:$0xff]  ;;  %v9404_v20 = vld [vmem:[%s16306_s5 + $0x190] sm:$0xff] }
 0x4cb   : > { %v2114_v55 = vadd.f32 %v2101_v2, %v2100_v61  ;;  %2161 = vadd.xlane.f32.xlu2 %v2160_v59  ;;  %v2258_v30 = vmul.f32 %v9402_v4, %v12521_v46  ;;  %v2187_v38 = vmul.f32 %v9389_v18, %v12594_v17  ;;  %v2141_v16 = vmul.f32 %v12814_v8, %v12763_v23  ;;  %v9383_v53 = vld [vmem:[%s16306_s5 + $0xe8] sm:$0xff]  ;;  %v10230_v18 = vld [vmem:[%s10923_s20 + $0xad0] sm:$0xf] }
 0x4cc   : > { %v2196_v40 = vadd.f32 %v2183_v50, %v2182_v39  ;;  %v2142_v9 = vmul.f32 %v12819_v36, %v12765_v37  ;;  %v2184_v63 = vmul.f32 %v9386_v41, %v12767_v54  ;;  %v2223_v28 = vmul.f32 %v9396_v7, %v12763_v23  ;;  %v9407_v2 = vld [vmem:[%s16306_s5 + $0x1a8] sm:$0xff]  ;;  %v12880_v39 = vld [vmem:[%s16306_s5 + $0xa0] sm:$0xff] }
 0x4cd   : > { %v2115_v11 = vadd.f32 %v2114_v55, %v2102_v14  ;;  %v2224_v43 = vmul.f32 %v9397_v12, %v12765_v37  ;;  %v2233_v56 = vadd.f32 %v2221_v34, %v2220_v25  ;;  %v2201_v31 = vadd.f32 %v2200_v32, %v2187_v38  ;;  %v9391_v25 = vld [vmem:[%s16306_s5 + $0x128] sm:$0xff]  ;;  %v16439_v34 = vld [vmem:[#allocation72_spill] sm:$0xff] }
 0x4ce   : > { %10056 = vmatmul.msk.f32.gmra.mxu2 %vm1661_vm2, %v12402_v1  ;;  %v2192_v61 = vadd.f32 %v2180_v60, %v2179_v51  ;;  %v2261_v4 = vmul.f32 %v9405_v29, %v12588_v26  ;;  %v2262_v62 = vmul.f32 %v9406_v52, %v12596_v19  ;;  %v16440_v59 = vld [vmem:[#allocation65_spill] sm:$0xff]  ;;  %v2197_v32 = vadd.f32 %v2196_v40, %v2184_v63  ;;  %v9414_v55 = vld [vmem:[%s16306_s5 + $0x1e0] sm:$0xff]  ;;  %v9429_v40 = vld [vmem:[%s16306_s5 + $0x258] sm:$0xff] }
 0x4cf   : > { %2116 = vadd.xlane.f32.xlu1 %v2115_v11  ;;  %v2222_v50 = vmul.f32 %v9395_v47, %v12601_v10  ;;  %v12884_v14 = vmul.f32 %v9404_v20, %v12559_v58  ;;  %v2155_v41 = vadd.f32 %v2142_v9, %v2141_v16  ;;  %v9398_v7 = vld [vmem:[%s16306_s5 + $0x160] sm:$0xff]  ;;  %v2181_v12 = vmul.f32 %v9383_v53, %v12601_v10  ;;  %v9415_v60 = vld [vmem:[%s16306_s5 + $0x1e8] sm:$0xff]  ;;  %v9412_v9 = vld [vmem:[%s16306_s5 + $0x1d0] sm:$0xff] }
 0x4d0   : > { %10033 = vmatmul.msk.f32.gmra.mxu0 %vm1661_vm2, %v12416_v57  ;;  %v2217_v51 = vmul.f32 %v9390_v21, %v12521_v46  ;;  %v2237_v29 = vadd.f32 %v2224_v43, %v2223_v28  ;;  %v12907_v11 = vmul.f32 %v9407_v2, %v12601_v10  ;;  %v2218_v38 = vmul.f32 %v9391_v25, %v12523_v22  ;;  %v9411_v16 = vld [vmem:[%s16306_s5 + $0x1c8] sm:$0xff]  ;;  %v9430_v47 = vld [vmem:[%s16306_s5 + $0x260] sm:$0xff]  ;;  %v9417_v53 = vld [vmem:[%s16306_s5 + $0x1f8] sm:$0xff] }
 0x4d1   : > { %10037 = vmatmul.msk.f32.gmra.mxu1 %vm1661_vm2, %v12416_v57  ;;  %2202 = vadd.xlane.f32.xlu0 %v2201_v31  ;;  %v12904_v52 = vadd.f32 %v2233_v56, %v2222_v50  ;;  %v2143_v20 = vmul.f32 %v12880_v39, %v12767_v54  ;;  %v12921_v63 = vadd.f32 %v2192_v61, %v2181_v12  ;;  %v9431_v56 = vld [vmem:[%s16306_s5 + $0x268] sm:$0xff]  ;;  %v9418_v21 = vld [vmem:[%s16306_s5 + $0x200] sm:$0xff] }
 0x4d2   : > { %10045 = vmatmul.msk.f32.gmra.mxu3 %vm1661_vm2, %v12416_v57  ;;  %v2274_v28 = vadd.f32 %v2262_v62, %v2261_v4  ;;  %v2270_v43 = vadd.f32 %v2259_v44, %v2258_v30  ;;  %v2225_v31 = vmul.f32 %v9398_v7, %v12767_v54  ;;  %v2299_v61 = vmul.f32 %v9414_v55, %v12521_v46  ;;  %v10222_v30 = vld [vmem:[%s10923_s20 + $0xa90] sm:$0xf]  ;;  %v9441_v62 = vld [vmem:[%s16306_s5 + $0x2b8] sm:$0xff]  ;;  %v9419_v55 = vld [vmem:[%s16306_s5 + $0x208] sm:$0xff] }
 0x4d3   : > { %2198 = vadd.xlane.f32.xlu2 %v2197_v32  ;;  %v2300_v2 = vmul.f32 %v9415_v60, %v12523_v22  ;;  %v10174_v44 = vld [vmem:[%s10923_s20 + $0x910] sm:$0xff]  ;;  %v2343_v4 = vmul.f32 %v9429_v40, %v12588_v26  ;;  %v2156_v25 = vadd.f32 %v2155_v41, %v2143_v20  ;;  %v2267_v50 = vmul.f32 %v9411_v16, %v12575_v42  ;;  %v9442_v7 = vld [vmem:[%s16306_s5 + $0x2c0] sm:$0xff] }
 0x4d4   : > { %v2268_v12 = vmul.f32 %v9412_v9, %v12585_v0  ;;  %10272 = vmatpush.msk.msrb.mxu2 %vm419_vm0, %v10222_v30  ;;  %v2344_v32 = vmul.f32 %v9430_v47, %v12596_v19  ;;  %v2238_v41 = vadd.f32 %v2237_v29, %v2225_v31  ;;  %v9392_v60 = vld [vmem:[%s16306_s5 + $0x130] sm:$0xff]  ;;  %v2229_v40 = vadd.f32 %v2218_v38, %v2217_v51  ;;  %v9413_v38 = vld [vmem:[%s16306_s5 + $0x1d8] sm:$0xff] }
 0x4d5   : > { %v2302_v16 = vmul.f32 %v9417_v53, %v12588_v26  ;;  %v2303_v9 = vmul.f32 %v9418_v21, %v12596_v19  ;;  %v9416_v47 = vld [vmem:[%s16306_s5 + $0x1f0] sm:$0xff]  ;;  %v2345_v20 = vmul.f32 %v9431_v56, %v12601_v10  ;;  %v2384_v29 = vmul.f32 %v9441_v62, %v12588_v26  ;;  %v9399_v53 = vld [vmem:[%s16306_s5 + $0x168] sm:$0xff] }
 0x4d6   : > { %10057 = vmatmul.msk.f32.gmra.mxu2 %vm1661_vm2, %v12416_v57  ;;  %v2356_v30 = vadd.f32 %v2344_v32, %v2343_v4  ;;  %v9443_v57 = vld [vmem:[%s16306_s5 + $0x2c8] sm:$0xff]  ;;  %v2311_v51 = vadd.f32 %v2300_v2, %v2299_v61  ;;  %v2304_v56 = vmul.f32 %v9419_v55, %v12601_v10  ;;  %v2385_v31 = vmul.f32 %v9442_v7, %v12596_v19  ;;  %v9400_v2 = vld [vmem:[%s16306_s5 + $0x170] sm:$0xff] }
 0x4d7   : > { %2157 = vadd.xlane.f32.xlu1 %v2156_v25  ;;  %7239 = vmatpush.msrb.mxu2 %v10174_v44  ;;  %v2315_v21 = vadd.f32 %v2303_v9, %v2302_v16  ;;  %v2219_v44 = vmul.f32 %v9392_v60, %v12559_v58  ;;  %v2282_v61 = vadd.f32 %v2268_v12, %v2267_v50  ;;  %v9423_v4 = vld [vmem:[%s16306_s5 + $0x228] sm:$0xff]  ;;  %v9424_v50 = vld [vmem:[%s16306_s5 + $0x230] sm:$0xff]  ;;  %v9449_v60 = vld [vmem:[%s16306_s5 + $0x2f8] sm:$0xff] }
 0x4d8   : > { %10034 = vmatmul.msk.f32.gmra.mxu0 %vm1661_vm2, %v12427_v3  ;;  %v12985_v62 = vadd.f32 %v2356_v30, %v2345_v20  ;;  %v9447_v25 = vld [vmem:[%s16306_s5 + $0x2e8] sm:$0xff]  ;;  %v2301_v32 = vmul.f32 %v9416_v47, %v12559_v58  ;;  %v2386_v55 = vmul.f32 %v9443_v57, %v12601_v10  ;;  %v2397_v7 = vadd.f32 %v2385_v31, %v2384_v29  ;;  %v9436_v57 = vld [vmem:[%s16306_s5 + $0x290] sm:$0xff] }
 0x4d9   : > { %10038 = vmatmul.msk.f32.gmra.mxu1 %vm1661_vm2, %v12427_v3  ;;  %2239 = vadd.xlane.f32.xlu0 %v2238_v41  ;;  %v12996_v12 = vadd.f32 %v2315_v21, %v2304_v56  ;;  %v9448_v41 = vld [vmem:[%s16306_s5 + $0x2f0] sm:$0xff]  ;;  %v2275_v16 = vadd.f32 %v2274_v28, %v12907_v11  ;;  %v13007_v9 = vadd.f32 %v2270_v43, %v12884_v14  ;;  %v9435_v30 = vld [vmem:[%s16306_s5 + $0x288] sm:$0xff]  ;;  %v9437_v11 = vld [vmem:[%s16306_s5 + $0x298] sm:$0xff] }
 0x4da   : > { %10046 = vmatmul.msk.f32.gmra.mxu3 %vm1661_vm2, %v12427_v3  ;;  %v13009_v47 = vadd.f32 %v2229_v40, %v2219_v44  ;;  %v2269_v20 = vmul.f32 %v9413_v38, %v12594_v17  ;;  %v13022_v14 = vadd.f32 %v2311_v51, %v2301_v32  ;;  %v13025_v28 = vmul.f32 %v9399_v53, %v12575_v42  ;;  %v10221_v43 = vld [vmem:[%s10923_s20 + $0xa88] sm:$0xf]  ;;  %v10223_v40 = vld [vmem:[%s10923_s20 + $0xa98] sm:$0xf]  ;;  %v10226_v29 = vld [vmem:[%s10923_s20 + $0xab0] sm:$0xf] }
 0x4db   : > { %2235 = vadd.xlane.f32.xlu2 %v12904_v52  ;;  %v13030_v38 = vadd.f32 %v2397_v7, %v2386_v55  ;;  %v2390_v56 = vmul.f32 %v9447_v25, %v12575_v42  ;;  %v13036_v31 = vmul.f32 %v9400_v2, %v12585_v0  ;;  %10270 = vmatpush.msk.msrb.mxu1 %vm419_vm0, %v10221_v43  ;;  %v10173_v52 = vld [vmem:[%s10923_s20 + $0x908] sm:$0xff]  ;;  %v9460_v44 = vld [vmem:[%s16306_s5 + $0x350] sm:$0xff]  ;;  %v9461_v55 = vld [vmem:[%s16306_s5 + $0x358] sm:$0xff] }
 0x4dc   : > { %v13033_v21 = vadd.f32 %v2282_v61, %v2269_v20  ;;  %10274 = vmatpush.msk.msrb.mxu3 %vm419_vm0, %v10223_v40  ;;  %v2391_v51 = vmul.f32 %v9448_v41, %v12585_v0  ;;  %v9459_v53 = vld [vmem:[%s16306_s5 + $0x348] sm:$0xff]  ;;  %v13051_v61 = vmul.f32 %v9423_v4, %v12575_v42  ;;  %v13054_v2 = vmul.f32 %v9424_v50, %v12585_v0  ;;  %v9456_v7 = vld [vmem:[%s16306_s5 + $0x330] sm:$0xff]  ;;  %v10175_v4 = vld [vmem:[%s10923_s20 + $0x918] sm:$0xff] }
 0x4dd   : > { %v2349_v25 = vmul.f32 %v9435_v30, %v12575_v42  ;;  %v2350_v32 = vmul.f32 %v9436_v57, %v12585_v0  ;;  %10280 = vmatpush.msk.msra.mxu2 %vm419_vm0, %v10226_v29  ;;  %v10178_v50 = vld [vmem:[%s10923_s20 + $0x930] sm:$0xff]  ;;  %v2392_v41 = vmul.f32 %v9449_v60, %v12594_v17  ;;  %v2351_v30 = vmul.f32 %v9437_v11, %v12594_v17  ;;  %v9458_v57 = vld [vmem:[%s16306_s5 + $0x340] sm:$0xff]  ;;  %v9445_v11 = vld [vmem:[%s16306_s5 + $0x2d8] sm:$0xff] }
 0x4de   : > { %10058 = vmatmul.msk.f32.gmra.mxu2 %vm1661_vm2, %v12427_v3  ;;  %v9457_v3 = vld [vmem:[%s16306_s5 + $0x338] sm:$0xff]  ;;  %v2405_v20 = vadd.f32 %v2391_v51, %v2390_v56  ;;  %7219 = vmatpush.msrb.mxu1 %v10173_v52  ;;  %v2432_v40 = vmul.f32 %v9460_v44, %v12585_v0  ;;  %v9444_v60 = vld [vmem:[%s16306_s5 + $0x2d0] sm:$0xff]  ;;  %v9446_v29 = vld [vmem:[%s16306_s5 + $0x2e0] sm:$0xff]  ;;  %v2433_v52 = vmul.f32 %v9461_v55, %v12594_v17 }
 0x4df   : > { %2194 = vadd.xlane.f32.xlu1 %v12921_v63  ;;  %v2364_v43 = vadd.f32 %v2350_v32, %v2349_v25  ;;  %v2431_v63 = vmul.f32 %v9459_v53, %v12575_v42  ;;  %v2428_v51 = vmul.f32 %v9456_v7, %v12763_v23  ;;  %v9468_v53 = vld [vmem:[%s16306_s5 + $0x390] sm:$0xff]  ;;  %v9469_v44 = vld [vmem:[%s16306_s5 + $0x398] sm:$0xff]  ;;  %7319 = vmatpush.msra.mxu2 %v10178_v50  ;;  %v9470_v55 = vld [vmem:[%s16306_s5 + $0x3a0] sm:$0xff] }
 0x4e0   : > { %10047 = vmatmul.msk.f32.vlgmr.msra.gmra.mxu0 %vm1661_vm2, %v12386_v27  ;;  %v13091_v56 = vadd.f32 %v2405_v20, %v2392_v41  ;;  %v2429_v32 = vmul.f32 %v9457_v3, %v12765_v37  ;;  %v9465_v7 = vld [vmem:[%s16306_s5 + $0x378] sm:$0xff]  ;;  %7259 = vmatpush.msrb.mxu3 %v10175_v4  ;;  %v2387_v50 = vmul.f32 %v9444_v60, %v12763_v23  ;;  %v9466_v3 = vld [vmem:[%s16306_s5 + $0x380] sm:$0xff] }
 0x4e1   : > { %10051 = vmatmul.msk.f32.vlgmr.msra.gmra.mxu1 %vm1661_vm2, %v12386_v27  ;;  %2276 = vadd.xlane.f32.xlu0 %v2275_v16  ;;  %v13103_v16 = vadd.f32 %v2364_v43, %v2351_v30  ;;  %v2446_v25 = vadd.f32 %v2432_v40, %v2431_v63  ;;  %v2388_v41 = vmul.f32 %v9445_v11, %v12765_v37  ;;  %v9467_v30 = vld [vmem:[%s16306_s5 + $0x388] sm:$0xff]  ;;  %v9453_v4 = vld [vmem:[%s16306_s5 + $0x318] sm:$0xff]  ;;  %v10172_v43 = vld [vmem:[%s10923_s20 + $0x900] sm:$0xff] }
 0x4e2   : > { %10059 = vmatmul.msk.f32.vlgmr.msra.gmra.mxu3 %vm1661_vm2, %v12386_v27  ;;  %v2430_v27 = vmul.f32 %v9458_v57, %v12767_v54  ;;  %v2389_v20 = vmul.f32 %v9446_v29, %v12767_v54  ;;  %v10220_v57 = vld [vmem:[%s10923_s20 + $0xa80] sm:$0xf]  ;;  %v10225_v63 = vld [vmem:[%s10923_s20 + $0xaa8] sm:$0xf]  ;;  %v2442_v60 = vadd.f32 %v2429_v32, %v2428_v51  ;;  %v2469_v11 = vmul.f32 %v9468_v53, %v12763_v23  ;;  %v9420_v51 = vld [vmem:[%s16306_s5 + $0x210] sm:$0xff] }
 0x4e3   : > { %16441 = vst [vmem:[#allocation7_spill] sm:$0xff] %v13103_v16  ;;  %2272 = vadd.xlane.f32.xlu2 %v13007_v9  ;;  %v13129_v40 = vadd.f32 %v2446_v25, %v2433_v52  ;;  %v2470_v29 = vmul.f32 %v9469_v44, %v12765_v37  ;;  %10268 = vmatpush.msk.msrb.mxu0 %vm419_vm0, %v10220_v57  ;;  %v9454_v52 = vld [vmem:[%s16306_s5 + $0x320] sm:$0xff]  ;;  %v9421_v53 = vld [vmem:[%s16306_s5 + $0x218] sm:$0xff]  ;;  %v9455_v57 = vld [vmem:[%s16306_s5 + $0x328] sm:$0xff] }
 0x4e4   : > { %10278 = vmatpush.msk.msra.mxu1 %vm419_vm0, %v10225_v63  ;;  %v2401_v49 = vadd.f32 %v2388_v41, %v2387_v50  ;;  %v2471_v9 = vmul.f32 %v9470_v55, %v12767_v54  ;;  %v2466_v16 = vmul.f32 %v9465_v7, %v12588_v26  ;;  %v13151_v44 = vld [vmem:[%s16302_s1] sm:$0xff]  ;;  %10282 = vmatpush.msk.msra.mxu3 %vm419_vm0, %v10227_v15  ;;  %v10177_v7 = vld [vmem:[%s10923_s20 + $0x928] sm:$0xff]  ;;  %v9401_v15 = vld [vmem:[%s16306_s5 + $0x178] sm:$0xff] }
 0x4e5   : > { %v13156_v25 = vadd.f32 %v2442_v60, %v2430_v27  ;;  %v2483_v32 = vadd.f32 %v2470_v29, %v2469_v11  ;;  %v2467_v55 = vmul.f32 %v9466_v3, %v12596_v19  ;;  %7199 = vmatpush.msrb.mxu0 %v10172_v43  ;;  %v2468_v41 = vmul.f32 %v9467_v30, %v12601_v10  ;;  %v9432_v11 = vld [vmem:[%s16306_s5 + $0x270] sm:$0xff] }
 0x4e6   : > { %10273 = vmatmul.msk.f32.vlgmr.msrb.gmra.mxu2 %vm415_vm1, %v13151_v44  ;;  %v13161_v50 = vadd.f32 %v2401_v49, %v2389_v20  ;;  %v2425_v63 = vmul.f32 %v9453_v4, %v12588_v26  ;;  %v10182_v49 = vld [vmem:[%s10923_s20 + $0x950] sm:$0xff]  ;;  %v2426_v3 = vmul.f32 %v9454_v52, %v12596_v19  ;;  %v2241_v26 = vadd.f32 %v13036_v31, %v13025_v28  ;;  %v10176_v52 = vld [vmem:[%s10923_s20 + $0x920] sm:$0xff] }
 0x4e7   : > { %2231 = vadd.xlane.f32.xlu1 %v13009_v47  ;;  %10288 = vmatpush.msk.msrb.mxu2 %vm419_vm0, %v10230_v18  ;;  %v10179_v47 = vld [vmem:[%s10923_s20 + $0x938] sm:$0xff]  ;;  %v13176_v27 = vadd.f32 %v2483_v32, %v2471_v9  ;;  %v2479_v20 = vadd.f32 %v2467_v55, %v2466_v16  ;;  %v2305_v30 = vmul.f32 %v9420_v51, %v12763_v23  ;;  %v9408_v19 = vld [vmem:[%s16306_s5 + $0x1b0] sm:$0xff]  ;;  %v16445_v55 = vld [vmem:[#allocation28_spill] sm:$0xff] }
 0x4e8   : > { %10048 = vmatmul.msk.f32.gmra.mxu0 %vm1661_vm2, %v12402_v1  ;;  %v2306_v4 = vmul.f32 %v9421_v53, %v12765_v37  ;;  %v9425_v18 = vld [vmem:[%s16306_s5 + $0x238] sm:$0xff]  ;;  %7299 = vmatpush.msra.mxu1 %v10177_v7  ;;  %v2427_v31 = vmul.f32 %v9455_v57, %v12601_v10  ;;  %v4278_v16 = vadd.f32 %v12732_v35, %v12735_v13  ;;  %v16444_v32 = vld [vmem:[#allocation38_spill] sm:$0xff] }
 0x4e9   : > { %10052 = vmatmul.msk.f32.gmra.mxu1 %vm1661_vm2, %v12402_v1  ;;  %2313 = vadd.xlane.f32.xlu0 %v13022_v14  ;;  %v9409_v14 = vld [vmem:[%s16306_s5 + $0x1b8] sm:$0xff]  ;;  %v13197_v28 = vadd.f32 %v2479_v20, %v2468_v41  ;;  %v2228_v43 = vmul.f32 %v9401_v15, %v12594_v17  ;;  %v2323_v60 = vadd.f32 %v13054_v2, %v13051_v61  ;;  %v10224_v2 = vld [vmem:[%s10923_s20 + $0xaa0] sm:$0xf] }
 0x4ea   : > { %10060 = vmatmul.msk.f32.gmra.mxu3 %vm1661_vm2, %v12402_v1  ;;  %v2438_v1 = vadd.f32 %v2426_v3, %v2425_v63  ;;  %7399 = vmatpush.msrb.mxu2 %v10182_v49  ;;  %v16442_v29 = vmax.f32 %v16440_v59, %v16439_v34  ;;  %v16443_v10 = vmax.f32 %v16433_v5, %v16432_v45  ;;  %v9433_v61 = vld [vmem:[%s16306_s5 + $0x278] sm:$0xff]  ;;  %v9422_v45 = vld [vmem:[%s16306_s5 + $0x220] sm:$0xff]  ;;  %v10234_v59 = vld [vmem:[%s10923_s20 + $0xaf0] sm:$0xf]  ;;  %v13243_v15 = vmax.f32 %v4278_v16, 0.0 }
 0x4eb   : > { %7339 = vmatpush.msra.mxu3 %v10179_v47  ;;  %v4279_v35 = vadd.f32 %v12833_v6, %v12735_v13  ;;  %2284 = vadd.xlane.f32.xlu2 %v13033_v21  ;;  %v2242_v53 = vadd.f32 %v2241_v26, %v2228_v43  ;;  %v2310_v34 = vmul.f32 %v9425_v18, %v12594_v17  ;;  %v9471_v21 = vld [vmem:[%s16306_s5 + $0x3a8] sm:$0xff]  ;;  %v9472_v63 = vld [vmem:[%s16306_s5 + $0x3b0] sm:$0xff]  ;;  %v9410_v49 = vld [vmem:[%s16306_s5 + $0x1c0] sm:$0xff] }
 0x4ec   : > { %v4268_v9 = vmax.f32 %v16443_v10, %v16442_v29  ;;  %v13222_v51 = vadd.f32 %v2438_v1, %v2427_v31  ;;  %v2264_v5 = vmul.f32 %v9408_v19, %v12763_v23  ;;  %v2265_v6 = vmul.f32 %v9409_v14, %v12765_v37  ;;  %10276 = vmatpush.msk.msra.mxu0 %vm419_vm0, %v10224_v2  ;;  %v10186_v26 = vld [vmem:[%s10923_s20 + $0x970] sm:$0xff]  ;;  %v16448_v1 = vld [vmem:[#allocation55_spill] sm:$0xff]  ;;  %v16449_v16 = vld [vmem:[#allocation40_spill] sm:$0xff] }
 0x4ed   : > { %v4236_v7 = vmax.f32 %v16445_v55, %v16444_v32  ;;  %v2319_v57 = vadd.f32 %v2306_v4, %v2305_v30  ;;  %v2324_v47 = vadd.f32 %v2323_v60, %v2310_v34  ;;  %v2346_v20 = vmul.f32 %v9432_v11, %v12763_v23  ;;  %v16446_v30 = vld [vmem:[#allocation41_spill] sm:$0xff]  ;;  %v16447_v4 = vld [vmem:[#allocation31_spill] sm:$0xff]  ;;  %v10725_v31 = vld [vmem:[%s16304_s3 + $0x10] sm:$0xff] }
 0x4ee   : > { %v4280_v41 = vadd.f32 %v4268_v9, %v12735_v13  ;;  %10281 = vmatmul.msk.f32.vlgmr.msra.gmra.mxu2 %vm415_vm1, %v13151_v44  ;;  %v2347_v3 = vmul.f32 %v9433_v61, %v12765_v37  ;;  %7279 = vmatpush.msra.mxu0 %v10176_v52  ;;  %v4239_v18 = vmax.f32 %v16447_v4, %v16446_v30  ;;  %v13253_v19 = vmax.f32 %v4279_v35, 0.0  ;;  %v9473_v23 = vld [vmem:[%s16306_s5 + $0x3b8] sm:$0xff]  ;;  %v16450_v29 = vld [vmem:[#allocation56_spill] sm:$0xff]  ;;  %v16451_v10 = vld [vmem:[#allocation54_spill] sm:$0xff] }
 0x4ef   : > { %2243 = vadd.xlane.f32.xlu1 %v2242_v53  ;;  %v2307_v14 = vmul.f32 %v9422_v45, %v12767_v54  ;;  %10296 = vmatpush.msk.msra.mxu2 %vm419_vm0, %v10234_v59  ;;  %v2472_v37 = vmul.f32 %v9471_v21, %v12575_v42  ;;  %v4248_v43 = vmax.f32 %v16449_v16, %v16448_v1  ;;  %v9434_v2 = vld [vmem:[%s16306_s5 + $0x280] sm:$0xff]  ;;  %v16452_v45 = vld [vmem:[#allocation42_spill] sm:$0xff]  ;;  %v16454_v59 = vld [vmem:[#allocation45_spill] sm:$0xff] }
 0x4f0   : > { %10049 = vmatmul.msk.f32.gmra.mxu0 %vm1661_vm2, %v10725_v31  ;;  %v2278_v60 = vadd.f32 %v2265_v6, %v2264_v5  ;;  %v2473_v11 = vmul.f32 %v9472_v63, %v12585_v0  ;;  %v4249_v9 = vmax.f32 %v16451_v10, %v16450_v29  ;;  %v13271_v35 = vmax.f32 %v4280_v41, 0.0  ;;  %v16453_v5 = vld [vmem:[#allocation26_spill] sm:$0xff]  ;;  %v16455_v21 = vld [vmem:[#allocation29_spill] sm:$0xff]  ;;  %v16456_v55 = vld [vmem:[#allocation59_spill] sm:$0xff] }
 0x4f1   : > { %10053 = vmatmul.msk.f32.gmra.mxu1 %vm1661_vm2, %v10725_v31  ;;  %2325 = vadd.xlane.f32.xlu0 %v2324_v47  ;;  %v2320_v61 = vadd.f32 %v2319_v57, %v2307_v14  ;;  %v2266_v42 = vmul.f32 %v9410_v49, %v12767_v54  ;;  %v2360_v52 = vadd.f32 %v2347_v3, %v2346_v20  ;;  %v16457_v41 = vld [vmem:[#allocation44_spill] sm:$0xff]  ;;  %v16459_v49 = vld [vmem:[#allocation58_spill] sm:$0xff]  ;;  %v16461_v4 = vld [vmem:[#allocation37_spill] sm:$0xff] }
 0x4f2   : > { %10061 = vmatmul.msk.f32.gmra.mxu3 %vm1661_vm2, %v10725_v31  ;;  %7479 = vmatpush.msra.mxu2 %v10186_v26  ;;  %v2474_v53 = vmul.f32 %v9473_v23, %v12594_v17  ;;  %v2487_v0 = vadd.f32 %v2473_v11, %v2472_v37  ;;  %v4354_v34 = vmul.f32 %v12814_v8, %v13243_v15  ;;  %v16458_v47 = vld [vmem:[#allocation60_spill] sm:$0xff]  ;;  %v10238_v3 = vld [vmem:[%s10923_s20 + $0xb10] sm:$0xf]  ;;  %v16462_v31 = vld [vmem:[#allocation53_spill] sm:$0xff] }
 0x4f3   : > { %v4237_v6 = vmax.f32 %v16453_v5, %v16452_v45  ;;  %v4240_v32 = vmax.f32 %v16455_v21, %v16454_v59  ;;  %v4251_v57 = vmax.f32 %v16457_v41, %v16456_v55  ;;  %2321 = vadd.xlane.f32.xlu2 %v2320_v61  ;;  %v4355_v63 = vmul.f32 %v12819_v36, %v13253_v19  ;;  %v16460_v30 = vld [vmem:[#allocation50_spill] sm:$0xff]  ;;  %v16463_v23 = vld [vmem:[#allocation35_spill] sm:$0xff]  ;;  %v9438_v11 = vld [vmem:[%s16306_s5 + $0x2a0] sm:$0xff] }
 0x4f4   : > { %v4252_v17 = vmax.f32 %v16459_v49, %v16458_v47  ;;  %v2279_v20 = vadd.f32 %v2278_v60, %v2266_v42  ;;  %v2348_v8 = vmul.f32 %v9434_v2, %v12767_v54  ;;  %v13293_v26 = vadd.f32 %v2487_v0, %v2474_v53  ;;  %v9439_v29 = vld [vmem:[%s16306_s5 + $0x2a8] sm:$0xff]  ;;  %v10190_v10 = vld [vmem:[%s10923_s20 + $0x990] sm:$0xff]  ;;  %v16464_v42 = vld [vmem:[#allocation67_spill] sm:$0xff] }
 0x4f5   : > { %v4245_v14 = vmax.f32 %v16461_v4, %v16460_v30  ;;  %v4246_v37 = vmax.f32 %v16463_v23, %v16462_v31  ;;  %v4356_v36 = vmul.f32 %v12880_v39, %v13271_v35  ;;  %v4368_v1 = vadd.f32 %v4355_v63, %v4354_v34  ;;  %v16465_v2 = vld [vmem:[#allocation52_spill] sm:$0xff]  ;;  %v16468_v34 = vld [vmem:[#allocation70_spill] sm:$0xff]  ;;  %v16469_v45 = vld [vmem:[#allocation57_spill] sm:$0xff] }
 0x4f6   : > { %10289 = vmatmul.msk.f32.vlgmr.msrb.gmra.mxu2 %vm415_vm1, %v13151_v44  ;;  %v4260_v16 = vmax.f32 %v4236_v7, %v4248_v43  ;;  %v4261_v60 = vmax.f32 %v4237_v6, %v4249_v9  ;;  %v2361_v54 = vadd.f32 %v2360_v52, %v2348_v8  ;;  %v4263_v61 = vmax.f32 %v4239_v18, %v4251_v57  ;;  %v16466_v53 = vld [vmem:[#allocation68_spill] sm:$0xff]  ;;  %v16467_v7 = vld [vmem:[#allocation66_spill] sm:$0xff]  ;;  %v10726_v9 = vld [vmem:[%s16304_s3 + $0x18] sm:$0xff] }
 0x4f7   : > { %2280 = vadd.xlane.f32.xlu1 %v2279_v20  ;;  %10304 = vmatpush.msk.msrb.mxu2 %vm419_vm0, %v10238_v3  ;;  %v4257_v39 = vmax.f32 %v16465_v2, %v16464_v42  ;;  %v4258_v43 = vmax.f32 %v16467_v7, %v16466_v53  ;;  %v13319_v52 = vadd.f32 %v4368_v1, %v4356_v36  ;;  %v16470_v6 = vld [vmem:[#allocation71_spill] sm:$0xff]  ;;  %v16471_v18 = vld [vmem:[#allocation61_spill] sm:$0xff]  ;;  %v16475_v20 = vld [vmem:[#allocation30_spill] sm:$0xff] }
 0x4f8   : > { %10050 = vmatmul.msk.f32.gmra.mxu0 %vm1661_vm2, %v10726_v9  ;;  %v4264_v0 = vmax.f32 %v4240_v32, %v4252_v17  ;;  %v4250_v5 = vmax.f32 %v16469_v45, %v16468_v34  ;;  %v4253_v59 = vmax.f32 %v16471_v18, %v16470_v6  ;;  %v4272_v21 = vadd.f32 %v4260_v16, %v12502_v33  ;;  %v9426_v32 = vld [vmem:[%s16306_s5 + $0x240] sm:$0xff]  ;;  %v9427_v57 = vld [vmem:[%s16306_s5 + $0x248] sm:$0xff]  ;;  %v16472_v63 = vld [vmem:[#allocation39_spill] sm:$0xff] }
 0x4f9   : > { %10054 = vmatmul.msk.f32.gmra.mxu1 %vm1661_vm2, %v10726_v9  ;;  %2362 = vadd.xlane.f32.xlu0 %v2361_v54  ;;  %v2381_v55 = vmul.f32 %v9438_v11, %v12521_v46  ;;  %v2382_v41 = vmul.f32 %v9439_v29, %v12523_v22  ;;  %v16473_v47 = vld [vmem:[#allocation27_spill] sm:$0xff]  ;;  %v4275_v3 = vadd.f32 %v4263_v61, %v12563_v48  ;;  %v9450_v4 = vld [vmem:[%s16306_s5 + $0x300] sm:$0xff]  ;;  %v9451_v31 = vld [vmem:[%s16306_s5 + $0x308] sm:$0xff] }
 0x4fa   : > { %10062 = vmatmul.msk.f32.gmra.mxu3 %vm1661_vm2, %v10726_v9  ;;  %7559 = vmatpush.msrb.mxu2 %v10190_v10  ;;  %v4238_v49 = vmax.f32 %v16473_v47, %v16472_v63  ;;  %v16474_v17 = vld [vmem:[#allocation43_spill] sm:$0xff]  ;;  %v4276_v30 = vadd.f32 %v4264_v0, %v12563_v48  ;;  %v4269_v23 = vmax.f32 %v4245_v14, %v4257_v39  ;;  %v9440_v11 = vld [vmem:[%s16306_s5 + $0x2b0] sm:$0xff]  ;;  %v13356_v42 = vmax.f32 %v4272_v21, 0.0  ;;  %v4296_v39 = vld [vmem:[%s16306_s5] sm:$0xff] }
 0x4fb   : > { %v4241_v8 = vmax.f32 %v16475_v20, %v16474_v17  ;;  %v4270_v36 = vmax.f32 %v4246_v37, %v4258_v43  ;;  %v4273_v1 = vadd.f32 %v4261_v60, %v12502_v33  ;;  %2358 = vadd.xlane.f32.xlu2 %v12985_v62  ;;  %v2340_v29 = vmul.f32 %v9426_v32, %v12521_v46  ;;  %v10242_v61 = vld [vmem:[%s10923_s20 + $0xb30] sm:$0xf]  ;;  %v16476_v53 = vld [vmem:[#allocation73_spill] sm:$0xff]  ;;  %v10228_v32 = vld [vmem:[%s10923_s20 + $0xac0] sm:$0xf] }
 0x4fc   : > { %v4262_v16 = vmax.f32 %v4238_v49, %v4250_v5  ;;  %v2341_v10 = vmul.f32 %v9427_v57, %v12523_v22  ;;  %v2393_v14 = vadd.f32 %v2382_v41, %v2381_v55  ;;  %v9428_v37 = vld [vmem:[%s16306_s5 + $0x250] sm:$0xff]  ;;  %v2422_v60 = vmul.f32 %v9450_v4, %v12521_v46  ;;  %v16477_v7 = vld [vmem:[#allocation69_spill] sm:$0xff]  ;;  %v4299_v5 = vld [vmem:[%s16306_s5 + $0x18] sm:$0xff]  ;;  %v13394_v55 = vpop.f32.mrf.mxu2 }
 0x4fd   : > { %v4265_v54 = vmax.f32 %v4241_v8, %v4253_v59  ;;  %v9452_v62 = vld [vmem:[%s16306_s5 + $0x310] sm:$0xff]  ;;  %v2423_v2 = vmul.f32 %v9451_v31, %v12523_v22  ;;  %v4259_v43 = vmax.f32 %v16477_v7, %v16476_v53  ;;  %v4281_v9 = vadd.f32 %v4269_v23, %v12561_v24  ;;  %v10229_v45 = vld [vmem:[%s10923_s20 + $0xac8] sm:$0xf]  ;;  %16478 = vst [vmem:[#allocation24_spill] sm:$0xff] %v13394_v55  ;;  %v10231_v41 = vld [vmem:[%s10923_s20 + $0xad8] sm:$0xf] }
 0x4fe   : > { %10297 = vmatmul.msk.f32.vlgmr.msra.gmra.mxu2 %vm415_vm1, %v13151_v44  ;;  %v13374_v0 = vmax.f32 %v4275_v3, 0.0  ;;  %v13376_v34 = vmax.f32 %v4276_v30, 0.0  ;;  %v4297_v6 = vld [vmem:[%s16306_s5 + $0x8] sm:$0xff]  ;;  %v4274_v18 = vadd.f32 %v4262_v16, %v12502_v33  ;;  %v13388_v59 = vmax.f32 %v4273_v1, 0.0  ;;  %v4300_v57 = vld [vmem:[%s16306_s5 + $0x20] sm:$0xff]  ;;  %v10183_v4 = vld [vmem:[%s10923_s20 + $0x958] sm:$0xff] }
 0x4ff   : > { %2317 = vadd.xlane.f32.xlu1 %v12996_v12  ;;  %10312 = vmatpush.msk.msra.mxu2 %vm419_vm0, %v10242_v61  ;;  %v4277_v21 = vadd.f32 %v4265_v54, %v12563_v48  ;;  %v2383_v12 = vmul.f32 %v9440_v11, %v12559_v58  ;;  %v4282_v63 = vadd.f32 %v4270_v36, %v12561_v24  ;;  %v10181_v17 = vld [vmem:[%s10923_s20 + $0x948] sm:$0xff]  ;;  %v9462_v20 = vld [vmem:[%s16306_s5 + $0x360] sm:$0xff]  ;;  %v13419_v23 = vmax.f32 %v4281_v9, 0.0  ;;  %v10194_v11 = vld [vmem:[%s10923_s20 + $0x9b0] sm:$0xff] }
 0x500   : > { %10269 = vmatmul.msk.f32.vlgmr.msrb.gmra.mxu0 %vm415_vm1, %v13151_v44  ;;  %v2342_v47 = vmul.f32 %v9428_v37, %v12559_v58  ;;  %v2352_v49 = vadd.f32 %v2341_v10, %v2340_v29  ;;  %v9463_v8 = vld [vmem:[%s16306_s5 + $0x368] sm:$0xff]  ;;  %v2424_v30 = vmul.f32 %v9452_v62, %v12559_v58  ;;  %v10180_v31 = vld [vmem:[%s10923_s20 + $0x940] sm:$0xff]  ;;  %v4311_v36 = vmul.f32 %v4299_v5, %v13374_v0  ;;  %v10206_v48 = vld [vmem:[%s10923_s20 + $0xa10] sm:$0xff] }
 0x501   : > { %10271 = vmatmul.msk.f32.vlgmr.msrb.gmra.mxu1 %vm415_vm1, %v13151_v44  ;;  %2399 = vadd.xlane.f32.xlu0 %v13030_v38  ;;  %v2394_v3 = vadd.f32 %v2393_v14, %v2383_v12  ;;  %v2434_v38 = vadd.f32 %v2423_v2, %v2422_v60  ;;  %v4312_v1 = vmul.f32 %v4300_v57, %v13376_v34  ;;  %v13426_v54 = vmax.f32 %v4277_v21, 0.0  ;;  %v4301_v62 = vld [vmem:[%s16306_s5 + $0x28] sm:$0xff]  ;;  %v10727_v60 = vld [vmem:[%s16306_s5 + $0x60] sm:$0xff]  ;;  %v4306_v21 = vld [vmem:[%s16306_s5 + $0x50] sm:$0xff] }
 0x502   : > { %10275 = vmatmul.msk.f32.vlgmr.msrb.gmra.mxu3 %vm415_vm1, %v13151_v44  ;;  %10286 = vmatpush.msk.msrb.mxu1 %vm419_vm0, %v10229_v45  ;;  %v4308_v16 = vmul.f32 %v4296_v39, %v13356_v42  ;;  %v4309_v29 = vmul.f32 %v4297_v6, %v13388_v59  ;;  %v2463_v10 = vmul.f32 %v9462_v20, %v12521_v46  ;;  %v13432_v14 = vmax.f32 %v4282_v63, 0.0  ;;  %v10728_v46 = vld [vmem:[%s16306_s5 + $0x68] sm:$0xff]  ;;  %v16479_v39 = vld [vmem:[#allocation51_spill] sm:$0xff]  ;;  %v16480_v9 = vld [vmem:[#allocation36_spill] sm:$0xff] }
 0x503   : > { %10290 = vmatpush.msk.msrb.mxu3 %vm419_vm0, %v10231_v41  ;;  %10284 = vmatpush.msk.msrb.mxu0 %vm419_vm0, %v10228_v32  ;;  %v2464_v61 = vmul.f32 %v9463_v8, %v12523_v22  ;;  %v2353_v37 = vadd.f32 %v2352_v49, %v2342_v47  ;;  %v4348_v2 = vmul.f32 %v10727_v60, %v13356_v42  ;;  %v13447_v5 = vmax.f32 %v4274_v18, 0.0  ;;  %v4305_v6 = vld [vmem:[%s16306_s5 + $0x48] sm:$0xff]  ;;  %v4298_v18 = vld [vmem:[%s16306_s5 + $0x10] sm:$0xff]  ;;  %v10235_v63 = vld [vmem:[%s10923_s20 + $0xaf8] sm:$0xf] }
 0x504   : > { %2395 = vadd.xlane.f32.xlu2 %v2394_v3  ;;  %7379 = vmatpush.msrb.mxu1 %v10181_v17  ;;  %v4349_v22 = vmul.f32 %v10728_v46, %v13388_v59  ;;  %v4247_v45 = vmax.f32 %v16480_v9, %v16479_v39  ;;  %v2435_v12 = vadd.f32 %v2434_v38, %v2424_v30  ;;  %v10233_v41 = vld [vmem:[%s10923_s20 + $0xae8] sm:$0xf]  ;;  %v10232_v47 = vld [vmem:[%s10923_s20 + $0xae0] sm:$0xf]  ;;  %v9464_v20 = vld [vmem:[%s16306_s5 + $0x370] sm:$0xff] }
 0x505   : > { %7419 = vmatpush.msrb.mxu3 %v10183_v4  ;;  %7359 = vmatpush.msrb.mxu0 %v10180_v31  ;;  %v4324_v32 = vadd.f32 %v4312_v1, %v4311_v36  ;;  %v4313_v49 = vmul.f32 %v4301_v62, %v13426_v54  ;;  %v4320_v17 = vadd.f32 %v4309_v29, %v4308_v16  ;;  %v10185_v53 = vld [vmem:[%s10923_s20 + $0x968] sm:$0xff]  ;;  %v9777_v30 = vld [vmem:[%s16306_s5 + $0x258] sm:$0xff]  ;;  %v9778_v38 = vld [vmem:[%s16306_s5 + $0x260] sm:$0xff]  ;;  %v13486_v31 = vpop.f32.mrf.mxu2 }
 0x506   : > { %10305 = vmatmul.msk.f32.vlgmr.msrb.gmra.mxu2 %vm415_vm1, %v13151_v44  ;;  %v4271_v57 = vmax.f32 %v4247_v45, %v4259_v43  ;;  %v2475_v8 = vadd.f32 %v2464_v61, %v2463_v10  ;;  %v4360_v7 = vadd.f32 %v4349_v22, %v4348_v2  ;;  %v4317_v43 = vmul.f32 %v4305_v6, %v13419_v23  ;;  %v10187_v36 = vld [vmem:[%s10923_s20 + $0x978] sm:$0xff]  ;;  %v10184_v1 = vld [vmem:[%s10923_s20 + $0x960] sm:$0xff]  ;;  %v10729_v61 = vld [vmem:[%s16306_s5 + $0x70] sm:$0xff] }
 0x507   : > { %2354 = vadd.xlane.f32.xlu1 %v2353_v37  ;;  %7639 = vmatpush.msra.mxu2 %v10194_v11  ;;  %v4318_v3 = vmul.f32 %v4306_v21, %v13432_v14  ;;  %16481 = vst [vmem:[#allocation20_spill] sm:$0xff] %v13486_v31  ;;  %v4310_v16 = vmul.f32 %v4298_v18, %v13447_v5  ;;  %v9779_v11 = vld [vmem:[%s16306_s5 + $0x268] sm:$0xff]  ;;  %v9774_v62 = vld [vmem:[%s16306_s5 + $0x240] sm:$0xff]  ;;  %v9776_v2 = vld [vmem:[%s16306_s5 + $0x250] sm:$0xff] }
 0x508   : > { %10277 = vmatmul.msk.f32.vlgmr.msra.gmra.mxu0 %vm415_vm1, %v13151_v44  ;;  %v4283_v4 = vadd.f32 %v4271_v57, %v12561_v24  ;;  %v13497_v29 = vadd.f32 %v4324_v32, %v4313_v49  ;;  %v2465_v10 = vmul.f32 %v9464_v20, %v12559_v58  ;;  %v4350_v37 = vmul.f32 %v10729_v61, %v13447_v5  ;;  %v9775_v60 = vld [vmem:[%s16306_s5 + $0x248] sm:$0xff]  ;;  %v10246_v46 = vld [vmem:[%s10923_s20 + $0xb50] sm:$0xf]  ;;  %v9762_v9 = vld [vmem:[%s16306_s5 + $0x1e0] sm:$0xff] }
 0x509   : > { %10279 = vmatmul.msk.f32.vlgmr.msra.gmra.mxu1 %vm415_vm1, %v13151_v44  ;;  %2436 = vadd.xlane.f32.xlu0 %v2435_v12  ;;  %v13514_v58 = vadd.f32 %v4320_v17, %v4310_v16  ;;  %v4551_v22 = vmul.f32 %v9777_v30, %v13374_v0  ;;  %v4552_v39 = vmul.f32 %v9778_v38, %v13376_v34  ;;  %v9763_v45 = vld [vmem:[%s16306_s5 + $0x1e8] sm:$0xff]  ;;  %v9764_v12 = vld [vmem:[%s16306_s5 + $0x1f0] sm:$0xff]  ;;  %v9785_v38 = vld [vmem:[%s16306_s5 + $0x298] sm:$0xff] }
 0x50a   : > { %10283 = vmatmul.msk.f32.vlgmr.msra.gmra.mxu3 %vm415_vm1, %v13151_v44  ;;  %10294 = vmatpush.msk.msra.mxu1 %vm419_vm0, %v10233_v41  ;;  %v13527_v6 = vadd.f32 %v4360_v7, %v4350_v37  ;;  %v13529_v21 = vadd.f32 %v4318_v3, %v4317_v43  ;;  %v9786_v41 = vld [vmem:[%s16306_s5 + $0x2a0] sm:$0xff]  ;;  %v4553_v32 = vmul.f32 %v9779_v11, %v13426_v54  ;;  %v9788_v49 = vld [vmem:[%s16306_s5 + $0x2b0] sm:$0xff]  ;;  %v9783_v17 = vld [vmem:[%s16306_s5 + $0x288] sm:$0xff]  ;;  %v13551_v20 = vmax.f32 %v4283_v4, 0.0 }
 0x50b   : > { %10298 = vmatpush.msk.msra.mxu3 %vm419_vm0, %v10235_v63  ;;  %10292 = vmatpush.msk.msra.mxu0 %vm419_vm0, %v10232_v47  ;;  %v4564_v18 = vadd.f32 %v4552_v39, %v4551_v22  ;;  %v4548_v57 = vmul.f32 %v9774_v62, %v13356_v42  ;;  %v4549_v63 = vmul.f32 %v9775_v60, %v13388_v59  ;;  %v9787_v47 = vld [vmem:[%s16306_s5 + $0x2a8] sm:$0xff]  ;;  %v9784_v30 = vld [vmem:[%s16306_s5 + $0x290] sm:$0xff]  ;;  %v10239_v4 = vld [vmem:[%s10923_s20 + $0xb18] sm:$0xf] }
 0x50c   : > { %2407 = vadd.xlane.f32.xlu2 %v13091_v56  ;;  %7459 = vmatpush.msra.mxu1 %v10185_v53  ;;  %v13525_v56 = vadd.f32 %v2475_v8, %v2465_v10  ;;  %v16482_v8 = vld [vmem:[#allocation7_spill] sm:$0xff]  ;;  %v10237_v53 = vld [vmem:[%s10923_s20 + $0xb08] sm:$0xf]  ;;  %v4550_v7 = vmul.f32 %v9776_v2, %v13447_v5  ;;  %v4508_v43 = vmul.f32 %v9762_v9, %v13356_v42  ;;  %v10188_v39 = vld [vmem:[%s10923_s20 + $0x980] sm:$0xff] }
 0x50d   : > { %7499 = vmatpush.msra.mxu3 %v10187_v36  ;;  %7439 = vmatpush.msra.mxu0 %v10184_v1  ;;  %v4509_v3 = vmul.f32 %v9763_v45, %v13388_v59  ;;  %v10236_v36 = vld [vmem:[%s10923_s20 + $0xb00] sm:$0xf]  ;;  %v13569_v1 = vadd.f32 %v4564_v18, %v4553_v32  ;;  %v4560_v16 = vadd.f32 %v4549_v63, %v4548_v57  ;;  %v9771_v61 = vld [vmem:[%s16306_s5 + $0x228] sm:$0xff]  ;;  %v9773_v22 = vld [vmem:[%s16306_s5 + $0x238] sm:$0xff] }
 0x50e   : > { %10313 = vmatmul.msk.f32.vlgmr.msra.gmra.mxu2 %vm415_vm1, %v13151_v44  ;;  %v4510_v11 = vmul.f32 %v9764_v12, %v13447_v5  ;;  %v4588_v10 = vmul.f32 %v9786_v41, %v13356_v42  ;;  %v10189_v37 = vld [vmem:[%s10923_s20 + $0x988] sm:$0xff]  ;;  %v4589_v60 = vmul.f32 %v9787_v47, %v13388_v59  ;;  %v4590_v2 = vmul.f32 %v9788_v49, %v13447_v5  ;;  %v10198_v32 = vld [vmem:[%s10923_s20 + $0x9d0] sm:$0xff]  ;;  %v9797_v49 = vld [vmem:[%s16306_s5 + $0x2f8] sm:$0xff] }
 0x50f   : > { %2366 = vadd.xlane.f32.xlu1 %v16482_v8  ;;  %10320 = vmatpush.msk.msrb.mxu2 %vm419_vm0, %v10246_v46  ;;  %v4520_v62 = vadd.f32 %v4509_v3, %v4508_v43  ;;  %v9772_v46 = vld [vmem:[%s16306_s5 + $0x230] sm:$0xff]  ;;  %v13593_v9 = vadd.f32 %v4560_v16, %v4550_v7  ;;  %v4557_v45 = vmul.f32 %v9783_v17, %v13419_v23  ;;  %v9795_v41 = vld [vmem:[%s16306_s5 + $0x2e8] sm:$0xff]  ;;  %v13613_v17 = vpop.f32.mrf.mxu2  ;;  %v13615_v8 = vpop.f32.mrf.mxu0  ;;  %v10200_v31 = vld [vmem:[%s10923_s20 + $0x9e0] sm:$0xff] }
 0x510   : > { %10285 = vmatmul.msk.f32.vlgmr.msrb.gmra.mxu0 %vm415_vm1, %v13151_v44  ;;  %v4558_v12 = vmul.f32 %v9784_v30, %v13432_v14  ;;  %v4600_v57 = vadd.f32 %v4589_v60, %v4588_v10  ;;  %v4559_v63 = vmul.f32 %v9785_v38, %v13551_v20  ;;  %v9796_v47 = vld [vmem:[%s16306_s5 + $0x2f0] sm:$0xff]  ;;  %16483 = vst [vmem:[#allocation12_spill] sm:$0xff] %v13613_v17  ;;  %v9793_v30 = vld [vmem:[%s16306_s5 + $0x2d8] sm:$0xff]  ;;  %v13628_v38 = vpop.f32.mrf.mxu1  ;;  %v10197_v13 = vld [vmem:[%s10923_s20 + $0x9c8] sm:$0xff] }
 0x511   : > { %10287 = vmatmul.msk.f32.vlgmr.msrb.gmra.mxu1 %vm415_vm1, %v13151_v44  ;;  %2448 = vadd.xlane.f32.xlu0 %v13129_v40  ;;  %v10191_v40 = vld [vmem:[%s10923_s20 + $0x998] sm:$0xff]  ;;  %v13603_v18 = vadd.f32 %v4520_v62, %v4510_v11  ;;  %v4517_v7 = vmul.f32 %v9771_v61, %v13419_v23  ;;  %v4518_v43 = vmul.f32 %v9772_v46, %v13432_v14  ;;  %v9792_v3 = vld [vmem:[%s16306_s5 + $0x2d0] sm:$0xff]  ;;  %v9782_v46 = vld [vmem:[%s16306_s5 + $0x280] sm:$0xff] }
 0x512   : > { %10291 = vmatmul.msk.f32.vlgmr.msrb.gmra.mxu3 %vm415_vm1, %v13151_v44  ;;  %10302 = vmatpush.msk.msrb.mxu1 %vm419_vm0, %v10237_v53  ;;  %v4572_v53 = vadd.f32 %v4558_v12, %v4557_v45  ;;  %v4519_v16 = vmul.f32 %v9773_v22, %v13551_v20  ;;  %v4597_v11 = vmul.f32 %v9795_v41, %v13419_v23  ;;  %v9780_v10 = vld [vmem:[%s16306_s5 + $0x270] sm:$0xff]  ;;  %v10241_v22 = vld [vmem:[%s10923_s20 + $0xb28] sm:$0xf]  ;;  %v9805_v41 = vld [vmem:[%s16306_s5 + $0x338] sm:$0xff] }
 0x513   : > { %10306 = vmatpush.msk.msrb.mxu3 %vm419_vm0, %v10239_v4  ;;  %10300 = vmatpush.msk.msrb.mxu0 %vm419_vm0, %v10236_v36  ;;  %v10250_v4 = vld [vmem:[%s10923_s20 + $0xb70] sm:$0xf]  ;;  %v13631_v36 = vadd.f32 %v4600_v57, %v4590_v2  ;;  %v4598_v62 = vmul.f32 %v9796_v47, %v13432_v14  ;;  %v4599_v60 = vmul.f32 %v9797_v49, %v13551_v20  ;;  %v9781_v2 = vld [vmem:[%s16306_s5 + $0x278] sm:$0xff]  ;;  %v9723_v57 = vld [vmem:[%s16306_s5 + $0xa8] sm:$0xff] }
 0x514   : > { %2444 = vadd.xlane.f32.xlu2 %v13156_v25  ;;  %7539 = vmatpush.msrb.mxu1 %v10189_v37  ;;  %v9794_v25 = vld [vmem:[%s16306_s5 + $0x2e0] sm:$0xff]  ;;  %v13638_v61 = vadd.f32 %v4572_v53, %v4559_v63  ;;  %v4532_v37 = vadd.f32 %v4518_v43, %v4517_v7  ;;  %v9804_v12 = vld [vmem:[%s16306_s5 + $0x330] sm:$0xff]  ;;  %v4554_v49 = vmul.f32 %v9780_v10, %v13243_v15  ;;  %v10193_v7 = vld [vmem:[%s10923_s20 + $0x9a8] sm:$0xff] }
 0x515   : > { %7579 = vmatpush.msrb.mxu3 %v10191_v40  ;;  %7519 = vmatpush.msrb.mxu0 %v10188_v39  ;;  %v4594_v40 = vmul.f32 %v9792_v3, %v13243_v15  ;;  %v4595_v39 = vmul.f32 %v9793_v30, %v13253_v19  ;;  %v4596_v45 = vmul.f32 %v9794_v25, %v13271_v35  ;;  %v9806_v53 = vld [vmem:[%s16306_s5 + $0x340] sm:$0xff]  ;;  %v9801_v25 = vld [vmem:[%s16306_s5 + $0x318] sm:$0xff]  ;;  %v9812_v24 = vld [vmem:[%s16306_s5 + $0x370] sm:$0xff] }
 0x516   : > { %7719 = vmatpush.msrb.mxu2 %v10198_v32  ;;  %v10240_v32 = vld [vmem:[%s10923_s20 + $0xb20] sm:$0xf]  ;;  %v13669_v63 = vadd.f32 %v4532_v37, %v4519_v16  ;;  %v4612_v47 = vadd.f32 %v4598_v62, %v4597_v11  ;;  %v4555_v3 = vmul.f32 %v9781_v2, %v13253_v19  ;;  %v4556_v30 = vmul.f32 %v9782_v46, %v13271_v35  ;;  %v9789_v62 = vld [vmem:[%s16306_s5 + $0x2b8] sm:$0xff]  ;;  %v10202_v2 = vld [vmem:[%s10923_s20 + $0x9f0] sm:$0xff] }
 0x517   : > { %2403 = vadd.xlane.f32.xlu1 %v13161_v50  ;;  %10321 = vmatmul.msk.f32.vlgmr.msrb.gmra.mxu2 %vm415_vm1, %v13151_v44  ;;  %v10243_v50 = vld [vmem:[%s10923_s20 + $0xb38] sm:$0xf]  ;;  %v4608_v43 = vadd.f32 %v4595_v39, %v4594_v40  ;;  %v10192_v16 = vld [vmem:[%s10923_s20 + $0x9a0] sm:$0xff]  ;;  %v4634_v10 = vmul.f32 %v9804_v12, %v13243_v15  ;;  %v4635_v37 = vmul.f32 %v9805_v41, %v13253_v19  ;;  %v9803_v40 = vld [vmem:[%s16306_s5 + $0x328] sm:$0xff] }
 0x518   : > { %10293 = vmatmul.msk.f32.vlgmr.msra.gmra.mxu0 %vm415_vm1, %v13151_v44  ;;  %10328 = vmatpush.msk.msra.mxu2 %vm419_vm0, %v10250_v4  ;;  %v9802_v4 = vld [vmem:[%s16306_s5 + $0x320] sm:$0xff]  ;;  %v13692_v11 = vadd.f32 %v4612_v47, %v4599_v60  ;;  %v4636_v60 = vmul.f32 %v9806_v53, %v13271_v35  ;;  %v4631_v41 = vmul.f32 %v9801_v25, %v13374_v0  ;;  %v9808_v47 = vld [vmem:[%s16306_s5 + $0x350] sm:$0xff]  ;;  %v13735_v25 = vpop.f32.mrf.mxu0 }
 0x519   : > { %10295 = vmatmul.msk.f32.vlgmr.msra.gmra.mxu1 %vm415_vm1, %v13151_v44  ;;  %2485 = vadd.xlane.f32.xlu0 %v13176_v27  ;;  %v10195_v27 = vld [vmem:[%s10923_s20 + $0x9b8] sm:$0xff]  ;;  %v13702_v46 = vadd.f32 %v4608_v43, %v4596_v45  ;;  %v9790_v39 = vld [vmem:[%s16306_s5 + $0x2c0] sm:$0xff]  ;;  %v4648_v12 = vadd.f32 %v4635_v37, %v4634_v10  ;;  %v4632_v45 = vmul.f32 %v9802_v4, %v13376_v34  ;;  %v9799_v10 = vld [vmem:[%s16306_s5 + $0x308] sm:$0xff] }
 0x51a   : > { %10299 = vmatmul.msk.f32.vlgmr.msra.gmra.mxu3 %vm415_vm1, %v13151_v44  ;;  %10310 = vmatpush.msk.msra.mxu1 %vm419_vm0, %v10241_v22  ;;  %v4568_v22 = vadd.f32 %v4555_v3, %v4554_v49  ;;  %v10254_v49 = vld [vmem:[%s10923_s20 + $0xb90] sm:$0xf]  ;;  %v9798_v43 = vld [vmem:[%s16306_s5 + $0x300] sm:$0xff]  ;;  %v13733_v3 = vpop.f32.mrf.mxu2  ;;  %16485 = vst [vmem:[#allocation16_spill] sm:$0xff] %v13735_v25 }
 0x51b   : > { %10314 = vmatpush.msk.msra.mxu3 %vm419_vm0, %v10243_v50  ;;  %10308 = vmatpush.msk.msra.mxu0 %vm419_vm0, %v10240_v32  ;;  %v9791_v50 = vld [vmem:[%s16306_s5 + $0x2c8] sm:$0xff]  ;;  %16484 = vst [vmem:[#allocation6_spill] sm:$0xff] %v13733_v3  ;;  %v13737_v4 = vadd.f32 %v4648_v12, %v4636_v60  ;;  %v9800_v37 = vld [vmem:[%s16306_s5 + $0x310] sm:$0xff]  ;;  %v10247_v12 = vld [vmem:[%s10923_s20 + $0xb58] sm:$0xf] }
 0x51c   : > { %2481 = vadd.xlane.f32.xlu2 %v13197_v28  ;;  %7619 = vmatpush.msra.mxu1 %v10193_v7  ;;  %v9807_v32 = vld [vmem:[%s16306_s5 + $0x348] sm:$0xff]  ;;  %v13724_v28 = vmul.f32 %v9723_v57, %v13419_v23  ;;  %v13727_v53 = vadd.f32 %v4568_v22, %v4556_v30  ;;  %v4591_v7 = vmul.f32 %v9789_v62, %v13374_v0  ;;  %v13751_v62 = vpop.f32.mrf.mxu1 }
 0x51d   : > { %7659 = vmatpush.msra.mxu3 %v10195_v27  ;;  %7599 = vmatpush.msra.mxu0 %v10192_v16  ;;  %v4633_v57 = vmul.f32 %v9803_v40, %v13426_v54  ;;  %v4644_v27 = vadd.f32 %v4632_v45, %v4631_v41  ;;  %v4592_v30 = vmul.f32 %v9790_v39, %v13376_v34  ;;  %v9809_v16 = vld [vmem:[%s16306_s5 + $0x358] sm:$0xff]  ;;  %v9810_v39 = vld [vmem:[%s16306_s5 + $0x360] sm:$0xff]  ;;  %v9724_v41 = vld [vmem:[%s16306_s5 + $0xb0] sm:$0xff] }
 0x51e   : > { %7799 = vmatpush.msra.mxu2 %v10202_v2  ;;  %16486 = vst [vmem:[#allocation9_spill] sm:$0xff] %v13751_v62  ;;  %v10245_v2 = vld [vmem:[%s10923_s20 + $0xb48] sm:$0xf]  ;;  %v4593_v22 = vmul.f32 %v9791_v50, %v13426_v54  ;;  %v4637_v60 = vmul.f32 %v9807_v32, %v13419_v23  ;;  %v4638_v40 = vmul.f32 %v9808_v47, %v13432_v14  ;;  %v10244_v45 = vld [vmem:[%s10923_s20 + $0xb40] sm:$0xf] }
 0x51f   : > { %2440 = vadd.xlane.f32.xlu1 %v13222_v51  ;;  %10329 = vmatmul.msk.f32.vlgmr.msra.gmra.mxu2 %vm415_vm1, %v13151_v44  ;;  %v9811_v51 = vld [vmem:[%s16306_s5 + $0x368] sm:$0xff]  ;;  %v13773_v50 = vadd.f32 %v4644_v27, %v4633_v57  ;;  %v4604_v32 = vadd.f32 %v4592_v30, %v4591_v7  ;;  %v4628_v47 = vmul.f32 %v9798_v43, %v13356_v42  ;;  %v9820_v43 = vld [vmem:[%s16306_s5 + $0x3b0] sm:$0xff]  ;;  %v10196_v30 = vld [vmem:[%s10923_s20 + $0x9c0] sm:$0xff] }
 0x520   : > { %10301 = vmatmul.msk.f32.vlgmr.msrb.gmra.mxu0 %vm415_vm1, %v13151_v44  ;;  %10336 = vmatpush.msk.msrb.mxu2 %vm419_vm0, %v10254_v49  ;;  %v4639_v3 = vmul.f32 %v9809_v16, %v13551_v20  ;;  %v4652_v49 = vadd.f32 %v4638_v40, %v4637_v60  ;;  %v4629_v57 = vmul.f32 %v9799_v10, %v13388_v59  ;;  %v9819_v7 = vld [vmem:[%s16306_s5 + $0x3a8] sm:$0xff]  ;;  %v9821_v40 = vld [vmem:[%s16306_s5 + $0x3b8] sm:$0xff]  ;;  %v10208_v62 = vld [vmem:[%s10923_s20 + $0xa20] sm:$0xff] }
 0x521   : > { %10303 = vmatmul.msk.f32.vlgmr.msrb.gmra.mxu1 %vm415_vm1, %v13151_v44  ;;  %4326 = vadd.xlane.f32.xlu0 %v13497_v29  ;;  %v10199_v29 = vld [vmem:[%s10923_s20 + $0x9d8] sm:$0xff]  ;;  %v13798_v16 = vadd.f32 %v4604_v32, %v4593_v22  ;;  %v4668_v10 = vmul.f32 %v9810_v39, %v13356_v42  ;;  %v4669_v60 = vmul.f32 %v9811_v51, %v13388_v59  ;;  %v9814_v51 = vld [vmem:[%s16306_s5 + $0x380] sm:$0xff] }
 0x522   : > { %10307 = vmatmul.msk.f32.vlgmr.msrb.gmra.mxu3 %vm415_vm1, %v13151_v44  ;;  %v13793_v27 = vpop.f32.mrf.mxu3  ;;  %10318 = vmatpush.msk.msrb.mxu1 %vm419_vm0, %v10245_v2  ;;  %v13808_v17 = vadd.f32 %v4652_v49, %v4639_v3  ;;  %v4630_v2 = vmul.f32 %v9800_v37, %v13447_v5  ;;  %v4640_v22 = vadd.f32 %v4629_v57, %v4628_v47  ;;  %v9813_v39 = vld [vmem:[%s16306_s5 + $0x378] sm:$0xff]  ;;  %v9816_v37 = vld [vmem:[%s16306_s5 + $0x390] sm:$0xff]  ;;  %v9815_v57 = vld [vmem:[%s16306_s5 + $0x388] sm:$0xff] }
 0x523   : > { %10322 = vmatpush.msk.msrb.mxu3 %vm419_vm0, %v10247_v12  ;;  %10316 = vmatpush.msk.msrb.mxu0 %vm419_vm0, %v10244_v45  ;;  %v4670_v12 = vmul.f32 %v9812_v24, %v13447_v5  ;;  %v4680_v45 = vadd.f32 %v4669_v60, %v4668_v10  ;;  %v4677_v3 = vmul.f32 %v9819_v7, %v13419_v23  ;;  %v9817_v32 = vld [vmem:[%s16306_s5 + $0x398] sm:$0xff]  ;;  %v10258_v24 = vld [vmem:[%s10923_s20 + $0xbb0] sm:$0xf]  ;;  %v10249_v60 = vld [vmem:[%s10923_s20 + $0xb68] sm:$0xf] }
 0x524   : > { %4322 = vadd.xlane.f32.xlu2 %v13514_v58  ;;  %7699 = vmatpush.msrb.mxu1 %v10197_v13  ;;  %v4307_v47 = vld [vmem:[%s16306_s5 + $0x58] sm:$0xff]  ;;  %v4358_v13 = vmul.f32 %v9724_v41, %v13432_v14  ;;  %v13831_v58 = vadd.f32 %v4640_v22, %v4630_v2  ;;  %v4678_v49 = vmul.f32 %v9820_v43, %v13432_v14  ;;  %v13845_v43 = vpop.xlane.xlu2 %2108 }
 0x525   : > { %7739 = vmatpush.msrb.mxu3 %v10199_v29  ;;  %7679 = vmatpush.msrb.mxu0 %v10196_v30  ;;  %v13837_v7 = vadd.f32 %v4680_v45, %v4670_v12  ;;  %v4679_v10 = vmul.f32 %v9821_v40, %v13551_v20  ;;  %v4671_v29 = vmul.f32 %v9813_v39, %v13374_v0  ;;  %v9818_v30 = vld [vmem:[%s16306_s5 + $0x3a0] sm:$0xff] }
 0x526   : > { %7879 = vmatpush.msrb.mxu2 %v10206_v48  ;;  %v4672_v41 = vmul.f32 %v9814_v51, %v13376_v34  ;;  %v4692_v48 = vadd.f32 %v4678_v49, %v4677_v3  ;;  %v4674_v40 = vmul.f32 %v9816_v37, %v13243_v15  ;;  %v4675_v2 = vmul.f32 %v9817_v32, %v13253_v19  ;;  %v13856_v51 = vpop.f32.mrf.mxu0  ;;  %v10248_v12 = vld [vmem:[%s10923_s20 + $0xb60] sm:$0xf]  ;;  %v13867_v37 = vpop.f32.mrf.mxu1  ;;  %v9725_v32 = vld [vmem:[%s16306_s5 + $0xb8] sm:$0xff] }
 0x527   : > { %16487 = vst [vmem:[#allocation15_spill] sm:$0xff] %v13837_v7  ;;  %2477 = vadd.xlane.f32.xlu1 %v13525_v56  ;;  %10337 = vmatmul.msk.f32.vlgmr.msrb.gmra.mxu2 %vm415_vm1, %v13151_v44  ;;  %v4319_v22 = vmul.f32 %v4307_v47, %v13551_v20  ;;  %v10251_v56 = vld [vmem:[%s10923_s20 + $0xb78] sm:$0xf]  ;;  %v4673_v45 = vmul.f32 %v9815_v57, %v13426_v54  ;;  %v10201_v47 = vld [vmem:[%s10923_s20 + $0x9e8] sm:$0xff] }
 0x528   : > { %v13854_v39 = vpop.f32.mrf.mxu2  ;;  %16488 = vst [vmem:[#allocation8_spill] sm:$0xff] %v13856_v51  ;;  %10309 = vmatmul.msk.f32.vlgmr.msra.gmra.mxu0 %vm415_vm1, %v13151_v44  ;;  %10344 = vmatpush.msk.msra.mxu2 %vm419_vm0, %v10258_v24  ;;  %v4684_v3 = vadd.f32 %v4672_v41, %v4671_v29  ;;  %v4302_v24 = vld [vmem:[%s16306_s5 + $0x30] sm:$0xff]  ;;  %v13876_v49 = vadd.f32 %v4692_v48, %v4679_v10  ;;  %v10203_v7 = vld [vmem:[%s10923_s20 + $0x9f8] sm:$0xff] }
 0x529   : > { %10311 = vmatmul.msk.f32.vlgmr.msra.gmra.mxu1 %vm415_vm1, %v13151_v44  ;;  %4362 = vadd.xlane.f32.xlu0 %v13527_v6  ;;  %16489 = vst [vmem:[#allocation17_spill] sm:$0xff] %v13867_v37  ;;  %v4676_v57 = vmul.f32 %v9818_v30, %v13271_v35  ;;  %v4688_v29 = vadd.f32 %v4675_v2, %v4674_v40  ;;  %v4303_v37 = vld [vmem:[%s16306_s5 + $0x38] sm:$0xff]  ;;  %v9732_v48 = vld [vmem:[%s16306_s5 + $0xf0] sm:$0xff] }
 0x52a   : > { %16490 = vst [vmem:[#allocation10_spill] sm:$0xff] %v13876_v49  ;;  %10315 = vmatmul.msk.f32.vlgmr.msra.gmra.mxu3 %vm415_vm1, %v13151_v44  ;;  %v4333_v6 = vadd.f32 %v13529_v21, %v4319_v22  ;;  %v13882_v41 = vpop.f32.mrf.mxu3  ;;  %10326 = vmatpush.msk.msra.mxu1 %vm419_vm0, %v10249_v60  ;;  %v13890_v10 = vadd.f32 %v4684_v3, %v4673_v45  ;;  %v10210_v44 = vld [vmem:[%s10923_s20 + $0xa30] sm:$0xff] }
 0x52b   : > { %v4372_v30 = vadd.f32 %v4358_v13, %v13724_v28  ;;  %10330 = vmatpush.msk.msra.mxu3 %vm419_vm0, %v10251_v56  ;;  %10324 = vmatpush.msk.msra.mxu0 %vm419_vm0, %v10248_v12  ;;  %v13896_v21 = vadd.f32 %v4688_v29, %v4676_v57  ;;  %v9733_v28 = vld [vmem:[%s16306_s5 + $0xf8] sm:$0xff]  ;;  %v4359_v13 = vmul.f32 %v9725_v32, %v13551_v20  ;;  %v10262_v22 = vld [vmem:[%s10923_s20 + $0xbd0] sm:$0xf]  ;;  %v13925_v32 = vld [vmem:[%s16302_s1] sm:$0xff] }
 0x52c   : > { %16491 = vst [vmem:[#allocation19_spill] sm:$0xff] %v13890_v10  ;;  %4334 = vadd.xlane.f32.xlu2 %v4333_v6  ;;  %v13898_v60 = vpop.xlane.xlu0 %2112  ;;  %7779 = vmatpush.msra.mxu1 %v10201_v47  ;;  %v4314_v40 = vmul.f32 %v4302_v24, %v13243_v15  ;;  %v4315_v2 = vmul.f32 %v4303_v37, %v13253_v19  ;;  %v10253_v37 = vld [vmem:[%s10923_s20 + $0xb88] sm:$0xf]  ;;  %v4304_v47 = vld [vmem:[%s16306_s5 + $0x40] sm:$0xff]  ;;  %v10255_v24 = vld [vmem:[%s10923_s20 + $0xb98] sm:$0xf] }
 0x52d   : > { %16492 = vst [vmem:[#allocation13_spill] sm:$0xff] %v13896_v21  ;;  %7819 = vmatpush.msra.mxu3 %v10203_v7  ;;  %7759 = vmatpush.msra.mxu0 %v10200_v31  ;;  %v4373_v12 = vadd.f32 %v4372_v30, %v4359_v13  ;;  %v4394_v45 = vmul.f32 %v9732_v48, %v13243_v15  ;;  %v9729_v7 = vld [vmem:[%s16306_s5 + $0xd8] sm:$0xff]  ;;  %v9730_v31 = vld [vmem:[%s16306_s5 + $0xe0] sm:$0xff]  ;;  %v10205_v30 = vld [vmem:[%s10923_s20 + $0xa08] sm:$0xff] }
 0x52e   : > { %7959 = vmatpush.msra.mxu2 %v10210_v44  ;;  %v13910_v56 = vpop.xlane.xlu2 %2120  ;;  %v4395_v3 = vmul.f32 %v9733_v28, %v13253_v19  ;;  %v10252_v57 = vld [vmem:[%s10923_s20 + $0xb80] sm:$0xf]  ;;  %v4328_v29 = vadd.f32 %v4315_v2, %v4314_v40  ;;  %v9717_v44 = vld [vmem:[%s16306_s5 + $0x78] sm:$0xff]  ;;  %v13952_v28 = vpop.f32.mrf.mxu0  ;;  %v4391_v13 = vmul.f32 %v9729_v7, %v13374_v0  ;;  %v4392_v40 = vmul.f32 %v9730_v31, %v13376_v34  ;;  %v10214_v7 = vld [vmem:[%s10923_s20 + $0xa50] sm:$0xff] }
 0x52f   : > { %2489 = vadd.xlane.f32.xlu1 %v13293_v26  ;;  %10345 = vmatmul.msk.f32.vlgmr.msra.gmra.mxu2 %vm415_vm1, %v13925_v32  ;;  %v9734_v6 = vld [vmem:[%s16306_s5 + $0x100] sm:$0xff]  ;;  %16495 = vst [vmem:[#allocation25_spill] sm:$0xff] %v13952_v28  ;;  %v10207_v2 = vld [vmem:[%s10923_s20 + $0xa18] sm:$0xff]  ;;  %v13962_v21 = vpop.f32.mrf.mxu1  ;;  %v4316_v10 = vmul.f32 %v4304_v47, %v13271_v35  ;;  %v9731_v47 = vld [vmem:[%s16306_s5 + $0xe8] sm:$0xff] }
 0x530   : > { %v13929_v26 = vpop.f32.mrf.mxu2  ;;  %10317 = vmatmul.msk.f32.vlgmr.msrb.gmra.mxu0 %vm415_vm1, %v13925_v32  ;;  %10352 = vmatpush.msk.msrb.mxu2 %vm419_vm0, %v10262_v22  ;;  %v9718_v22 = vld [vmem:[%s16306_s5 + $0x80] sm:$0xff]  ;;  %16496 = vst [vmem:[#allocation23_spill] sm:$0xff] %v13962_v21  ;;  %v4408_v49 = vadd.f32 %v4395_v3, %v4394_v45  ;;  %v9741_v21 = vld [vmem:[%s16306_s5 + $0x138] sm:$0xff] }
 0x531   : > { %16493 = vst [vmem:[#allocation21_spill] sm:$0xff] %v13929_v26  ;;  %10319 = vmatmul.msk.f32.vlgmr.msrb.gmra.mxu1 %vm415_vm1, %v13925_v32  ;;  %4374 = vadd.xlane.f32.xlu0 %v4373_v12  ;;  %v10204_v12 = vld [vmem:[%s10923_s20 + $0xa00] sm:$0xff]  ;;  %v4329_v3 = vadd.f32 %v4328_v29, %v4316_v10  ;;  %v4431_v29 = vmul.f32 %v9741_v21, %v13374_v0  ;;  %v9719_v21 = vld [vmem:[%s16306_s5 + $0x88] sm:$0xff] }
 0x532   : > { %10323 = vmatmul.msk.f32.vlgmr.msrb.gmra.mxu3 %vm415_vm1, %v13925_v32  ;;  %v13950_v48 = vpop.f32.mrf.mxu3  ;;  %10334 = vmatpush.msk.msrb.mxu1 %vm419_vm0, %v10253_v37  ;;  %v4396_v37 = vmul.f32 %v9734_v6, %v13271_v35  ;;  %v9742_v45 = vld [vmem:[%s16306_s5 + $0x140] sm:$0xff]  ;;  %v4404_v6 = vadd.f32 %v4392_v40, %v4391_v13  ;;  %v10257_v13 = vld [vmem:[%s10923_s20 + $0xba8] sm:$0xf]  ;;  %v4393_v40 = vmul.f32 %v9731_v47, %v13426_v54 }
 0x533   : > { %16494 = vst [vmem:[#allocation22_spill] sm:$0xff] %v13950_v48  ;;  %10338 = vmatpush.msk.msrb.mxu3 %vm419_vm0, %v10255_v24  ;;  %10332 = vmatpush.msk.msrb.mxu0 %vm419_vm0, %v10252_v57  ;;  %v4352_v24 = vmul.f32 %v9718_v22, %v13376_v34  ;;  %v10266_v57 = vld [vmem:[%s10923_s20 + $0xbf0] sm:$0xf]  ;;  %v4432_v33 = vmul.f32 %v9742_v45, %v13376_v34  ;;  %v10259_v22 = vld [vmem:[%s10923_s20 + $0xbb8] sm:$0xf]  ;;  %v10209_v45 = vld [vmem:[%s10923_s20 + $0xa28] sm:$0xff] }
 0x534   : > { %4370 = vadd.xlane.f32.xlu2 %v13319_v52  ;;  %v13969_v31 = vpop.xlane.xlu0 %2153  ;;  %7859 = vmatpush.msrb.mxu1 %v10205_v30  ;;  %v4351_v52 = vmul.f32 %v9717_v44, %v13374_v0  ;;  %v4409_v10 = vadd.f32 %v4408_v49, %v4396_v37  ;;  %v9738_v44 = vld [vmem:[%s16306_s5 + $0x120] sm:$0xff]  ;;  %v9743_v37 = vld [vmem:[%s16306_s5 + $0x148] sm:$0xff]  ;;  %v4405_v47 = vadd.f32 %v4404_v6, %v4393_v40  ;;  %v10218_v6 = vld [vmem:[%s10923_s20 + $0xa70] sm:$0xff] }
 0x535   : > { %7899 = vmatpush.msrb.mxu3 %v10207_v2  ;;  %7839 = vmatpush.msrb.mxu0 %v10204_v12  ;;  %v9739_v2 = vld [vmem:[%s16306_s5 + $0x128] sm:$0xff]  ;;  %v10256_v12 = vld [vmem:[%s10923_s20 + $0xba0] sm:$0xf]  ;;  %v4353_v55 = vmul.f32 %v9719_v21, %v13426_v54  ;;  %v4444_v28 = vadd.f32 %v4432_v33, %v4431_v29 }
 0x536   : > { %8039 = vmatpush.msrb.mxu2 %v10214_v7  ;;  %v13984_v30 = vpop.xlane.xlu2 %2149  ;;  %v4364_v7 = vadd.f32 %v4352_v24, %v4351_v52  ;;  %v4429_v52 = vmul.f32 %v9739_v2, %v13388_v59  ;;  %v10211_v24 = vld [vmem:[%s10923_s20 + $0xa38] sm:$0xff]  ;;  %v9750_v40 = vld [vmem:[%s16306_s5 + $0x180] sm:$0xff]  ;;  %v9751_v33 = vld [vmem:[%s16306_s5 + $0x188] sm:$0xff] }
 0x537   : > { %4330 = vadd.xlane.f32.xlu1 %v4329_v3  ;;  %10353 = vmatmul.msk.f32.vlgmr.msrb.gmra.mxu2 %vm415_vm1, %v13925_v32  ;;  %v9726_v3 = vld [vmem:[%s16306_s5 + $0xc0] sm:$0xff] }
 0x538   : > { %v13998_v49 = vpop.f32.mrf.mxu2  ;;  %10325 = vmatmul.msk.f32.vlgmr.msra.gmra.mxu0 %vm415_vm1, %v13925_v32  ;;  %10360 = vmatpush.msk.msra.mxu2 %vm419_vm0, %v10266_v57  ;;  %v4365_v21 = vadd.f32 %v4364_v7, %v4353_v55  ;;  %v4468_v55 = vmul.f32 %v9750_v40, %v13356_v42  ;;  %v4469_v7 = vmul.f32 %v9751_v33, %v13388_v59  ;;  %v9735_v40 = vld [vmem:[%s16306_s5 + $0x108] sm:$0xff] }
 0x539   : > { %16497 = vst [vmem:[#allocation63_spill] sm:$0xff] %v13998_v49  ;;  %10327 = vmatmul.msk.f32.vlgmr.msra.gmra.mxu1 %vm415_vm1, %v13925_v32  ;;  %4410 = vadd.xlane.f32.xlu0 %v4409_v10  ;;  %v4428_v49 = vmul.f32 %v9738_v44, %v13356_v42  ;;  %v9727_v10 = vld [vmem:[%s16306_s5 + $0xc8] sm:$0xff] }
 0x53a   : > { %10331 = vmatmul.msk.f32.vlgmr.msra.gmra.mxu3 %vm415_vm1, %v13925_v32  ;;  %v14019_v57 = vpop.f32.mrf.mxu3  ;;  %10342 = vmatpush.msk.msra.mxu1 %vm419_vm0, %v10257_v13  ;;  %v4433_v13 = vmul.f32 %v9743_v37, %v13426_v54  ;;  %v4389_v37 = vmul.f32 %v9727_v10, %v13388_v59  ;;  %v10263_v59 = vld [vmem:[%s10923_s20 + $0xbd8] sm:$0xf]  ;;  %v4480_v51 = vadd.f32 %v4469_v7, %v4468_v55 }
 0x53b   : > { %16498 = vst [vmem:[#allocation48_spill] sm:$0xff] %v14019_v57  ;;  %10346 = vmatpush.msk.msra.mxu3 %vm419_vm0, %v10259_v22  ;;  %10340 = vmatpush.msk.msra.mxu0 %vm419_vm0, %v10256_v12  ;;  %v9740_v22 = vld [vmem:[%s16306_s5 + $0x130] sm:$0xff]  ;;  %v4388_v12 = vmul.f32 %v9726_v3, %v13356_v42  ;;  %v9747_v3 = vld [vmem:[%s16306_s5 + $0x168] sm:$0xff]  ;;  %v9749_v7 = vld [vmem:[%s16306_s5 + $0x178] sm:$0xff] }
 0x53c   : > { %4406 = vadd.xlane.f32.xlu2 %v4405_v47  ;;  %v14033_v44 = vpop.xlane.xlu0 %2190  ;;  %v14035_v2 = vpop.f32.mrf.mxu0  ;;  %7939 = vmatpush.msra.mxu1 %v10209_v45  ;;  %v4440_v45 = vadd.f32 %v4429_v52, %v4428_v49  ;;  %v10261_v49 = vld [vmem:[%s10923_s20 + $0xbc8] sm:$0xf]  ;;  %v4430_v52 = vmul.f32 %v9740_v22, %v13447_v5  ;;  %v9728_v42 = vld [vmem:[%s16306_s5 + $0xd0] sm:$0xff]  ;;  %v4437_v22 = vmul.f32 %v9747_v3, %v13419_v23 }
 0x53d   : > { %v14044_v29 = vpop.f32.mrf.mxu1  ;;  %7979 = vmatpush.msra.mxu3 %v10211_v24  ;;  %7919 = vmatpush.msra.mxu0 %v10208_v62  ;;  %v9748_v62 = vld [vmem:[%s16306_s5 + $0x170] sm:$0xff]  ;;  %v10260_v24 = vld [vmem:[%s10923_s20 + $0xbc0] sm:$0xf]  ;;  %v4400_v10 = vadd.f32 %v4389_v37, %v4388_v12  ;;  %v10215_v12 = vld [vmem:[%s10923_s20 + $0xa58] sm:$0xff]  ;;  %v4390_v26 = vmul.f32 %v9728_v42, %v13447_v5 }
 0x53e   : > { %16499 = vst [vmem:[#allocation46_spill] sm:$0xff] %v14044_v29  ;;  %8119 = vmatpush.msra.mxu2 %v10218_v6  ;;  %v14051_v47 = vpop.xlane.xlu2 %2161  ;;  %v4445_v29 = vadd.f32 %v4444_v28, %v4433_v13  ;;  %v9752_v6 = vld [vmem:[%s16306_s5 + $0x190] sm:$0xff]  ;;  %v10213_v13 = vld [vmem:[%s10923_s20 + $0xa48] sm:$0xff]  ;;  %v4441_v33 = vadd.f32 %v4440_v45, %v4430_v52 }
 0x53f   : > { %4366 = vadd.xlane.f32.xlu1 %v4365_v21  ;;  %10361 = vmatmul.msk.f32.vlgmr.msra.gmra.mxu2 %vm415_vm1, %v13925_v32  ;;  %v9736_v37 = vld [vmem:[%s16306_s5 + $0x110] sm:$0xff]  ;;  %v4470_v3 = vmul.f32 %v9752_v6, %v13447_v5  ;;  %v4401_v55 = vadd.f32 %v4400_v10, %v4390_v26  ;;  %v4397_v5 = vmul.f32 %v9735_v40, %v13419_v23 }
 0x540   : > { %v14065_v28 = vpop.f32.mrf.mxu2  ;;  %10333 = vmatmul.msk.f32.vlgmr.msrb.gmra.mxu0 %vm415_vm1, %v13925_v32  ;;  %v4398_v42 = vmul.f32 %v9736_v37, %v13432_v14  ;;  %v9756_v40 = vld [vmem:[%s16306_s5 + $0x1b0] sm:$0xff]  ;;  %v9761_v37 = vld [vmem:[%s16306_s5 + $0x1d8] sm:$0xff] }
 0x541   : > { %16500 = vst [vmem:[#allocation34_spill] sm:$0xff] %v14065_v28  ;;  %10335 = vmatmul.msk.f32.vlgmr.msrb.gmra.mxu1 %vm415_vm1, %v13925_v32  ;;  %4446 = vadd.xlane.f32.xlu0 %v4445_v29  ;;  %v4438_v29 = vmul.f32 %v9748_v62, %v13432_v14  ;;  %v10212_v28 = vld [vmem:[%s10923_s20 + $0xa40] sm:$0xff]  ;;  %v9759_v62 = vld [vmem:[%s16306_s5 + $0x1c8] sm:$0xff] }
 0x542   : > { %10339 = vmatmul.msk.f32.vlgmr.msrb.gmra.mxu3 %vm415_vm1, %v13925_v32  ;;  %v14085_v21 = vpop.xlane.xlu1 %2116  ;;  %10350 = vmatpush.msk.msrb.mxu1 %vm419_vm0, %v10261_v49  ;;  %v9760_v49 = vld [vmem:[%s16306_s5 + $0x1d0] sm:$0xff]  ;;  %v4477_v26 = vmul.f32 %v9759_v62, %v13419_v23  ;;  %v9737_v23 = vld [vmem:[%s16306_s5 + $0x118] sm:$0xff] }
 0x543   : > { %v14095_v57 = vpop.f32.mrf.mxu3  ;;  %10354 = vmatpush.msk.msrb.mxu3 %vm419_vm0, %v10263_v59  ;;  %10348 = vmatpush.msk.msrb.mxu0 %vm419_vm0, %v10260_v24  ;;  %v4452_v24 = vadd.f32 %v4438_v29, %v4437_v22  ;;  %v4478_v10 = vmul.f32 %v9760_v49, %v13432_v14  ;;  %v4439_v22 = vmul.f32 %v9749_v7, %v13551_v20  ;;  %v10267_v14 = vld [vmem:[%s10923_s20 + $0xbf8] sm:$0xf]  ;;  %v9744_v62 = vld [vmem:[%s16306_s5 + $0x150] sm:$0xff] }
 0x544   : > { %4442 = vadd.xlane.f32.xlu2 %v4441_v33  ;;  %v14100_v45 = vpop.xlane.xlu0 %2202  ;;  %8019 = vmatpush.msrb.mxu1 %v10213_v13  ;;  %v4481_v13 = vadd.f32 %v4480_v51, %v4470_v3  ;;  %v10265_v33 = vld [vmem:[%s10923_s20 + $0xbe8] sm:$0xf]  ;;  %v10264_v51 = vld [vmem:[%s10923_s20 + $0xbe0] sm:$0xf]  ;;  %v4474_v7 = vmul.f32 %v9756_v40, %v13243_v15  ;;  %v4479_v40 = vmul.f32 %v9761_v37, %v13551_v20 }
 0x545   : > { %v14109_v52 = vpop.f32.mrf.mxu0  ;;  %8059 = vmatpush.msrb.mxu3 %v10215_v12  ;;  %7999 = vmatpush.msrb.mxu0 %v10212_v28  ;;  %v9757_v28 = vld [vmem:[%s16306_s5 + $0x1b8] sm:$0xff]  ;;  %v4412_v12 = vadd.f32 %v4398_v42, %v4397_v5  ;;  %v10217_v3 = vld [vmem:[%s10923_s20 + $0xa68] sm:$0xff]  ;;  %v4453_v49 = vadd.f32 %v4452_v24, %v4439_v22  ;;  %v4492_v48 = vadd.f32 %v4478_v10, %v4477_v26 }
 0x546   : > { %16501 = vst [vmem:[#allocation47_spill] sm:$0xff] %v14109_v52  ;;  %v14116_v59 = vpop.f32.mrf.mxu1  ;;  %v14118_v6 = vpop.xlane.xlu2 %2198  ;;  %v10219_v5 = vld [vmem:[%s10923_s20 + $0xa78] sm:$0xff]  ;;  %v4399_v52 = vmul.f32 %v9737_v23, %v13551_v20  ;;  %v9758_v23 = vld [vmem:[%s16306_s5 + $0x1c0] sm:$0xff]  ;;  %v4434_v20 = vmul.f32 %v9744_v62, %v13243_v15 }
 0x547   : > { %16502 = vst [vmem:[#allocation33_spill] sm:$0xff] %v14116_v59  ;;  %4402 = vadd.xlane.f32.xlu1 %v4401_v55  ;;  %v9745_v42 = vld [vmem:[%s16306_s5 + $0x158] sm:$0xff]  ;;  %v10216_v59 = vld [vmem:[%s10923_s20 + $0xa60] sm:$0xff]  ;;  %s14467_s20 = scalar_lea.vmem [#allocation2], %s9219_s19 }
 0x548   : > { %10341 = vmatmul.msk.f32.vlgmr.msra.gmra.mxu0 %vm415_vm1, %v13925_v32  ;;  %v4413_v10 = vadd.f32 %v4412_v12, %v4399_v52  ;;  %v9765_v12 = vld [vmem:[%s16306_s5 + $0x1f8] sm:$0xff]  ;;  %v9766_v62 = vld [vmem:[%s16306_s5 + $0x200] sm:$0xff]  ;;  %s9150_s8 = sshll.u32 %s14467_s20, 4  ;;  %s9151_s8 = int_to_ptr.vmem [resolvable:$true] %s9150_s8 }
 0x549   : > { %10343 = vmatmul.msk.f32.vlgmr.msra.gmra.mxu1 %vm415_vm1, %v13925_v32  ;;  %4482 = vadd.xlane.f32.xlu0 %v4481_v13  ;;  %v14139_v29 = vpop.f32.mrf.mxu2  ;;  %v4475_v13 = vmul.f32 %v9757_v28, %v13253_v19  ;;  %v9768_v28 = vld [vmem:[%s16306_s5 + $0x210] sm:$0xff] }
 0x54a   : > { %10347 = vmatmul.msk.f32.vlgmr.msra.gmra.mxu3 %vm415_vm1, %v13925_v32  ;;  %v14150_v55 = vpop.xlane.xlu1 %2157  ;;  %10358 = vmatpush.msk.msra.mxu1 %vm419_vm0, %v10265_v33  ;;  %v9769_v33 = vld [vmem:[%s16306_s5 + $0x218] sm:$0xff] }
 0x54b   : > { %10362 = vmatpush.msk.msra.mxu3 %vm419_vm0, %v10267_v14  ;;  %10356 = vmatpush.msk.msra.mxu0 %vm419_vm0, %v10264_v51  ;;  %v4435_v14 = vmul.f32 %v9745_v42, %v13253_v19  ;;  %v4488_v37 = vadd.f32 %v4475_v13, %v4474_v7  ;;  %v4515_v52 = vmul.f32 %v9769_v33, %v13253_v19  ;;  %v9754_v33 = vld [vmem:[%s16306_s5 + $0x1a0] sm:$0xff]  ;;  %vm2551_vm0 = vcmask 73728  }
 0x54c   : > { %4454 = vadd.xlane.f32.xlu2 %v4453_v49  ;;  %v14163_v24 = vpop.xlane.xlu0 %2239  ;;  %8099 = vmatpush.msra.mxu1 %v10217_v3  ;;  %v4493_v49 = vadd.f32 %v4492_v48, %v4479_v40  ;;  %v9746_v48 = vld [vmem:[%s16306_s5 + $0x160] sm:$0xff]  ;;  %v4511_v42 = vmul.f32 %v9765_v12, %v13374_v0  ;;  %v4512_v40 = vmul.f32 %v9766_v62, %v13376_v34  ;;  %v9767_v62 = vld [vmem:[%s16306_s5 + $0x208] sm:$0xff] }
 0x54d   : > { %v14172_v22 = vpop.f32.mrf.mxu3  ;;  %v14174_v26 = vpop.f32.mrf.mxu0  ;;  %8139 = vmatpush.msra.mxu3 %v10219_v5  ;;  %8079 = vmatpush.msra.mxu0 %v10216_v59  ;;  %v4476_v59 = vmul.f32 %v9758_v23, %v13271_v35  ;;  %v4448_v19 = vadd.f32 %v4435_v14, %v4434_v20  ;;  %v9770_v5 = vld [vmem:[%s16306_s5 + $0x220] sm:$0xff] }
 0x54e   : > { %16503 = vst [vmem:[#allocation49_spill] sm:$0xff] %v14172_v22  ;;  %v14181_v51 = vpop.f32.mrf.mxu1  ;;  %v14183_v3 = vpop.xlane.xlu2 %2235  ;;  %v4516_v12 = vmul.f32 %v9770_v5, %v13271_v35 }
 0x54f   : > { %16504 = vst [vmem:[#allocation32_spill] sm:$0xff] %v14174_v26  ;;  %4414 = vadd.xlane.f32.xlu1 %v4413_v10  ;;  %v4514_v26 = vmul.f32 %v9768_v28, %v13243_v15  ;;  %v4489_v7 = vadd.f32 %v4488_v37, %v4476_v59  ;;  %v9753_v28 = vld [vmem:[%s16306_s5 + $0x198] sm:$0xff]  ;;  %v4436_v10 = vmul.f32 %v9746_v48, %v13271_v35  ;;  %v9755_v35 = vld [vmem:[%s16306_s5 + $0x1a8] sm:$0xff] }
 0x550   : > { %16505 = vst [vmem:[#allocation64_spill] sm:$0xff] %v14181_v51  ;;  %10349 = vmatmul.msk.f32.vlgmr.msrb.gmra.mxu0 %vm415_vm1, %v13925_v32  ;;  %v4471_v59 = vmul.f32 %v9753_v28, %v13374_v0  ;;  %v4472_v51 = vmul.f32 %v9754_v33, %v13376_v34 }
 0x551   : > { %10351 = vmatmul.msk.f32.vlgmr.msrb.gmra.mxu1 %vm415_vm1, %v13925_v32  ;;  %4494 = vadd.xlane.f32.xlu0 %v4493_v49  ;;  %v14201_v15 = vpop.f32.mrf.mxu2  ;;  %v4528_v23 = vadd.f32 %v4515_v52, %v4514_v26  ;;  %v4449_v49 = vadd.f32 %v4448_v19, %v4436_v10  ;;  %v4524_v26 = vadd.f32 %v4512_v40, %v4511_v42 }
 0x552   : > { %16506 = vst [vmem:[#allocation62_spill] sm:$0xff] %v14201_v15  ;;  %10355 = vmatmul.msk.f32.vlgmr.msrb.gmra.mxu3 %vm415_vm1, %v13925_v32  ;;  %v14205_v13 = vpop.xlane.xlu1 %2194  ;;  %v4484_v34 = vadd.f32 %v4472_v51, %v4471_v59  ;;  %v4473_v42 = vmul.f32 %v9755_v35, %v13426_v54 }
 0x554   : > { %4490 = vadd.xlane.f32.xlu2 %v4489_v7  ;;  %v14219_v20 = vpop.xlane.xlu0 %2276  ;;  %v4529_v7 = vadd.f32 %v4528_v23, %v4516_v12  ;;  %v4485_v33 = vadd.f32 %v4484_v34, %v4473_v42 }
 0x555   : > { %v14221_v14 = vpop.f32.mrf.mxu3  ;;  %v14223_v37 = vpop.f32.mrf.mxu0 }
 0x556   : > { %16507 = vst [vmem:[#allocation72_spill] sm:$0xff] %v14221_v14  ;;  %v14231_v48 = vpop.f32.mrf.mxu1  ;;  %v14233_v52 = vpop.xlane.xlu2 %2272  ;;  %v2492_v14 = vsel %vm2491_vm6, %v13845_v43, %v13984_v30 }
 0x557   : > { %16508 = vst [vmem:[#allocation65_spill] sm:$0xff] %v14223_v37  ;;  %4450 = vadd.xlane.f32.xlu1 %v4449_v49  ;;  %v4513_v37 = vmul.f32 %v9767_v62, %v13426_v54 }
 0x558   : > { %16509 = vst [vmem:[#allocation38_spill] sm:$0xff] %v14231_v48  ;;  %10357 = vmatmul.msk.f32.vlgmr.msra.gmra.mxu0 %vm415_vm1, %v13925_v32 }
 0x559   : > { %10359 = vmatmul.msk.f32.vlgmr.msra.gmra.mxu1 %vm415_vm1, %v13925_v32  ;;  %4530 = vadd.xlane.f32.xlu0 %v4529_v7  ;;  %v14243_v0 = vpop.f32.mrf.mxu2  ;;  %v4525_v19 = vadd.f32 %v4524_v26, %v4513_v37 }
 0x55a   : > { %16510 = vst [vmem:[#allocation28_spill] sm:$0xff] %v14243_v0  ;;  %10363 = vmatmul.msk.f32.vlgmr.msra.gmra.mxu3 %vm415_vm1, %v13925_v32  ;;  %v14247_v5 = vpop.xlane.xlu1 %2231  ;;  %v2494_v0 = vsel %vm2491_vm6, %v14085_v21, %v14150_v55 }
 0x55b   : > { %v2499_v21 = vsel %vm2496_vm7, %v2494_v0, %v14118_v6 }
 0x55c   : > { %4526 = vadd.xlane.f32.xlu2 %v4525_v19  ;;  %v14250_v40 = vpop.xlane.xlu0 %2313 }
 0x55d   : > { %v14252_v28 = vpop.f32.mrf.mxu3  ;;  %v14254_v10 = vpop.f32.mrf.mxu0 }
 0x55e   : > { %16511 = vst [vmem:[#allocation41_spill] sm:$0xff] %v14252_v28  ;;  %v14256_v23 = vpop.f32.mrf.mxu1  ;;  %v14258_v49 = vpop.xlane.xlu2 %2284 }
 0x55f   : > { %4486 = vadd.xlane.f32.xlu1 %v4485_v33 }
 0x561   : > { %4566 = vadd.xlane.f32.xlu0 %v13569_v1  ;;  %v14261_v32 = vpop.f32.mrf.mxu2 }
 0x562   : > { %16512 = vst [vmem:[#allocation31_spill] sm:$0xff] %v14261_v32  ;;  %v14263_v51 = vpop.xlane.xlu1 %2243 }
 0x564   : > { %4562 = vadd.xlane.f32.xlu2 %v13593_v9  ;;  %v14266_v54 = vpop.xlane.xlu0 %2325 }
 0x565   : > { %v14268_v37 = vpop.f32.mrf.mxu3  ;;  %v14270_v12 = vpop.f32.mrf.mxu0 }
 0x566   : > { %16513 = vst [vmem:[#allocation55_spill] sm:$0xff] %v14270_v12  ;;  %v14272_v62 = vpop.f32.mrf.mxu1  ;;  %v14274_v59 = vpop.xlane.xlu2 %2321 }
 0x567   : > { %16514 = vst [vmem:[#allocation40_spill] sm:$0xff] %v14272_v62  ;;  %4522 = vadd.xlane.f32.xlu1 %v13603_v18 }
 0x569   : > { %4602 = vadd.xlane.f32.xlu0 %v13631_v36  ;;  %v14278_v1 = vpop.f32.mrf.mxu2 }
 0x56a   : > { %v14280_v26 = vpop.xlane.xlu1 %2280 }
 0x56c   : > { %4574 = vadd.xlane.f32.xlu2 %v13638_v61  ;;  %v14283_v9 = vpop.xlane.xlu0 %2362 }
 0x56d   : > { %v14285_v7 = vpop.f32.mrf.mxu3  ;;  %v14287_v35 = vpop.f32.mrf.mxu0 }
 0x56e   : > { %16515 = vst [vmem:[#allocation56_spill] sm:$0xff] %v14285_v7  ;;  %v14289_v34 = vpop.f32.mrf.mxu1  ;;  %v14291_v19 = vpop.xlane.xlu2 %2358 }
 0x56f   : > { %16516 = vst [vmem:[#allocation54_spill] sm:$0xff] %v14287_v35  ;;  %4534 = vadd.xlane.f32.xlu1 %v13669_v63 }
 0x570   : > { %16517 = vst [vmem:[#allocation42_spill] sm:$0xff] %v14289_v34 }
 0x571   : > { %4614 = vadd.xlane.f32.xlu0 %v13692_v11  ;;  %v7321_v18 = vpop.f32.mrf.mxu2 }
 0x572   : > { %v2318_v36 = vpop.xlane.xlu1 %2317 }
 0x574   : > { %4610 = vadd.xlane.f32.xlu2 %v13702_v46  ;;  %v14296_v42 = vpop.xlane.xlu0 %2399 }
 0x575   : > { %v14298_v61 = vpop.f32.mrf.mxu3  ;;  %v14300_v33 = vpop.f32.mrf.mxu0 }
 0x576   : > { %16518 = vst [vmem:[#allocation26_spill] sm:$0xff] %v14298_v61  ;;  %v14302_v48 = vpop.f32.mrf.mxu1 }
 0x577   : > { %16519 = vst [vmem:[#allocation45_spill] sm:$0xff] %v14300_v33  ;;  %v14304_v35 = vpop.xlane.xlu2 %2395  ;;  %4570 = vadd.xlane.f32.xlu1 %v13727_v53 }
 0x578   : > { %16520 = vst [vmem:[#allocation29_spill] sm:$0xff] %v14302_v48 }
 0x579   : > { %4650 = vadd.xlane.f32.xlu0 %v13737_v4  ;;  %v7401_v63 = vpop.f32.mrf.mxu2 }
 0x57a   : > { %v2355_v11 = vpop.xlane.xlu1 %2354 }
 0x57c   : > { %4646 = vadd.xlane.f32.xlu2 %v13773_v50  ;;  %v14309_v34 = vpop.xlane.xlu0 %2436 }
 0x57d   : > { %v14311_v46 = vpop.f32.mrf.mxu3  ;;  %v7201_v12 = vpop.f32.mrf.mxu0 }
 0x57e   : > { %16521 = vst [vmem:[#allocation59_spill] sm:$0xff] %v14311_v46  ;;  %v7221_v61 = vpop.f32.mrf.mxu1 }
 0x57f   : > { %v14313_v7 = vpop.xlane.xlu2 %2407  ;;  %4606 = vadd.xlane.f32.xlu1 %v13798_v16  ;;  %v2493_v16 = vsel %vm2491_vm6, %v13898_v60, %v13969_v31 }
 0x581   : > { %4654 = vadd.xlane.f32.xlu0 %v13808_v17  ;;  %v14319_v53 = vpop.f32.mrf.mxu2  ;;  %v2498_v17 = vsel %vm2496_vm7, %v2493_v16, %v14205_v13 }
 0x582   : > { %v14317_v33 = vpop.xlane.xlu1 %2366  ;;  %v2503_v31 = vsel %vm2501_vm8, %v2498_v17, %v14183_v3  ;;  %v2504_v17 = vsel %vm2501_vm8, %v2499_v21, %v14163_v24 }
 0x583   : > { %v2508_v25 = vsel %vm2506_vm9, %v2503_v31, %v14219_v20  ;;  %v2509_v0 = vsel %vm2506_vm9, %v2504_v17, %v14280_v26  ;;  %v2495_v20 = vsel %vm2491_vm6, %v13910_v56, %v14051_v47 }
 0x584   : > { %v14321_v4 = vpop.xlane.xlu0 %2448  ;;  %v2514_v47 = vsel %vm2511_vm10, %v2509_v0, %v14274_v59 }
 0x585   : > { %v7261_v48 = vpop.f32.mrf.mxu3  ;;  %v7281_v50 = vpop.f32.mrf.mxu0 }
 0x586   : > { %v14323_v28 = vpop.f32.mrf.mxu1  ;;  %v8145_v55 = vmax.f32 %v7221_v61, %v7281_v50  ;;  %v8144_v16 = vmax.f32 %v7201_v12, %v7261_v48  ;;  %v16522_v48 = vld [vmem:[#allocation5_spill] sm:$0xff] }
 0x587   : > { %v14325_v46 = vpop.xlane.xlu2 %2444  ;;  %4642 = vadd.xlane.f32.xlu1 %v13831_v58  ;;  %v2497_v58 = vsel %vm2496_vm7, %v2492_v14, %v14033_v44 }
 0x588   : > { %v2502_v13 = vsel %vm2501_vm8, %v2497_v58, %v14247_v5  ;;  %v2513_v58 = vsel %vm2511_vm10, %v2508_v25, %v2318_v36  ;;  %v2500_v25 = vsel %vm2496_vm7, %v2495_v20, %v14100_v45 }
 0x589   : > { %v14343_v60 = vpop.f32.mrf.mxu2  ;;  %v2507_v3 = vsel %vm2506_vm9, %v2502_v13, %v14233_v52  ;;  %v2518_v24 = vsel %vm2516_vm11, %v2513_v58, %v14291_v19  ;;  %v2505_v56 = vsel %vm2501_vm8, %v2500_v25, %v14263_v51 }
 0x58a   : > { %v2404_v32 = vpop.xlane.xlu1 %2403  ;;  %v2512_v52 = vsel %vm2511_vm10, %v2507_v3, %v14250_v40  ;;  %v2523_v19 = vsel %vm2521_vm12, %v2518_v24, %v14296_v42  ;;  %v2510_v13 = vsel %vm2506_vm9, %v2505_v56, %v14258_v49 }
 0x58c   : > { %v14341_v22 = vpop.xlane.xlu0 %2485 }
 0x58d   : > { %v7341_v43 = vpop.f32.mrf.mxu3  ;;  %v14349_v30 = vpop.f32.mrf.mxu0 }
 0x58e   : > { %v8148_v44 = vmax.f32 %v7341_v43, %v7401_v63  ;;  %v7381_v14 = vpop.f32.mrf.mxu1  ;;  %v2519_v43 = vsel %vm2516_vm11, %v2514_v47, %v14283_v9 }
 0x58f   : > { %v2482_v15 = vpop.xlane.xlu2 %2481  ;;  %v8147_v62 = vmax.f32 %v7321_v18, %v7381_v14 }
 0x590   : > { %v8151_v5 = vmax.f32 %v8145_v55, %v8148_v44  ;;  %v2524_v55 = vsel %vm2521_vm12, %v2519_v43, %v2404_v32  ;;  %v2515_v44 = vsel %vm2511_vm10, %v2510_v13, %v14266_v54 }
 0x591   : > { %v8150_v6 = vmax.f32 %v8144_v16, %v8147_v62  ;;  %v2517_v62 = vsel %vm2516_vm11, %v2512_v52, %v2355_v11  ;;  %v7641_v31 = vpop.f32.mrf.mxu2  ;;  %v2520_v14 = vsel %vm2516_vm11, %v2515_v44, %v14317_v33  ;;  %v2529_v32 = vsel %vm2526_vm13, %v2524_v55, %v14325_v46 }
 0x592   : > { %v8154_v12 = vadd.f32 %v8151_v5, %v16522_v48  ;;  %v2441_v18 = vpop.xlane.xlu1 %2440  ;;  %v2522_v11 = vsel %vm2521_vm12, %v2517_v62, %v14304_v35  ;;  %v2534_v33 = vsel %vm2531_vm14, %v2529_v32, %v14341_v22  ;;  %v8146_v44 = vmax.f32 %v14278_v1, %v14323_v28 }
 0x593   : > { %v8153_v61 = vadd.f32 %v8150_v6, %v16522_v48  ;;  %v2528_v21 = vsel %vm2526_vm13, %v2523_v19, %v2441_v18  ;;  %v2527_v35 = vsel %vm2526_vm13, %v2522_v11, %v14309_v34  ;;  %v2540_v18 = vsel %vm2536_vm15, %v2534_v33, 0.0 }
 0x594   : > { %v14374_v26 = vpop.xlane.xlu0 %4326  ;;  %v14380_v40 = vmax.f32 %v8154_v12, 0.0  ;;  %v2533_v49 = vsel %vm2531_vm14, %v2528_v21, %v2482_v15  ;;  %v2525_v15 = vsel %vm2521_vm12, %v2520_v14, %v14313_v7 }
 0x595   : > { %v14382_v36 = vmax.f32 %v8153_v61, 0.0  ;;  %v14384_v63 = vpop.f32.mrf.mxu3  ;;  %v7441_v45 = vpop.f32.mrf.mxu0  ;;  %v2538_v54 = vsel %vm2536_vm15, %v2533_v49, 0.0  ;;  %v2530_v12 = vsel %vm2526_vm13, %v2525_v15, %v14321_v4 }
 0x596   : > { %v7461_v50 = vpop.f32.mrf.mxu1  ;;  %v8149_v21 = vmax.f32 %v14349_v30, %v14384_v63 }
 0x597   : > { %v4323_v51 = vpop.xlane.xlu2 %4322  ;;  %v14392_v59 = vpack.i.bf16 %v14380_v40, %v14382_v36 }
 0x598   : > { %v8152_v14 = vmax.f32 %v8146_v44, %v8149_v21  ;;  %v6444_v21 = vmax.f32 %v14095_v57, %v14139_v29 }
 0x599   : > { %10685 = vrot.lane.b32.xlu2 %v14392_v59, %s10824_s28 }
 0x59a   : > { %v2478_v42 = vpop.xlane.xlu1 %2477  ;;  %v14421_v46 = vpop.f32.mrf.mxu2 }
 0x59b   : > { %v2532_v9 = vsel %vm2531_vm14, %v2527_v35, %v2478_v42 }
 0x59c   : > { %v2537_v16 = vsel %vm2536_vm15, %v2532_v9, 0.0  ;;  %v4363_v3 = vpop.xlane.xlu0 %4362 }
 0x59d   : > { %v7501_v34 = vpop.f32.mrf.mxu3  ;;  %v14414_v5 = vsel %vm2491_vm6, %v4323_v51, %v4363_v3  ;;  %v7521_v17 = vpop.f32.mrf.mxu0  ;;  %v2539_v6 = vadd.f32 %v2538_v54, %v2537_v16 }
 0x59e   : > { %v7541_v58 = vpop.f32.mrf.mxu1  ;;  %v8160_v47 = vmax.f32 %v7461_v50, %v7521_v17  ;;  %v8159_v51 = vmax.f32 %v7441_v45, %v7501_v34 }
 0x59f   : > { %v4335_v0 = vpop.xlane.xlu2 %4334  ;;  %v2541_v61 = vadd.f32 %v2540_v18, %v2539_v6  ;;  %v8161_v34 = vmax.f32 %v14319_v53, %v7541_v58 }
 0x5a2   : > { %v2490_v20 = vpop.xlane.xlu1 %2489 }
 0x5a3   : > { %v2535_v52 = vsel %vm2531_vm14, %v2530_v12, %v2490_v20  ;;  %v318_v12 = vld [vmem:[%s16307_s6] sm:$0x1] }
 0x5a4   : > { %v2542_v25 = vsel %vm2536_vm15, %v2535_v52, 0.0  ;;  %v4375_v24 = vpop.xlane.xlu0 %4374 }
 0x5a5   : > { %v7581_v7 = vpop.f32.mrf.mxu3  ;;  %v2543_v62 = vadd.f32 %v2542_v25, %v2541_v61  ;;  %v14429_v22 = vsel %vm2491_vm6, %v4335_v0, %v4375_v24  ;;  %v7601_v56 = vpop.f32.mrf.mxu0  ;;  %v8155_v0 = vadd.f32 %v8152_v14, %v16522_v48 }
 0x5a6   : > { %v8163_v19 = vmax.f32 %v7581_v7, %v7641_v31  ;;  %v7621_v11 = vpop.f32.mrf.mxu1  ;;  %v14437_v31 = vpop.f32.mrf.mxu2 }
 0x5a7   : > { %v2544_v4 = vrot.slane %v2543_v62, 4  ;;  %v4371_v13 = vpop.xlane.xlu2 %4370  ;;  %v8162_v43 = vmax.f32 %v14343_v60, %v7621_v11  ;;  %v14462_v25 = vmax.f32 %v8155_v0, 0.0  ;;  %v16530_v0 = vld [vmem:[#allocation48_spill] sm:$0xff] }
 0x5a8   : > { %v8166_v55 = vmax.f32 %v8160_v47, %v8163_v19 }
 0x5a9   : > { %v2545_v35 = vadd.f32 %v2544_v4, %v2543_v62  ;;  %v8165_v42 = vmax.f32 %v8159_v51, %v8162_v43  ;;  %v10709_v57 = vpack.i.bf16 %v14462_v25, %v14380_v40 }
 0x5aa   : > { %v8169_v49 = vadd.f32 %v8166_v55, %v16522_v48  ;;  %v4331_v50 = vpop.xlane.xlu1 %4330 }
 0x5ab   : > { %v2546_v45 = vrot.slane %v2545_v35, 2  ;;  %v8168_v9 = vadd.f32 %v8165_v42, %v16522_v48  ;;  %v4698_v60 = vsel %vm2491_vm6, %v4331_v50, %v4371_v13  ;;  %v6432_v42 = vmax.f32 %v13628_v38, %v14035_v2 }
 0x5ac   : > { %v4411_v30 = vpop.xlane.xlu0 %4410  ;;  %v14442_v63 = vmax.f32 %v8169_v49, 0.0  ;;  %v6431_v2 = vmax.f32 %v13615_v8, %v13793_v27  ;;  %v16532_v27 = vld [vmem:[#allocation46_spill] sm:$0xff] }
 0x5ad   : > { %v2547_v32 = vadd.f32 %v2546_v45, %v2545_v35  ;;  %v14444_v16 = vmax.f32 %v8168_v9, 0.0  ;;  %v7661_v28 = vpop.f32.mrf.mxu3  ;;  %v14447_v1 = vsel %vm2496_vm7, %v4698_v60, %v4411_v30  ;;  %v7681_v3 = vpop.f32.mrf.mxu0  ;;  %v6443_v45 = vmax.f32 %v13854_v39, %v14256_v23  ;;  %v16525_v23 = vld [vmem:[#allocation16_spill] sm:$0xff] }
 0x5ae   : > { %16523 = vst [vmem:[#allocation44_spill] sm:$0xff] %v14442_v63  ;;  %v8164_v17 = vmax.f32 %v7601_v56, %v7661_v28  ;;  %v7701_v54 = vpop.f32.mrf.mxu1  ;;  %v7881_v56 = vpop.f32.mrf.mxu2  ;;  %v6445_v28 = vmax.f32 %v14254_v10, %v14268_v37 }
 0x5af   : > { %v2548_v15 = vrot.slane %v2547_v32, 1  ;;  %v4407_v33 = vpop.xlane.xlu2 %4406  ;;  %v10689_v6 = vpack.i.bf16 %v14442_v63, %v14444_v16  ;;  %v6455_v10 = vmax.f32 %v6431_v2, %v6443_v45 }
 0x5b0   : > { %v8167_v18 = vmax.f32 %v8161_v34, %v8164_v17  ;;  %v6434_v34 = vmax.f32 %v16525_v23, %v13882_v41  ;;  %v16526_v17 = vld [vmem:[#allocation22_spill] sm:$0xff] }
 0x5b1   : > { %v2549_v20 = vadd.f32 %v2548_v15, %v2547_v32  ;;  %10690 = vrot.lane.b32.xlu0 %v10689_v6, %s10823_s23  ;;  %v6456_v32 = vmax.f32 %v6432_v42, %v6444_v21  ;;  %v16528_v15 = vld [vmem:[#allocation40_spill] sm:$0xff] }
 0x5b2   : > { %v8170_v53 = vadd.f32 %v8167_v18, %v16522_v48  ;;  %v4367_v58 = vpop.xlane.xlu1 %4366  ;;  %v16533_v18 = vld [vmem:[#allocation24_spill] sm:$0xff] }
 0x5b3   : > { %v2550_v52 = vadd.f32 %v2549_v20, %v318_v12  ;;  %v4697_v61 = vsel %vm2491_vm6, %v14374_v26, %v4367_v58  ;;  %v16531_v12 = vld [vmem:[#allocation25_spill] sm:$0xff]  ;;  %v6433_v20 = vmax.f32 %v16533_v18, %v16532_v27  ;;  %v16534_v58 = vld [vmem:[#allocation47_spill] sm:$0xff]  ;;  %v16549_v18 = vld [vmem:[#allocation64_spill] sm:$0xff] }
 0x5b4   : > { %v14464_v24 = vmax.f32 %v8170_v53, 0.0  ;;  %v4447_v7 = vpop.xlane.xlu0 %4446  ;;  %v4701_v62 = vsel %vm2496_vm7, %v4697_v61, %v4407_v33  ;;  %v6440_v8 = vmax.f32 %v16531_v12, %v16530_v0  ;;  %v16536_v61 = vld [vmem:[#allocation62_spill] sm:$0xff] }
 0x5b5   : > { %2552 = vst.msk [vmem:[%s14467_s20] sm:$0x1] %vm2551_vm0, %v2550_v52  ;;  %v7741_v47 = vpop.f32.mrf.mxu3  ;;  %v14472_v19 = vsel %vm2501_vm8, %v4701_v62, %v4447_v7  ;;  %v7761_v11 = vpop.f32.mrf.mxu0  ;;  %v16535_v52 = vld [vmem:[#allocation9_spill] sm:$0xff]  ;;  %v6457_v21 = vmax.f32 %v6433_v20, %v6445_v28  ;;  %v16545_v28 = vld [vmem:[#allocation31_spill] sm:$0xff]  ;;  %v16550_v20 = vld [vmem:[#allocation12_spill] sm:$0xff] }
 0x5b6   : > { %16524 = vst [vmem:[#allocation60_spill] sm:$0xff] %v14464_v24  ;;  %v14474_v51 = vpop.f32.mrf.mxu1  ;;  %v10699_v26 = vpack.i.bf16 %v14462_v25, %v14464_v24  ;;  %v8175_v9 = vmax.f32 %v7701_v54, %v7761_v11  ;;  %v8174_v29 = vmax.f32 %v7681_v3, %v7741_v47  ;;  %v14496_v38 = vpop.f32.mrf.mxu2  ;;  %v16527_v3 = vld [vmem:[#allocation8_spill] sm:$0xff]  ;;  %v6435_v41 = vmax.f32 %v16535_v52, %v16534_v58  ;;  %v16537_v7 = vld [vmem:[#allocation49_spill] sm:$0xff]  ;;  %v16538_v11 = vld [vmem:[#allocation74_spill] sm:$0xff] }
 0x5b7   : > { %v4443_v4 = vpop.xlane.xlu2 %4442  ;;  %v6437_v54 = vmax.f32 %v16527_v3, %v16526_v17  ;;  %v6447_v62 = vmax.f32 %v16537_v7, %v16536_v61  ;;  %v16547_v17 = vld [vmem:[#allocation56_spill] sm:$0xff]  ;;  %v16548_v3 = vld [vmem:[#allocation55_spill] sm:$0xff]  ;;  %v6469_v52 = vadd.f32 %v6457_v21, %v16538_v11  ;;  %v16557_v21 = vld [vmem:[#allocation34_spill] sm:$0xff] }
 0x5b8   : > { %10700 = vrot.lane.b32.xlu2 %v10699_v26, %s10823_s23  ;;  %v6468_v26 = vadd.f32 %v6456_v32, %v16538_v11  ;;  %v6467_v32 = vadd.f32 %v6455_v10, %v16538_v11  ;;  %v6439_v10 = vmax.f32 %v16550_v20, %v16549_v18  ;;  %v16554_v61 = vld [vmem:[#allocation63_spill] sm:$0xff]  ;;  %v16562_v18 = vld [vmem:[#allocation14_spill] sm:$0xff] }
 0x5ba   : > { %v4403_v13 = vpop.xlane.xlu1 %4402 }
 0x5bb   : > { %v4700_v43 = vsel %vm2496_vm7, %v14414_v5, %v4403_v13  ;;  %v16540_v13 = vld [vmem:[#allocation72_spill] sm:$0xff] }
 0x5bc   : > { %v4483_v55 = vpop.xlane.xlu0 %4482  ;;  %v4704_v35 = vsel %vm2501_vm8, %v4700_v43, %v4443_v4  ;;  %v16539_v4 = vld [vmem:[#allocation28_spill] sm:$0xff] }
 0x5bd   : > { %v7821_v44 = vpop.f32.mrf.mxu3  ;;  %v14487_v49 = vsel %vm2506_vm9, %v4704_v35, %v4483_v55  ;;  %v14489_v50 = vpop.f32.mrf.mxu0  ;;  %v6450_v43 = vmax.f32 %v16540_v13, %v16539_v4  ;;  %v8176_v4 = vmax.f32 %v14421_v46, %v14474_v51  ;;  %v10123_v51 = vld [vmem:[%s16306_s5 + $0x240] sm:$0xff] }
 0x5be   : > { %v8178_v5 = vmax.f32 %v7821_v44, %v7881_v56  ;;  %v7861_v60 = vpop.f32.mrf.mxu1  ;;  %v14561_v13 = vpop.f32.mrf.mxu2 }
 0x5bf   : > { %v4455_v14 = vpop.xlane.xlu2 %4454  ;;  %v8177_v30 = vmax.f32 %v14437_v31, %v7861_v60  ;;  %v16529_v31 = vld [vmem:[#allocation21_spill] sm:$0xff] }
 0x5c0   : > { %v8181_v39 = vmax.f32 %v8175_v9, %v8178_v5  ;;  %10710 = vrot.lane.b32.xlu2 %v10709_v57, %s10825_s29  ;;  %v6446_v33 = vmax.f32 %v16529_v31, %v16528_v15  ;;  %v16541_v60 = vld [vmem:[#allocation33_spill] sm:$0xff]  ;;  %v6448_v15 = vmax.f32 %v16548_v3, %v16547_v17 }
 0x5c1   : > { %v8180_v6 = vmax.f32 %v8174_v29, %v8177_v30  ;;  %v16543_v29 = vld [vmem:[#allocation32_spill] sm:$0xff]  ;;  %v16544_v30 = vld [vmem:[#allocation17_spill] sm:$0xff] }
 0x5c2   : > { %v8184_v37 = vadd.f32 %v8181_v39, %v16522_v48  ;;  %v4415_v53 = vpop.xlane.xlu1 %4414  ;;  %v6458_v42 = vmax.f32 %v6434_v34, %v6446_v33  ;;  %v6438_v2 = vmax.f32 %v16544_v30, %v16543_v29  ;;  %v16546_v39 = vld [vmem:[#allocation41_spill] sm:$0xff]  ;;  %v6459_v34 = vmax.f32 %v6435_v41, %v6447_v62  ;;  %v16553_v41 = vld [vmem:[#allocation42_spill] sm:$0xff] }
 0x5c3   : > { %v8183_v56 = vadd.f32 %v8180_v6, %v16522_v48  ;;  %v4703_v47 = vsel %vm2496_vm7, %v14429_v22, %v4415_v53  ;;  %v16542_v22 = vld [vmem:[#allocation20_spill] sm:$0xff]  ;;  %v16552_v53 = vld [vmem:[#allocation23_spill] sm:$0xff]  ;;  %v6449_v7 = vmax.f32 %v16554_v61, %v16553_v41  ;;  %v14555_v62 = vmax.f32 %v6468_v26, 0.0  ;;  %v16559_v29 = vld [vmem:[#allocation45_spill] sm:$0xff] }
 0x5c4   : > { %v4495_v55 = vpop.xlane.xlu0 %4494  ;;  %v4707_v35 = vsel %vm2501_vm8, %v4703_v47, %v4455_v14  ;;  %v14525_v44 = vmax.f32 %v8184_v37, 0.0  ;;  %v6436_v57 = vmax.f32 %v16542_v22, %v16541_v60  ;;  %v6453_v14 = vmax.f32 %v16546_v39, %v16545_v28  ;;  %v16551_v37 = vld [vmem:[#allocation65_spill] sm:$0xff]  ;;  %v16558_v22 = vld [vmem:[#allocation59_spill] sm:$0xff]  ;;  %v16561_v28 = vld [vmem:[#allocation6_spill] sm:$0xff] }
 0x5c5   : > { %v14527_v45 = vmax.f32 %v8183_v56, 0.0  ;;  %v7901_v9 = vpop.f32.mrf.mxu3  ;;  %v14530_v5 = vsel %vm2506_vm9, %v4707_v35, %v4495_v55  ;;  %v14546_v27 = vpop.f32.mrf.mxu0  ;;  %v6441_v58 = vmax.f32 %v16552_v53, %v16551_v37  ;;  %v16555_v56 = vld [vmem:[#allocation11_spill] sm:$0xff]  ;;  %v14563_v55 = vmax.f32 %v6467_v32, 0.0  ;;  %v16560_v32 = vld [vmem:[#allocation38_spill] sm:$0xff]  ;;  %v10124_v53 = vld [vmem:[%s16306_s5 + $0x248] sm:$0xff] }
 0x5c6   : > { %v14539_v23 = vpop.f32.mrf.mxu1  ;;  %v8179_v31 = vmax.f32 %v14489_v50, %v7901_v9  ;;  %v6462_v50 = vmax.f32 %v6438_v2, %v6450_v43  ;;  %v6470_v47 = vadd.f32 %v6458_v42, %v16555_v56  ;;  %v16556_v9 = vld [vmem:[#allocation29_spill] sm:$0xff]  ;;  %v6454_v26 = vmax.f32 %v16559_v29, %v16558_v22 }
 0x5c7   : > { %v4491_v33 = vpop.xlane.xlu2 %4490  ;;  %v10679_v6 = vpack.i.bf16 %v14525_v44, %v14527_v45  ;;  %v6465_v35 = vmax.f32 %v6441_v58, %v6453_v14  ;;  %v6452_v60 = vmax.f32 %v16557_v21, %v16556_v9  ;;  %v6471_v43 = vadd.f32 %v6459_v34, %v16555_v56 }
 0x5c8   : > { %v6460_v42 = vmax.f32 %v6436_v57, %v6448_v15  ;;  %v8182_v2 = vmax.f32 %v8176_v4, %v8179_v31  ;;  %v6442_v39 = vmax.f32 %v16561_v28, %v16560_v32  ;;  %v14577_v14 = vmax.f32 %v6469_v52, 0.0  ;;  %v16563_v15 = vld [vmem:[#allocation26_spill] sm:$0xff]  ;;  %v8121_v28 = vpop.f32.mrf.mxu2 }
 0x5c9   : > { %10680 = vrot.lane.b32.xlu1 %v10679_v6, %s10824_s28  ;;  %v6461_v17 = vmax.f32 %v6437_v54, %v6449_v7  ;;  %v6474_v34 = vadd.f32 %v6462_v50, %v16562_v18  ;;  %v14581_v57 = vmax.f32 %v6470_v47, 0.0  ;;  %v16564_v31 = vld [vmem:[#allocation54_spill] sm:$0xff]  ;;  %v6464_v52 = vmax.f32 %v6440_v8, %v6452_v60  ;;  %v10126_v50 = vld [vmem:[%s16306_s5 + $0x258] sm:$0xff]  ;;  %v10127_v8 = vld [vmem:[%s16306_s5 + $0x260] sm:$0xff] }
 0x5ca   : > { %v4451_v30 = vpop.xlane.xlu1 %4450  ;;  %v10125_v54 = vld [vmem:[%s16306_s5 + $0x250] sm:$0xff]  ;;  %v6466_v41 = vmax.f32 %v6442_v39, %v6454_v26  ;;  %v6743_v7 = vmul.f32 %v10123_v51, %v14563_v55  ;;  %v14606_v47 = vmax.f32 %v6471_v43, 0.0  ;;  %v6472_v4 = vadd.f32 %v6460_v42, %v16555_v56 }
 0x5cb   : > { %v4706_v46 = vsel %vm2501_vm8, %v14447_v1, %v4451_v30  ;;  %v6451_v1 = vmax.f32 %v16564_v31, %v16563_v15  ;;  %v8185_v9 = vadd.f32 %v8182_v2, %v16522_v48  ;;  %v6473_v21 = vadd.f32 %v6461_v17, %v16562_v18  ;;  %v10064_v15 = vld [vmem:[%s16306_s5 + $0x68] sm:$0xff] }
 0x5cc   : > { %v4531_v3 = vpop.xlane.xlu0 %4530  ;;  %v4710_v6 = vsel %vm2506_vm9, %v4706_v46, %v4491_v33  ;;  %v16565_v33 = vld [vmem:[#allocation18_spill] sm:$0xff]  ;;  %v6744_v0 = vmul.f32 %v10124_v53, %v14555_v62  ;;  %v6745_v12 = vmul.f32 %v10125_v54, %v14577_v14  ;;  %v14616_v60 = vmax.f32 %v6474_v34, 0.0 }
 0x5cd   : > { %v14585_v20 = vpop.f32.mrf.mxu3  ;;  %v14588_v37 = vsel %vm2511_vm10, %v4710_v6, %v4531_v3  ;;  %v6477_v58 = vadd.f32 %v6465_v35, %v16565_v33  ;;  %v6463_v22 = vmax.f32 %v6439_v10, %v6451_v1  ;;  %v8001_v29 = vpop.f32.mrf.mxu0  ;;  %v6746_v26 = vmul.f32 %v10126_v50, %v14581_v57 }
 0x5ce   : > { %v14600_v61 = vpop.f32.mrf.mxu1  ;;  %v6476_v43 = vadd.f32 %v6464_v52, %v16565_v33  ;;  %v6478_v42 = vadd.f32 %v6466_v41, %v16565_v33  ;;  %v6755_v46 = vadd.f32 %v6744_v0, %v6743_v7  ;;  %v14625_v51 = vmax.f32 %v6472_v4, 0.0  ;;  %v10103_v41 = vld [vmem:[%s16306_s5 + $0x1a0] sm:$0xff]  ;;  %v10112_v7 = vld [vmem:[%s16306_s5 + $0x1e8] sm:$0xff] }
 0x5cf   : > { %v4527_v35 = vpop.xlane.xlu2 %4526  ;;  %v14621_v30 = vmax.f32 %v6477_v58, 0.0  ;;  %v14627_v32 = vmax.f32 %v8185_v9, 0.0  ;;  %v6747_v39 = vmul.f32 %v10127_v8, %v14606_v47  ;;  %v14635_v17 = vmax.f32 %v6473_v21, 0.0  ;;  %v6495_v58 = vld [vmem:[%s16306_s5 + $0x20] sm:$0xff] }
 0x5d0   : > { %v8190_v3 = vmax.f32 %v14539_v23, %v8001_v29  ;;  %v14642_v31 = vadd.f32 %v6755_v46, %v6745_v12  ;;  %v14648_v1 = vadd.f32 %v6463_v22, %v16562_v18  ;;  %v8189_v53 = vmax.f32 %v14546_v27, %v14585_v20  ;;  %v10151_v21 = vld [vmem:[%s16306_s5 + $0x320] sm:$0xff]  ;;  %v6494_v29 = vld [vmem:[%s16306_s5 + $0x18] sm:$0xff] }
 0x5d1   : > { %10695 = vrot.lane.b32.xlu1 %v14392_v59, %s10823_s23  ;;  %16566 = vst [vmem:[#allocation58_spill] sm:$0xff] %v14627_v32  ;;  %v6492_v59 = vld [vmem:[%s16306_s5 + $0x8] sm:$0xff]  ;;  %v14658_v52 = vadd.f32 %v6747_v39, %v6746_v26  ;;  %v14666_v50 = vmax.f32 %v6476_v43, 0.0  ;;  %v14668_v27 = vmax.f32 %v6478_v42, 0.0  ;;  %v10704_v8 = vpack.i.bf16 %v14462_v25, %v14627_v32  ;;  %v6491_v22 = vld [vmem:[%s16306_s5] sm:$0xff] }
 0x5d2   : > { %v4487_v2 = vpop.xlane.xlu1 %4486  ;;  %v6504_v9 = vmul.f32 %v6492_v59, %v14555_v62  ;;  %v10063_v26 = vld [vmem:[%s16306_s5 + $0x60] sm:$0xff]  ;;  %v6544_v43 = vmul.f32 %v10064_v15, %v14555_v62  ;;  %v6507_v46 = vmul.f32 %v6495_v58, %v14606_v47  ;;  %v14704_v59 = vmul.f32 %v10112_v7, %v14555_v62  ;;  %v10731_v15 = vld [vmem:[%s16306_s5 + $0x368] sm:$0xff] }
 0x5d3   : > { %v4709_v10 = vsel %vm2506_vm9, %v14472_v19, %v4487_v2  ;;  %v10136_v19 = vld [vmem:[%s16306_s5 + $0x2a8] sm:$0xff]  ;;  %v6493_v2 = vld [vmem:[%s16306_s5 + $0x10] sm:$0xff]  ;;  %v6503_v58 = vmul.f32 %v6491_v22, %v14563_v55 }
 0x5d4   : > { %v4567_v6 = vpop.xlane.xlu0 %4566  ;;  %v4713_v34 = vsel %vm2511_vm10, %v4709_v10, %v4527_v35  ;;  %v10070_v35 = vld [vmem:[%s16306_s5 + $0x98] sm:$0xff]  ;;  %v14691_v42 = vmul.f32 %v10136_v19, %v14555_v62  ;;  %v14701_v10 = vmul.f32 %v10103_v41, %v14606_v47  ;;  %v14720_v19 = vmul.f32 %v10731_v15, %v14555_v62  ;;  %v6500_v7 = vld [vmem:[%s16306_s5 + $0x48] sm:$0xff] }
 0x5d5   : > { %v8061_v23 = vpop.f32.mrf.mxu3  ;;  %v14653_v54 = vsel %vm2516_vm11, %v4713_v34, %v4567_v6  ;;  %v14711_v6 = vmul.f32 %v10070_v35, %v14616_v60  ;;  %v14714_v34 = vmul.f32 %v10151_v21, %v14606_v47  ;;  %v6506_v41 = vmul.f32 %v6494_v29, %v14581_v57  ;;  %v16567_v21 = vld [vmem:[#allocation15_spill] sm:$0xff] }
 0x5d6   : > { %v8193_v20 = vmax.f32 %v8061_v23, %v8121_v28  ;;  %v8101_v4 = vpop.f32.mrf.mxu1  ;;  %v10128_v28 = vld [vmem:[%s16306_s5 + $0x268] sm:$0xff]  ;;  %v6505_v22 = vmul.f32 %v6493_v2, %v14577_v14  ;;  %v10065_v2 = vld [vmem:[%s16306_s5 + $0x70] sm:$0xff] }
 0x5d7   : > { %v4563_v0 = vpop.xlane.xlu2 %4562  ;;  %v8192_v12 = vmax.f32 %v14561_v13, %v8101_v4  ;;  %v10142_v4 = vld [vmem:[%s16306_s5 + $0x2d8] sm:$0xff]  ;;  %v6748_v29 = vmul.f32 %v10128_v28, %v14625_v51  ;;  %v6519_v18 = vadd.f32 %v6507_v46, %v6506_v41  ;;  %v10135_v46 = vld [vmem:[%s16306_s5 + $0x2a0] sm:$0xff] }
 0x5d8   : > { %v8196_v13 = vmax.f32 %v8190_v3, %v8193_v20  ;;  %v6496_v3 = vld [vmem:[%s16306_s5 + $0x28] sm:$0xff]  ;;  %v6543_v20 = vmul.f32 %v10063_v26, %v14563_v55 }
 0x5d9   : > { %v8195_v39 = vmax.f32 %v8189_v53, %v8192_v12  ;;  %10705 = vrot.lane.b32.xlu1 %v10704_v8, %s10824_s28  ;;  %v8081_v12 = vpop.f32.mrf.mxu0  ;;  %s9152_s28 = sshll.u32 %s9149_s22, 4  ;;  %s9153_s28 = int_to_ptr.hbm [resolvable:$true] %s9152_s28 }
 0x5da   : > { %v8199_v53 = vadd.f32 %v8196_v13, %v16522_v48  ;;  %v4523_v23 = vpop.xlane.xlu1 %4522  ;;  %v8191_v13 = vmax.f32 %v14496_v38, %v14600_v61  ;;  %s10772_s14 = sshra.s32 %s9153_s28, 4  ;;  %s10773_s14 = int_to_ptr.hbm [resolvable:$true] %s10772_s14 }
 0x5db   : > { %v8198_v35 = vadd.f32 %v8195_v39, %v16522_v48  ;;  %4682 = vadd.xlane.f32.xlu0 %v16567_v21  ;;  %v4712_v8 = vsel %vm2511_vm10, %v14487_v49, %v4523_v23  ;;  %v6508_v39 = vmul.f32 %v6496_v3, %v14625_v51  ;;  %v6501_v21 = vld [vmem:[%s16306_s5 + $0x50] sm:$0xff]  ;;  %v6502_v49 = vld [vmem:[%s16306_s5 + $0x58] sm:$0xff]  ;;  %v10132_v3 = vld [vmem:[%s16306_s5 + $0x288] sm:$0xff]  ;;  %s10774_s13 = scalar_lea.hbm %s10773_s14, 4  ;;  %p10779_p0 = scmp.lt.s32.totalorder %s10773_s14, %s16308_s7 }
 0x5dc   : > { %v14740_v26 = vmax.f32 %v8199_v53, 0.0  ;;  %v4603_v15 = vpop.xlane.xlu0 %4602  ;;  %v4716_v33 = vsel %vm2516_vm11, %v4712_v8, %v4563_v0  ;;  %v6512_v0 = vmul.f32 %v6500_v7, %v14666_v50  ;;  %v14763_v53 = vmul.f32 %v10142_v4, %v14616_v60  ;;  %v10133_v7 = vld [vmem:[%s16306_s5 + $0x290] sm:$0xff]  ;;  %p10775_p11 = scmp.ne.s32.totalorder %s10773_s14, %s10774_s13  ;;  %p10780_p1 = scmp.lt.s32.totalorder %s10778_s17, %s10774_s13 }
 0x5dd   : > { %v14753_v38 = vmax.f32 %v8198_v35, 0.0  ;;  %v8141_v61 = vpop.f32.mrf.mxu3  ;;  %v14756_v28 = vsel %vm2521_vm12, %v4716_v33, %v4603_v15  ;;  %v6515_v8 = vadd.f32 %v6504_v9, %v6503_v58  ;;  %v14766_v35 = vadd.f32 %v6544_v43, %v6543_v20  ;;  %v10069_v33 = vld [vmem:[%s16306_s5 + $0x90] sm:$0xff]  ;;  %v10134_v43 = vld [vmem:[%s16306_s5 + $0x298] sm:$0xff] }
 0x5de   : > { %v8194_v23 = vmax.f32 %v8081_v12, %v8141_v61  ;;  %8319 = vmatpush.msrb.mxu1 %v14740_v26  ;;  %v6513_v4 = vmul.f32 %v6501_v21, %v14621_v30  ;;  %v6514_v12 = vmul.f32 %v6502_v49, %v14668_v27  ;;  %v14778_v15 = vmul.f32 %v10065_v2, %v14577_v14  ;;  %v10137_v58 = vld [vmem:[%s16306_s5 + $0x2b0] sm:$0xff]  ;;  %p10776_p12 = pnand %p10775_p11, %p10903_p5  ;;  %p10781_p2 = por %p10780_p1, %p10779_p0 }
 0x5df   : > { %8290 = vmatpush.msrb.mxu0 %v14753_v38  ;;  %v14781_v9 = vadd.f32 %v14658_v52, %v6748_v29  ;;  %v14793_v20 = vadd.f32 %v6515_v8, %v6505_v22  ;;  %v14795_v21 = vadd.f32 %v6519_v18, %v6508_v39  ;;  %v6752_v52 = vmul.f32 %v10132_v3, %v14666_v50  ;;  %v4575_v49 = vpop.xlane.xlu2 %4574  ;;  %v10102_v18 = vld [vmem:[%s16306_s5 + $0x198] sm:$0xff]  ;;  %v16568_v8 = vld [vmem:[#allocation10_spill] sm:$0xff] }
 0x5e0   : > { %v8197_v41 = vmax.f32 %v8191_v13, %v8194_v23  ;;  %8320 = vmatpush.msrb.mxu1 %v14525_v44  ;;  %v14799_v29 = vmax.f32 %v14648_v1, 0.0  ;;  %v6527_v2 = vadd.f32 %v6513_v4, %v6512_v0  ;;  %v14805_v13 = vmul.f32 %v10069_v33, %v14635_v17  ;;  %v10104_v23 = vld [vmem:[%s16306_s5 + $0x1a8] sm:$0xff]  ;;  %v10141_v4 = vld [vmem:[%s16306_s5 + $0x2d0] sm:$0xff]  ;;  %p10777_p13 = pneg %p10776_p12 }
 0x5e1   : > { %8291 = vmatpush.msrb.mxu0 %v14527_v45  ;;  %8265 = vrot.lane.b32.xlu1 %v14382_v36, %s10825_s29  ;;  %v6753_v22 = vmul.f32 %v10133_v7, %v14621_v30  ;;  %v6754_v61 = vmul.f32 %v10134_v43, %v14668_v27  ;;  %v6783_v3 = vmul.f32 %v10135_v46, %v14563_v55  ;;  %v10143_v43 = vld [vmem:[%s16306_s5 + $0x2e0] sm:$0xff] }
 0x5e2   : > { %v8200_v39 = vadd.f32 %v8197_v41, %v16522_v48  ;;  %8321 = vmatpush.msrb.mxu1 %v14442_v63  ;;  %v4535_v1 = vpop.xlane.xlu1 %4534  ;;  %v6785_v0 = vmul.f32 %v10137_v58, %v14577_v14  ;;  %v14823_v33 = vadd.f32 %v6527_v2, %v6514_v12  ;;  %v10111_v46 = vld [vmem:[%s16306_s5 + $0x1e0] sm:$0xff]  ;;  %v10144_v2 = vld [vmem:[%s16306_s5 + $0x2e8] sm:$0xff]  ;;  %p10782_p3 = pnand %p10781_p2, %p10777_p13 }
 0x5e3   : > { %8292 = vmatpush.msrb.mxu0 %v14444_v16  ;;  %4694 = vadd.xlane.f32.xlu0 %v16568_v8  ;;  %v4715_v48 = vsel %vm2511_vm10, %v14530_v5, %v4535_v1  ;;  %v6767_v7 = vadd.f32 %v6753_v22, %v6752_v52  ;;  %v6795_v41 = vadd.f32 %v14691_v42, %v6783_v3  ;;  %v10145_v22 = vld [vmem:[%s16306_s5 + $0x2f0] sm:$0xff] }
 0x5e4   : > { %v14834_v58 = vmax.f32 %v8200_v39, 0.0  ;;  %8322 = vmatpush.msrb.mxu1 %v14380_v40  ;;  %v4615_v5 = vpop.xlane.xlu0 %4614  ;;  %v4719_v12 = vsel %vm2516_vm11, %v4715_v48, %v4575_v49  ;;  %v6666_v52 = vmul.f32 %v10102_v18, %v14581_v57  ;;  %v10146_v39 = vld [vmem:[%s16306_s5 + $0x2f8] sm:$0xff]  ;;  %v14858_v49 = vld [vmem:[%s16304_s3] sm:$0xff]  ;;  %v6668_v18 = vmul.f32 %v10104_v23, %v14625_v51  ;;  %v10113_v1 = vld [vmem:[%s16306_s5 + $0x1f0] sm:$0xff] }
 0x5e5   : > { %v14850_v40 = vsel %vm2521_vm12, %v4719_v12, %v4615_v5  ;;  %8293 = vmatpush.msrb.mxu0 %v14382_v36  ;;  %v14853_v42 = vadd.f32 %v6767_v7, %v6754_v61  ;;  %10368 = vmatmul.msk.f32.vlgmr.msrb.gmra.mxu1 %vm1661_vm2, %v14858_v49  ;;  %v10150_v36 = vld [vmem:[%s16306_s5 + $0x318] sm:$0xff]  ;;  %v14870_v61 = vadd.f32 %v6795_v41, %v6785_v0  ;;  %v10152_v23 = vld [vmem:[%s16306_s5 + $0x328] sm:$0xff]  ;;  %v10153_v7 = vld [vmem:[%s16306_s5 + $0x330] sm:$0xff] }
 0x5e6   : > { %8348 = vmatpush.msrb.mxu2 %v14834_v58  ;;  %v6679_v3 = vadd.f32 %v14701_v10, %v6666_v52  ;;  %v6789_v8 = vmul.f32 %v10141_v4, %v14635_v17  ;;  %v6791_v48 = vmul.f32 %v10143_v43, %v14799_v29  ;;  %v6792_v5 = vmul.f32 %v10144_v2, %v14666_v50  ;;  %v10154_v4 = vld [vmem:[%s16306_s5 + $0x338] sm:$0xff]  ;;  %v10155_v43 = vld [vmem:[%s16306_s5 + $0x340] sm:$0xff] }
 0x5e7   : > { %v6793_v12 = vmul.f32 %v10145_v22, %v14621_v30  ;;  %v6794_v0 = vmul.f32 %v10146_v39, %v14668_v27  ;;  %10364 = vmatmul.msk.f32.vlgmr.msrb.gmra.mxu0 %vm1661_vm2, %v14858_v49  ;;  %v6703_v10 = vmul.f32 %v10111_v46, %v14563_v55  ;;  %v6705_v2 = vmul.f32 %v10113_v1, %v14577_v14  ;;  %v10120_v46 = vld [vmem:[%s16306_s5 + $0x228] sm:$0xff]  ;;  %v16569_v39 = vld [vmem:[#allocation19_spill] sm:$0xff] }
 0x5e8   : > { %8349 = vmatpush.msrb.mxu2 %v14627_v32  ;;  %v14894_v41 = vadd.f32 %v6679_v3, %v6668_v18  ;;  %v6803_v52 = vadd.f32 %v14763_v53, %v6789_v8  ;;  %v6826_v22 = vmul.f32 %v10150_v36, %v14581_v57  ;;  %v6828_v63 = vmul.f32 %v10152_v23, %v14625_v51  ;;  %v10121_v53 = vld [vmem:[%s16306_s5 + $0x230] sm:$0xff] }
 0x5e9   : > { %4686 = vadd.xlane.f32.xlu2 %v16569_v39  ;;  %v6807_v56 = vadd.f32 %v6793_v12, %v6792_v5  ;;  %v6715_v11 = vadd.f32 %v14704_v59, %v6703_v10  ;;  %v6829_v18 = vmul.f32 %v10153_v7, %v14635_v17  ;;  %v6830_v8 = vmul.f32 %v10154_v4, %v14616_v60  ;;  %v4611_v59 = vpop.xlane.xlu2 %4610 }
 0x5ea   : > { %8350 = vmatpush.msrb.mxu2 %v14464_v24  ;;  %v4571_v1 = vpop.xlane.xlu1 %4570  ;;  %v14910_v36 = vadd.f32 %v6803_v52, %v6791_v48  ;;  %v6839_v3 = vadd.f32 %v14714_v34, %v6826_v22  ;;  %v6831_v5 = vmul.f32 %v10155_v43, %v14799_v29  ;;  %v10122_v48 = vld [vmem:[%s16306_s5 + $0x238] sm:$0xff]  ;;  %v6712_v34 = vmul.f32 %v10120_v46, %v14666_v50 }
 0x5eb   : > { %6517 = vadd.xlane.f32.xlu0 %v14793_v20  ;;  %v4718_v23 = vsel %vm2516_vm11, %v14588_v37, %v4571_v1  ;;  %v14918_v7 = vadd.f32 %v6807_v56, %v6794_v0  ;;  %v14920_v12 = vadd.f32 %v6715_v11, %v6705_v2  ;;  %v6843_v20 = vadd.f32 %v6830_v8, %v6829_v18  ;;  %v10129_v11 = vld [vmem:[%s16306_s5 + $0x270] sm:$0xff]  ;;  %v10734_v0 = vld [vmem:[%s16306_s5 + $0x360] sm:$0xff]  ;;  %v10130_v2 = vld [vmem:[%s16306_s5 + $0x278] sm:$0xff] }
 0x5ec   : > { %8351 = vmatpush.msrb.mxu2 %v14462_v25  ;;  %v4651_v10 = vpop.xlane.xlu0 %4650  ;;  %v4722_v4 = vsel %vm2521_vm12, %v4718_v23, %v4611_v59  ;;  %v14928_v43 = vadd.f32 %v6839_v3, %v6828_v63  ;;  %v6713_v37 = vmul.f32 %v10121_v53, %v14621_v30  ;;  %v14942_v25 = vld [vmem:[%s16304_s3 + $0x8] sm:$0xff]  ;;  %v6714_v63 = vmul.f32 %v10122_v48, %v14668_v27  ;;  %v10138_v22 = vld [vmem:[%s16306_s5 + $0x2b8] sm:$0xff]  ;;  %v10735_v18 = vld [vmem:[%s16306_s5 + $0x370] sm:$0xff] }
 0x5ed   : > { %v14935_v56 = vsel %vm2526_vm13, %v4722_v4, %v4651_v10  ;;  %10372 = vmatmul.msk.f32.vlgmr.msrb.gmra.mxu2 %vm1661_vm2, %v14858_v49  ;;  %10369 = vmatmul.msk.f32.gmra.mxu1 %vm1661_vm2, %v14942_v25  ;;  %v6863_v52 = vmul.f32 %v10734_v0, %v14563_v55  ;;  %v14957_v46 = vadd.f32 %v6843_v20, %v6831_v5  ;;  %v10736_v1 = vld [vmem:[%s16306_s5 + $0x378] sm:$0xff]  ;;  %v10139_v8 = vld [vmem:[%s16306_s5 + $0x2c0] sm:$0xff]  ;;  %v10738_v48 = vld [vmem:[%s16306_s5 + $0x388] sm:$0xff] }
 0x5ee   : > { %16570 = vst [vmem:[#allocation50_spill] sm:$0xff] %v14935_v56  ;;  %v6727_v39 = vadd.f32 %v6713_v37, %v6712_v34  ;;  %v6865_v53 = vmul.f32 %v10735_v18, %v14577_v14  ;;  %v6866_v3 = vmul.f32 %v10736_v1, %v14581_v57  ;;  %v10737_v59 = vld [vmem:[%s16306_s5 + $0x380] sm:$0xff]  ;;  %v6868_v34 = vmul.f32 %v10738_v48, %v14625_v51  ;;  %v10140_v4 = vld [vmem:[%s16306_s5 + $0x2c8] sm:$0xff]  ;;  %v10149_v56 = vld [vmem:[%s16306_s5 + $0x310] sm:$0xff] }
 0x5ef   : > { %10365 = vmatmul.msk.f32.gmra.mxu0 %vm1661_vm2, %v14942_v25  ;;  %v6875_v5 = vadd.f32 %v14720_v19, %v6863_v52  ;;  %v6867_v23 = vmul.f32 %v10737_v59, %v14606_v47  ;;  %v6749_v10 = vmul.f32 %v10129_v11, %v14635_v17  ;;  %v10147_v19 = vld [vmem:[%s16306_s5 + $0x300] sm:$0xff]  ;;  %v10148_v20 = vld [vmem:[%s16306_s5 + $0x308] sm:$0xff]  ;;  %v6750_v11 = vmul.f32 %v10130_v2, %v14616_v60  ;;  %v10739_v52 = vld [vmem:[%s16306_s5 + $0x3b0] sm:$0xff] }
 0x5f0   : > { %v14991_v37 = vadd.f32 %v6727_v39, %v6714_v63  ;;  %v10131_v0 = vld [vmem:[%s16306_s5 + $0x280] sm:$0xff]  ;;  %v6873_v18 = vmul.f32 %v10739_v52, %v14621_v30  ;;  %v6786_v1 = vmul.f32 %v10138_v22, %v14581_v57  ;;  %v6787_v2 = vmul.f32 %v10139_v8, %v14606_v47  ;;  %v10740_v8 = vld [vmem:[%s16306_s5 + $0x3a8] sm:$0xff] }
 0x5f1   : > { %6521 = vadd.xlane.f32.xlu2 %v14795_v21  ;;  %v10071_v63 = vld [vmem:[%s16306_s5 + $0xa0] sm:$0xff]  ;;  %v15006_v39 = vadd.f32 %v6875_v5, %v6865_v53  ;;  %v6879_v59 = vadd.f32 %v6867_v23, %v6866_v3  ;;  %v6751_v48 = vmul.f32 %v10131_v0, %v14799_v29  ;;  %v6763_v32 = vadd.f32 %v6750_v11, %v6749_v10 }
 0x5f2   : > { %v4607_v52 = vpop.xlane.xlu1 %4606  ;;  %v6788_v22 = vmul.f32 %v10140_v4, %v14625_v51  ;;  %v6823_v21 = vmul.f32 %v10147_v19, %v14563_v55  ;;  %v6824_v24 = vmul.f32 %v10148_v20, %v14555_v62  ;;  %v6872_v5 = vmul.f32 %v10740_v8, %v14666_v50 }
 0x5f3   : > { %6529 = vadd.xlane.f32.xlu0 %v14823_v33  ;;  %v15019_v53 = vsel %vm2521_vm12, %v14653_v54, %v4607_v52  ;;  %v15021_v3 = vadd.f32 %v6879_v59, %v6868_v34  ;;  %v6799_v23 = vadd.f32 %v6787_v2, %v6786_v1  ;;  %v6551_v4 = vmul.f32 %v10071_v63, %v14799_v29  ;;  %v15040_v34 = vld [vmem:[%s16304_s3 + $0x10] sm:$0xff]  ;;  %v10743_v1 = vld [vmem:[%s16306_s5 + $0x398] sm:$0xff] }
 0x5f4   : > { %v4655_v10 = vpop.xlane.xlu0 %4654  ;;  %v15028_v19 = vadd.f32 %v6763_v32, %v6751_v48  ;;  %v6825_v33 = vmul.f32 %v10149_v56, %v14577_v14  ;;  %v6835_v20 = vadd.f32 %v6824_v24, %v6823_v21  ;;  %v6887_v32 = vadd.f32 %v6873_v18, %v6872_v5  ;;  %v10072_v24 = vld [vmem:[%s16306_s5 + $0xa8] sm:$0xff]  ;;  %v10742_v56 = vld [vmem:[%s16306_s5 + $0x390] sm:$0xff]  ;;  %v10074_v2 = vld [vmem:[%s16306_s5 + $0xb8] sm:$0xff] }
 0x5f5   : > { %v15033_v54 = vsel %vm2526_vm13, %v14850_v40, %v4655_v10  ;;  %10373 = vmatmul.msk.f32.gmra.mxu2 %vm1661_vm2, %v14942_v25  ;;  %10370 = vmatmul.msk.f32.gmra.mxu1 %vm1661_vm2, %v15040_v34  ;;  %v15044_v0 = vadd.f32 %v6799_v23, %v6788_v22  ;;  %v6869_v11 = vmul.f32 %v10742_v56, %v14635_v17  ;;  %v10073_v48 = vld [vmem:[%s16306_s5 + $0xb0] sm:$0xff]  ;;  %v10078_v52 = vld [vmem:[%s16306_s5 + $0xd8] sm:$0xff]  ;;  %v10079_v5 = vld [vmem:[%s16306_s5 + $0xe0] sm:$0xff] }
 0x5f6   : > { %v15049_v40 = vadd.f32 %v6835_v20, %v6825_v33  ;;  %v6870_v18 = vmul.f32 %v10743_v1, %v14616_v60  ;;  %v6556_v63 = vadd.f32 %v14766_v35, %v14778_v15  ;;  %v6563_v59 = vadd.f32 %v14711_v6, %v14805_v13  ;;  %v10744_v15 = vld [vmem:[%s16306_s5 + $0x3b8] sm:$0xff]  ;;  %v10080_v23 = vld [vmem:[%s16306_s5 + $0xe8] sm:$0xff]  ;;  %v10745_v56 = vld [vmem:[%s16306_s5 + $0x3a0] sm:$0xff] }
 0x5f7   : > { %10366 = vmatmul.msk.f32.gmra.mxu0 %vm1661_vm2, %v15040_v34  ;;  %v6552_v6 = vmul.f32 %v10072_v24, %v14666_v50  ;;  %v6874_v13 = vmul.f32 %v10744_v15, %v14668_v27  ;;  %v6553_v8 = vmul.f32 %v10073_v48, %v14621_v30  ;;  %v6586_v33 = vmul.f32 %v10078_v52, %v14581_v57  ;;  %v10157_v24 = vld [vmem:[%s16306_s5 + $0x350] sm:$0xff]  ;;  %v10082_v15 = vld [vmem:[%s16306_s5 + $0xf8] sm:$0xff] }
 0x5f8   : > { %v6883_v22 = vadd.f32 %v6870_v18, %v6869_v11  ;;  %v6564_v35 = vadd.f32 %v6563_v59, %v6551_v4  ;;  %v6554_v4 = vmul.f32 %v10074_v2, %v14668_v27  ;;  %v6871_v11 = vmul.f32 %v10745_v56, %v14799_v29  ;;  %v10081_v59 = vld [vmem:[%s16306_s5 + $0xf0] sm:$0xff] }
 0x5f9   : > { %6557 = vadd.xlane.f32.xlu2 %v6556_v63  ;;  %v15092_v20 = vadd.f32 %v6887_v32, %v6874_v13  ;;  %v6567_v1 = vadd.f32 %v6553_v8, %v6552_v6  ;;  %v6588_v18 = vmul.f32 %v10080_v23, %v14625_v51  ;;  %v15108_v32 = vld [vmem:[%s16304_s3 + $0x18] sm:$0xff]  ;;  %v10156_v63 = vld [vmem:[%s16306_s5 + $0x348] sm:$0xff]  ;;  %v6833_v2 = vmul.f32 %v10157_v24, %v14621_v30  ;;  %v10083_v13 = vld [vmem:[%s16306_s5 + $0x100] sm:$0xff] }
 0x5fa   : > { %v4643_v21 = vpop.xlane.xlu1 %4642  ;;  %v6832_v48 = vmul.f32 %v10156_v63, %v14666_v50  ;;  %v15120_v52 = vadd.f32 %v6883_v22, %v6871_v11  ;;  %v10088_v23 = vld [vmem:[%s16306_s5 + $0x128] sm:$0xff]  ;;  %v6591_v24 = vmul.f32 %v10083_v13, %v14799_v29  ;;  %v10158_v11 = vld [vmem:[%s16306_s5 + $0x358] sm:$0xff]  ;;  %v6497_v13 = vld [vmem:[%s16306_s5 + $0x30] sm:$0xff] }
 0x5fb   : > { %6565 = vadd.xlane.f32.xlu0 %v6564_v35  ;;  %v15088_v10 = vsel %vm2526_vm13, %v14756_v28, %v4643_v21  ;;  %v6587_v28 = vmul.f32 %v10079_v5, %v14606_v47  ;;  %v6568_v35 = vadd.f32 %v6567_v1, %v6554_v4  ;;  %v10087_v21 = vld [vmem:[%s16306_s5 + $0x120] sm:$0xff]  ;;  %v6589_v5 = vmul.f32 %v10081_v59, %v14635_v17  ;;  %v10089_v4 = vld [vmem:[%s16306_s5 + $0x130] sm:$0xff]  ;;  %v10090_v59 = vld [vmem:[%s16306_s5 + $0x138] sm:$0xff] }
 0x5fc   : > { %v6847_v8 = vadd.f32 %v6833_v2, %v6832_v48  ;;  %v6623_v56 = vmul.f32 %v10087_v21, %v14563_v55  ;;  %v6834_v1 = vmul.f32 %v10158_v11, %v14668_v27  ;;  %v6625_v63 = vmul.f32 %v10089_v4, %v14577_v14  ;;  %v10096_v21 = vld [vmem:[%s16306_s5 + $0x168] sm:$0xff]  ;;  %v6499_v4 = vld [vmem:[%s16306_s5 + $0x40] sm:$0xff] }
 0x5fd   : > { %10374 = vmatmul.msk.f32.gmra.mxu2 %vm1661_vm2, %v15040_v34  ;;  %10371 = vmatmul.msk.f32.gmra.mxu1 %vm1661_vm2, %v15108_v32  ;;  %v6599_v6 = vadd.f32 %v6587_v28, %v6586_v33  ;;  %v6590_v33 = vmul.f32 %v10082_v15, %v14616_v60  ;;  %v10092_v15 = vld [vmem:[%s16306_s5 + $0x148] sm:$0xff] }
 0x5fe   : > { %v15154_v48 = vadd.f32 %v6847_v8, %v6834_v1  ;;  %v6628_v11 = vmul.f32 %v10092_v15, %v14625_v51  ;;  %v6509_v1 = vmul.f32 %v6497_v13, %v14635_v17  ;;  %v10100_v13 = vld [vmem:[%s16306_s5 + $0x188] sm:$0xff] }
 0x5ff   : > { %10367 = vmatmul.msk.f32.gmra.mxu0 %vm1661_vm2, %v15108_v32  ;;  %v6600_v22 = vadd.f32 %v6599_v6, %v6588_v18  ;;  %v6603_v28 = vadd.f32 %v6590_v33, %v6589_v5  ;;  %v6624_v18 = vmul.f32 %v10088_v23, %v14555_v62  ;;  %v10091_v6 = vld [vmem:[%s16306_s5 + $0x140] sm:$0xff]  ;;  %v6498_v5 = vld [vmem:[%s16306_s5 + $0x38] sm:$0xff]  ;;  %v10097_v33 = vld [vmem:[%s16306_s5 + $0x170] sm:$0xff] }
 0x600   : > { %v6627_v23 = vmul.f32 %v10091_v6, %v14606_v47  ;;  %v10099_v6 = vld [vmem:[%s16306_s5 + $0x180] sm:$0xff] }
 0x601   : > { %6569 = vadd.xlane.f32.xlu2 %v6568_v35  ;;  %v6604_v2 = vadd.f32 %v6603_v28, %v6591_v24  ;;  %v6635_v35 = vadd.f32 %v6624_v18, %v6623_v56  ;;  %v10098_v24 = vld [vmem:[%s16306_s5 + $0x178] sm:$0xff]  ;;  %v16571_v56 = vld [vmem:[#allocation13_spill] sm:$0xff]  ;;  %v6632_v28 = vmul.f32 %v10096_v21, %v14666_v50  ;;  %v6510_v18 = vmul.f32 %v6498_v5, %v14616_v60  ;;  %v10101_v21 = vld [vmem:[%s16306_s5 + $0x190] sm:$0xff] }
 0x602   : > { %v10105_v5 = vld [vmem:[%s16306_s5 + $0x1b0] sm:$0xff] }
 0x603   : > { %6601 = vadd.xlane.f32.xlu0 %v6600_v22  ;;  %v6636_v8 = vadd.f32 %v6635_v35, %v6625_v63  ;;  %v6626_v22 = vmul.f32 %v10090_v59, %v14581_v57  ;;  %v6511_v59 = vmul.f32 %v6499_v4, %v14799_v29  ;;  %v6634_v35 = vmul.f32 %v10098_v24, %v14668_v27  ;;  %v10067_v24 = vld [vmem:[%s16306_s5 + $0x80] sm:$0xff] }
 0x605   : > { %10375 = vmatmul.msk.f32.gmra.mxu2 %vm1661_vm2, %v15108_v32  ;;  %v6639_v63 = vadd.f32 %v6627_v23, %v6626_v22  ;;  %v10066_v22 = vld [vmem:[%s16306_s5 + $0x78] sm:$0xff] }
 0x609   : > { %6605 = vadd.xlane.f32.xlu2 %v6604_v2  ;;  %v6633_v2 = vmul.f32 %v10097_v33, %v14621_v30  ;;  %v6663_v33 = vmul.f32 %v10099_v6, %v14563_v55 }
 0x60b   : > { %4690 = vadd.xlane.f32.xlu1 %v16571_v56  ;;  %6637 = vadd.xlane.f32.xlu0 %v6636_v8  ;;  %v6640_v8 = vadd.f32 %v6639_v63, %v6628_v11  ;;  %v6523_v56 = vadd.f32 %v6510_v18, %v6509_v1  ;;  %v6647_v15 = vadd.f32 %v6633_v2, %v6632_v28  ;;  %v10068_v1 = vld [vmem:[%s16306_s5 + $0x88] sm:$0xff]  ;;  %v10106_v28 = vld [vmem:[%s16306_s5 + $0x1b8] sm:$0xff]  ;;  %v10107_v18 = vld [vmem:[%s16306_s5 + $0x1c0] sm:$0xff] }
 0x60c   : > { %v6664_v11 = vmul.f32 %v10100_v13, %v14555_v62  ;;  %v6665_v63 = vmul.f32 %v10101_v21, %v14577_v14  ;;  %v6669_v2 = vmul.f32 %v10105_v5, %v14635_v17  ;;  %v10108_v13 = vld [vmem:[%s16306_s5 + $0x1c8] sm:$0xff]  ;;  %v10109_v5 = vld [vmem:[%s16306_s5 + $0x1d0] sm:$0xff] }
 0x60d   : > { %v6524_v23 = vadd.f32 %v6523_v56, %v6511_v59  ;;  %v6648_v4 = vadd.f32 %v6647_v15, %v6634_v35  ;;  %v6546_v59 = vmul.f32 %v10066_v22, %v14581_v57  ;;  %v6547_v35 = vmul.f32 %v10067_v24, %v14606_v47  ;;  %v10075_v22 = vld [vmem:[%s16306_s5 + $0xc0] sm:$0xff]  ;;  %v10114_v24 = vld [vmem:[%s16306_s5 + $0x1f8] sm:$0xff] }
 0x60e   : > { %v6675_v6 = vadd.f32 %v6664_v11, %v6663_v33  ;;  %v6670_v56 = vmul.f32 %v10106_v28, %v14616_v60  ;;  %v6671_v15 = vmul.f32 %v10107_v18, %v14799_v29  ;;  %v10110_v33 = vld [vmem:[%s16306_s5 + $0x1d8] sm:$0xff]  ;;  %v6672_v28 = vmul.f32 %v10108_v13, %v14666_v50  ;;  %v10076_v18 = vld [vmem:[%s16306_s5 + $0xc8] sm:$0xff] }
 0x610   : > { %v6683_v21 = vadd.f32 %v6670_v56, %v6669_v2  ;;  %v10115_v2 = vld [vmem:[%s16306_s5 + $0x200] sm:$0xff]  ;;  %v6706_v56 = vmul.f32 %v10114_v24, %v14581_v57  ;;  %v10118_v57 = vld [vmem:[%s16306_s5 + $0x218] sm:$0xff]  ;;  %v10085_v24 = vld [vmem:[%s16306_s5 + $0x110] sm:$0xff] }
 0x611   : > { %6641 = vadd.xlane.f32.xlu2 %v6640_v8  ;;  %v6548_v8 = vmul.f32 %v10068_v1, %v14625_v51 }
 0x612   : > { %v6684_v1 = vadd.f32 %v6683_v21, %v6671_v15  ;;  %v6584_v15 = vmul.f32 %v10076_v18, %v14555_v62  ;;  %v10117_v21 = vld [vmem:[%s16306_s5 + $0x210] sm:$0xff]  ;;  %v10119_v62 = vld [vmem:[%s16306_s5 + $0x220] sm:$0xff]  ;;  %v6710_v18 = vmul.f32 %v10118_v57, %v14616_v60 }
 0x613   : > { %6525 = vadd.xlane.f32.xlu1 %v6524_v23  ;;  %6649 = vadd.xlane.f32.xlu0 %v6648_v4  ;;  %v6676_v23 = vadd.f32 %v6675_v6, %v6665_v63  ;;  %v6559_v4 = vadd.f32 %v6547_v35, %v6546_v59  ;;  %v10077_v63 = vld [vmem:[%s16306_s5 + $0xd0] sm:$0xff]  ;;  %v6583_v59 = vmul.f32 %v10075_v22, %v14563_v55  ;;  %v10116_v35 = vld [vmem:[%s16306_s5 + $0x208] sm:$0xff] }
 0x614   : > { %v6673_v6 = vmul.f32 %v10109_v5, %v14621_v30  ;;  %v6585_v55 = vmul.f32 %v10077_v63, %v14577_v14  ;;  %v10084_v14 = vld [vmem:[%s16306_s5 + $0x108] sm:$0xff]  ;;  %v6711_v63 = vmul.f32 %v10119_v62, %v14799_v29 }
 0x615   : > { %v6560_v11 = vadd.f32 %v6559_v4, %v6548_v8  ;;  %v6674_v8 = vmul.f32 %v10110_v33, %v14668_v27  ;;  %v6708_v4 = vmul.f32 %v10116_v35, %v14625_v51  ;;  %v6709_v33 = vmul.f32 %v10117_v21, %v14635_v17 }
 0x616   : > { %v6687_v13 = vadd.f32 %v6673_v6, %v6672_v28 }
 0x617   : > { %v6723_v6 = vadd.f32 %v6710_v18, %v6709_v33 }
 0x618   : > { %v6688_v22 = vadd.f32 %v6687_v13, %v6674_v8  ;;  %v6593_v8 = vmul.f32 %v10085_v24, %v14621_v30  ;;  %v10094_v30 = vld [vmem:[%s16306_s5 + $0x158] sm:$0xff] }
 0x619   : > { %6677 = vadd.xlane.f32.xlu2 %v6676_v23  ;;  %v6707_v23 = vmul.f32 %v10115_v2, %v14606_v47  ;;  %v6724_v13 = vadd.f32 %v6723_v6, %v6711_v63 }
 0x61b   : > { %6561 = vadd.xlane.f32.xlu1 %v6560_v11  ;;  %6685 = vadd.xlane.f32.xlu0 %v6684_v1  ;;  %v6595_v11 = vadd.f32 %v6584_v15, %v6583_v59  ;;  %v6719_v5 = vadd.f32 %v6707_v23, %v6706_v56  ;;  %v10086_v1 = vld [vmem:[%s16306_s5 + $0x118] sm:$0xff]  ;;  %v6592_v59 = vmul.f32 %v10084_v14, %v14666_v50  ;;  %v10093_v50 = vld [vmem:[%s16306_s5 + $0x150] sm:$0xff] }
 0x61c   : > { %v6594_v56 = vmul.f32 %v10086_v1, %v14668_v27  ;;  %v10095_v27 = vld [vmem:[%s16306_s5 + $0x160] sm:$0xff]  ;;  %v6629_v21 = vmul.f32 %v10093_v50, %v14635_v17 }
 0x61d   : > { %v6596_v47 = vadd.f32 %v6595_v11, %v6585_v55  ;;  %v6720_v51 = vadd.f32 %v6719_v5, %v6708_v4  ;;  %v6607_v55 = vadd.f32 %v6593_v8, %v6592_v59  ;;  %v15299_v4 = vpop.xlane.xlu2 %4646  ;;  %v6631_v11 = vmul.f32 %v10095_v27, %v14799_v29 }
 0x61f   : > { %v6608_v23 = vadd.f32 %v6607_v55, %v6594_v56  ;;  %v16572_v56 = vld [vmem:[#allocation44_spill] sm:$0xff] }
 0x621   : > { %6689 = vadd.xlane.f32.xlu2 %v6688_v22  ;;  %v6630_v22 = vmul.f32 %v10094_v30, %v14616_v60 }
 0x623   : > { %6597 = vadd.xlane.f32.xlu1 %v6596_v47  ;;  %6721 = vadd.xlane.f32.xlu0 %v6720_v51  ;;  %v15281_v28 = vpop.permute.xlu0 %10690  ;;  %v6643_v5 = vadd.f32 %v6630_v22, %v6629_v21 }
 0x624   : > { %v10693_v2 = vunpack.i.h.bf16 %v15281_v28  ;;  %v10692_v35 = vunpack.i.l.bf16 %v15281_v28  ;;  %v4725_v28 = vsel %vm2526_vm13, %v15019_v53, %v15299_v4 }
 0x625   : > { %v6644_v57 = vadd.f32 %v6643_v5, %v6631_v11  ;;  %v15313_v62 = vpop.permute.xlu2 %10685  ;;  %v16575_v5 = vld [vmem:[#allocation50_spill] sm:$0xff] }
 0x626   : > { %v15293_v15 = vsel %vm1623_vm3, %v10692_v35, %v10693_v2 }
 0x627   : > { %8464 = vmatpush.msra.mxu2 %v15293_v15 }
 0x629   : > { %6725 = vadd.xlane.f32.xlu2 %v6724_v13 }
 0x62b   : > { %6609 = vadd.xlane.f32.xlu1 %v6608_v23  ;;  %6757 = vadd.xlane.f32.xlu0 %v14642_v31  ;;  %v16574_v23 = vld [vmem:[#allocation58_spill] sm:$0xff] }
 0x62d   : > { %v15318_v17 = vpop.permute.xlu2 %10700 }
 0x62e   : > { %v10703_v51 = vunpack.i.h.bf16 %v15318_v17  ;;  %v10702_v33 = vunpack.i.l.bf16 %v15318_v17 }
 0x631   : > { %6761 = vadd.xlane.f32.xlu2 %v14781_v9  ;;  %v10688_v9 = vunpack.i.h.bf16 %v15313_v62 }
 0x633   : > { %6645 = vadd.xlane.f32.xlu1 %v6644_v57  ;;  %6769 = vadd.xlane.f32.xlu0 %v14853_v42  ;;  %v10687_v42 = vunpack.i.l.bf16 %v15313_v62 }
 0x639   : > { %6797 = vadd.xlane.f32.xlu2 %v14870_v61 }
 0x63b   : > { %6681 = vadd.xlane.f32.xlu1 %v14894_v41  ;;  %v10681_v31 = vpop.permute.xlu1 %10680  ;;  %6805 = vadd.xlane.f32.xlu0 %v14910_v36  ;;  %v8213_v41 = vsel %vm1593_vm5, %v10687_v42, %v10688_v9 }
 0x63c   : > { %v10683_v60 = vunpack.i.h.bf16 %v10681_v31  ;;  %v10682_v29 = vunpack.i.l.bf16 %v10681_v31 }
 0x63e   : > { %v15321_v14 = vsel %vm1593_vm5, %v10682_v29, %v10683_v60 }
 0x63f   : > { %8377 = vmatpush.msrb.mxu3 %v15321_v14 }
 0x641   : > { %6809 = vadd.xlane.f32.xlu2 %v14918_v7  ;;  %8378 = vmatpush.msrb.mxu3 %v14753_v38  ;;  %v10711_v7 = vpop.permute.xlu2 %10710 }
 0x642   : > { %v10713_v1 = vunpack.i.h.bf16 %v10711_v7  ;;  %v10712_v18 = vunpack.i.l.bf16 %v10711_v7 }
 0x643   : > { %6717 = vadd.xlane.f32.xlu1 %v14920_v12  ;;  %v15329_v61 = vpop.permute.xlu1 %10695  ;;  %6841 = vadd.xlane.f32.xlu0 %v14928_v43  ;;  %v8259_v43 = vsel %vm1623_vm3, %v10693_v2, %v10702_v33 }
 0x644   : > { %v10698_v36 = vunpack.i.h.bf16 %v15329_v61  ;;  %v10697_v47 = vunpack.i.l.bf16 %v15329_v61  ;;  %8379 = vmatpush.msrb.mxu3 %v8213_v41  ;;  %v8272_v59 = vsel %vm1653_vm4, %v10712_v18, %v10713_v1 }
 0x646   : > { %8380 = vmatpush.msrb.mxu3 %v14444_v16  ;;  %v8242_v12 = vsel %vm1623_vm3, %v10697_v47, %v10698_v36  ;;  %v8243_v24 = vsel %vm1623_vm3, %v10698_v36, %v10703_v51  ;;  %v8248_v13 = vsel %vm1623_vm3, %v10703_v51, %v10697_v47 }
 0x647   : > { %10376 = vmatmul.msk.f32.vlgmr.msrb.gmra.mxu3 %vm1661_vm2, %v14858_v49  ;;  %8465 = vmatpush.msra.mxu2 %v8242_v12 }
 0x648   : > { %8493 = vmatpush.msra.mxu3 %v8259_v43 }
 0x649   : > { %6845 = vadd.xlane.f32.xlu2 %v14957_v46  ;;  %8466 = vmatpush.msra.mxu2 %v14753_v38 }
 0x64a   : > { %8494 = vmatpush.msra.mxu3 %v8243_v24  ;;  %v15468_v24 = vld [vmem:[%s16307_s6] sm:$0x1] }
 0x64b   : > { %6729 = vadd.xlane.f32.xlu1 %v14991_v37  ;;  %v10706_v16 = vpop.permute.xlu1 %10705  ;;  %6877 = vadd.xlane.f32.xlu0 %v15006_v39 }
 0x64c   : > { %8495 = vmatpush.msra.mxu3 %v14740_v26  ;;  %v10707_v63 = vunpack.i.l.bf16 %v10706_v16  ;;  %8467 = vmatpush.msra.mxu2 %v14527_v45  ;;  %v10708_v6 = vunpack.i.h.bf16 %v10706_v16 }
 0x64d   : > { %10388 = vmatmul.msk.f32.vlgmr.msra.gmra.mxu2 %vm1661_vm2, %v14858_v49 }
 0x64e   : > { %8496 = vmatpush.msra.mxu3 %v14525_v44  ;;  %8580 = vmatpush.msrb.mxu2 %v8272_v59  ;;  %v4683_v46 = vpop.xlane.xlu0 %4682  ;;  %v8230_v2 = vsel %vm1593_vm5, %v10683_v60, %v10707_v63  ;;  %v8235_v37 = vsel %vm1593_vm5, %v10707_v63, %v10682_v29  ;;  %v8214_v45 = vsel %vm1593_vm5, %v10688_v9, %v10708_v6 }
 0x64f   : > { %10377 = vmatmul.msk.f32.gmra.mxu3 %vm1661_vm2, %v14942_v25  ;;  %8406 = vmatpush.msra.mxu0 %v8230_v2  ;;  %v8219_v8 = vsel %vm1593_vm5, %v10708_v6, %v10687_v42  ;;  %v4728_v55 = vsel %vm2531_vm14, %v15088_v10, %v4683_v46 }
 0x650   : > { %8581 = vmatpush.msrb.mxu2 %v8259_v43  ;;  %8435 = vmatpush.msra.mxu1 %v8235_v37  ;;  %v4732_v10 = vsel %vm2536_vm15, %v4728_v55, 0.0 }
 0x651   : > { %6881 = vadd.xlane.f32.xlu2 %v15021_v3  ;;  %8407 = vmatpush.msra.mxu0 %v14740_v26 }
 0x652   : > { %8582 = vmatpush.msrb.mxu2 %v8230_v2  ;;  %8436 = vmatpush.msra.mxu1 %v14834_v58 }
 0x653   : > { %6765 = vadd.xlane.f32.xlu1 %v15028_v19  ;;  %v8266_v44 = vpop.permute.xlu1 %8265  ;;  %6889 = vadd.xlane.f32.xlu0 %v15092_v20  ;;  %v16573_v20 = vld [vmem:[#allocation60_spill] sm:$0xff] }
 0x654   : > { %8583 = vmatpush.msrb.mxu2 %v14740_v26  ;;  %v8277_v39 = vsel %vm1653_vm4, %v10713_v1, %v8266_v44  ;;  %8408 = vmatpush.msra.mxu0 %v8214_v45  ;;  %v8271_v3 = vsel %vm1653_vm4, %v8266_v44, %v10712_v18  ;;  %v8264_v26 = vsel %vm1623_vm3, %v10702_v33, %v10692_v35 }
 0x655   : > { %8437 = vmatpush.msra.mxu1 %v8219_v8  ;;  %10389 = vmatmul.msk.f32.gmra.mxu2 %vm1661_vm2, %v14942_v25 }
 0x656   : > { %8409 = vmatpush.msra.mxu0 %v16572_v56  ;;  %8609 = vmatpush.msrb.mxu3 %v8277_v39  ;;  %v4695_v19 = vpop.xlane.xlu0 %4694 }
 0x657   : > { %8438 = vmatpush.msra.mxu1 %v16573_v20  ;;  %10378 = vmatmul.msk.f32.gmra.mxu3 %vm1661_vm2, %v15040_v34  ;;  %v4731_v11 = vsel %vm2531_vm14, %v15033_v54, %v4695_v19 }
 0x658   : > { %10384 = vmatmul.msk.f32.vlgmr.msra.gmra.mxu1 %vm1661_vm2, %v14858_v49  ;;  %8522 = vmatpush.msrb.mxu0 %v8264_v26  ;;  %v4737_v17 = vsel %vm2536_vm15, %v4731_v11, 0.0 }
 0x659   : > { %8551 = vmatpush.msrb.mxu1 %v8271_v3  ;;  %8610 = vmatpush.msrb.mxu3 %v8264_v26 }
 0x65a   : > { %8523 = vmatpush.msrb.mxu0 %v8248_v13 }
 0x65b   : > { %8552 = vmatpush.msrb.mxu1 %v15293_v15  ;;  %8611 = vmatpush.msrb.mxu3 %v8235_v37 }
 0x65c   : > { %8524 = vmatpush.msrb.mxu0 %v14834_v58  ;;  %6801 = vadd.xlane.f32.xlu1 %v15044_v0  ;;  %v4687_v35 = vpop.xlane.xlu2 %4686 }
 0x65d   : > { %8553 = vmatpush.msrb.mxu1 %v15321_v14  ;;  %v4729_v50 = vsel %vm2531_vm14, %v4725_v28, %v4687_v35  ;;  %8612 = vmatpush.msrb.mxu3 %v14834_v58 }
 0x65e   : > { %v4733_v15 = vsel %vm2536_vm15, %v4729_v50, 0.0  ;;  %10390 = vmatmul.msk.f32.gmra.mxu2 %vm1661_vm2, %v15040_v34  ;;  %8525 = vmatpush.msrb.mxu0 %v16574_v23  ;;  %v6518_v53 = vpop.xlane.xlu0 %6517 }
 0x65f   : > { %v4734_v0 = vadd.f32 %v4733_v15, %v4732_v10  ;;  %8554 = vmatpush.msrb.mxu1 %v14753_v38  ;;  %10379 = vmatmul.msk.f32.gmra.mxu3 %vm1661_vm2, %v15108_v32 }
 0x660   : > { %10385 = vmatmul.msk.f32.gmra.mxu1 %vm1661_vm2, %v14942_v25  ;;  %10380 = vmatmul.msk.f32.vlgmr.msra.gmra.mxu0 %vm1661_vm2, %v14858_v49 }
 0x664   : > { %6837 = vadd.xlane.f32.xlu1 %v15049_v40  ;;  %v6522_v58 = vpop.xlane.xlu2 %6521  ;;  %v15495_v19 = vpop.f32.mrf.mxu0 }
 0x666   : > { %10391 = vmatmul.msk.f32.gmra.mxu2 %vm1661_vm2, %v15108_v32  ;;  %v6530_v38 = vpop.xlane.xlu0 %6529 }
 0x667   : > { %10392 = vmatmul.msk.f32.vlgmr.msra.gmra.mxu3 %vm1661_vm2, %v14858_v49 }
 0x668   : > { %10386 = vmatmul.msk.f32.gmra.mxu1 %vm1661_vm2, %v15040_v34  ;;  %10381 = vmatmul.msk.f32.gmra.mxu0 %vm1661_vm2, %v14942_v25 }
 0x66c   : > { %6849 = vadd.xlane.f32.xlu1 %v15154_v48  ;;  %v6558_v4 = vpop.xlane.xlu2 %6557  ;;  %v15501_v35 = vpop.f32.mrf.mxu0 }
 0x66d   : > { %v6891_v30 = vsel %vm2491_vm6, %v6518_v53, %v6558_v4 }
 0x66e   : > { %10404 = vmatmul.msk.f32.vlgmr.msrb.gmra.mxu2 %vm1661_vm2, %v14858_v49  ;;  %v6566_v40 = vpop.xlane.xlu0 %6565 }
 0x66f   : > { %10393 = vmatmul.msk.f32.gmra.mxu3 %vm1661_vm2, %v14942_v25 }
 0x670   : > { %10387 = vmatmul.msk.f32.gmra.mxu1 %vm1661_vm2, %v15108_v32  ;;  %10382 = vmatmul.msk.f32.gmra.mxu0 %vm1661_vm2, %v15040_v34  ;;  %v15489_v45 = vpop.f32.mrf.mxu2 }
 0x674   : > { %6885 = vadd.xlane.f32.xlu1 %v15120_v52  ;;  %v6570_v27 = vpop.xlane.xlu2 %6569 }
 0x675   : > { %v6894_v48 = vsel %vm2491_vm6, %v6530_v38, %v6570_v27 }
 0x676   : > { %10405 = vmatmul.msk.f32.gmra.mxu2 %vm1661_vm2, %v14942_v25  ;;  %v6602_v22 = vpop.xlane.xlu0 %6601 }
 0x677   : > { %10394 = vmatmul.msk.f32.gmra.mxu3 %vm1661_vm2, %v15040_v34 }
 0x678   : > { %10400 = vmatmul.msk.f32.vlgmr.msrb.gmra.mxu1 %vm1661_vm2, %v14858_v49  ;;  %10383 = vmatmul.msk.f32.gmra.mxu0 %vm1661_vm2, %v15108_v32  ;;  %v15493_v56 = vpop.f32.mrf.mxu2 }
 0x67c   : > { %v6606_v21 = vpop.xlane.xlu2 %6605 }
 0x67e   : > { %10406 = vmatmul.msk.f32.gmra.mxu2 %vm1661_vm2, %v15040_v34  ;;  %v4691_v52 = vpop.xlane.xlu1 %4690  ;;  %v6638_v61 = vpop.xlane.xlu0 %6637 }
 0x67f   : > { %v4730_v57 = vsel %vm2531_vm14, %v16575_v5, %v4691_v52  ;;  %10395 = vmatmul.msk.f32.gmra.mxu3 %vm1661_vm2, %v15108_v32 }
 0x680   : > { %v4735_v62 = vsel %vm2536_vm15, %v4730_v57, 0.0  ;;  %10401 = vmatmul.msk.f32.gmra.mxu1 %vm1661_vm2, %v14942_v25  ;;  %10396 = vmatmul.msk.f32.vlgmr.msrb.gmra.mxu0 %vm1661_vm2, %v14858_v49  ;;  %v15499_v55 = vpop.f32.mrf.mxu2 }
 0x681   : > { %v4736_v31 = vadd.f32 %v4735_v62, %v4734_v0 }
 0x683   : > { %v4738_v60 = vadd.f32 %v4737_v17, %v4736_v31 }
 0x684   : > { %v6642_v54 = vpop.xlane.xlu2 %6641 }
 0x685   : > { %v4739_v29 = vrot.slane %v4738_v60, 4 }
 0x686   : > { %10407 = vmatmul.msk.f32.gmra.mxu2 %vm1661_vm2, %v15108_v32  ;;  %v6526_v14 = vpop.xlane.xlu1 %6525  ;;  %v15471_v18 = vpop.xlane.xlu0 %6649 }
 0x687   : > { %v4740_v9 = vadd.f32 %v4739_v29, %v4738_v60  ;;  %v6893_v42 = vsel %vm2491_vm6, %v6526_v14, %v6566_v40  ;;  %10408 = vmatmul.msk.f32.vlgmr.msrb.gmra.mxu3 %vm1661_vm2, %v14858_v49 }
 0x688   : > { %10402 = vmatmul.msk.f32.gmra.mxu1 %vm1661_vm2, %v15040_v34  ;;  %10397 = vmatmul.msk.f32.gmra.mxu0 %vm1661_vm2, %v14942_v25  ;;  %v15455_v41 = vsel %vm2496_vm7, %v6893_v42, %v6606_v21  ;;  %v15505_v0 = vpop.f32.mrf.mxu2 }
 0x689   : > { %v4741_v36 = vrot.slane %v4740_v9, 2 }
 0x68b   : > { %v4742_v47 = vadd.f32 %v4741_v36, %v4740_v9 }
 0x68c   : > { %v6678_v49 = vpop.xlane.xlu2 %6677 }
 0x68d   : > { %v4743_v51 = vrot.slane %v4742_v47, 1 }
 0x68e   : > { %v6562_v33 = vpop.xlane.xlu1 %6561  ;;  %v15482_v59 = vpop.xlane.xlu0 %6685 }
 0x68f   : > { %v4744_v7 = vadd.f32 %v4743_v51, %v4742_v47  ;;  %v6892_v12 = vsel %vm2491_vm6, %v6522_v58, %v6562_v33  ;;  %10409 = vmatmul.msk.f32.gmra.mxu3 %vm1661_vm2, %v14942_v25  ;;  %v15508_v58 = vpop.f32.mrf.mxu0 }
 0x690   : > { %v6896_v43 = vsel %vm2496_vm7, %v6892_v12, %v6602_v22  ;;  %10403 = vmatmul.msk.f32.gmra.mxu1 %vm1661_vm2, %v15108_v32  ;;  %10398 = vmatmul.msk.f32.gmra.mxu0 %vm1661_vm2, %v15040_v34 }
 0x691   : > { %v4745_v1 = vadd.f32 %v15468_v24, %v4744_v7  ;;  %v6900_v53 = vsel %vm2501_vm8, %v6896_v43, %v6642_v54 }
 0x693   : > { %9822 = vst.msk [vmem:[%s14467_s20 + $0x1] sm:$0x1] %vm2551_vm0, %v4745_v1 }
 0x694   : > { %v15480_v63 = vpop.xlane.xlu2 %6689 }
 0x696   : > { %v6598_v25 = vpop.xlane.xlu1 %6597  ;;  %v6722_v6 = vpop.xlane.xlu0 %6721 }
 0x697   : > { %v6895_v16 = vsel %vm2496_vm7, %v6891_v30, %v6598_v25  ;;  %10410 = vmatmul.msk.f32.gmra.mxu3 %vm1661_vm2, %v15040_v34  ;;  %v15491_v34 = vpop.f32.mrf.mxu1  ;;  %v15527_v60 = vpop.f32.mrf.mxu0 }
 0x698   : > { %10399 = vmatmul.msk.f32.gmra.mxu0 %vm1661_vm2, %v15108_v32  ;;  %v6899_v27 = vsel %vm2501_vm8, %v6895_v16, %v6638_v61 }
 0x699   : > { %v6903_v52 = vsel %vm2506_vm9, %v6899_v27, %v6678_v49 }
 0x69c   : > { %v15487_v37 = vpop.xlane.xlu2 %6725 }
 0x69e   : > { %v6610_v46 = vpop.xlane.xlu1 %6609  ;;  %v6758_v3 = vpop.xlane.xlu0 %6757 }
 0x69f   : > { %v6898_v2 = vsel %vm2496_vm7, %v6894_v48, %v6610_v46  ;;  %10411 = vmatmul.msk.f32.gmra.mxu3 %vm1661_vm2, %v15108_v32  ;;  %v15497_v26 = vpop.f32.mrf.mxu1 }
 0x6a0   : > { %v6902_v12 = vsel %vm2501_vm8, %v6898_v2, %v15471_v18 }
 0x6a4   : > { %v6762_v39 = vpop.xlane.xlu2 %6761 }
 0x6a6   : > { %v6646_v44 = vpop.xlane.xlu1 %6645  ;;  %v6770_v32 = vpop.xlane.xlu0 %6769 }
 0x6a7   : > { %v15503_v50 = vpop.f32.mrf.mxu1  ;;  %v6901_v49 = vsel %vm2501_vm8, %v15455_v41, %v6646_v44 }
 0x6ac   : > { %v6798_v13 = vpop.xlane.xlu2 %6797 }
 0x6ae   : > { %v6682_v8 = vpop.xlane.xlu1 %6681  ;;  %v6806_v15 = vpop.xlane.xlu0 %6805 }
 0x6af   : > { %v6904_v38 = vsel %vm2506_vm9, %v6900_v53, %v6682_v8  ;;  %v15513_v30 = vpop.f32.mrf.mxu1 }
 0x6b0   : > { %v6908_v48 = vsel %vm2511_vm10, %v6904_v38, %v6722_v6  ;;  %v6905_v6 = vsel %vm2506_vm9, %v6901_v49, %v15482_v59 }
 0x6b1   : > { %v6912_v11 = vsel %vm2516_vm11, %v6908_v48, %v6762_v39  ;;  %v6906_v39 = vsel %vm2506_vm9, %v6902_v12, %v15480_v63  ;;  %v6909_v8 = vsel %vm2511_vm10, %v6905_v6, %v15487_v37 }
 0x6b4   : > { %v6810_v10 = vpop.xlane.xlu2 %6809 }
 0x6b6   : > { %v6718_v20 = vpop.xlane.xlu1 %6717  ;;  %v6842_v21 = vpop.xlane.xlu0 %6841 }
 0x6b7   : > { %v6907_v57 = vsel %vm2511_vm10, %v6903_v52, %v6718_v20 }
 0x6b8   : > { %v6911_v29 = vsel %vm2516_vm11, %v6907_v57, %v6758_v3 }
 0x6b9   : > { %v6915_v36 = vsel %vm2521_vm12, %v6911_v29, %v6798_v13 }
 0x6bc   : > { %v6846_v40 = vpop.xlane.xlu2 %6845 }
 0x6be   : > { %v6730_v28 = vpop.xlane.xlu1 %6729  ;;  %v6878_v47 = vpop.xlane.xlu0 %6877 }
 0x6bf   : > { %v6910_v41 = vsel %vm2511_vm10, %v6906_v39, %v6730_v28 }
 0x6c0   : > { %v6914_v3 = vsel %vm2516_vm11, %v6910_v41, %v6770_v32 }
 0x6c1   : > { %v6918_v38 = vsel %vm2521_vm12, %v6914_v3, %v6810_v10 }
 0x6c4   : > { %v6882_v9 = vpop.xlane.xlu2 %6881 }
 0x6c6   : > { %v6766_v23 = vpop.xlane.xlu1 %6765  ;;  %v6890_v48 = vpop.xlane.xlu0 %6889 }
 0x6c7   : > { %v6913_v20 = vsel %vm2516_vm11, %v6909_v8, %v6766_v23 }
 0x6c8   : > { %v6917_v59 = vsel %vm2521_vm12, %v6913_v20, %v6806_v15 }
 0x6c9   : > { %v6921_v23 = vsel %vm2526_vm13, %v6917_v59, %v6846_v40 }
 0x6ca   : > { %v15511_v4 = vpop.f32.mrf.mxu3 }
 0x6cf   : > { %v6802_v22 = vpop.xlane.xlu1 %6801 }
 0x6d0   : > { %v15519_v5 = vpop.f32.mrf.mxu2  ;;  %v6916_v62 = vsel %vm2521_vm12, %v6912_v11, %v6802_v22 }
 0x6d1   : > { %v6920_v54 = vsel %vm2526_vm13, %v6916_v62, %v6842_v21 }
 0x6d2   : > { %v15523_v31 = vpop.f32.mrf.mxu3  ;;  %v6924_v42 = vsel %vm2531_vm14, %v6920_v54, %v6882_v9 }
 0x6d3   : > { %v8629_v17 = vmax.f32 %v15501_v35, %v15523_v31  ;;  %v6928_v25 = vsel %vm2536_vm15, %v6924_v42, 0.0  ;;  %v8686_v35 = vld [vmem:[%s16306_s5] sm:$0xff] }
 0x6d4   : > { %v10508_v31 = vld [vmem:[%s16306_s5 + $0x360] sm:$0xff] }
 0x6d5   : > { %v15531_v14 = vpop.f32.mrf.mxu1 }
 0x6d7   : > { %v6838_v61 = vpop.xlane.xlu1 %6837 }
 0x6d8   : > { %v6919_v51 = vsel %vm2526_vm13, %v6915_v36, %v6838_v61  ;;  %v15536_v33 = vpop.f32.mrf.mxu2 }
 0x6d9   : > { %v6923_v7 = vsel %vm2531_vm14, %v6919_v51, %v6878_v47 }
 0x6da   : > { %v6927_v43 = vsel %vm2536_vm15, %v6923_v7, 0.0  ;;  %v15544_v1 = vpop.f32.mrf.mxu3 }
 0x6db   : > { %v8632_v16 = vmax.f32 %v15508_v58, %v15544_v1  ;;  %v6929_v46 = vadd.f32 %v6928_v25, %v6927_v43 }
 0x6dd   : > { %v15553_v18 = vpop.f32.mrf.mxu1  ;;  %v8411_v2 = vpop.f32.mrf.mxu0 }
 0x6de   : > { %v8627_v41 = vmax.f32 %v15491_v34, %v8411_v2 }
 0x6df   : > { %v6850_v44 = vpop.xlane.xlu1 %6849 }
 0x6e0   : > { %v6922_v28 = vsel %vm2526_vm13, %v6918_v38, %v6850_v44  ;;  %v16576_v38 = vld [vmem:[#allocation74_spill] sm:$0xff] }
 0x6e1   : > { %v15560_v13 = vpop.f32.mrf.mxu2  ;;  %v6926_v21 = vsel %vm2531_vm14, %v6922_v28, %v6890_v48 }
 0x6e2   : > { %v15562_v53 = vpop.f32.mrf.mxu3  ;;  %v6932_v10 = vsel %vm2536_vm15, %v6926_v21, 0.0 }
 0x6e3   : > { %v8635_v63 = vmax.f32 %v15527_v60, %v15562_v53  ;;  %v10438_v60 = vld [vmem:[%s16306_s5 + $0x130] sm:$0xff] }
 0x6e5   : > { %v15569_v27 = vpop.f32.mrf.mxu1  ;;  %v8414_v37 = vpop.f32.mrf.mxu0 }
 0x6e7   : > { %v6886_v32 = vpop.xlane.xlu1 %6885 }
 0x6e8   : > { %v6925_v22 = vsel %vm2531_vm14, %v6921_v23, %v6886_v32 }
 0x6e9   : > { %v6930_v52 = vsel %vm2536_vm15, %v6925_v22, 0.0  ;;  %v15575_v11 = vpop.f32.mrf.mxu2  ;;  %v10424_v22 = vld [vmem:[%s16306_s5 + $0xc0] sm:$0xff] }
 0x6ea   : > { %v6931_v15 = vadd.f32 %v6930_v52, %v6929_v46  ;;  %v8498_v57 = vpop.f32.mrf.mxu3  ;;  %v8626_v46 = vmax.f32 %v15495_v19, %v15511_v4  ;;  %v8630_v19 = vmax.f32 %v15497_v26, %v8414_v37  ;;  %v10412_v26 = vld [vmem:[%s16306_s5 + $0x60] sm:$0xff] }
 0x6ec   : > { %v6933_v62 = vadd.f32 %v6932_v10, %v6931_v15  ;;  %v10425_v15 = vld [vmem:[%s16306_s5 + $0xc8] sm:$0xff] }
 0x6ed   : > { %v15578_v29 = vpop.f32.mrf.mxu1  ;;  %v8417_v54 = vpop.f32.mrf.mxu0 }
 0x6ee   : > { %v6934_v9 = vrot.slane %v6933_v62, 4  ;;  %v8637_v40 = vmax.f32 %v15505_v0, %v15578_v29  ;;  %v10479_v0 = vld [vmem:[%s16306_s5 + $0x278] sm:$0xff]  ;;  %v10480_v29 = vld [vmem:[%s16306_s5 + $0x280] sm:$0xff] }
 0x6f0   : > { %v6935_v42 = vadd.f32 %v6934_v9, %v6933_v62 }
 0x6f1   : > { %v8585_v61 = vpop.f32.mrf.mxu2 }
 0x6f2   : > { %v6936_v36 = vrot.slane %v6935_v42, 2  ;;  %v8501_v47 = vpop.f32.mrf.mxu3  ;;  %v8639_v6 = vmax.f32 %v8498_v57, %v8585_v61  ;;  %v8687_v61 = vld [vmem:[%s16306_s5 + $0x8] sm:$0xff] }
 0x6f4   : > { %v6937_v51 = vadd.f32 %v6936_v36, %v6935_v42  ;;  %v8651_v59 = vmax.f32 %v8627_v41, %v8639_v6  ;;  %v10413_v42 = vld [vmem:[%s16306_s5 + $0x68] sm:$0xff]  ;;  %v8628_v36 = vmax.f32 %v15489_v45, %v15531_v14  ;;  %v10448_v14 = vld [vmem:[%s16306_s5 + $0x180] sm:$0xff] }
 0x6f5   : > { %v8556_v7 = vpop.f32.mrf.mxu1  ;;  %v15582_v12 = vpop.f32.mrf.mxu0 }
 0x6f6   : > { %v6938_v49 = vrot.slane %v6937_v51, 1  ;;  %v8638_v43 = vmax.f32 %v15519_v5, %v8556_v7  ;;  %v8636_v25 = vmax.f32 %v15513_v30, %v15582_v12  ;;  %v8663_v4 = vadd.f32 %v8651_v59, %v16576_v38  ;;  %v10749_v30 = vld [vmem:[%s16306_s5 + $0x1e0] sm:$0xff]  ;;  %v10473_v12 = vld [vmem:[%s16306_s5 + $0x248] sm:$0xff] }
 0x6f8   : > { %v6939_v39 = vadd.f32 %v6938_v49, %v6937_v51  ;;  %v8650_v44 = vmax.f32 %v8626_v46, %v8638_v43  ;;  %v15605_v52 = vmax.f32 %v8663_v4, 0.0  ;;  %v8633_v51 = vmax.f32 %v15503_v50, %v8417_v54  ;;  %v10509_v49 = vld [vmem:[%s16306_s5 + $0x368] sm:$0xff]  ;;  %v10436_v50 = vld [vmem:[%s16306_s5 + $0x120] sm:$0xff] }
 0x6f9   : > { %v8588_v8 = vpop.f32.mrf.mxu2  ;;  %v8634_v43 = vmax.f32 %v15499_v55, %v15569_v27 }
 0x6fa   : > { %v6940_v3 = vadd.f32 %v15468_v24, %v6939_v39  ;;  %v8504_v20 = vpop.f32.mrf.mxu3  ;;  %v8662_v5 = vadd.f32 %v8650_v44, %v16576_v38  ;;  %v8642_v28 = vmax.f32 %v8501_v47, %v8588_v8  ;;  %v8631_v47 = vmax.f32 %v15493_v56, %v15553_v18  ;;  %v10449_v8 = vld [vmem:[%s16306_s5 + $0x188] sm:$0xff] }
 0x6fb   : > { %v8779_v46 = vmul.f32 %v10425_v15, %v15605_v52  ;;  %v8739_v41 = vmul.f32 %v10413_v42, %v15605_v52  ;;  %v8699_v44 = vmul.f32 %v8687_v61, %v15605_v52  ;;  %v16578_v15 = vld [vmem:[#allocation14_spill] sm:$0xff]  ;;  %v10748_v42 = vld [vmem:[%s16306_s5 + $0x300] sm:$0xff]  ;;  %v10485_v18 = vld [vmem:[%s16306_s5 + $0x2a8] sm:$0xff] }
 0x6fc   : > { %10171 = vst.msk [vmem:[%s14467_s20 + $0x2] sm:$0x1] %vm2551_vm0, %v6940_v3  ;;  %v15597_v23 = vmax.f32 %v8662_v5, 0.0  ;;  %v8654_v34 = vmax.f32 %v8630_v19, %v8642_v28  ;;  %v9059_v28 = vmul.f32 %v10509_v49, %v15605_v52 }
 0x6fd   : > { %v8559_v48 = vpop.f32.mrf.mxu1  ;;  %v8527_v37 = vpop.f32.mrf.mxu0 }
 0x6fe   : > { %v8641_v32 = vmax.f32 %v15536_v33, %v8559_v48  ;;  %v8778_v9 = vmul.f32 %v10424_v22, %v15597_v23  ;;  %v8738_v7 = vmul.f32 %v10412_v26, %v15597_v23  ;;  %v8698_v6 = vmul.f32 %v8686_v35, %v15597_v23 }
 0x6ff   : > { %v9058_v45 = vmul.f32 %v10508_v31, %v15597_v23  ;;  %v8858_v4 = vmul.f32 %v10448_v14, %v15597_v23  ;;  %v9018_v58 = vmul.f32 %v10748_v42, %v15597_v23  ;;  %v8898_v1 = vmul.f32 %v10749_v30, %v15597_v23  ;;  %v10750_v14 = vld [vmem:[%s16306_s5 + $0x308] sm:$0xff] }
 0x700   : > { %v8653_v24 = vmax.f32 %v8629_v17, %v8641_v32  ;;  %v16577_v17 = vld [vmem:[#allocation11_spill] sm:$0xff]  ;;  %v15658_v5 = vadd.f32 %v8779_v46, %v8778_v9  ;;  %v15664_v19 = vadd.f32 %v8739_v41, %v8738_v7  ;;  %v15671_v22 = vadd.f32 %v8699_v44, %v8698_v6  ;;  %v10414_v6 = vld [vmem:[%s16306_s5 + $0x70] sm:$0xff] }
 0x701   : > { %v8591_v2 = vpop.f32.mrf.mxu2  ;;  %v8666_v57 = vadd.f32 %v8654_v34, %v16577_v17  ;;  %v8818_v34 = vmul.f32 %v10436_v50, %v15597_v23  ;;  %v15673_v26 = vadd.f32 %v9059_v28, %v9058_v45  ;;  %v8688_v45 = vld [vmem:[%s16306_s5 + $0x10] sm:$0xff]  ;;  %v9019_v50 = vmul.f32 %v10750_v14, %v15605_v52 }
 0x702   : > { %v8507_v21 = vpop.f32.mrf.mxu3  ;;  %v8645_v33 = vmax.f32 %v8504_v20, %v8591_v2  ;;  %v8665_v10 = vadd.f32 %v8653_v24, %v16577_v17  ;;  %v10415_v24 = vld [vmem:[%s16306_s5 + $0x78] sm:$0xff]  ;;  %v8939_v28 = vmul.f32 %v10473_v12, %v15605_v52 }
 0x703   : > { %v15654_v3 = vmax.f32 %v8666_v57, 0.0  ;;  %v9030_v53 = vadd.f32 %v9019_v50, %v9018_v58 }
 0x704   : > { %v8657_v54 = vmax.f32 %v8633_v51, %v8645_v33  ;;  %v15656_v20 = vmax.f32 %v8665_v10, 0.0  ;;  %v8859_v33 = vmul.f32 %v10449_v8, %v15605_v52  ;;  %v10416_v10 = vld [vmem:[%s16306_s5 + $0x80] sm:$0xff] }
 0x705   : > { %v8562_v62 = vpop.f32.mrf.mxu1  ;;  %v8530_v61 = vpop.f32.mrf.mxu0 }
 0x706   : > { %v8644_v39 = vmax.f32 %v15560_v13, %v8562_v62  ;;  %v10437_v13 = vld [vmem:[%s16306_s5 + $0x128] sm:$0xff]  ;;  %v8669_v35 = vadd.f32 %v8657_v54, %v16578_v15  ;;  %v8870_v51 = vadd.f32 %v8859_v33, %v8858_v4 }
 0x707   : > { %v8819_v57 = vmul.f32 %v10437_v13, %v15605_v52  ;;  %v10451_v13 = vld [vmem:[%s16306_s5 + $0x198] sm:$0xff] }
 0x708   : > { %v8656_v31 = vmax.f32 %v8632_v16, %v8644_v39  ;;  %v8741_v16 = vmul.f32 %v10415_v24, %v15656_v20  ;;  %v8742_v39 = vmul.f32 %v10416_v10, %v15654_v3  ;;  %v15728_v41 = vmax.f32 %v8669_v35, 0.0  ;;  %v8690_v24 = vld [vmem:[%s16306_s5 + $0x20] sm:$0xff] }
 0x709   : > { %v8594_v59 = vpop.f32.mrf.mxu2  ;;  %v8830_v7 = vadd.f32 %v8819_v57, %v8818_v34  ;;  %v8689_v34 = vld [vmem:[%s16306_s5 + $0x18] sm:$0xff] }
 0x70a   : > { %v8648_v48 = vmax.f32 %v8507_v21, %v8594_v59  ;;  %v8614_v32 = vpop.f32.mrf.mxu3  ;;  %v10472_v21 = vld [vmem:[%s16306_s5 + $0x240] sm:$0xff]  ;;  %v8668_v44 = vadd.f32 %v8656_v31, %v16578_v15  ;;  %v10450_v59 = vld [vmem:[%s16306_s5 + $0x190] sm:$0xff]  ;;  %v15749_v4 = vadd.f32 %v8742_v39, %v8741_v16  ;;  %v8701_v31 = vmul.f32 %v8689_v34, %v15656_v20  ;;  %v10439_v34 = vld [vmem:[%s16306_s5 + $0x138] sm:$0xff] }
 0x70b   : > { %v8640_v2 = vmax.f32 %v8527_v37, %v8614_v32  ;;  %v8938_v49 = vmul.f32 %v10472_v21, %v15597_v23  ;;  %v8861_v21 = vmul.f32 %v10451_v13, %v15656_v20  ;;  %v8702_v16 = vmul.f32 %v8690_v24, %v15654_v3  ;;  %v10440_v24 = vld [vmem:[%s16306_s5 + $0x140] sm:$0xff] }
 0x70c   : > { %v15686_v37 = vmax.f32 %v8636_v25, %v8648_v48  ;;  %v10452_v48 = vld [vmem:[%s16306_s5 + $0x1a0] sm:$0xff] }
 0x70d   : > { %v8652_v62 = vmax.f32 %v8628_v36, %v8640_v2  ;;  %v8565_v9 = vpop.f32.mrf.mxu1  ;;  %v10426_v36 = vld [vmem:[%s16306_s5 + $0xd0] sm:$0xff]  ;;  %v8950_v33 = vadd.f32 %v8939_v28, %v8938_v49  ;;  %v8862_v35 = vmul.f32 %v10452_v48, %v15654_v3  ;;  %v10484_v49 = vld [vmem:[%s16306_s5 + $0x2a0] sm:$0xff]  ;;  %v8533_v14 = vpop.f32.mrf.mxu0  ;;  %v8714_v39 = vadd.f32 %v8702_v16, %v8701_v31 }
 0x70e   : > { %v8647_v25 = vmax.f32 %v15575_v11, %v8565_v9  ;;  %v10510_v11 = vld [vmem:[%s16306_s5 + $0x370] sm:$0xff]  ;;  %v10500_v28 = vld [vmem:[%s16306_s5 + $0x320] sm:$0xff] }
 0x70f   : > { %v8664_v46 = vadd.f32 %v8652_v62, %v16576_v38  ;;  %v10751_v38 = vld [vmem:[%s16306_s5 + $0x1e8] sm:$0xff] }
 0x710   : > { %v8899_v54 = vmul.f32 %v10751_v38, %v15605_v52  ;;  %v15734_v8 = vmax.f32 %v8635_v63, %v8647_v25  ;;  %v8874_v38 = vadd.f32 %v8862_v35, %v8861_v21 }
 0x711   : > { %v8676_v32 = vmax.f32 %v8664_v46, 0.0 }
 0x712   : > { %v8910_v63 = vadd.f32 %v8899_v54, %v8898_v1  ;;  %v8617_v2 = vpop.f32.mrf.mxu3  ;;  %v10474_v1 = vld [vmem:[%s16306_s5 + $0x250] sm:$0xff]  ;;  %v8691_v54 = vld [vmem:[%s16306_s5 + $0x28] sm:$0xff] }
 0x713   : > { %v8643_v57 = vmax.f32 %v8530_v61, %v8617_v2  ;;  %v8780_v10 = vmul.f32 %v10426_v36, %v8676_v32  ;;  %v8740_v62 = vmul.f32 %v10414_v6, %v8676_v32  ;;  %v8700_v9 = vmul.f32 %v8688_v45, %v8676_v32 }
 0x714   : > { %v9060_v42 = vmul.f32 %v10510_v11, %v8676_v32  ;;  %v8860_v58 = vmul.f32 %v10450_v59, %v8676_v32  ;;  %v8820_v30 = vmul.f32 %v10438_v60, %v8676_v32  ;;  %v10752_v11 = vld [vmem:[%s16306_s5 + $0x310] sm:$0xff]  ;;  %v10499_v59 = vld [vmem:[%s16306_s5 + $0x318] sm:$0xff] }
 0x715   : > { %v8655_v12 = vmax.f32 %v8631_v47, %v8643_v57  ;;  %v8791_v25 = vadd.f32 %v15658_v5, %v8780_v10  ;;  %v8751_v61 = vadd.f32 %v15664_v19, %v8740_v62  ;;  %v8711_v36 = vadd.f32 %v15671_v22, %v8700_v9  ;;  %v10753_v19 = vld [vmem:[%s16306_s5 + $0x1f0] sm:$0xff]  ;;  %v10441_v62 = vld [vmem:[%s16306_s5 + $0x148] sm:$0xff] }
 0x716   : > { %v9071_v46 = vadd.f32 %v15673_v26, %v9060_v42  ;;  %v8871_v6 = vadd.f32 %v8870_v51, %v8860_v58  ;;  %v8831_v45 = vadd.f32 %v8830_v7, %v8820_v30  ;;  %v9020_v56 = vmul.f32 %v10752_v11, %v8676_v32  ;;  %v10417_v26 = vld [vmem:[%s16306_s5 + $0x88] sm:$0xff]  ;;  %v10427_v30 = vld [vmem:[%s16306_s5 + $0xd8] sm:$0xff] }
 0x717   : > { %v15780_v47 = vmax.f32 %v8668_v44, 0.0  ;;  %v8667_v5 = vadd.f32 %v8655_v12, %v16577_v17  ;;  %8792 = vadd.xlane.f32.xlu0 %v8791_v25  ;;  %8752 = vadd.xlane.f32.xlu1 %v8751_v61  ;;  %v8900_v22 = vmul.f32 %v10753_v19, %v8676_v32  ;;  %v8940_v51 = vmul.f32 %v10474_v1, %v8676_v32  ;;  %v10453_v7 = vld [vmem:[%s16306_s5 + $0x1a8] sm:$0xff]  ;;  %v10486_v17 = vld [vmem:[%s16306_s5 + $0x2b0] sm:$0xff]  ;;  %v10428_v1 = vld [vmem:[%s16306_s5 + $0xe0] sm:$0xff] }
 0x718   : > { %8712 = vadd.xlane.f32.xlu2 %v8711_v36  ;;  %v15795_v50 = vadd.f32 %v9030_v53, %v9020_v56  ;;  %v8978_v44 = vmul.f32 %v10484_v49, %v15597_v23  ;;  %v8979_v53 = vmul.f32 %v10485_v18, %v15605_v52  ;;  %v10501_v23 = vld [vmem:[%s16306_s5 + $0x328] sm:$0xff]  ;;  %v8980_v21 = vmul.f32 %v10486_v17, %v8676_v32  ;;  %v10463_v19 = vld [vmem:[%s16306_s5 + $0x1f8] sm:$0xff]  ;;  %v8694_v17 = vld [vmem:[%s16306_s5 + $0x40] sm:$0xff] }
 0x719   : > { %v15807_v13 = vmax.f32 %v8667_v5, 0.0  ;;  %v15809_v48 = vadd.f32 %v8910_v63, %v8900_v22  ;;  %v15811_v60 = vadd.f32 %v8950_v33, %v8940_v51  ;;  %v9021_v63 = vmul.f32 %v10499_v59, %v15656_v20  ;;  %v10429_v36 = vld [vmem:[%s16306_s5 + $0xe8] sm:$0xff]  ;;  %v10464_v22 = vld [vmem:[%s16306_s5 + $0x200] sm:$0xff]  ;;  %v8692_v51 = vld [vmem:[%s16306_s5 + $0x30] sm:$0xff] }
 0x71a   : > { %v8620_v2 = vpop.f32.mrf.mxu3  ;;  %v9022_v33 = vmul.f32 %v10500_v28, %v15654_v3  ;;  %v8821_v52 = vmul.f32 %v10439_v34, %v15656_v20  ;;  %v8990_v9 = vadd.f32 %v8979_v53, %v8978_v44  ;;  %v8822_v58 = vmul.f32 %v10440_v24, %v15654_v3  ;;  %v10512_v44 = vld [vmem:[%s16306_s5 + $0x380] sm:$0xff]  ;;  %v10513_v59 = vld [vmem:[%s16306_s5 + $0x388] sm:$0xff] }
 0x71b   : > { %v8646_v35 = vmax.f32 %v8533_v14, %v8620_v2  ;;  %v8743_v31 = vmul.f32 %v10417_v26, %v15807_v13  ;;  %v8863_v57 = vmul.f32 %v10453_v7, %v15807_v13  ;;  %v8703_v10 = vmul.f32 %v8691_v54, %v15807_v13  ;;  %v8693_v7 = vld [vmem:[%s16306_s5 + $0x38] sm:$0xff] }
 0x71c   : > { %v9023_v32 = vmul.f32 %v10501_v23, %v15807_v13  ;;  %v9034_v42 = vadd.f32 %v9022_v33, %v9021_v63  ;;  %v15851_v49 = vadd.f32 %v8990_v9, %v8980_v21  ;;  %v8823_v56 = vmul.f32 %v10441_v62, %v15807_v13  ;;  %v10755_v62 = vld [vmem:[%s16306_s5 + $0x2c0] sm:$0xff] }
 0x71d   : > { %v8658_v16 = vmax.f32 %v8634_v43, %v8646_v35  ;;  %v8755_v12 = vadd.f32 %v15749_v4, %v8743_v31  ;;  %v15844_v25 = vadd.f32 %v8874_v38, %v8863_v57  ;;  %v15846_v61 = vadd.f32 %v8714_v39, %v8703_v10  ;;  %v10511_v39 = vld [vmem:[%s16306_s5 + $0x378] sm:$0xff]  ;;  %v10476_v57 = vld [vmem:[%s16306_s5 + $0x260] sm:$0xff]  ;;  %v10477_v10 = vld [vmem:[%s16306_s5 + $0x268] sm:$0xff] }
 0x71e   : > { %v15853_v11 = vadd.f32 %v9034_v42, %v9023_v32  ;;  %v8834_v18 = vadd.f32 %v8822_v58, %v8821_v52  ;;  %v8781_v27 = vmul.f32 %v10427_v30, %v15656_v20  ;;  %v8782_v43 = vmul.f32 %v10428_v1, %v15654_v3  ;;  %v10475_v31 = vld [vmem:[%s16306_s5 + $0x258] sm:$0xff]  ;;  %v10756_v32 = vld [vmem:[%s16306_s5 + $0x2c8] sm:$0xff] }
 0x71f   : > { %v8670_v55 = vadd.f32 %v8658_v16, %v16578_v15  ;;  %9072 = vadd.xlane.f32.xlu0 %v9071_v46  ;;  %8872 = vadd.xlane.f32.xlu1 %v8871_v6  ;;  %v8783_v5 = vmul.f32 %v10429_v36, %v15807_v13  ;;  %v10465_v15 = vld [vmem:[%s16306_s5 + $0x208] sm:$0xff]  ;;  %v8902_v26 = vmul.f32 %v10464_v22, %v15654_v3  ;;  %v10442_v16 = vld [vmem:[%s16306_s5 + $0x150] sm:$0xff]  ;;  %v10444_v36 = vld [vmem:[%s16306_s5 + $0x160] sm:$0xff] }
 0x720   : > { %8832 = vadd.xlane.f32.xlu2 %v8831_v45  ;;  %v15859_v4 = vadd.f32 %v8834_v18, %v8823_v56  ;;  %v8794_v6 = vadd.f32 %v8782_v43, %v8781_v27  ;;  %v8901_v45 = vmul.f32 %v10463_v19, %v15656_v20  ;;  %v8903_v14 = vmul.f32 %v10465_v15, %v15807_v13  ;;  %v10418_v15 = vld [vmem:[%s16306_s5 + $0x90] sm:$0xff] }
 0x721   : > { %v15871_v46 = vmax.f32 %v8670_v55, 0.0  ;;  %v8704_v38 = vmul.f32 %v8692_v51, %v15780_v47  ;;  %v8705_v54 = vmul.f32 %v8693_v7, %v15728_v41  ;;  %v9061_v24 = vmul.f32 %v10511_v39, %v15656_v20  ;;  %v10454_v51 = vld [vmem:[%s16306_s5 + $0x1b0] sm:$0xff]  ;;  %v10455_v7 = vld [vmem:[%s16306_s5 + $0x1b8] sm:$0xff] }
 0x722   : > { %v15896_v28 = vadd.f32 %v8794_v6, %v8783_v5  ;;  %v8914_v53 = vadd.f32 %v8902_v26, %v8901_v45  ;;  %v9062_v2 = vmul.f32 %v10512_v44, %v15654_v3  ;;  %v9063_v21 = vmul.f32 %v10513_v59, %v15807_v13  ;;  %v8536_v5 = vpop.f32.mrf.mxu0  ;;  %v8623_v19 = vpop.f32.mrf.mxu3  ;;  %v10419_v6 = vld [vmem:[%s16306_s5 + $0x98] sm:$0xff]  ;;  %v10420_v45 = vld [vmem:[%s16306_s5 + $0xa0] sm:$0xff]  ;;  %v10430_v39 = vld [vmem:[%s16306_s5 + $0xf0] sm:$0xff] }
 0x723   : > { %v8706_v23 = vmul.f32 %v8694_v17, %v15871_v46  ;;  %v8718_v34 = vadd.f32 %v8705_v54, %v8704_v38  ;;  %v8982_v9 = vmul.f32 %v10755_v62, %v15654_v3  ;;  %v8983_v42 = vmul.f32 %v10756_v32, %v15807_v13  ;;  %v10456_v17 = vld [vmem:[%s16306_s5 + $0x1c0] sm:$0xff]  ;;  %v10431_v44 = vld [vmem:[%s16306_s5 + $0xf8] sm:$0xff]  ;;  %v10478_v62 = vld [vmem:[%s16306_s5 + $0x270] sm:$0xff] }
 0x724   : > { %v15902_v63 = vadd.f32 %v8914_v53, %v8903_v14  ;;  %v9074_v52 = vadd.f32 %v9062_v2, %v9061_v24  ;;  %v8941_v58 = vmul.f32 %v10475_v31, %v15656_v20  ;;  %v8942_v30 = vmul.f32 %v10476_v57, %v15654_v3  ;;  %v10432_v59 = vld [vmem:[%s16306_s5 + $0x100] sm:$0xff]  ;;  %v10467_v32 = vld [vmem:[%s16306_s5 + $0x218] sm:$0xff] }
 0x725   : > { %v15904_v33 = vadd.f32 %v8718_v34, %v8706_v23  ;;  %v8943_v1 = vmul.f32 %v10477_v10, %v15807_v13  ;;  %v8824_v56 = vmul.f32 %v10442_v16, %v15780_v47  ;;  %v8826_v3 = vmul.f32 %v10444_v36, %v15871_v46  ;;  %v10491_v16 = vld [vmem:[%s16306_s5 + $0x2d8] sm:$0xff] }
 0x726   : > { %v15908_v35 = vadd.f32 %v9074_v52, %v9063_v21  ;;  %v8954_v13 = vadd.f32 %v8942_v30, %v8941_v58  ;;  %v8744_v26 = vmul.f32 %v10418_v15, %v15780_v47  ;;  %v8649_v14 = vmax.f32 %v8536_v5, %v8623_v19 }
 0x727   : > { %9032 = vadd.xlane.f32.xlu1 %v15795_v50  ;;  %8756 = vadd.xlane.f32.xlu0 %v8755_v12  ;;  %v10754_v50 = vld [vmem:[%s16306_s5 + $0x2b8] sm:$0xff]  ;;  %v8865_v38 = vmul.f32 %v10455_v7, %v15728_v41  ;;  %v8866_v54 = vmul.f32 %v10456_v17, %v15871_v46  ;;  %v8784_v23 = vmul.f32 %v10430_v39, %v15780_v47  ;;  %v8695_v7 = vld [vmem:[%s16306_s5 + $0x48] sm:$0xff]  ;;  %v8696_v17 = vld [vmem:[%s16306_s5 + $0x50] sm:$0xff] }
 0x728   : > { %8912 = vadd.xlane.f32.xlu2 %v15809_v48  ;;  %v8981_v48 = vmul.f32 %v10754_v50, %v15656_v20  ;;  %v10443_v12 = vld [vmem:[%s16306_s5 + $0x158] sm:$0xff]  ;;  %v15948_v43 = vadd.f32 %v8954_v13, %v8943_v1  ;;  %v8785_v34 = vmul.f32 %v10431_v44, %v15728_v41  ;;  %v8786_v24 = vmul.f32 %v10432_v59, %v15871_v46  ;;  %v16579_v50 = vld [vmem:[#allocation18_spill] sm:$0xff] }
 0x729   : > { %v8825_v20 = vmul.f32 %v10443_v12, %v15728_v41  ;;  %v8661_v31 = vmax.f32 %v8637_v40, %v8649_v14  ;;  %v8671_v40 = vadd.f32 %v15734_v8, %v16579_v50  ;;  %v10468_v8 = vld [vmem:[%s16306_s5 + $0x220] sm:$0xff]  ;;  %v8905_v58 = vmul.f32 %v10467_v32, %v15728_v41  ;;  %v10490_v1 = vld [vmem:[%s16306_s5 + $0x2d0] sm:$0xff]  ;;  %v8697_v14 = vld [vmem:[%s16306_s5 + $0x58] sm:$0xff] }
 0x72a   : > { %v8994_v18 = vadd.f32 %v8982_v9, %v8981_v48  ;;  %v8798_v52 = vadd.f32 %v8785_v34, %v8784_v23  ;;  %v8672_v48 = vadd.f32 %v15686_v37, %v16579_v50  ;;  %v8944_v37 = vmul.f32 %v10478_v62, %v15780_v47  ;;  %v10466_v9 = vld [vmem:[%s16306_s5 + $0x210] sm:$0xff]  ;;  %v10492_v12 = vld [vmem:[%s16306_s5 + $0x2e0] sm:$0xff]  ;;  %v10435_v44 = vld [vmem:[%s16306_s5 + $0x118] sm:$0xff] }
 0x72b   : > { %v8838_v55 = vadd.f32 %v8825_v20, %v8824_v56  ;;  %v8906_v30 = vmul.f32 %v10468_v8, %v15871_v46  ;;  %v8984_v56 = vmul.f32 %v10490_v1, %v15780_v47  ;;  %v8985_v20 = vmul.f32 %v10491_v16, %v15728_v41  ;;  %v10434_v39 = vld [vmem:[%s16306_s5 + $0x110] sm:$0xff]  ;;  %v10457_v32 = vld [vmem:[%s16306_s5 + $0x1c8] sm:$0xff] }
 0x72c   : > { %v15946_v27 = vadd.f32 %v8994_v18, %v8983_v42  ;;  %v15998_v10 = vadd.f32 %v8798_v52, %v8786_v24  ;;  %v8904_v42 = vmul.f32 %v10466_v9, %v15780_v47  ;;  %v16046_v5 = vmax.f32 %v8672_v48, 0.0  ;;  %v10421_v48 = vld [vmem:[%s16306_s5 + $0xa8] sm:$0xff]  ;;  %v10422_v62 = vld [vmem:[%s16306_s5 + $0xb0] sm:$0xff] }
 0x72d   : > { %v15950_v22 = vadd.f32 %v8838_v55, %v8826_v3  ;;  %v8986_v3 = vmul.f32 %v10492_v12, %v15871_v46  ;;  %v8998_v55 = vadd.f32 %v8985_v20, %v8984_v56  ;;  %v16048_v19 = vmax.f32 %v8671_v40, 0.0  ;;  %v10445_v40 = vld [vmem:[%s16306_s5 + $0x168] sm:$0xff]  ;;  %v10458_v8 = vld [vmem:[%s16306_s5 + $0x1d0] sm:$0xff] }
 0x72e   : > { %v8918_v18 = vadd.f32 %v8905_v58, %v8904_v42  ;;  %v8788_v23 = vmul.f32 %v10434_v39, %v16046_v5 }
 0x72f   : > { %8876 = vadd.xlane.f32.xlu0 %v15844_v25  ;;  %8716 = vadd.xlane.f32.xlu1 %v15846_v61  ;;  %v8745_v25 = vmul.f32 %v10419_v6, %v15728_v41  ;;  %v8746_v61 = vmul.f32 %v10420_v45, %v15871_v46  ;;  %v16054_v45 = vadd.f32 %v8998_v55, %v8986_v3  ;;  %v10481_v3 = vld [vmem:[%s16306_s5 + $0x288] sm:$0xff]  ;;  %v10483_v55 = vld [vmem:[%s16306_s5 + $0x298] sm:$0xff] }
 0x730   : > { %8952 = vadd.xlane.f32.xlu2 %v15811_v60  ;;  %v8864_v60 = vmul.f32 %v10454_v51, %v15780_v47  ;;  %v16052_v6 = vadd.f32 %v8918_v18, %v8906_v30  ;;  %v8867_v58 = vmul.f32 %v10457_v32, %v16048_v19  ;;  %v8868_v30 = vmul.f32 %v10458_v8, %v16046_v5  ;;  %v10482_v18 = vld [vmem:[%s16306_s5 + $0x290] sm:$0xff] }
 0x731   : > { %v8758_v53 = vadd.f32 %v8745_v25, %v8744_v26  ;;  %v10502_v26 = vld [vmem:[%s16306_s5 + $0x330] sm:$0xff]  ;;  %v10503_v25 = vld [vmem:[%s16306_s5 + $0x338] sm:$0xff] }
 0x732   : > { %v8878_v2 = vadd.f32 %v8865_v38, %v8864_v60  ;;  %v9024_v51 = vmul.f32 %v10502_v26, %v15780_v47  ;;  %v8708_v60 = vmul.f32 %v8696_v17, %v16046_v5  ;;  %v8947_v26 = vmul.f32 %v10481_v3, %v16048_v19  ;;  %v10506_v17 = vld [vmem:[%s16306_s5 + $0x350] sm:$0xff] }
 0x733   : > { %v15991_v21 = vadd.f32 %v8758_v53, %v8746_v61  ;;  %v10504_v61 = vld [vmem:[%s16306_s5 + $0x340] sm:$0xff] }
 0x734   : > { %v15996_v57 = vadd.f32 %v8878_v2, %v8866_v54  ;;  %v10433_v54 = vld [vmem:[%s16306_s5 + $0x108] sm:$0xff] }
 0x735   : > { %v8787_v53 = vmul.f32 %v10433_v54, %v16048_v19 }
 0x737   : > { %9036 = vadd.xlane.f32.xlu0 %v15853_v11  ;;  %8836 = vadd.xlane.f32.xlu1 %v15859_v4  ;;  %v8945_v11 = vmul.f32 %v10479_v0, %v15728_v41  ;;  %v8946_v4 = vmul.f32 %v10480_v29, %v15871_v46  ;;  %v8802_v52 = vadd.f32 %v8788_v23, %v8787_v53  ;;  %v10423_v0 = vld [vmem:[%s16306_s5 + $0xb8] sm:$0xff] }
 0x738   : > { %8992 = vadd.xlane.f32.xlu2 %v15851_v49  ;;  %v8673_v49 = vadd.f32 %v8661_v31, %v16579_v50  ;;  %v8747_v29 = vmul.f32 %v10421_v48, %v16048_v19 }
 0x739   : > { %v8958_v36 = vadd.f32 %v8945_v11, %v8944_v37  ;;  %v10446_v37 = vld [vmem:[%s16306_s5 + $0x170] sm:$0xff]  ;;  %v10447_v11 = vld [vmem:[%s16306_s5 + $0x178] sm:$0xff] }
 0x73a   : > { %v16050_v15 = vmax.f32 %v8673_v49, 0.0  ;;  %v10459_v49 = vld [vmem:[%s16306_s5 + $0x1d8] sm:$0xff] }
 0x73b   : > { %v16044_v13 = vadd.f32 %v8958_v36, %v8946_v4  ;;  %v8828_v4 = vmul.f32 %v10446_v37, %v16046_v5  ;;  %v8882_v36 = vadd.f32 %v8868_v30, %v8867_v58 }
 0x73c   : > { %v8709_v38 = vmul.f32 %v8697_v14, %v16050_v15  ;;  %v8789_v34 = vmul.f32 %v10435_v44, %v16050_v15  ;;  %v8829_v9 = vmul.f32 %v10447_v11, %v16050_v15  ;;  %v8869_v1 = vmul.f32 %v10459_v49, %v16050_v15  ;;  %v10507_v14 = vld [vmem:[%s16306_s5 + $0x358] sm:$0xff] }
 0x73d   : > { %v9029_v54 = vmul.f32 %v10507_v14, %v16050_v15 }
 0x73e   : > { %v16099_v50 = vadd.f32 %v8802_v52, %v8789_v34  ;;  %v8883_v20 = vadd.f32 %v8882_v36, %v8869_v1  ;;  %v10514_v34 = vld [vmem:[%s16306_s5 + $0x390] sm:$0xff]  ;;  %v10516_v52 = vld [vmem:[%s16306_s5 + $0x3a0] sm:$0xff] }
 0x73f   : > { %8916 = vadd.xlane.f32.xlu1 %v15902_v63  ;;  %8720 = vadd.xlane.f32.xlu0 %v15904_v33  ;;  %v9025_v63 = vmul.f32 %v10503_v25, %v15728_v41  ;;  %v9026_v33 = vmul.f32 %v10504_v61, %v15871_v46  ;;  %v10469_v25 = vld [vmem:[%s16306_s5 + $0x228] sm:$0xff]  ;;  %v10470_v61 = vld [vmem:[%s16306_s5 + $0x230] sm:$0xff]  ;;  %v9064_v48 = vmul.f32 %v10514_v34, %v15780_v47 }
 0x740   : > { %8796 = vadd.xlane.f32.xlu2 %v15896_v28  ;;  %v8707_v28 = vmul.f32 %v8695_v7, %v16048_v19  ;;  %v10505_v7 = vld [vmem:[%s16306_s5 + $0x348] sm:$0xff] }
 0x741   : > { %v9038_v59 = vadd.f32 %v9025_v63, %v9024_v51  ;;  %v10471_v51 = vld [vmem:[%s16306_s5 + $0x238] sm:$0xff]  ;;  %v8908_v63 = vmul.f32 %v10470_v61, %v16046_v5 }
 0x742   : > { %v8722_v24 = vadd.f32 %v8708_v60, %v8707_v28  ;;  %v9027_v60 = vmul.f32 %v10505_v7, %v16048_v19 }
 0x743   : > { %v16095_v2 = vadd.f32 %v9038_v59, %v9026_v33  ;;  %v8909_v33 = vmul.f32 %v10471_v51, %v16050_v15 }
 0x744   : > { %v16097_v31 = vadd.f32 %v8722_v24, %v8709_v38  ;;  %v9028_v38 = vmul.f32 %v10506_v17, %v16046_v5  ;;  %v10515_v24 = vld [vmem:[%s16306_s5 + $0x398] sm:$0xff] }
 0x746   : > { %v9042_v59 = vadd.f32 %v9028_v38, %v9027_v60 }
 0x747   : > { %8956 = vadd.xlane.f32.xlu1 %v15948_v43  ;;  %8840 = vadd.xlane.f32.xlu0 %v15950_v22  ;;  %v8748_v43 = vmul.f32 %v10422_v62, %v16046_v5  ;;  %v8749_v22 = vmul.f32 %v10423_v0, %v16050_v15  ;;  %v10493_v62 = vld [vmem:[%s16306_s5 + $0x2e8] sm:$0xff]  ;;  %v10494_v0 = vld [vmem:[%s16306_s5 + $0x2f0] sm:$0xff] }
 0x748   : > { %9076 = vadd.xlane.f32.xlu2 %v15908_v35  ;;  %v8827_v35 = vmul.f32 %v10445_v40, %v16048_v19  ;;  %v9043_v23 = vadd.f32 %v9042_v59, %v9029_v54  ;;  %v8988_v47 = vmul.f32 %v10494_v0, %v16046_v5 }
 0x749   : > { %v8762_v42 = vadd.f32 %v8748_v43, %v8747_v29  ;;  %v10495_v29 = vld [vmem:[%s16306_s5 + $0x2f8] sm:$0xff]  ;;  %v10518_v43 = vld [vmem:[%s16306_s5 + $0x3b0] sm:$0xff] }
 0x74a   : > { %v8842_v16 = vadd.f32 %v8828_v4, %v8827_v35  ;;  %v9068_v11 = vmul.f32 %v10518_v43, %v16046_v5 }
 0x74b   : > { %v8763_v12 = vadd.f32 %v8762_v42, %v8749_v22  ;;  %v10519_v22 = vld [vmem:[%s16306_s5 + $0x3b8] sm:$0xff] }
 0x74c   : > { %v8843_v56 = vadd.f32 %v8842_v16, %v8829_v9  ;;  %v9069_v35 = vmul.f32 %v10519_v22, %v16050_v15 }
 0x74f   : > { %8996 = vadd.xlane.f32.xlu1 %v15946_v27  ;;  %8880 = vadd.xlane.f32.xlu0 %v15996_v57  ;;  %v8948_v27 = vmul.f32 %v10482_v18, %v16046_v5  ;;  %v8949_v57 = vmul.f32 %v10483_v55, %v16050_v15 }
 0x750   : > { %8760 = vadd.xlane.f32.xlu2 %v15991_v21  ;;  %v8907_v21 = vmul.f32 %v10469_v25, %v16048_v19 }
 0x751   : > { %v8962_v28 = vadd.f32 %v8948_v27, %v8947_v26 }
 0x752   : > { %v8922_v39 = vadd.f32 %v8908_v63, %v8907_v21 }
 0x753   : > { %v8963_v44 = vadd.f32 %v8962_v28, %v8949_v57 }
 0x754   : > { %v8923_v53 = vadd.f32 %v8922_v39, %v8909_v33 }
 0x757   : > { %8800 = vadd.xlane.f32.xlu1 %v15998_v10  ;;  %8920 = vadd.xlane.f32.xlu0 %v16052_v6  ;;  %v9065_v10 = vmul.f32 %v10515_v24, %v15728_v41  ;;  %v9066_v6 = vmul.f32 %v10516_v52, %v15871_v46  ;;  %v8989_v41 = vmul.f32 %v10495_v29, %v16050_v15  ;;  %v10517_v46 = vld [vmem:[%s16306_s5 + $0x3a8] sm:$0xff] }
 0x758   : > { %8960 = vadd.xlane.f32.xlu2 %v16044_v13  ;;  %v8987_v13 = vmul.f32 %v10493_v62, %v16048_v19  ;;  %v9067_v37 = vmul.f32 %v10517_v46, %v16048_v19 }
 0x759   : > { %v9078_v40 = vadd.f32 %v9065_v10, %v9064_v48 }
 0x75a   : > { %v9002_v4 = vadd.f32 %v8988_v47, %v8987_v13  ;;  %v9082_v32 = vadd.f32 %v9068_v11, %v9067_v37 }
 0x75b   : > { %v9079_v9 = vadd.f32 %v9078_v40, %v9066_v6 }
 0x75c   : > { %v9003_v8 = vadd.f32 %v9002_v4, %v8989_v41  ;;  %v9083_v49 = vadd.f32 %v9082_v32, %v9069_v35 }
 0x75f   : > { %9000 = vadd.xlane.f32.xlu1 %v16054_v45  ;;  %9040 = vadd.xlane.f32.xlu0 %v16095_v2 }
 0x760   : > { %8724 = vadd.xlane.f32.xlu2 %v16097_v31 }
 0x767   : > { %8804 = vadd.xlane.f32.xlu0 %v16099_v50  ;;  %8764 = vadd.xlane.f32.xlu1 %v8763_v12 }
 0x768   : > { %8844 = vadd.xlane.f32.xlu2 %v8843_v56 }
 0x76f   : > { %8884 = vadd.xlane.f32.xlu0 %v8883_v20  ;;  %8964 = vadd.xlane.f32.xlu1 %v8963_v44 }
 0x770   : > { %8924 = vadd.xlane.f32.xlu2 %v8923_v53 }
 0x777   : > { %9044 = vadd.xlane.f32.xlu0 %v9043_v23  ;;  %9080 = vadd.xlane.f32.xlu1 %v9079_v9 }
 0x778   : > { %9004 = vadd.xlane.f32.xlu2 %v9003_v8 }
 0x780   : > { %9084 = vadd.xlane.f32.xlu2 %v9083_v49 }
 0x78a   : > { %v8793_v5 = vpop.xlane.xlu0 %8792  ;;  %v8753_v19 = vpop.xlane.xlu1 %8752 }
 0x78b   : > { %v8713_v15 = vpop.xlane.xlu2 %8712 }
 0x78c   : > { %v9086_v45 = vsel %vm2491_vm6, %v8713_v15, %v8753_v19 }
 0x78d   : > { %v9090_v2 = vsel %vm2496_vm7, %v9086_v45, %v8793_v5 }
 0x792   : > { %v9073_v42 = vpop.xlane.xlu0 %9072  ;;  %v8873_v31 = vpop.xlane.xlu1 %8872 }
 0x793   : > { %v8833_v58 = vpop.xlane.xlu2 %8832 }
 0x794   : > { %v9094_v50 = vsel %vm2501_vm8, %v9090_v2, %v8833_v58 }
 0x795   : > { %v9098_v30 = vsel %vm2506_vm9, %v9094_v50, %v8873_v31 }
 0x79a   : > { %v9033_v1 = vpop.xlane.xlu1 %9032  ;;  %v8757_v16 = vpop.xlane.xlu0 %8756 }
 0x79b   : > { %v8913_v12 = vpop.xlane.xlu2 %8912 }
 0x79c   : > { %v9102_v36 = vsel %vm2511_vm10, %v9098_v30, %v8913_v12 }
 0x7a2   : > { %v8877_v56 = vpop.xlane.xlu0 %8876  ;;  %v8717_v20 = vpop.xlane.xlu1 %8716 }
 0x7a3   : > { %v8953_v3 = vpop.xlane.xlu2 %8952  ;;  %v9087_v63 = vsel %vm2491_vm6, %v8717_v20, %v8757_v16 }
 0x7a4   : > { %v9106_v18 = vsel %vm2516_vm11, %v9102_v36, %v8953_v3 }
 0x7aa   : > { %v9037_v55 = vpop.xlane.xlu0 %9036  ;;  %v8837_v26 = vpop.xlane.xlu1 %8836 }
 0x7ab   : > { %v8993_v27 = vpop.xlane.xlu2 %8992 }
 0x7ac   : > { %v9110_v57 = vsel %vm2521_vm12, %v9106_v18, %v8993_v27 }
 0x7ad   : > { %v9114_v25 = vsel %vm2526_vm13, %v9110_v57, %v9033_v1 }
 0x7ae   : > { %v9118_v61 = vsel %vm2531_vm14, %v9114_v25, %v9073_v42 }
 0x7af   : > { %v9122_v10 = vsel %vm2536_vm15, %v9118_v61, 0.0 }
 0x7b2   : > { %v8917_v51 = vpop.xlane.xlu1 %8916  ;;  %v8721_v21 = vpop.xlane.xlu0 %8720 }
 0x7b3   : > { %v8797_v33 = vpop.xlane.xlu2 %8796 }
 0x7b4   : > { %v9091_v7 = vsel %vm2496_vm7, %v9087_v63, %v8797_v33 }
 0x7b5   : > { %v9095_v17 = vsel %vm2501_vm8, %v9091_v7, %v8837_v26 }
 0x7b6   : > { %v9099_v14 = vsel %vm2506_vm9, %v9095_v17, %v8877_v56 }
 0x7b7   : > { %v9103_v54 = vsel %vm2511_vm10, %v9099_v14, %v8917_v51 }
 0x7ba   : > { %v8957_v28 = vpop.xlane.xlu1 %8956  ;;  %v8841_v60 = vpop.xlane.xlu0 %8840 }
 0x7bb   : > { %v9077_v38 = vpop.xlane.xlu2 %9076  ;;  %v9107_v39 = vsel %vm2516_vm11, %v9103_v54, %v8957_v28 }
 0x7c2   : > { %v8997_v44 = vpop.xlane.xlu1 %8996  ;;  %v8881_v59 = vpop.xlane.xlu0 %8880 }
 0x7c3   : > { %v9111_v53 = vsel %vm2521_vm12, %v9107_v39, %v8997_v44  ;;  %v8761_v23 = vpop.xlane.xlu2 %8760 }
 0x7c4   : > { %v9115_v34 = vsel %vm2526_vm13, %v9111_v53, %v9037_v55  ;;  %v9088_v43 = vsel %vm2491_vm6, %v8721_v21, %v8761_v23  ;;  %v10757_v21 = vld [vmem:[%s16307_s6] sm:$0x1] }
 0x7c5   : > { %v9119_v24 = vsel %vm2531_vm14, %v9115_v34, %v9077_v38 }
 0x7c6   : > { %v9123_v6 = vsel %vm2536_vm15, %v9119_v24, 0.0 }
 0x7c7   : > { %v9124_v0 = vadd.f32 %v9123_v6, %v9122_v10 }
 0x7ca   : > { %v8801_v52 = vpop.xlane.xlu1 %8800  ;;  %v8921_v48 = vpop.xlane.xlu0 %8920 }
 0x7cb   : > { %v8961_v62 = vpop.xlane.xlu2 %8960  ;;  %v9092_v40 = vsel %vm2496_vm7, %v9088_v43, %v8801_v52 }
 0x7cc   : > { %v9096_v37 = vsel %vm2501_vm8, %v9092_v40, %v8841_v60 }
 0x7cd   : > { %v9100_v4 = vsel %vm2506_vm9, %v9096_v37, %v8881_v59 }
 0x7ce   : > { %v9104_v8 = vsel %vm2511_vm10, %v9100_v4, %v8921_v48 }
 0x7cf   : > { %v9108_v19 = vsel %vm2516_vm11, %v9104_v8, %v8961_v62 }
 0x7d2   : > { %v9001_v29 = vpop.xlane.xlu1 %9000  ;;  %v9041_v13 = vpop.xlane.xlu0 %9040 }
 0x7d3   : > { %v8725_v47 = vpop.xlane.xlu2 %8724  ;;  %v9112_v45 = vsel %vm2521_vm12, %v9108_v19, %v9001_v29 }
 0x7d4   : > { %v9116_v58 = vsel %vm2526_vm13, %v9112_v45, %v9041_v13 }
 0x7da   : > { %v8765_v41 = vpop.xlane.xlu1 %8764  ;;  %v8805_v22 = vpop.xlane.xlu0 %8804 }
 0x7db   : > { %v8845_v46 = vpop.xlane.xlu2 %8844  ;;  %v9089_v11 = vsel %vm2491_vm6, %v8725_v47, %v8765_v41 }
 0x7dc   : > { %v9093_v32 = vsel %vm2496_vm7, %v9089_v11, %v8805_v22 }
 0x7dd   : > { %v9097_v5 = vsel %vm2501_vm8, %v9093_v32, %v8845_v46 }
 0x7e2   : > { %v8965_v35 = vpop.xlane.xlu1 %8964  ;;  %v8885_v49 = vpop.xlane.xlu0 %8884 }
 0x7e3   : > { %v8925_v9 = vpop.xlane.xlu2 %8924  ;;  %v9101_v15 = vsel %vm2506_vm9, %v9097_v5, %v8885_v49 }
 0x7e4   : > { %v9105_v31 = vsel %vm2511_vm10, %v9101_v15, %v8925_v9 }
 0x7e5   : > { %v9109_v30 = vsel %vm2516_vm11, %v9105_v31, %v8965_v35 }
 0x7ea   : > { %v9081_v2 = vpop.xlane.xlu1 %9080  ;;  %v9045_v1 = vpop.xlane.xlu0 %9044 }
 0x7eb   : > { %v9005_v42 = vpop.xlane.xlu2 %9004  ;;  %v9120_v50 = vsel %vm2531_vm14, %v9116_v58, %v9081_v2 }
 0x7ec   : > { %v9113_v16 = vsel %vm2521_vm12, %v9109_v30, %v9005_v42  ;;  %v9125_v12 = vsel %vm2536_vm15, %v9120_v50, 0.0 }
 0x7ed   : > { %v9117_v36 = vsel %vm2526_vm13, %v9113_v16, %v9045_v1  ;;  %v9126_v20 = vadd.f32 %v9125_v12, %v9124_v0 }
 0x7f3   : > { %v9085_v56 = vpop.xlane.xlu2 %9084 }
 0x7f4   : > { %v9121_v3 = vsel %vm2531_vm14, %v9117_v36, %v9085_v56 }
 0x7f5   : > { %v9127_v18 = vsel %vm2536_vm15, %v9121_v3, 0.0 }
 0x7f6   : > { %v9128_v55 = vadd.f32 %v9127_v18, %v9126_v20 }
 0x7f8   : > { %v9129_v26 = vrot.slane %v9128_v55, 4 }
 0x7fa   : > { %v9130_v27 = vadd.f32 %v9129_v26, %v9128_v55 }
 0x7fc   : > { %v9131_v57 = vrot.slane %v9130_v27, 2 }
 0x7fe   : > { %v9132_v25 = vadd.f32 %v9131_v57, %v9130_v27 }
 0x800   : > { %v9133_v61 = vrot.slane %v9132_v25, 1 }
 0x802   : > { %v9134_v51 = vadd.f32 %v9133_v61, %v9132_v25 }
 0x804   : > { %v9135_v63 = vadd.f32 %v10757_v21, %v9134_v51 }
 0x806   : > { %10520 = vst.msk [vmem:[%s14467_s20 + $0x3] sm:$0x1] %vm2551_vm0, %v9135_v63 }
 0x807   : > { %10785 = shalt.err (!%p10782_p3)
}
 0x808   : > { %s10826_s18 = smov 16   ;;  %s10827_s20 = smov 1  }
 0x809   : > { %10526 = dma.vmem_to_hbm [thread:$0]  (%p10903_p5), %s9151_s8, 64, %s9153_s28, %s9139_s9, %s10826_s18, %s10826_s18, %s10827_s20  }
 0x80a PF: > { %p10532_p4 = scmp.ge.s32.totalorder %s10820_s27, 2  ;;  %s9167_s22 = sand.u32 1, %s10808_s24  }
 0x80b   : > { %s9168_s23 = scalar_lea.sflag [#allocation3], %s9167_s22 }
 0x80c   : > { %p10529_p7 = pnand %p10532_p4, %p10907_p6 }
 0x80e   : > { %p10530_p8 = pneg %p10529_p7 }
 0x810   : > { %10803 = dma.done.wait (%p10530_p8), %s9168_s23, 64  }
 0x811   : > { %10805 = vsyncadd (%p10530_p8), %s9168_s23, 4294967232  ;;  %p17_p9 = scmp.ge.s32.totalorder %s10891_s30, 4   ;;  %s16580_s24 = smov %s10812_s25 }
 0x812   : > { %s16581_s25 = smov %s10816_s26  ;;  %s16582_s26 = smov %s10901_s10 }
 0x813   : > { %s16583_s27 = smov %s10891_s30  ;;  %19 = sbr.rel (!%p17_p9) target bundleno = 3 (0x3), region = 98 }
 0x818   :  { %9174 = vsyncpa [#allocation3], 1 }
 0x819   :  { %9176 = vsyncpa [#allocation3 + $0x1], 1 }

</bundles_post_ra>
